<compile_context>
chip_gen: v6e
topology: v6e:2x2x1
jax: 0.10.0
libtpu: 0.0.40
codegen_flags: <defaults>
</compile_context>

<pallas_src>
import functools

import jax
import jax.numpy as jnp
import numpy as np
from jax.experimental import pallas as pl
from jax.experimental.pallas import tpu as pltpu

KTYPES = ["h", "l"]
ROTS = [0, 1, 2, 3]
# (dy, dx) offsets of the a/b/c taps for each kernel type (same as the PyTorch slices).
SHIFTS = {
    "h": ((0, 0), (0, 1), (0, 2)),
    "l": ((0, 0), (0, 1), (1, 1)),
}
AVG_FACTOR = 2.0


def _replicate_pad(x):
    # F.pad(x, (0, 2, 0, 2), mode='replicate') on NCHW: +2 rows bottom, +2 cols right.
    return jnp.pad(x, ((0, 0), (0, 0), (0, 2), (0, 2)), mode="edge")


# ----------------------------- Pallas kernel ---------------------------------
def hl_lut_kernel(idx_ref, tab_ref, out_ref, *, n_tables, L, up2, inv_avg):
    """Factored LUT gather, lane-dense over pixels.

    idx_ref : (n_tables, tile)        int32   packed (a << 16) | (b*L + c) per pixel
    tab_ref : (n_tables, up2*L, L^2)  float32 LUTs, rows = (u, a), cols = bc
    out_ref : (up2, tile)             float32 averaged result (pixels on lanes)
    """
    l2 = L * L
    tile = out_ref.shape[-1]
    iota_bc = jax.lax.broadcasted_iota(jnp.int32, (l2, tile), 0)   # (L^2, tile)
    iota_a = jax.lax.broadcasted_iota(jnp.int32, (L, tile), 0)     # (L,   tile)

    acc = [jnp.zeros((1, tile), jnp.float32) for _ in range(up2)]
    for t in range(n_tables):
        packed = idx_ref[t:t + 1, :]                     # (1, tile) int32
        a_dig = packed >> 16                             # a tap value  in [0, L)
        bc_dig = packed & 0xFFFF                         # b*L + c      in [0, L^2)

        # Small one-hots (L and L^2 wide instead of a single L^3-wide one).
        oh_bc = (iota_bc == bc_dig).astype(jnp.float32)  # (L^2, tile)
        oh_a = (iota_a == a_dig).astype(jnp.float32)     # (L,   tile)

        # MXU: gather over the bc digit -> rows (u, a), pixels stay on lanes.
        m = jnp.dot(tab_ref[t], oh_bc,
                    preferred_element_type=jnp.float32)  # (up2*L, tile)

        # VPU: select the a digit and reduce over L sublanes, per sub-pixel u.
        for u in range(up2):
            mu = m[u * L:(u + 1) * L, :]                 # (L, tile) static slice
            acc[u] = acc[u] + jnp.sum(mu * oh_a, axis=0, keepdims=True)

    for u in range(up2):
        out_ref[u:u + 1, :] = acc[u] * inv_avg           # / avg_factor


# ------------------------------- wrapper --------------------------------------
def hl_lut_forward(img_lr, h_weight, l_weight, L, upscale=2, pixel_tile=1024):
    # NOTE: packing requires L <= 256 (a in high 16 bits, b*L + c in low 16 bits).
    B, C, H, W = img_lr.shape
    n_pix = B * C * H * W
    n_tables = len(KTYPES) * len(ROTS)     # 8
    l2 = L * L
    l3 = L ** 3
    up2 = upscale * upscale
    weights = {"h": h_weight, "l": l_weight}

    # -- glue: packed (a, bc) digits per pixel for each (ktype, rotation), aligned
    #    back to the un-rotated output grid (inverse-rotate the index map).
    idx_rows = []
    for k in KTYPES:
        for r in ROTS:
            xr = jnp.rot90(img_lr, r, axes=(2, 3))
            Hr, Wr = xr.shape[2], xr.shape[3]
            xp = jnp.clip(_replicate_pad(xr).astype(jnp.int32), 0, L - 1)
            (ay, ax), (by, bx), (cy, cx) = SHIFTS[k]
            a = xp[:, :, ay:ay + Hr, ax:ax + Wr]
            b = xp[:, :, by:by + Hr, bx:bx + Wr]
            c = xp[:, :, cy:cy + Hr, cx:cx + Wr]
            packed = a * 65536 + (b * L + c)
            packed = jnp.rot90(packed, (4 - r) % 4, axes=(2, 3))  # back to (B,C,H,W)
            idx_rows.append(packed.reshape(-1))
    idx_all = jnp.stack(idx_rows, axis=0).astype(jnp.int32)       # (8, n_pix)

    # Pad the pixel axis to a tile multiple (padded pixels are trimmed afterwards).
    n_pad = pl.cdiv(n_pix, pixel_tile) * pixel_tile
    if n_pad != n_pix:
        idx_all = jnp.pad(idx_all, ((0, 0), (0, n_pad - n_pix)))

    # -- glue: the inverse spatial rotation also rotates each up x up sub-block;
    #    bake that into per-rotation LUT copies, stored lane-dense as (u, a) x bc.
    tabs = []
    for k in KTYPES:
        w = weights[k].astype(jnp.float32).reshape(l3, upscale, upscale)
        for r in ROTS:
            wr = jnp.rot90(w, (4 - r) % 4, axes=(1, 2)).reshape(l3, up2)  # (L^3, up2)
            wr = wr.reshape(L, l2, up2).transpose(2, 0, 1)                # (u, a, bc)
            tabs.append(wr.reshape(up2 * L, l2))
    tab_all = jnp.stack(tabs, axis=0)                                     # (8, up2*L, L^2)

    grid = (n_pad // pixel_tile,)
    kernel = functools.partial(hl_lut_kernel, n_tables=n_tables, L=L, up2=up2,
                               inv_avg=1.0 / AVG_FACTOR)

    out_t = pl.pallas_call(
        kernel,
        out_shape=jax.ShapeDtypeStruct((up2, n_pad), jnp.float32),
        grid_spec=pltpu.PrefetchScalarGridSpec(
            num_scalar_prefetch=0,
            grid=grid,
            in_specs=[
                pl.BlockSpec((n_tables, pixel_tile), lambda i: (0, i)),
                pl.BlockSpec((n_tables, up2 * L, l2), lambda i: (0, 0, 0)),
            ],
            out_specs=pl.BlockSpec((up2, pixel_tile), lambda i: (0, i)),
        ),
        compiler_params=pltpu.CompilerParams(
            dimension_semantics=("parallel",)),
    )(idx_all, tab_all)

    # -- glue: trim padding and pixel-shuffle (up,up,B,C,H,W) -> (B,C,H*up,W*up)
    out = out_t[:, :n_pix].reshape(upscale, upscale, B, C, H, W)
    out = out.transpose(2, 3, 4, 0, 5, 1).reshape(B, C, H * upscale, W * upscale)
    return out


# ------------------------- pure-JAX reference ---------------------------------
def hl_lut_reference(img_lr, h_weight, l_weight, L, upscale=2):
    weights = {"h": h_weight, "l": l_weight}
    B, C, H, W = img_lr.shape
    out = jnp.zeros((B, C, H * upscale, W * upscale), jnp.float32)
    for k in KTYPES:
        for r in ROTS:
            xr = jnp.rot90(img_lr, r, axes=(2, 3))
            Bx, Cx, Hr, Wr = xr.shape
            xp = _replicate_pad(xr).astype(jnp.int32)
            (ay, ax), (by, bx), (cy, cx) = SHIFTS[k]
            a = xp[:, :, ay:ay + Hr, ax:ax + Wr]
            b = xp[:, :, by:by + Hr, bx:bx + Wr]
            c = xp[:, :, cy:cy + Hr, cx:cx + Wr]
            idx = (a * (L * L) + b * L + c).reshape(-1)
            tmp = weights[k].astype(jnp.float32)[idx]
            tmp = tmp.reshape(Bx, Cx, Hr, Wr, upscale, upscale)
            tmp = tmp.transpose(0, 1, 2, 4, 3, 5).reshape(Bx, Cx, Hr * upscale, Wr * upscale)
            tmp = jnp.rot90(tmp, (4 - r) % 4, axes=(2, 3))
            out = out + tmp
    return out / AVG_FACTOR


if __name__ == "__main__":
    L = 8            # LUT resolution -> tables of shape (L^3, upscale^2)
    upscale = 2
    B, C, H, W = 2, 4, 16, 16

    key = jax.random.PRNGKey(0)
    k_img, k_h, k_l = jax.random.split(key, 3)

    # Quantized low-res input: integer values in [0, L), stored as float (as the
    # PyTorch module expects before its .type(torch.int64) cast).
    img_lr = jax.random.randint(k_img, (B, C, H, W), 0, L).astype(jnp.float32)

    h_weight = jax.random.normal(k_h, (L ** 3, upscale * upscale), jnp.float32)
    l_weight = jax.random.normal(k_l, (L ** 3, upscale * upscale), jnp.float32)

    out = hl_lut_forward(img_lr, h_weight, l_weight, L, upscale)
    out = jax.block_until_ready(out)

    ref = hl_lut_reference(img_lr, h_weight, l_weight, L, upscale)
    np.testing.assert_allclose(np.asarray(out), np.asarray(ref),
                               rtol=1e-5, atol=1e-5)
    print("KERNEL_OK")
</pallas_src>

<mosaic_0001>
module attributes {stable_mosaic.version = 11 : i64} {
  func.func @hl_lut_kernel(%arg0: i32, %arg1: memref<8x1024xi32, #tpu.memory_space<vmem>>, %arg2: memref<8x32x64xf32, #tpu.memory_space<vmem>>, %arg3: memref<4x1024xf32, #tpu.memory_space<vmem>>) attributes {dimension_semantics = [#tpu.dimension_semantics<parallel>], iteration_bounds = array<i64: 2>, scalar_prefetch = 0 : i64, scratch_operands = 0 : i64, tpu.core_type = #tpu.core_type<tc>, window_params = [{transform_indices = @transform_0, window_bounds = array<i64: 8, 1024>}, {pipeline_mode = #tpu.pipeline_mode<synchronous>, transform_indices = @transform_1, window_bounds = array<i64: 8, 32, 64>}, {transform_indices = @transform_2, window_bounds = array<i64: 4, 1024>}]} {
    %0 = tpu.iota {dimensions = array<i32: 0>} : vector<64x1024xi32>
    %1 = tpu.iota {dimensions = array<i32: 0>} : vector<8x1024xi32>
    %cst = arith.constant 0.000000e+00 : f32
    %2 = vector.broadcast %cst : f32 to vector<1x1024xf32>
    %cst_0 = arith.constant 0.000000e+00 : f32
    %3 = vector.broadcast %cst_0 : f32 to vector<1x1024xf32>
    %cst_1 = arith.constant 0.000000e+00 : f32
    %4 = vector.broadcast %cst_1 : f32 to vector<1x1024xf32>
    %cst_2 = arith.constant 0.000000e+00 : f32
    %5 = vector.broadcast %cst_2 : f32 to vector<1x1024xf32>
    %c0 = arith.constant 0 : index
    %c0_3 = arith.constant 0 : index
    %6 = vector.load %arg1[%c0, %c0_3] : memref<8x1024xi32, #tpu.memory_space<vmem>>, vector<1x1024xi32>
    %c16_i32 = arith.constant 16 : i32
    %7 = vector.broadcast %c16_i32 : i32 to vector<1x1024xi32>
    %8 = arith.shrsi %6, %7 : vector<1x1024xi32>
    %c65535_i32 = arith.constant 65535 : i32
    %9 = vector.broadcast %c65535_i32 : i32 to vector<1x1024xi32>
    %10 = arith.andi %6, %9 : vector<1x1024xi32>
    %11 = vector.broadcast %10 : vector<1x1024xi32> to vector<64x1024xi32>
    %12 = arith.cmpi eq, %0, %11 : vector<64x1024xi32>
    %13 = arith.extui %12 : vector<64x1024xi1> to vector<64x1024xi32>
    %14 = arith.sitofp %13 : vector<64x1024xi32> to vector<64x1024xf32>
    %15 = vector.broadcast %8 : vector<1x1024xi32> to vector<8x1024xi32>
    %16 = arith.cmpi eq, %1, %15 : vector<8x1024xi32>
    %17 = arith.extui %16 : vector<8x1024xi1> to vector<8x1024xi32>
    %18 = arith.sitofp %17 : vector<8x1024xi32> to vector<8x1024xf32>
    %c0_4 = arith.constant 0 : index
    %c0_5 = arith.constant 0 : index
    %c0_6 = arith.constant 0 : index
    %19 = vector.load %arg2[%c0_4, %c0_5, %c0_6] : memref<8x32x64xf32, #tpu.memory_space<vmem>>, vector<1x32x64xf32>
    %20 = vector.shape_cast %19 : vector<1x32x64xf32> to vector<32x64xf32>
    %cst_7 = arith.constant dense<0.000000e+00> : vector<32x1024xf32>
    %21 = tpu.matmul %20, %14, %cst_7 {dimension_numbers = #tpu.dot_dimension_numbers<[1], [0], [0], [1], [0, 0, 1, 1], [], []>} : vector<32x64xf32>, vector<64x1024xf32>, vector<32x1024xf32> -> vector<32x1024xf32>
    %22 = vector.extract_strided_slice %21 {offsets = [0, 0], sizes = [8, 1024], strides = [1, 1]} : vector<32x1024xf32> to vector<8x1024xf32>
    %23 = arith.mulf %22, %18 : vector<8x1024xf32>
    %cst_8 = arith.constant dense<0.000000e+00> : vector<1024xf32>
    %24 = vector.multi_reduction <add>, %23, %cst_8 [0] : vector<8x1024xf32> to vector<1024xf32>
    %25 = vector.shape_cast %24 : vector<1024xf32> to vector<1x1024xf32>
    %26 = arith.addf %2, %25 : vector<1x1024xf32>
    %27 = vector.extract_strided_slice %21 {offsets = [8, 0], sizes = [8, 1024], strides = [1, 1]} : vector<32x1024xf32> to vector<8x1024xf32>
    %28 = arith.mulf %27, %18 : vector<8x1024xf32>
    %cst_9 = arith.constant dense<0.000000e+00> : vector<1024xf32>
    %29 = vector.multi_reduction <add>, %28, %cst_9 [0] : vector<8x1024xf32> to vector<1024xf32>
    %30 = vector.shape_cast %29 : vector<1024xf32> to vector<1x1024xf32>
    %31 = arith.addf %3, %30 : vector<1x1024xf32>
    %32 = vector.extract_strided_slice %21 {offsets = [16, 0], sizes = [8, 1024], strides = [1, 1]} : vector<32x1024xf32> to vector<8x1024xf32>
    %33 = arith.mulf %32, %18 : vector<8x1024xf32>
    %cst_10 = arith.constant dense<0.000000e+00> : vector<1024xf32>
    %34 = vector.multi_reduction <add>, %33, %cst_10 [0] : vector<8x1024xf32> to vector<1024xf32>
    %35 = vector.shape_cast %34 : vector<1024xf32> to vector<1x1024xf32>
    %36 = arith.addf %4, %35 : vector<1x1024xf32>
    %37 = vector.extract_strided_slice %21 {offsets = [24, 0], sizes = [8, 1024], strides = [1, 1]} : vector<32x1024xf32> to vector<8x1024xf32>
    %38 = arith.mulf %37, %18 : vector<8x1024xf32>
    %cst_11 = arith.constant dense<0.000000e+00> : vector<1024xf32>
    %39 = vector.multi_reduction <add>, %38, %cst_11 [0] : vector<8x1024xf32> to vector<1024xf32>
    %40 = vector.shape_cast %39 : vector<1024xf32> to vector<1x1024xf32>
    %41 = arith.addf %5, %40 : vector<1x1024xf32>
    %c1 = arith.constant 1 : index
    %c0_12 = arith.constant 0 : index
    %42 = vector.load %arg1[%c1, %c0_12] : memref<8x1024xi32, #tpu.memory_space<vmem>>, vector<1x1024xi32>
    %c16_i32_13 = arith.constant 16 : i32
    %43 = vector.broadcast %c16_i32_13 : i32 to vector<1x1024xi32>
    %44 = arith.shrsi %42, %43 : vector<1x1024xi32>
    %c65535_i32_14 = arith.constant 65535 : i32
    %45 = vector.broadcast %c65535_i32_14 : i32 to vector<1x1024xi32>
    %46 = arith.andi %42, %45 : vector<1x1024xi32>
    %47 = vector.broadcast %46 : vector<1x1024xi32> to vector<64x1024xi32>
    %48 = arith.cmpi eq, %0, %47 : vector<64x1024xi32>
    %49 = arith.extui %48 : vector<64x1024xi1> to vector<64x1024xi32>
    %50 = arith.sitofp %49 : vector<64x1024xi32> to vector<64x1024xf32>
    %51 = vector.broadcast %44 : vector<1x1024xi32> to vector<8x1024xi32>
    %52 = arith.cmpi eq, %1, %51 : vector<8x1024xi32>
    %53 = arith.extui %52 : vector<8x1024xi1> to vector<8x1024xi32>
    %54 = arith.sitofp %53 : vector<8x1024xi32> to vector<8x1024xf32>
    %c1_15 = arith.constant 1 : index
    %c0_16 = arith.constant 0 : index
    %c0_17 = arith.constant 0 : index
    %55 = vector.load %arg2[%c1_15, %c0_16, %c0_17] : memref<8x32x64xf32, #tpu.memory_space<vmem>>, vector<1x32x64xf32>
    %56 = vector.shape_cast %55 : vector<1x32x64xf32> to vector<32x64xf32>
    %cst_18 = arith.constant dense<0.000000e+00> : vector<32x1024xf32>
    %57 = tpu.matmul %56, %50, %cst_18 {dimension_numbers = #tpu.dot_dimension_numbers<[1], [0], [0], [1], [0, 0, 1, 1], [], []>} : vector<32x64xf32>, vector<64x1024xf32>, vector<32x1024xf32> -> vector<32x1024xf32>
    %58 = vector.extract_strided_slice %57 {offsets = [0, 0], sizes = [8, 1024], strides = [1, 1]} : vector<32x1024xf32> to vector<8x1024xf32>
    %59 = arith.mulf %58, %54 : vector<8x1024xf32>
    %cst_19 = arith.constant dense<0.000000e+00> : vector<1024xf32>
    %60 = vector.multi_reduction <add>, %59, %cst_19 [0] : vector<8x1024xf32> to vector<1024xf32>
    %61 = vector.shape_cast %60 : vector<1024xf32> to vector<1x1024xf32>
    %62 = arith.addf %26, %61 : vector<1x1024xf32>
    %63 = vector.extract_strided_slice %57 {offsets = [8, 0], sizes = [8, 1024], strides = [1, 1]} : vector<32x1024xf32> to vector<8x1024xf32>
    %64 = arith.mulf %63, %54 : vector<8x1024xf32>
    %cst_20 = arith.constant dense<0.000000e+00> : vector<1024xf32>
    %65 = vector.multi_reduction <add>, %64, %cst_20 [0] : vector<8x1024xf32> to vector<1024xf32>
    %66 = vector.shape_cast %65 : vector<1024xf32> to vector<1x1024xf32>
    %67 = arith.addf %31, %66 : vector<1x1024xf32>
    %68 = vector.extract_strided_slice %57 {offsets = [16, 0], sizes = [8, 1024], strides = [1, 1]} : vector<32x1024xf32> to vector<8x1024xf32>
    %69 = arith.mulf %68, %54 : vector<8x1024xf32>
    %cst_21 = arith.constant dense<0.000000e+00> : vector<1024xf32>
    %70 = vector.multi_reduction <add>, %69, %cst_21 [0] : vector<8x1024xf32> to vector<1024xf32>
    %71 = vector.shape_cast %70 : vector<1024xf32> to vector<1x1024xf32>
    %72 = arith.addf %36, %71 : vector<1x1024xf32>
    %73 = vector.extract_strided_slice %57 {offsets = [24, 0], sizes = [8, 1024], strides = [1, 1]} : vector<32x1024xf32> to vector<8x1024xf32>
    %74 = arith.mulf %73, %54 : vector<8x1024xf32>
    %cst_22 = arith.constant dense<0.000000e+00> : vector<1024xf32>
    %75 = vector.multi_reduction <add>, %74, %cst_22 [0] : vector<8x1024xf32> to vector<1024xf32>
    %76 = vector.shape_cast %75 : vector<1024xf32> to vector<1x1024xf32>
    %77 = arith.addf %41, %76 : vector<1x1024xf32>
    %c2 = arith.constant 2 : index
    %c0_23 = arith.constant 0 : index
    %78 = vector.load %arg1[%c2, %c0_23] : memref<8x1024xi32, #tpu.memory_space<vmem>>, vector<1x1024xi32>
    %c16_i32_24 = arith.constant 16 : i32
    %79 = vector.broadcast %c16_i32_24 : i32 to vector<1x1024xi32>
    %80 = arith.shrsi %78, %79 : vector<1x1024xi32>
    %c65535_i32_25 = arith.constant 65535 : i32
    %81 = vector.broadcast %c65535_i32_25 : i32 to vector<1x1024xi32>
    %82 = arith.andi %78, %81 : vector<1x1024xi32>
    %83 = vector.broadcast %82 : vector<1x1024xi32> to vector<64x1024xi32>
    %84 = arith.cmpi eq, %0, %83 : vector<64x1024xi32>
    %85 = arith.extui %84 : vector<64x1024xi1> to vector<64x1024xi32>
    %86 = arith.sitofp %85 : vector<64x1024xi32> to vector<64x1024xf32>
    %87 = vector.broadcast %80 : vector<1x1024xi32> to vector<8x1024xi32>
    %88 = arith.cmpi eq, %1, %87 : vector<8x1024xi32>
    %89 = arith.extui %88 : vector<8x1024xi1> to vector<8x1024xi32>
    %90 = arith.sitofp %89 : vector<8x1024xi32> to vector<8x1024xf32>
    %c2_26 = arith.constant 2 : index
    %c0_27 = arith.constant 0 : index
    %c0_28 = arith.constant 0 : index
    %91 = vector.load %arg2[%c2_26, %c0_27, %c0_28] : memref<8x32x64xf32, #tpu.memory_space<vmem>>, vector<1x32x64xf32>
    %92 = vector.shape_cast %91 : vector<1x32x64xf32> to vector<32x64xf32>
    %cst_29 = arith.constant dense<0.000000e+00> : vector<32x1024xf32>
    %93 = tpu.matmul %92, %86, %cst_29 {dimension_numbers = #tpu.dot_dimension_numbers<[1], [0], [0], [1], [0, 0, 1, 1], [], []>} : vector<32x64xf32>, vector<64x1024xf32>, vector<32x1024xf32> -> vector<32x1024xf32>
    %94 = vector.extract_strided_slice %93 {offsets = [0, 0], sizes = [8, 1024], strides = [1, 1]} : vector<32x1024xf32> to vector<8x1024xf32>
    %95 = arith.mulf %94, %90 : vector<8x1024xf32>
    %cst_30 = arith.constant dense<0.000000e+00> : vector<1024xf32>
    %96 = vector.multi_reduction <add>, %95, %cst_30 [0] : vector<8x1024xf32> to vector<1024xf32>
    %97 = vector.shape_cast %96 : vector<1024xf32> to vector<1x1024xf32>
    %98 = arith.addf %62, %97 : vector<1x1024xf32>
    %99 = vector.extract_strided_slice %93 {offsets = [8, 0], sizes = [8, 1024], strides = [1, 1]} : vector<32x1024xf32> to vector<8x1024xf32>
    %100 = arith.mulf %99, %90 : vector<8x1024xf32>
    %cst_31 = arith.constant dense<0.000000e+00> : vector<1024xf32>
    %101 = vector.multi_reduction <add>, %100, %cst_31 [0] : vector<8x1024xf32> to vector<1024xf32>
    %102 = vector.shape_cast %101 : vector<1024xf32> to vector<1x1024xf32>
    %103 = arith.addf %67, %102 : vector<1x1024xf32>
    %104 = vector.extract_strided_slice %93 {offsets = [16, 0], sizes = [8, 1024], strides = [1, 1]} : vector<32x1024xf32> to vector<8x1024xf32>
    %105 = arith.mulf %104, %90 : vector<8x1024xf32>
    %cst_32 = arith.constant dense<0.000000e+00> : vector<1024xf32>
    %106 = vector.multi_reduction <add>, %105, %cst_32 [0] : vector<8x1024xf32> to vector<1024xf32>
    %107 = vector.shape_cast %106 : vector<1024xf32> to vector<1x1024xf32>
    %108 = arith.addf %72, %107 : vector<1x1024xf32>
    %109 = vector.extract_strided_slice %93 {offsets = [24, 0], sizes = [8, 1024], strides = [1, 1]} : vector<32x1024xf32> to vector<8x1024xf32>
    %110 = arith.mulf %109, %90 : vector<8x1024xf32>
    %cst_33 = arith.constant dense<0.000000e+00> : vector<1024xf32>
    %111 = vector.multi_reduction <add>, %110, %cst_33 [0] : vector<8x1024xf32> to vector<1024xf32>
    %112 = vector.shape_cast %111 : vector<1024xf32> to vector<1x1024xf32>
    %113 = arith.addf %77, %112 : vector<1x1024xf32>
    %c3 = arith.constant 3 : index
    %c0_34 = arith.constant 0 : index
    %114 = vector.load %arg1[%c3, %c0_34] : memref<8x1024xi32, #tpu.memory_space<vmem>>, vector<1x1024xi32>
    %c16_i32_35 = arith.constant 16 : i32
    %115 = vector.broadcast %c16_i32_35 : i32 to vector<1x1024xi32>
    %116 = arith.shrsi %114, %115 : vector<1x1024xi32>
    %c65535_i32_36 = arith.constant 65535 : i32
    %117 = vector.broadcast %c65535_i32_36 : i32 to vector<1x1024xi32>
    %118 = arith.andi %114, %117 : vector<1x1024xi32>
    %119 = vector.broadcast %118 : vector<1x1024xi32> to vector<64x1024xi32>
    %120 = arith.cmpi eq, %0, %119 : vector<64x1024xi32>
    %121 = arith.extui %120 : vector<64x1024xi1> to vector<64x1024xi32>
    %122 = arith.sitofp %121 : vector<64x1024xi32> to vector<64x1024xf32>
    %123 = vector.broadcast %116 : vector<1x1024xi32> to vector<8x1024xi32>
    %124 = arith.cmpi eq, %1, %123 : vector<8x1024xi32>
    %125 = arith.extui %124 : vector<8x1024xi1> to vector<8x1024xi32>
    %126 = arith.sitofp %125 : vector<8x1024xi32> to vector<8x1024xf32>
    %c3_37 = arith.constant 3 : index
    %c0_38 = arith.constant 0 : index
    %c0_39 = arith.constant 0 : index
    %127 = vector.load %arg2[%c3_37, %c0_38, %c0_39] : memref<8x32x64xf32, #tpu.memory_space<vmem>>, vector<1x32x64xf32>
    %128 = vector.shape_cast %127 : vector<1x32x64xf32> to vector<32x64xf32>
    %cst_40 = arith.constant dense<0.000000e+00> : vector<32x1024xf32>
    %129 = tpu.matmul %128, %122, %cst_40 {dimension_numbers = #tpu.dot_dimension_numbers<[1], [0], [0], [1], [0, 0, 1, 1], [], []>} : vector<32x64xf32>, vector<64x1024xf32>, vector<32x1024xf32> -> vector<32x1024xf32>
    %130 = vector.extract_strided_slice %129 {offsets = [0, 0], sizes = [8, 1024], strides = [1, 1]} : vector<32x1024xf32> to vector<8x1024xf32>
    %131 = arith.mulf %130, %126 : vector<8x1024xf32>
    %cst_41 = arith.constant dense<0.000000e+00> : vector<1024xf32>
    %132 = vector.multi_reduction <add>, %131, %cst_41 [0] : vector<8x1024xf32> to vector<1024xf32>
    %133 = vector.shape_cast %132 : vector<1024xf32> to vector<1x1024xf32>
    %134 = arith.addf %98, %133 : vector<1x1024xf32>
    %135 = vector.extract_strided_slice %129 {offsets = [8, 0], sizes = [8, 1024], strides = [1, 1]} : vector<32x1024xf32> to vector<8x1024xf32>
    %136 = arith.mulf %135, %126 : vector<8x1024xf32>
    %cst_42 = arith.constant dense<0.000000e+00> : vector<1024xf32>
    %137 = vector.multi_reduction <add>, %136, %cst_42 [0] : vector<8x1024xf32> to vector<1024xf32>
    %138 = vector.shape_cast %137 : vector<1024xf32> to vector<1x1024xf32>
    %139 = arith.addf %103, %138 : vector<1x1024xf32>
    %140 = vector.extract_strided_slice %129 {offsets = [16, 0], sizes = [8, 1024], strides = [1, 1]} : vector<32x1024xf32> to vector<8x1024xf32>
    %141 = arith.mulf %140, %126 : vector<8x1024xf32>
    %cst_43 = arith.constant dense<0.000000e+00> : vector<1024xf32>
    %142 = vector.multi_reduction <add>, %141, %cst_43 [0] : vector<8x1024xf32> to vector<1024xf32>
    %143 = vector.shape_cast %142 : vector<1024xf32> to vector<1x1024xf32>
    %144 = arith.addf %108, %143 : vector<1x1024xf32>
    %145 = vector.extract_strided_slice %129 {offsets = [24, 0], sizes = [8, 1024], strides = [1, 1]} : vector<32x1024xf32> to vector<8x1024xf32>
    %146 = arith.mulf %145, %126 : vector<8x1024xf32>
    %cst_44 = arith.constant dense<0.000000e+00> : vector<1024xf32>
    %147 = vector.multi_reduction <add>, %146, %cst_44 [0] : vector<8x1024xf32> to vector<1024xf32>
    %148 = vector.shape_cast %147 : vector<1024xf32> to vector<1x1024xf32>
    %149 = arith.addf %113, %148 : vector<1x1024xf32>
    %c4 = arith.constant 4 : index
    %c0_45 = arith.constant 0 : index
    %150 = vector.load %arg1[%c4, %c0_45] : memref<8x1024xi32, #tpu.memory_space<vmem>>, vector<1x1024xi32>
    %c16_i32_46 = arith.constant 16 : i32
    %151 = vector.broadcast %c16_i32_46 : i32 to vector<1x1024xi32>
    %152 = arith.shrsi %150, %151 : vector<1x1024xi32>
    %c65535_i32_47 = arith.constant 65535 : i32
    %153 = vector.broadcast %c65535_i32_47 : i32 to vector<1x1024xi32>
    %154 = arith.andi %150, %153 : vector<1x1024xi32>
    %155 = vector.broadcast %154 : vector<1x1024xi32> to vector<64x1024xi32>
    %156 = arith.cmpi eq, %0, %155 : vector<64x1024xi32>
    %157 = arith.extui %156 : vector<64x1024xi1> to vector<64x1024xi32>
    %158 = arith.sitofp %157 : vector<64x1024xi32> to vector<64x1024xf32>
    %159 = vector.broadcast %152 : vector<1x1024xi32> to vector<8x1024xi32>
    %160 = arith.cmpi eq, %1, %159 : vector<8x1024xi32>
    %161 = arith.extui %160 : vector<8x1024xi1> to vector<8x1024xi32>
    %162 = arith.sitofp %161 : vector<8x1024xi32> to vector<8x1024xf32>
    %c4_48 = arith.constant 4 : index
    %c0_49 = arith.constant 0 : index
    %c0_50 = arith.constant 0 : index
    %163 = vector.load %arg2[%c4_48, %c0_49, %c0_50] : memref<8x32x64xf32, #tpu.memory_space<vmem>>, vector<1x32x64xf32>
    %164 = vector.shape_cast %163 : vector<1x32x64xf32> to vector<32x64xf32>
    %cst_51 = arith.constant dense<0.000000e+00> : vector<32x1024xf32>
    %165 = tpu.matmul %164, %158, %cst_51 {dimension_numbers = #tpu.dot_dimension_numbers<[1], [0], [0], [1], [0, 0, 1, 1], [], []>} : vector<32x64xf32>, vector<64x1024xf32>, vector<32x1024xf32> -> vector<32x1024xf32>
    %166 = vector.extract_strided_slice %165 {offsets = [0, 0], sizes = [8, 1024], strides = [1, 1]} : vector<32x1024xf32> to vector<8x1024xf32>
    %167 = arith.mulf %166, %162 : vector<8x1024xf32>
    %cst_52 = arith.constant dense<0.000000e+00> : vector<1024xf32>
    %168 = vector.multi_reduction <add>, %167, %cst_52 [0] : vector<8x1024xf32> to vector<1024xf32>
    %169 = vector.shape_cast %168 : vector<1024xf32> to vector<1x1024xf32>
    %170 = arith.addf %134, %169 : vector<1x1024xf32>
    %171 = vector.extract_strided_slice %165 {offsets = [8, 0], sizes = [8, 1024], strides = [1, 1]} : vector<32x1024xf32> to vector<8x1024xf32>
    %172 = arith.mulf %171, %162 : vector<8x1024xf32>
    %cst_53 = arith.constant dense<0.000000e+00> : vector<1024xf32>
    %173 = vector.multi_reduction <add>, %172, %cst_53 [0] : vector<8x1024xf32> to vector<1024xf32>
    %174 = vector.shape_cast %173 : vector<1024xf32> to vector<1x1024xf32>
    %175 = arith.addf %139, %174 : vector<1x1024xf32>
    %176 = vector.extract_strided_slice %165 {offsets = [16, 0], sizes = [8, 1024], strides = [1, 1]} : vector<32x1024xf32> to vector<8x1024xf32>
    %177 = arith.mulf %176, %162 : vector<8x1024xf32>
    %cst_54 = arith.constant dense<0.000000e+00> : vector<1024xf32>
    %178 = vector.multi_reduction <add>, %177, %cst_54 [0] : vector<8x1024xf32> to vector<1024xf32>
    %179 = vector.shape_cast %178 : vector<1024xf32> to vector<1x1024xf32>
    %180 = arith.addf %144, %179 : vector<1x1024xf32>
    %181 = vector.extract_strided_slice %165 {offsets = [24, 0], sizes = [8, 1024], strides = [1, 1]} : vector<32x1024xf32> to vector<8x1024xf32>
    %182 = arith.mulf %181, %162 : vector<8x1024xf32>
    %cst_55 = arith.constant dense<0.000000e+00> : vector<1024xf32>
    %183 = vector.multi_reduction <add>, %182, %cst_55 [0] : vector<8x1024xf32> to vector<1024xf32>
    %184 = vector.shape_cast %183 : vector<1024xf32> to vector<1x1024xf32>
    %185 = arith.addf %149, %184 : vector<1x1024xf32>
    %c5 = arith.constant 5 : index
    %c0_56 = arith.constant 0 : index
    %186 = vector.load %arg1[%c5, %c0_56] : memref<8x1024xi32, #tpu.memory_space<vmem>>, vector<1x1024xi32>
    %c16_i32_57 = arith.constant 16 : i32
    %187 = vector.broadcast %c16_i32_57 : i32 to vector<1x1024xi32>
    %188 = arith.shrsi %186, %187 : vector<1x1024xi32>
    %c65535_i32_58 = arith.constant 65535 : i32
    %189 = vector.broadcast %c65535_i32_58 : i32 to vector<1x1024xi32>
    %190 = arith.andi %186, %189 : vector<1x1024xi32>
    %191 = vector.broadcast %190 : vector<1x1024xi32> to vector<64x1024xi32>
    %192 = arith.cmpi eq, %0, %191 : vector<64x1024xi32>
    %193 = arith.extui %192 : vector<64x1024xi1> to vector<64x1024xi32>
    %194 = arith.sitofp %193 : vector<64x1024xi32> to vector<64x1024xf32>
    %195 = vector.broadcast %188 : vector<1x1024xi32> to vector<8x1024xi32>
    %196 = arith.cmpi eq, %1, %195 : vector<8x1024xi32>
    %197 = arith.extui %196 : vector<8x1024xi1> to vector<8x1024xi32>
    %198 = arith.sitofp %197 : vector<8x1024xi32> to vector<8x1024xf32>
    %c5_59 = arith.constant 5 : index
    %c0_60 = arith.constant 0 : index
    %c0_61 = arith.constant 0 : index
    %199 = vector.load %arg2[%c5_59, %c0_60, %c0_61] : memref<8x32x64xf32, #tpu.memory_space<vmem>>, vector<1x32x64xf32>
    %200 = vector.shape_cast %199 : vector<1x32x64xf32> to vector<32x64xf32>
    %cst_62 = arith.constant dense<0.000000e+00> : vector<32x1024xf32>
    %201 = tpu.matmul %200, %194, %cst_62 {dimension_numbers = #tpu.dot_dimension_numbers<[1], [0], [0], [1], [0, 0, 1, 1], [], []>} : vector<32x64xf32>, vector<64x1024xf32>, vector<32x1024xf32> -> vector<32x1024xf32>
    %202 = vector.extract_strided_slice %201 {offsets = [0, 0], sizes = [8, 1024], strides = [1, 1]} : vector<32x1024xf32> to vector<8x1024xf32>
    %203 = arith.mulf %202, %198 : vector<8x1024xf32>
    %cst_63 = arith.constant dense<0.000000e+00> : vector<1024xf32>
    %204 = vector.multi_reduction <add>, %203, %cst_63 [0] : vector<8x1024xf32> to vector<1024xf32>
    %205 = vector.shape_cast %204 : vector<1024xf32> to vector<1x1024xf32>
    %206 = arith.addf %170, %205 : vector<1x1024xf32>
    %207 = vector.extract_strided_slice %201 {offsets = [8, 0], sizes = [8, 1024], strides = [1, 1]} : vector<32x1024xf32> to vector<8x1024xf32>
    %208 = arith.mulf %207, %198 : vector<8x1024xf32>
    %cst_64 = arith.constant dense<0.000000e+00> : vector<1024xf32>
    %209 = vector.multi_reduction <add>, %208, %cst_64 [0] : vector<8x1024xf32> to vector<1024xf32>
    %210 = vector.shape_cast %209 : vector<1024xf32> to vector<1x1024xf32>
    %211 = arith.addf %175, %210 : vector<1x1024xf32>
    %212 = vector.extract_strided_slice %201 {offsets = [16, 0], sizes = [8, 1024], strides = [1, 1]} : vector<32x1024xf32> to vector<8x1024xf32>
    %213 = arith.mulf %212, %198 : vector<8x1024xf32>
    %cst_65 = arith.constant dense<0.000000e+00> : vector<1024xf32>
    %214 = vector.multi_reduction <add>, %213, %cst_65 [0] : vector<8x1024xf32> to vector<1024xf32>
    %215 = vector.shape_cast %214 : vector<1024xf32> to vector<1x1024xf32>
    %216 = arith.addf %180, %215 : vector<1x1024xf32>
    %217 = vector.extract_strided_slice %201 {offsets = [24, 0], sizes = [8, 1024], strides = [1, 1]} : vector<32x1024xf32> to vector<8x1024xf32>
    %218 = arith.mulf %217, %198 : vector<8x1024xf32>
    %cst_66 = arith.constant dense<0.000000e+00> : vector<1024xf32>
    %219 = vector.multi_reduction <add>, %218, %cst_66 [0] : vector<8x1024xf32> to vector<1024xf32>
    %220 = vector.shape_cast %219 : vector<1024xf32> to vector<1x1024xf32>
    %221 = arith.addf %185, %220 : vector<1x1024xf32>
    %c6 = arith.constant 6 : index
    %c0_67 = arith.constant 0 : index
    %222 = vector.load %arg1[%c6, %c0_67] : memref<8x1024xi32, #tpu.memory_space<vmem>>, vector<1x1024xi32>
    %c16_i32_68 = arith.constant 16 : i32
    %223 = vector.broadcast %c16_i32_68 : i32 to vector<1x1024xi32>
    %224 = arith.shrsi %222, %223 : vector<1x1024xi32>
    %c65535_i32_69 = arith.constant 65535 : i32
    %225 = vector.broadcast %c65535_i32_69 : i32 to vector<1x1024xi32>
    %226 = arith.andi %222, %225 : vector<1x1024xi32>
    %227 = vector.broadcast %226 : vector<1x1024xi32> to vector<64x1024xi32>
    %228 = arith.cmpi eq, %0, %227 : vector<64x1024xi32>
    %229 = arith.extui %228 : vector<64x1024xi1> to vector<64x1024xi32>
    %230 = arith.sitofp %229 : vector<64x1024xi32> to vector<64x1024xf32>
    %231 = vector.broadcast %224 : vector<1x1024xi32> to vector<8x1024xi32>
    %232 = arith.cmpi eq, %1, %231 : vector<8x1024xi32>
    %233 = arith.extui %232 : vector<8x1024xi1> to vector<8x1024xi32>
    %234 = arith.sitofp %233 : vector<8x1024xi32> to vector<8x1024xf32>
    %c6_70 = arith.constant 6 : index
    %c0_71 = arith.constant 0 : index
    %c0_72 = arith.constant 0 : index
    %235 = vector.load %arg2[%c6_70, %c0_71, %c0_72] : memref<8x32x64xf32, #tpu.memory_space<vmem>>, vector<1x32x64xf32>
    %236 = vector.shape_cast %235 : vector<1x32x64xf32> to vector<32x64xf32>
    %cst_73 = arith.constant dense<0.000000e+00> : vector<32x1024xf32>
    %237 = tpu.matmul %236, %230, %cst_73 {dimension_numbers = #tpu.dot_dimension_numbers<[1], [0], [0], [1], [0, 0, 1, 1], [], []>} : vector<32x64xf32>, vector<64x1024xf32>, vector<32x1024xf32> -> vector<32x1024xf32>
    %238 = vector.extract_strided_slice %237 {offsets = [0, 0], sizes = [8, 1024], strides = [1, 1]} : vector<32x1024xf32> to vector<8x1024xf32>
    %239 = arith.mulf %238, %234 : vector<8x1024xf32>
    %cst_74 = arith.constant dense<0.000000e+00> : vector<1024xf32>
    %240 = vector.multi_reduction <add>, %239, %cst_74 [0] : vector<8x1024xf32> to vector<1024xf32>
    %241 = vector.shape_cast %240 : vector<1024xf32> to vector<1x1024xf32>
    %242 = arith.addf %206, %241 : vector<1x1024xf32>
    %243 = vector.extract_strided_slice %237 {offsets = [8, 0], sizes = [8, 1024], strides = [1, 1]} : vector<32x1024xf32> to vector<8x1024xf32>
    %244 = arith.mulf %243, %234 : vector<8x1024xf32>
    %cst_75 = arith.constant dense<0.000000e+00> : vector<1024xf32>
    %245 = vector.multi_reduction <add>, %244, %cst_75 [0] : vector<8x1024xf32> to vector<1024xf32>
    %246 = vector.shape_cast %245 : vector<1024xf32> to vector<1x1024xf32>
    %247 = arith.addf %211, %246 : vector<1x1024xf32>
    %248 = vector.extract_strided_slice %237 {offsets = [16, 0], sizes = [8, 1024], strides = [1, 1]} : vector<32x1024xf32> to vector<8x1024xf32>
    %249 = arith.mulf %248, %234 : vector<8x1024xf32>
    %cst_76 = arith.constant dense<0.000000e+00> : vector<1024xf32>
    %250 = vector.multi_reduction <add>, %249, %cst_76 [0] : vector<8x1024xf32> to vector<1024xf32>
    %251 = vector.shape_cast %250 : vector<1024xf32> to vector<1x1024xf32>
    %252 = arith.addf %216, %251 : vector<1x1024xf32>
    %253 = vector.extract_strided_slice %237 {offsets = [24, 0], sizes = [8, 1024], strides = [1, 1]} : vector<32x1024xf32> to vector<8x1024xf32>
    %254 = arith.mulf %253, %234 : vector<8x1024xf32>
    %cst_77 = arith.constant dense<0.000000e+00> : vector<1024xf32>
    %255 = vector.multi_reduction <add>, %254, %cst_77 [0] : vector<8x1024xf32> to vector<1024xf32>
    %256 = vector.shape_cast %255 : vector<1024xf32> to vector<1x1024xf32>
    %257 = arith.addf %221, %256 : vector<1x1024xf32>
    %c7 = arith.constant 7 : index
    %c0_78 = arith.constant 0 : index
    %258 = vector.load %arg1[%c7, %c0_78] : memref<8x1024xi32, #tpu.memory_space<vmem>>, vector<1x1024xi32>
    %c16_i32_79 = arith.constant 16 : i32
    %259 = vector.broadcast %c16_i32_79 : i32 to vector<1x1024xi32>
    %260 = arith.shrsi %258, %259 : vector<1x1024xi32>
    %c65535_i32_80 = arith.constant 65535 : i32
    %261 = vector.broadcast %c65535_i32_80 : i32 to vector<1x1024xi32>
    %262 = arith.andi %258, %261 : vector<1x1024xi32>
    %263 = vector.broadcast %262 : vector<1x1024xi32> to vector<64x1024xi32>
    %264 = arith.cmpi eq, %0, %263 : vector<64x1024xi32>
    %265 = arith.extui %264 : vector<64x1024xi1> to vector<64x1024xi32>
    %266 = arith.sitofp %265 : vector<64x1024xi32> to vector<64x1024xf32>
    %267 = vector.broadcast %260 : vector<1x1024xi32> to vector<8x1024xi32>
    %268 = arith.cmpi eq, %1, %267 : vector<8x1024xi32>
    %269 = arith.extui %268 : vector<8x1024xi1> to vector<8x1024xi32>
    %270 = arith.sitofp %269 : vector<8x1024xi32> to vector<8x1024xf32>
    %c7_81 = arith.constant 7 : index
    %c0_82 = arith.constant 0 : index
    %c0_83 = arith.constant 0 : index
    %271 = vector.load %arg2[%c7_81, %c0_82, %c0_83] : memref<8x32x64xf32, #tpu.memory_space<vmem>>, vector<1x32x64xf32>
    %272 = vector.shape_cast %271 : vector<1x32x64xf32> to vector<32x64xf32>
    %cst_84 = arith.constant dense<0.000000e+00> : vector<32x1024xf32>
    %273 = tpu.matmul %272, %266, %cst_84 {dimension_numbers = #tpu.dot_dimension_numbers<[1], [0], [0], [1], [0, 0, 1, 1], [], []>} : vector<32x64xf32>, vector<64x1024xf32>, vector<32x1024xf32> -> vector<32x1024xf32>
    %274 = vector.extract_strided_slice %273 {offsets = [0, 0], sizes = [8, 1024], strides = [1, 1]} : vector<32x1024xf32> to vector<8x1024xf32>
    %275 = arith.mulf %274, %270 : vector<8x1024xf32>
    %cst_85 = arith.constant dense<0.000000e+00> : vector<1024xf32>
    %276 = vector.multi_reduction <add>, %275, %cst_85 [0] : vector<8x1024xf32> to vector<1024xf32>
    %277 = vector.shape_cast %276 : vector<1024xf32> to vector<1x1024xf32>
    %278 = arith.addf %242, %277 : vector<1x1024xf32>
    %279 = vector.extract_strided_slice %273 {offsets = [8, 0], sizes = [8, 1024], strides = [1, 1]} : vector<32x1024xf32> to vector<8x1024xf32>
    %280 = arith.mulf %279, %270 : vector<8x1024xf32>
    %cst_86 = arith.constant dense<0.000000e+00> : vector<1024xf32>
    %281 = vector.multi_reduction <add>, %280, %cst_86 [0] : vector<8x1024xf32> to vector<1024xf32>
    %282 = vector.shape_cast %281 : vector<1024xf32> to vector<1x1024xf32>
    %283 = arith.addf %247, %282 : vector<1x1024xf32>
    %284 = vector.extract_strided_slice %273 {offsets = [16, 0], sizes = [8, 1024], strides = [1, 1]} : vector<32x1024xf32> to vector<8x1024xf32>
    %285 = arith.mulf %284, %270 : vector<8x1024xf32>
    %cst_87 = arith.constant dense<0.000000e+00> : vector<1024xf32>
    %286 = vector.multi_reduction <add>, %285, %cst_87 [0] : vector<8x1024xf32> to vector<1024xf32>
    %287 = vector.shape_cast %286 : vector<1024xf32> to vector<1x1024xf32>
    %288 = arith.addf %252, %287 : vector<1x1024xf32>
    %289 = vector.extract_strided_slice %273 {offsets = [24, 0], sizes = [8, 1024], strides = [1, 1]} : vector<32x1024xf32> to vector<8x1024xf32>
    %290 = arith.mulf %289, %270 : vector<8x1024xf32>
    %cst_88 = arith.constant dense<0.000000e+00> : vector<1024xf32>
    %291 = vector.multi_reduction <add>, %290, %cst_88 [0] : vector<8x1024xf32> to vector<1024xf32>
    %292 = vector.shape_cast %291 : vector<1024xf32> to vector<1x1024xf32>
    %293 = arith.addf %257, %292 : vector<1x1024xf32>
    %cst_89 = arith.constant 5.000000e-01 : f32
    %294 = vector.broadcast %cst_89 : f32 to vector<1x1024xf32>
    %295 = arith.mulf %278, %294 : vector<1x1024xf32>
    %c0_90 = arith.constant 0 : index
    %c0_91 = arith.constant 0 : index
    %296 = vector.load %arg3[%c0_90, %c0_91] : memref<4x1024xf32, #tpu.memory_space<vmem>>, vector<1x1024xf32>
    tpu.vector_store %arg3[%c0_90, %c0_91], %295 {strides = array<i32>} : memref<4x1024xf32, #tpu.memory_space<vmem>>, vector<1x1024xf32>,
    %cst_92 = arith.constant 5.000000e-01 : f32
    %297 = vector.broadcast %cst_92 : f32 to vector<1x1024xf32>
    %298 = arith.mulf %283, %297 : vector<1x1024xf32>
    %c1_93 = arith.constant 1 : index
    %c0_94 = arith.constant 0 : index
    %299 = vector.load %arg3[%c1_93, %c0_94] : memref<4x1024xf32, #tpu.memory_space<vmem>>, vector<1x1024xf32>
    tpu.vector_store %arg3[%c1_93, %c0_94], %298 {strides = array<i32>} : memref<4x1024xf32, #tpu.memory_space<vmem>>, vector<1x1024xf32>,
    %cst_95 = arith.constant 5.000000e-01 : f32
    %300 = vector.broadcast %cst_95 : f32 to vector<1x1024xf32>
    %301 = arith.mulf %288, %300 : vector<1x1024xf32>
    %c2_96 = arith.constant 2 : index
    %c0_97 = arith.constant 0 : index
    %302 = vector.load %arg3[%c2_96, %c0_97] : memref<4x1024xf32, #tpu.memory_space<vmem>>, vector<1x1024xf32>
    tpu.vector_store %arg3[%c2_96, %c0_97], %301 {strides = array<i32>} : memref<4x1024xf32, #tpu.memory_space<vmem>>, vector<1x1024xf32>,
    %cst_98 = arith.constant 5.000000e-01 : f32
    %303 = vector.broadcast %cst_98 : f32 to vector<1x1024xf32>
    %304 = arith.mulf %293, %303 : vector<1x1024xf32>
    %c3_99 = arith.constant 3 : index
    %c0_100 = arith.constant 0 : index
    %305 = vector.load %arg3[%c3_99, %c0_100] : memref<4x1024xf32, #tpu.memory_space<vmem>>, vector<1x1024xf32>
    tpu.vector_store %arg3[%c3_99, %c0_100], %304 {strides = array<i32>} : memref<4x1024xf32, #tpu.memory_space<vmem>>, vector<1x1024xf32>,
    return
  }
  func.func @transform_0(%arg0: i32) -> (i32, i32) {
    %c0_i32 = arith.constant 0 : i32
    %c0_i32_0 = arith.constant 0 : i32
    return %c0_i32, %arg0 : i32, i32
  }
  func.func @transform_1(%arg0: i32) -> (i32, i32, i32) {
    %c0_i32 = arith.constant 0 : i32
    %c0_i32_0 = arith.constant 0 : i32
    %c0_i32_1 = arith.constant 0 : i32
    %c0_i32_2 = arith.constant 0 : i32
    return %c0_i32, %c0_i32_0, %c0_i32_1 : i32, i32, i32
  }
  func.func @transform_2(%arg0: i32) -> (i32, i32) {
    %c0_i32 = arith.constant 0 : i32
    %c0_i32_0 = arith.constant 0 : i32
    return %c0_i32, %arg0 : i32, i32
  }
}

</mosaic_0001>

<bundles_post_ra>
// kernel: tpu_custom_call.1
= control target key start
LH: loop header
LB: loop body
LE: loop exit
PB: predicated region body
PF: predicated region fallthrough
CT: control target
= control target key end

     0   :  { %7 = vsyncpa [#allocation3], 0  ;;  %s14516_s0 = inlined_call_operand.hbm [shape: s32[8,2048], index: 0, kind: input, shape index: {}]   ;;  %s14517_s1 = inlined_call_operand.hbm [shape: f32[8,32,64], index: 1, kind: input, shape index: {}]   ;;  %s14518_s2 = inlined_call_operand.hbm [shape: f32[4,2048], index: 2, kind: output, shape index: {}]  }
   0x1   :  { %9 = vsyncpa [#allocation3 + $0x1], 0 }
   0x2   :  { %10 = vsyncpa [#allocation6], 0 }
   0x3   :  { %11 = vsyncpa [#allocation4], 0 }
   0x4   :  { %13 = vsyncpa [#allocation4 + $0x1], 0  ;;  %s9331_s9 = smov 0   ;;  %s9333_s10 = smov 0  }
   0x5   :  { %s9335_s11 = smov 0   ;;  %s9337_s12 = smov 0  }
   0x6 LB: > { %s9352_s13 = sadd.s32 4294967295, %s9306_s12   ;;  %s7871_s14 = sadd.s32 4294967294, %s9306_s12   ;;  %s9306_s12 = sphi %s9337_s12, %s14974_s12   ;;  %s9302_s11 = sphi %s9335_s11, %s14973_s11   ;;  %s9298_s10 = sphi %s9333_s10, %s14972_s10   ;;  %s9294_s9 = sphi %s9331_s9, %s14971_s9  }
   0x7   : > { %p39_p0 = scmp.ne.s32.totalorder %s9298_s10, %s9294_s9  ;;  %p14519_p1 = scmp.eq.s32.totalorder %s9352_s13, 0 }
   0x8   : > { %p90_p3 = scmp.eq.s32.totalorder %s7871_s14, 1  ;;  %p7872_p5 = scmp.ge.s32.totalorder %s9306_s12, 1 }
   0x9   : > { %p9361_p4 = por %p14519_p1, %p39_p0  ;;  %p97_p7 = scmp.lt.s32.totalorder %s9306_s12, 3 }
   0xa   : > { %p9366_p6 = por %p90_p3, %p39_p0  ;;  %s9308_s18 = smov [#allocation5]  }
   0xb   : > { %s14572_s15 = scalar_select %p9361_p4, 1, 0 }
   0xc   : > { %s14573_s16 = scalar_select %p9366_p6, 1, 0 }
   0xd   : > { %p9371_p8 = pnand %p7872_p5, %p97_p7  ;;  %s109_s19 = sshll.u32 %s9308_s18, 4  ;;  %s110_s19 = int_to_ptr.vmem [resolvable:$true] %s109_s19 }
   0xe   : > { %s9385_s21 = sadd.s32 1, %s9306_s12   ;;  %s26_s22 = sadd.s32 1, %s9302_s11 }
   0xf   : > { %s14574_s17 = scalar_select %p9371_p8, 1, 0 }
  0x10   : > { %p9130_p9 = pneg %p9371_p8  ;;  %s23_s23 = ssub.s32 %s9306_s12, %s9385_s21 }
  0x11   : > { %s9195_s24 = scalar_lea.vmem %s110_s19, 4096  ;;  %p9203_p5 = scmp.lt.s32.totalorder %s110_s19, %s110_s19 }
  0x12   : > { %p9380_p11 = pnand %p9130_p9, %p14519_p1  ;;  %p9196_p13 = scmp.ne.s32.totalorder %s110_s19, %s9195_s24 }
  0x13   : > { %p9204_p7 = scmp.lt.s32.totalorder %s9195_s24, %s9195_s24 }
  0x14   : > { %p9186_p12 = pneg %p9380_p11 }
  0x15   : > { %p9205_p10 = por %p9204_p7, %p9203_p5 }
  0x16   : > { %p9198_p0 = pnand %p9196_p13, %p9186_p12 }
  0x18   : > { %p9199_p3 = pneg %p9198_p0 }
  0x1a   : > { %p9206_p2 = pnand %p9205_p10, %p9199_p3 }
  0x1c   : > { %9209 = shalt.err (!%p9206_p2)
}
  0x1d   : > { %s9309_s25 = smov 128   ;;  %s9310_s26 = smov 8  }
  0x1e   : > { %9133 = dma.hbm_to_vmem [thread:$0]  (!%p9380_p11), %s14517_s1, 4096, %s110_s19, [#allocation6], %s9309_s25, %s9309_s25, %s9310_s26  }
  0x1f   : > { %p24_p9 = scmp.eq.s32.totalorder %s23_s23, 0  ;;  %p33_p12 = scmp.ne.s32.totalorder %s9302_s11, %s9298_s10 }
  0x20   : > { %p34_p10 = scmp.eq.s32.totalorder %s9306_s12, 0  ;;  %p9143_p2 = scmp.lt.s32.totalorder %s9306_s12, 2 }
  0x21   : > { %s9402_s29 = scalar_select %p24_p9, %s9302_s11, %s26_s22  }
  0x22   : > { %p35_p13 = por %p34_p10, %p33_p12  ;;  %p14576_p0 = scmp.eq.s32.totalorder %s9352_s13, 1 }
  0x23   : > { %s123_s3 = sand.u32 1, %s9302_s11   ;;  %s9120_s4 = sshll.u32 %s9306_s12, 10 }
  0x24   : > { %p9406_p3 = por %p14576_p0, %p33_p12  ;;  %s7875_s5 = sshll.u32 %s123_s3, 6 }
  0x25   : > { %s9415_s8 = scalar_lea.hbm %s14516_s0, %s9120_s4  ;;  %s127_s14 = scalar_lea.vmem [#allocation2], %s7875_s5 }
  0x26   : > { %s14577_s30 = scalar_select %p9406_p3, 1, 0 }
  0x27   : > { %s135_s18 = sshll.u32 %s127_s14, 4  ;;  %p9417_p11 = pnand %p9143_p2, %p35_p13  ;;  %s136_s18 = int_to_ptr.vmem [resolvable:$true] %s135_s18 }
  0x28   : > { %s124_s20 = scalar_lea.sflag [#allocation3], %s123_s3  ;;  %s9210_s22 = scalar_lea.hbm %s9415_s8, 1024 }
  0x29   : > { %p9211_p5 = scmp.ne.s32.totalorder %s9415_s8, %s9210_s22  ;;  %p9212_p7 = pneg %p9417_p11 }
  0x2a   : > { %s9215_s25 = scalar_lea.hbm %s14516_s0, 2048  ;;  %p9216_p10 = scmp.lt.s32.totalorder %s9415_s8, %s14516_s0 }
  0x2b   : > { %p9213_p9 = pnand %p9212_p7, %p9211_p5  ;;  %p9217_p2 = scmp.lt.s32.totalorder %s9215_s25, %s9210_s22 }
  0x2d   : > { %p9214_p12 = pneg %p9213_p9  ;;  %p9218_p13 = por %p9217_p2, %p9216_p10 }
  0x2f   : > { %p9219_p0 = pnand %p9218_p13, %p9214_p12 }
  0x31   : > { %9222 = shalt.err (!%p9219_p0)
}
  0x32   : > { %s9223_s28 = scalar_lea.vmem %s136_s18, 1024  ;;  %s9311_s3 = smov [#allocation2]  }
  0x33   : > { %p9224_p1 = scmp.ne.s32.totalorder %s136_s18, %s9223_s28  ;;  %s9228_s4 = sshll.u32 %s9311_s3, 4  ;;  %s9229_s4 = int_to_ptr.vmem [resolvable:$false] %s9228_s4 }
  0x34   : > { %s9230_s5 = scalar_lea.vmem %s9229_s4, 2048  ;;  %p9231_p5 = scmp.lt.s32.totalorder %s136_s18, %s9229_s4 }
  0x35   : > { %p9226_p6 = pnand %p9224_p1, %p9212_p7  ;;  %p9232_p9 = scmp.lt.s32.totalorder %s9230_s5, %s9223_s28 }
  0x37   : > { %p9227_p3 = pneg %p9226_p6  ;;  %p9233_p4 = por %p9232_p9, %p9231_p5 }
  0x39   : > { %p9234_p8 = pnand %p9233_p4, %p9227_p3 }
  0x3b   : > { %9237 = shalt.err (!%p9234_p8)
}
  0x3c   : > { %9137 = dma.hbm_to_vmem [thread:$0]  (!%p9417_p11), %s9415_s8, 1024, %s136_s18, %s124_s20  }
  0x3d   : > { %p14579_p12 = scmp.ne.s32.totalorder %s14574_s17, 0 }
  0x3f   : > { %144 = sbr.rel (%p14579_p12) target bundleno = 955 (0x3bb), region = 28 }
  0x44   : > { %s9438_s6 = sand.u32 1, %s9298_s10   ;;  %p14580_p1 = scmp.ne.s32.totalorder %s14572_s15, 0 }
  0x45   : > { %s7879_s7 = sshll.u32 %s9438_s6, 6  ;;  %s147_s14 = scalar_lea.sflag [#allocation3], %s9438_s6 }
  0x46   : > { %s9442_s22 = scalar_lea.vmem [#allocation2], %s7879_s7 }
  0x47   : > { %9281 = dma.done.wait (%p14580_p1), %s147_s14, 1024  }
  0x48   : > { %9283 = vsyncadd (%p14580_p1), %s147_s14, 4294966272  ;;  %p14581_p4 = scmp.eq.s32.totalorder %s9352_s13, 0 }
  0x4a   : > { %9285 = dma.done.wait (%p14581_p4), [#allocation6], 4096   ;;  %p14582_p6 = pmov %p14581_p4 }
  0x4b   : > { %v177_v0 = vlaneseq  ;;  %v14523_v1 = vmov 0.0   ;;  %v186_v4 = vld [vmem:[%s9442_s22] ss:$8 sm:$0xf]  ;;  %v14525_v19 = vmov 1.0   ;;  %s7881_s15 = sshll.u32 %s9438_s6, 5 }
  0x4c   : > { %9287 = vsyncadd (%p14582_p6), [#allocation6], 4294963200  ;;  %552 = vmatprep.mubr.f32.mxu0 %v14523_v1  ;;  %641 = vmatprep.mubr.f32.mxu1 %v14523_v1  ;;  %v187_v5 = vld [vmem:[%s9442_s22] ss:$8 sm:$0xf0]  ;;  %s14436_s17 = scalar_lea.vmem [#allocation7], %s7881_s15 }
  0x4d   : > { %v9454_v2 = vshrl.u32 %v177_v0, 7  ;;  %v9461_v6 = vor.u32 %v187_v5, %v186_v4  ;;  %v9632_v31 = vld [vmem:[#allocation5] sm:$0xff]  ;;  %v9664_v32 = vld [vmem:[#allocation5 + $0x8] sm:$0xff]  ;;  %v9698_v35 = vld [vmem:[#allocation5 + $0x10] sm:$0xff]  ;;  %s9121_s8 = sshll.u32 %s9352_s13, 9  ;;  %s7791_s18 = sshll.u32 %s14436_s17, 4  ;;  %s7792_s18 = int_to_ptr.vmem [resolvable:$true] %s7791_s18 }
  0x4e   : > { %v8034_v33 = vld [vmem:[%s9442_s22 + $0x1] ss:$8 sm:$0xf]  ;;  %v8188_v49 = vld [vmem:[%s9442_s22 + $0x2] ss:$8 sm:$0xf]  ;;  %s7789_s23 = scalar_lea.hbm %s14518_s2, %s9121_s8 }
  0x4f   : > { %v9457_v3 = vsub.s32 1, %v9454_v2  ;;  %v9464_v7 = vsub.s32 3, %v9454_v2  ;;  %v9467_v8 = vsub.s32 0, %v9454_v2  ;;  %v9470_v9 = vsub.s32 2, %v9454_v2  ;;  %v9735_v38 = vld [vmem:[#allocation5 + $0x18] sm:$0xff]  ;;  %v9919_v47 = vld [vmem:[#allocation5 + $0x20] sm:$0xff] }
  0x50   : > { %v9473_v10 = vadd.s32 56, %v9454_v2  ;;  %v9476_v11 = vand.u32 65535, %v9461_v6  ;;  %v9479_v12 = vadd.s32 48, %v9454_v2  ;;  %v9482_v13 = vadd.s32 40, %v9454_v2  ;;  %v9951_v48 = vld [vmem:[#allocation5 + $0x28] sm:$0xff]  ;;  %v9985_v51 = vld [vmem:[#allocation5 + $0x30] sm:$0xff] }
  0x51   : > { %14583 = vst [vmem:[#allocation11_spill] sm:$0xff] %v9457_v3  ;;  %14584 = vst [vmem:[#allocation12_spill] sm:$0xff] %v9464_v7  ;;  %v9501_v18 = vadd.s32 32, %v9454_v2  ;;  %v9528_v20 = vadd.s32 24, %v9454_v2  ;;  %v9543_v21 = vadd.s32 16, %v9454_v2  ;;  %v9552_v22 = vsub.s32 5, %v9454_v2 }
  0x52   : > { %14585 = vst [vmem:[#allocation13_spill] sm:$0xff] %v9467_v8  ;;  %14586 = vst [vmem:[#allocation14_spill] sm:$0xff] %v9470_v9  ;;  %v9486_v14 = vrot.slane %v9476_v11, %v9457_v3  ;;  %v9490_v15 = vrot.slane %v9476_v11, %v9464_v7  ;;  %v9494_v16 = vrot.slane %v9476_v11, %v9467_v8  ;;  %v9561_v23 = vadd.s32 8, %v9454_v2  ;;  %v8035_v34 = vld [vmem:[%s9442_s22 + $0x1] ss:$8 sm:$0xf0] }
  0x53   : > { %v9498_v17 = vrot.slane %v9476_v11, %v9470_v9  ;;  %14587 = vst [vmem:[#allocation15_spill] sm:$0xff] %v9552_v22  ;;  %v9564_v24 = vsub.s32 7, %v9454_v2  ;;  %v9573_v25 = vsub.s32 4, %v9454_v2  ;;  %v9582_v26 = vsub.s32 6, %v9454_v2  ;;  %v10022_v54 = vld [vmem:[#allocation5 + $0x38] sm:$0xff]  ;;  %v10206_v63 = vld [vmem:[#allocation5 + $0x40] sm:$0xff] }
  0x54   : > { %vm280_vm0 = vcmp.eq.s32.totalorder %v9473_v10, %v9486_v14  ;;  %vm282_vm1 = vcmp.eq.s32.totalorder %v9473_v10, %v9490_v15  ;;  %vm279_vm2 = vcmp.eq.s32.totalorder %v9473_v10, %v9494_v16  ;;  %vm272_vm4 = vcmp.eq.s32.totalorder %v9479_v12, %v9486_v14  ;;  %v8189_v50 = vld [vmem:[%s9442_s22 + $0x2] ss:$8 sm:$0xf0]  ;;  %v8342_v4 = vld [vmem:[%s9442_s22 + $0x3] ss:$8 sm:$0xf] }
  0x55   : > { %vm281_vm3 = vcmp.eq.s32.totalorder %v9473_v10, %v9498_v17  ;;  %7954 = vmatprep.subr.msk.mxu0 %vm280_vm0, %v14525_v19  ;;  %7974 = vmatprep.subr.msk.mxu1 %vm282_vm1, %v14525_v19  ;;  %vm274_vm5 = vcmp.eq.s32.totalorder %v9479_v12, %v9490_v15  ;;  %vm271_vm6 = vcmp.eq.s32.totalorder %v9479_v12, %v9494_v16  ;;  %v10238_v0 = vld [vmem:[#allocation5 + $0x48] sm:$0xff]  ;;  %s7777_s24 = scalar_lea.sflag [#allocation4], %s9438_s6  ;;  %s9238_s25 = scalar_lea.vmem %s7792_s18, 512 }
  0x56   : > { %7955 = vmatpush1.msk.msra.mxu0 %vm279_vm2, %v14525_v19  ;;  %7975 = vmatpush1.msk.msra.mxu1 %vm281_vm3, %v14525_v19  ;;  %vm273_vm7 = vcmp.eq.s32.totalorder %v9479_v12, %v9498_v17  ;;  %vm264_vm8 = vcmp.eq.s32.totalorder %v9482_v13, %v9486_v14  ;;  %vm266_vm9 = vcmp.eq.s32.totalorder %v9482_v13, %v9490_v15  ;;  %v8343_v5 = vld [vmem:[%s9442_s22 + $0x3] ss:$8 sm:$0xf0]  ;;  %p9239_p8 = scmp.ne.s32.totalorder %s7792_s18, %s9238_s25  ;;  %p14968_p3 = scmp.ne.s32.totalorder %s14577_s30, 0 }
  0x57   : > { %7956 = vmatprep.subr.msk.mxu0 %vm272_vm4, %v14525_v19  ;;  %7976 = vmatprep.subr.msk.mxu1 %vm274_vm5, %v14525_v19  ;;  %vm263_vm10 = vcmp.eq.s32.totalorder %v9482_v13, %v9494_v16  ;;  %vm265_vm11 = vcmp.eq.s32.totalorder %v9482_v13, %v9498_v17  ;;  %vm256_vm12 = vcmp.eq.s32.totalorder %v9501_v18, %v9486_v14  ;;  %s9315_s13 = smov [#allocation7]  }
  0x58   : > { %7957 = vmatpush1.msk.msra.mxu0 %vm271_vm6, %v14525_v19  ;;  %7977 = vmatpush1.msk.msra.mxu1 %vm273_vm7, %v14525_v19  ;;  %vm258_vm13 = vcmp.eq.s32.totalorder %v9501_v18, %v9490_v15  ;;  %vm255_vm14 = vcmp.eq.s32.totalorder %v9501_v18, %v9494_v16  ;;  %vm257_vm15 = vcmp.eq.s32.totalorder %v9501_v18, %v9498_v17  ;;  %p9240_p11 = pnand %p9239_p8, %p14968_p3  ;;  %s9242_s26 = sshll.u32 %s9315_s13, 4  ;;  %s9243_s26 = int_to_ptr.vmem [resolvable:$false] %s9242_s26 }
  0x59   : > { %7958 = vmatprep.subr.msk.mxu0 %vm264_vm8, %v14525_v19  ;;  %7978 = vmatprep.subr.msk.mxu1 %vm266_vm9, %v14525_v19  ;;  %vm248_vm0 = vcmp.eq.s32.totalorder %v9528_v20, %v9486_v14  ;;  %vm250_vm1 = vcmp.eq.s32.totalorder %v9528_v20, %v9490_v15  ;;  %14588 = vst [vmem:[#allocation16_spill] sm:$0xff] %v9564_v24  ;;  %14589 = vst [vmem:[#allocation17_spill] sm:$0xff] %v9573_v25  ;;  %s9244_s27 = scalar_lea.vmem %s9243_s26, 1024  ;;  %p9245_p10 = scmp.lt.s32.totalorder %s7792_s18, %s9243_s26 }
  0x5a   : > { %7959 = vmatpush1.msk.msra.mxu0 %vm263_vm10, %v14525_v19  ;;  %7979 = vmatpush1.msk.msra.mxu1 %vm265_vm11, %v14525_v19  ;;  %vm247_vm2 = vcmp.eq.s32.totalorder %v9528_v20, %v9494_v16  ;;  %vm249_vm3 = vcmp.eq.s32.totalorder %v9528_v20, %v9498_v17  ;;  %vm240_vm4 = vcmp.eq.s32.totalorder %v9543_v21, %v9486_v14  ;;  %p9241_p7 = pneg %p9240_p11  ;;  %p9246_p2 = scmp.lt.s32.totalorder %s9244_s27, %s9238_s25 }
  0x5b   : > { %7960 = vmatprep.subr.msk.mxu0 %vm256_vm12, %v14525_v19  ;;  %7980 = vmatprep.subr.msk.mxu1 %vm258_vm13, %v14525_v19  ;;  %vm242_vm5 = vcmp.eq.s32.totalorder %v9543_v21, %v9490_v15  ;;  %14590 = vst [vmem:[#allocation18_spill] sm:$0xff] %v9582_v26  ;;  %vm239_vm6 = vcmp.eq.s32.totalorder %v9543_v21, %v9494_v16 }
  0x5c   : > { %7961 = vmatpush1.msk.msra.mxu0 %vm255_vm14, %v14525_v19  ;;  %7981 = vmatpush1.msk.msra.mxu1 %vm257_vm15, %v14525_v19  ;;  %vm241_vm7 = vcmp.eq.s32.totalorder %v9543_v21, %v9498_v17  ;;  %v9592_v27 = vrot.slane %v9476_v11, %v9552_v22  ;;  %vm232_vm8 = vcmp.eq.s32.totalorder %v9561_v23, %v9486_v14  ;;  %p9247_p13 = por %p9246_p2, %p9245_p10 }
  0x5d   : > { %7962 = vmatprep.subr.msk.mxu0 %vm248_vm0, %v14525_v19  ;;  %7982 = vmatprep.subr.msk.mxu1 %vm250_vm1, %v14525_v19  ;;  %vm234_vm9 = vcmp.eq.s32.totalorder %v9561_v23, %v9490_v15  ;;  %v9602_v28 = vrot.slane %v9476_v11, %v9564_v24  ;;  %vm231_vm10 = vcmp.eq.s32.totalorder %v9561_v23, %v9494_v16  ;;  %vm475_vm0 = vcmask 523264  }
  0x5e   : > { %7963 = vmatpush1.msk.msra.mxu0 %vm247_vm2, %v14525_v19  ;;  %7983 = vmatpush1.msk.msra.mxu1 %vm249_vm3, %v14525_v19  ;;  %vm233_vm11 = vcmp.eq.s32.totalorder %v9561_v23, %v9498_v17  ;;  %v9612_v29 = vrot.slane %v9476_v11, %v9573_v25  ;;  %vm224_vm12 = vcmp.eq.s32.totalorder %v9454_v2, %v9486_v14  ;;  %p9248_p0 = pnand %p9247_p13, %p9241_p7 }
  0x5f   : > { %7964 = vmatprep.subr.msk.mxu0 %vm240_vm4, %v14525_v19  ;;  %7984 = vmatprep.subr.msk.mxu1 %vm242_vm5, %v14525_v19  ;;  %vm226_vm13 = vcmp.eq.s32.totalorder %v9454_v2, %v9490_v15  ;;  %v9622_v30 = vrot.slane %v9476_v11, %v9582_v26  ;;  %vm223_vm14 = vcmp.eq.s32.totalorder %v9454_v2, %v9494_v16  ;;  %v10272_v11 = vld [vmem:[#allocation5 + $0x50] sm:$0xff]  ;;  %v10309_v16 = vld [vmem:[#allocation5 + $0x58] sm:$0xff] }
  0x60   : > { %7965 = vmatpush1.msk.msra.mxu0 %vm239_vm6, %v14525_v19  ;;  %7985 = vmatpush1.msk.msra.mxu1 %vm241_vm7, %v14525_v19  ;;  %vm225_vm15 = vcmp.eq.s32.totalorder %v9454_v2, %v9498_v17  ;;  %vm284_vm1 = vcmp.eq.s32.totalorder %v9473_v10, %v9592_v27  ;;  %vm286_vm2 = vcmp.eq.s32.totalorder %v9473_v10, %v9602_v28 }
  0x61   : > { %7966 = vmatprep.subr.msk.mxu0 %vm232_vm8, %v14525_v19  ;;  %7986 = vmatprep.subr.msk.mxu1 %vm234_vm9, %v14525_v19  ;;  %vm283_vm3 = vcmp.eq.s32.totalorder %v9473_v10, %v9612_v29  ;;  %vm285_vm4 = vcmp.eq.s32.totalorder %v9473_v10, %v9622_v30  ;;  %vm276_vm5 = vcmp.eq.s32.totalorder %v9479_v12, %v9592_v27 }
  0x62   : > { %7967 = vmatpush1.msk.msra.mxu0 %vm231_vm10, %v14525_v19  ;;  %7987 = vmatpush1.msk.msra.mxu1 %vm233_vm11, %v14525_v19  ;;  %vm278_vm6 = vcmp.eq.s32.totalorder %v9479_v12, %v9602_v28  ;;  %vm275_vm7 = vcmp.eq.s32.totalorder %v9479_v12, %v9612_v29  ;;  %vm277_vm8 = vcmp.eq.s32.totalorder %v9479_v12, %v9622_v30 }
  0x63   : > { %7968 = vmatprep.subr.msk.mxu0 %vm224_vm12, %v14525_v19  ;;  %7988 = vmatprep.subr.msk.mxu1 %vm226_vm13, %v14525_v19  ;;  %vm268_vm9 = vcmp.eq.s32.totalorder %v9482_v13, %v9592_v27  ;;  %vm270_vm10 = vcmp.eq.s32.totalorder %v9482_v13, %v9602_v28  ;;  %vm267_vm11 = vcmp.eq.s32.totalorder %v9482_v13, %v9612_v29 }
  0x64   : > { %7969 = vmatpush1.msk.msra.mxu0 %vm223_vm14, %v14525_v19  ;;  %7989 = vmatpush1.msk.msra.mxu1 %vm225_vm15, %v14525_v19  ;;  %vm269_vm12 = vcmp.eq.s32.totalorder %v9482_v13, %v9622_v30  ;;  %vm260_vm13 = vcmp.eq.s32.totalorder %v9501_v18, %v9592_v27  ;;  %vm262_vm14 = vcmp.eq.s32.totalorder %v9501_v18, %v9602_v28 }
  0x65   : > { %7970 = vmatmul.mubr.msk.f32.vlgmr.msra.gmra.mxu0 %vm475_vm0, %v9632_v31  ;;  %7990 = vmatmul.mubr.msk.f32.vlgmr.msra.gmra.mxu1 %vm475_vm0, %v9632_v31  ;;  %vm259_vm15 = vcmp.eq.s32.totalorder %v9501_v18, %v9612_v29  ;;  %v9706_v36 = vor.u32 %v8035_v34, %v8034_v33  ;;  %v9993_v52 = vor.u32 %v8189_v50, %v8188_v49  ;;  %v10493_v34 = vld [vmem:[#allocation5 + $0x60] sm:$0xff] }
  0x66   : > { %7994 = vmatprep.subr.msk.mxu0 %vm284_vm1, %v14525_v19  ;;  %8014 = vmatprep.subr.msk.mxu1 %vm286_vm2, %v14525_v19  ;;  %vm261_vm1 = vcmp.eq.s32.totalorder %v9501_v18, %v9622_v30  ;;  %vm252_vm2 = vcmp.eq.s32.totalorder %v9528_v20, %v9592_v27  ;;  %v10280_v14 = vor.u32 %v8343_v5, %v8342_v4  ;;  %v8650_v49 = vld [vmem:[%s9442_s22 + $0x5] ss:$8 sm:$0xf] }
  0x67   : > { %7995 = vmatpush1.msk.msra.mxu0 %vm283_vm3, %v14525_v19  ;;  %8015 = vmatpush1.msk.msra.mxu1 %vm285_vm4, %v14525_v19  ;;  %vm254_vm3 = vcmp.eq.s32.totalorder %v9528_v20, %v9602_v28  ;;  %vm251_vm4 = vcmp.eq.s32.totalorder %v9528_v20, %v9612_v29  ;;  %v9731_v37 = vand.u32 65535, %v9706_v36  ;;  %14591 = vst [vmem:[#allocation19_spill] sm:$0xff] %v9993_v52  ;;  %v10018_v53 = vand.u32 65535, %v9993_v52  ;;  %v8651_v50 = vld [vmem:[%s9442_s22 + $0x5] ss:$8 sm:$0xf0] }
  0x68   : > { %7996 = vmatprep.subr.msk.mxu0 %vm276_vm5, %v14525_v19  ;;  %8016 = vmatprep.subr.msk.mxu1 %vm278_vm6, %v14525_v19  ;;  %vm253_vm5 = vcmp.eq.s32.totalorder %v9528_v20, %v9622_v30  ;;  %vm244_vm6 = vcmp.eq.s32.totalorder %v9543_v21, %v9592_v27  ;;  %14592 = vst [vmem:[#allocation20_spill] sm:$0xff] %v10280_v14  ;;  %v10305_v15 = vand.u32 65535, %v10280_v14 }
  0x69   : > { %558 = vmatprep.mubr.f32.mxu0 %v14523_v1  ;;  %647 = vmatprep.mubr.f32.mxu1 %v14523_v1  ;;  %v9759_v39 = vrot.slane %v9731_v37, %v9457_v3  ;;  %v9763_v40 = vrot.slane %v9731_v37, %v9464_v7  ;;  %v9771_v41 = vrot.slane %v9731_v37, %v9467_v8 }
  0x6a   : > { %7997 = vmatpush1.msk.msra.mxu0 %vm275_vm7, %v14525_v19  ;;  %8017 = vmatpush1.msk.msra.mxu1 %vm277_vm8, %v14525_v19  ;;  %vm246_vm7 = vcmp.eq.s32.totalorder %v9543_v21, %v9602_v28  ;;  %vm243_vm8 = vcmp.eq.s32.totalorder %v9543_v21, %v9612_v29  ;;  %v9775_v42 = vrot.slane %v9731_v37, %v9470_v9 }
  0x6b   : > { %7971 = vmatmul.mubr.msk.f32.gmra.mxu0 %vm475_vm0, %v9664_v32  ;;  %7991 = vmatmul.mubr.msk.f32.gmra.mxu1 %vm475_vm0, %v9664_v32  ;;  %v9887_v43 = vrot.slane %v9731_v37, %v9552_v22  ;;  %v9899_v44 = vrot.slane %v9731_v37, %v9564_v24  ;;  %v9907_v45 = vrot.slane %v9731_v37, %v9573_v25 }
  0x6c   : > { %7998 = vmatprep.subr.msk.mxu0 %vm268_vm9, %v14525_v19  ;;  %8018 = vmatprep.subr.msk.mxu1 %vm270_vm10, %v14525_v19  ;;  %vm245_vm9 = vcmp.eq.s32.totalorder %v9543_v21, %v9622_v30  ;;  %vm236_vm10 = vcmp.eq.s32.totalorder %v9561_v23, %v9592_v27  ;;  %v9911_v46 = vrot.slane %v9731_v37, %v9582_v26  ;;  %v8496_v37 = vld [vmem:[%s9442_s22 + $0x4] ss:$8 sm:$0xf] }
  0x6d   : > { %7999 = vmatpush1.msk.msra.mxu0 %vm267_vm11, %v14525_v19  ;;  %8019 = vmatpush1.msk.msra.mxu1 %vm269_vm12, %v14525_v19  ;;  %vm238_vm11 = vcmp.eq.s32.totalorder %v9561_v23, %v9602_v28  ;;  %vm235_vm12 = vcmp.eq.s32.totalorder %v9561_v23, %v9612_v29  ;;  %v10046_v55 = vrot.slane %v10018_v53, %v9457_v3 }
  0x6e   : > { %8000 = vmatprep.subr.msk.mxu0 %vm260_vm13, %v14525_v19  ;;  %8020 = vmatprep.subr.msk.mxu1 %vm262_vm14, %v14525_v19  ;;  %vm237_vm13 = vcmp.eq.s32.totalorder %v9561_v23, %v9622_v30  ;;  %vm228_vm14 = vcmp.eq.s32.totalorder %v9454_v2, %v9592_v27  ;;  %v10050_v56 = vrot.slane %v10018_v53, %v9464_v7 }
  0x6f   : > { %564 = vmatprep.mubr.f32.mxu0 %v14523_v1  ;;  %653 = vmatprep.mubr.f32.mxu1 %v14523_v1  ;;  %v10058_v57 = vrot.slane %v10018_v53, %v9467_v8  ;;  %v10062_v58 = vrot.slane %v10018_v53, %v9470_v9  ;;  %v10174_v59 = vrot.slane %v10018_v53, %v9552_v22 }
  0x70   : > { %8001 = vmatpush1.msk.msra.mxu0 %vm259_vm15, %v14525_v19  ;;  %8021 = vmatpush1.msk.msra.mxu1 %vm261_vm1, %v14525_v19  ;;  %vm230_vm15 = vcmp.eq.s32.totalorder %v9454_v2, %v9602_v28  ;;  %vm227_vm1 = vcmp.eq.s32.totalorder %v9454_v2, %v9612_v29  ;;  %v10186_v60 = vrot.slane %v10018_v53, %v9564_v24 }
  0x71   : > { %7972 = vmatmul.mubr.msk.f32.gmra.mxu0 %vm475_vm0, %v9698_v35  ;;  %7992 = vmatmul.mubr.msk.f32.gmra.mxu1 %vm475_vm0, %v9698_v35  ;;  %v10194_v61 = vrot.slane %v10018_v53, %v9573_v25  ;;  %v10198_v62 = vrot.slane %v10018_v53, %v9582_v26  ;;  %v10333_v17 = vrot.slane %v10305_v15, %v9457_v3 }
  0x72   : > { %8002 = vmatprep.subr.msk.mxu0 %vm252_vm2, %v14525_v19  ;;  %8022 = vmatprep.subr.msk.mxu1 %vm254_vm3, %v14525_v19  ;;  %vm229_vm2 = vcmp.eq.s32.totalorder %v9454_v2, %v9622_v30  ;;  %vm1195_vm3 = vcmp.eq.s32.totalorder %v9473_v10, %v9759_v39  ;;  %v10337_v27 = vrot.slane %v10305_v15, %v9464_v7 }
  0x73   : > { %8003 = vmatpush1.msk.msra.mxu0 %vm251_vm4, %v14525_v19  ;;  %8023 = vmatpush1.msk.msra.mxu1 %vm253_vm5, %v14525_v19  ;;  %vm1197_vm4 = vcmp.eq.s32.totalorder %v9473_v10, %v9763_v40  ;;  %vm1194_vm5 = vcmp.eq.s32.totalorder %v9473_v10, %v9771_v41  ;;  %v10345_v28 = vrot.slane %v10305_v15, %v9467_v8 }
  0x74   : > { %8004 = vmatprep.subr.msk.mxu0 %vm244_vm6, %v14525_v19  ;;  %8024 = vmatprep.subr.msk.mxu1 %vm246_vm7, %v14525_v19  ;;  %vm1196_vm6 = vcmp.eq.s32.totalorder %v9473_v10, %v9775_v42  ;;  %vm1187_vm7 = vcmp.eq.s32.totalorder %v9479_v12, %v9759_v39  ;;  %v10349_v29 = vrot.slane %v10305_v15, %v9470_v9 }
  0x75   : > { %570 = vmatprep.mubr.f32.mxu0 %v14523_v1  ;;  %659 = vmatprep.mubr.f32.mxu1 %v14523_v1  ;;  %v10461_v30 = vrot.slane %v10305_v15, %v9552_v22  ;;  %v10485_v33 = vrot.slane %v10305_v15, %v9582_v26 }
  0x76   : > { %8005 = vmatpush1.msk.msra.mxu0 %vm243_vm8, %v14525_v19  ;;  %8025 = vmatpush1.msk.msra.mxu1 %vm245_vm9, %v14525_v19  ;;  %vm1189_vm8 = vcmp.eq.s32.totalorder %v9479_v12, %v9763_v40  ;;  %vm1186_vm9 = vcmp.eq.s32.totalorder %v9479_v12, %v9771_v41 }
  0x77   : > { %7973 = vmatmul.mubr.msk.f32.gmra.mxu0 %vm475_vm0, %v9735_v38  ;;  %7993 = vmatmul.mubr.msk.f32.gmra.mxu1 %vm475_vm0, %v9735_v38 }
  0x78   : > { %8006 = vmatprep.subr.msk.mxu0 %vm236_vm10, %v14525_v19  ;;  %8026 = vmatprep.subr.msk.mxu1 %vm238_vm11, %v14525_v19  ;;  %vm1188_vm10 = vcmp.eq.s32.totalorder %v9479_v12, %v9775_v42  ;;  %vm1179_vm11 = vcmp.eq.s32.totalorder %v9482_v13, %v9759_v39 }
  0x79   : > { %8007 = vmatpush1.msk.msra.mxu0 %vm235_vm12, %v14525_v19  ;;  %8027 = vmatpush1.msk.msra.mxu1 %vm237_vm13, %v14525_v19  ;;  %vm1181_vm12 = vcmp.eq.s32.totalorder %v9482_v13, %v9763_v40  ;;  %vm1178_vm13 = vcmp.eq.s32.totalorder %v9482_v13, %v9771_v41 }
  0x7a   : > { %8008 = vmatprep.subr.msk.mxu0 %vm228_vm14, %v14525_v19  ;;  %8028 = vmatprep.subr.msk.mxu1 %vm230_vm15, %v14525_v19  ;;  %vm1180_vm14 = vcmp.eq.s32.totalorder %v9482_v13, %v9775_v42  ;;  %vm1171_vm15 = vcmp.eq.s32.totalorder %v9501_v18, %v9759_v39 }
  0x7b   : > { %8009 = vmatpush1.msk.msra.mxu0 %vm227_vm1, %v14525_v19  ;;  %730 = vmatprep.mubr.f32.mxu0 %v14523_v1  ;;  %vm1173_vm1 = vcmp.eq.s32.totalorder %v9501_v18, %v9763_v40 }
  0x7c   : > { %8029 = vmatpush1.msk.msra.mxu1 %vm229_vm2, %v14525_v19  ;;  %819 = vmatprep.mubr.f32.mxu1 %v14523_v1  ;;  %vm1170_vm2 = vcmp.eq.s32.totalorder %v9501_v18, %v9771_v41 }
  0x7d   : > { %8010 = vmatmul.mubr.msk.f32.vlgmr.msra.gmra.mxu0 %vm475_vm0, %v9632_v31  ;;  %8030 = vmatmul.mubr.msk.f32.vlgmr.msra.gmra.mxu1 %vm475_vm0, %v9632_v31  ;;  %v10473_v31 = vrot.slane %v10305_v15, %v9564_v24 }
  0x7e   : > { %8108 = vmatprep.subr.msk.mxu0 %vm1195_vm3, %v14525_v19  ;;  %8128 = vmatprep.subr.msk.mxu1 %vm1197_vm4, %v14525_v19  ;;  %vm1172_vm3 = vcmp.eq.s32.totalorder %v9501_v18, %v9775_v42  ;;  %vm1163_vm4 = vcmp.eq.s32.totalorder %v9528_v20, %v9759_v39 }
  0x7f   : > { %8109 = vmatpush1.msk.msra.mxu0 %vm1194_vm5, %v14525_v19  ;;  %8129 = vmatpush1.msk.msra.mxu1 %vm1196_vm6, %v14525_v19  ;;  %vm1165_vm5 = vcmp.eq.s32.totalorder %v9528_v20, %v9763_v40  ;;  %vm1162_vm6 = vcmp.eq.s32.totalorder %v9528_v20, %v9771_v41 }
  0x80   : > { %8110 = vmatprep.subr.msk.mxu0 %vm1187_vm7, %v14525_v19  ;;  %8130 = vmatprep.subr.msk.mxu1 %vm1189_vm8, %v14525_v19  ;;  %vm1164_vm7 = vcmp.eq.s32.totalorder %v9528_v20, %v9775_v42  ;;  %vm1155_vm8 = vcmp.eq.s32.totalorder %v9543_v21, %v9759_v39 }
  0x81   : > { %736 = vmatprep.mubr.f32.mxu0 %v14523_v1  ;;  %825 = vmatprep.mubr.f32.mxu1 %v14523_v1 }
  0x82   : > { %8111 = vmatpush1.msk.msra.mxu0 %vm1186_vm9, %v14525_v19  ;;  %8131 = vmatpush1.msk.msra.mxu1 %vm1188_vm10, %v14525_v19  ;;  %vm1157_vm9 = vcmp.eq.s32.totalorder %v9543_v21, %v9763_v40  ;;  %vm1154_vm10 = vcmp.eq.s32.totalorder %v9543_v21, %v9771_v41 }
  0x83   : > { %8011 = vmatmul.mubr.msk.f32.gmra.mxu0 %vm475_vm0, %v9664_v32  ;;  %8031 = vmatmul.mubr.msk.f32.gmra.mxu1 %vm475_vm0, %v9664_v32  ;;  %v10481_v32 = vrot.slane %v10305_v15, %v9573_v25 }
  0x84   : > { %8112 = vmatprep.subr.msk.mxu0 %vm1179_vm11, %v14525_v19  ;;  %8132 = vmatprep.subr.msk.mxu1 %vm1181_vm12, %v14525_v19  ;;  %vm1156_vm11 = vcmp.eq.s32.totalorder %v9543_v21, %v9775_v42  ;;  %vm1147_vm12 = vcmp.eq.s32.totalorder %v9561_v23, %v9759_v39 }
  0x85   : > { %8113 = vmatpush1.msk.msra.mxu0 %vm1178_vm13, %v14525_v19  ;;  %8133 = vmatpush1.msk.msra.mxu1 %vm1180_vm14, %v14525_v19  ;;  %vm1149_vm13 = vcmp.eq.s32.totalorder %v9561_v23, %v9763_v40  ;;  %vm1146_vm14 = vcmp.eq.s32.totalorder %v9561_v23, %v9771_v41 }
  0x86   : > { %8114 = vmatprep.subr.msk.mxu0 %vm1171_vm15, %v14525_v19  ;;  %8134 = vmatprep.subr.msk.mxu1 %vm1173_vm1, %v14525_v19  ;;  %vm1148_vm15 = vcmp.eq.s32.totalorder %v9561_v23, %v9775_v42  ;;  %vm1139_vm1 = vcmp.eq.s32.totalorder %v9454_v2, %v9759_v39  ;;  %v10559_v39 = vld [vmem:[#allocation5 + $0x70] sm:$0xff] }
  0x87   : > { %742 = vmatprep.mubr.f32.mxu0 %v14523_v1  ;;  %831 = vmatprep.mubr.f32.mxu1 %v14523_v1 }
  0x88   : > { %8115 = vmatpush1.msk.msra.mxu0 %vm1170_vm2, %v14525_v19  ;;  %8135 = vmatpush1.msk.msra.mxu1 %vm1172_vm3, %v14525_v19  ;;  %vm1141_vm2 = vcmp.eq.s32.totalorder %v9454_v2, %v9763_v40  ;;  %vm1138_vm3 = vcmp.eq.s32.totalorder %v9454_v2, %v9771_v41 }
  0x89   : > { %8012 = vmatmul.mubr.msk.f32.gmra.mxu0 %vm475_vm0, %v9698_v35  ;;  %8032 = vmatmul.mubr.msk.f32.gmra.mxu1 %vm475_vm0, %v9698_v35  ;;  %v10525_v35 = vld [vmem:[#allocation5 + $0x68] sm:$0xff] }
  0x8a   : > { %8116 = vmatprep.subr.msk.mxu0 %vm1163_vm4, %v14525_v19  ;;  %8136 = vmatprep.subr.msk.mxu1 %vm1165_vm5, %v14525_v19  ;;  %vm1140_vm4 = vcmp.eq.s32.totalorder %v9454_v2, %v9775_v42  ;;  %vm1199_vm5 = vcmp.eq.s32.totalorder %v9473_v10, %v9887_v43  ;;  %v10596_v42 = vld [vmem:[#allocation5 + $0x78] sm:$0xff] }
  0x8b   : > { %8117 = vmatpush1.msk.msra.mxu0 %vm1162_vm6, %v14525_v19  ;;  %8137 = vmatpush1.msk.msra.mxu1 %vm1164_vm7, %v14525_v19  ;;  %vm1201_vm6 = vcmp.eq.s32.totalorder %v9473_v10, %v9899_v44  ;;  %vm1198_vm7 = vcmp.eq.s32.totalorder %v9473_v10, %v9907_v45 }
  0x8c   : > { %8118 = vmatprep.subr.msk.mxu0 %vm1155_vm8, %v14525_v19  ;;  %8138 = vmatprep.subr.msk.mxu1 %vm1157_vm9, %v14525_v19  ;;  %vm1200_vm8 = vcmp.eq.s32.totalorder %v9473_v10, %v9911_v46  ;;  %vm1191_vm9 = vcmp.eq.s32.totalorder %v9479_v12, %v9887_v43 }
  0x8d   : > { %748 = vmatprep.mubr.f32.mxu0 %v14523_v1  ;;  %837 = vmatprep.mubr.f32.mxu1 %v14523_v1 }
  0x8e   : > { %8119 = vmatpush1.msk.msra.mxu0 %vm1154_vm10, %v14525_v19  ;;  %8139 = vmatpush1.msk.msra.mxu1 %vm1156_vm11, %v14525_v19  ;;  %vm1193_vm10 = vcmp.eq.s32.totalorder %v9479_v12, %v9899_v44  ;;  %vm1190_vm11 = vcmp.eq.s32.totalorder %v9479_v12, %v9907_v45 }
  0x8f   : > { %8013 = vmatmul.mubr.msk.f32.gmra.mxu0 %vm475_vm0, %v9735_v38  ;;  %8033 = vmatmul.mubr.msk.f32.gmra.mxu1 %vm475_vm0, %v9735_v38  ;;  %v8497_v38 = vld [vmem:[%s9442_s22 + $0x4] ss:$8 sm:$0xf0] }
  0x90   : > { %8120 = vmatprep.subr.msk.mxu0 %vm1147_vm12, %v14525_v19  ;;  %8140 = vmatprep.subr.msk.mxu1 %vm1149_vm13, %v14525_v19  ;;  %vm1192_vm12 = vcmp.eq.s32.totalorder %v9479_v12, %v9911_v46  ;;  %vm1183_vm13 = vcmp.eq.s32.totalorder %v9482_v13, %v9887_v43  ;;  %v10567_v40 = vor.u32 %v8497_v38, %v8496_v37 }
  0x91   : > { %8121 = vmatpush1.msk.msra.mxu0 %vm1146_vm14, %v14525_v19  ;;  %8141 = vmatpush1.msk.msra.mxu1 %vm1148_vm15, %v14525_v19  ;;  %vm1185_vm14 = vcmp.eq.s32.totalorder %v9482_v13, %v9899_v44  ;;  %vm1182_vm15 = vcmp.eq.s32.totalorder %v9482_v13, %v9907_v45 }
  0x92   : > { %8122 = vmatprep.subr.msk.mxu0 %vm1139_vm1, %v14525_v19  ;;  %8142 = vmatprep.subr.msk.mxu1 %vm1141_vm2, %v14525_v19  ;;  %vm1184_vm1 = vcmp.eq.s32.totalorder %v9482_v13, %v9911_v46  ;;  %vm1175_vm2 = vcmp.eq.s32.totalorder %v9501_v18, %v9887_v43  ;;  %14593 = vst [vmem:[#allocation21_spill] sm:$0xff] %v10567_v40  ;;  %v10592_v41 = vand.u32 65535, %v10567_v40 }
  0x93   : > { %8123 = vmatpush1.msk.msra.mxu0 %vm1138_vm3, %v14525_v19  ;;  %1467 = vmatprep.mubr.f32.mxu0 %v14523_v1  ;;  %vm1177_vm3 = vcmp.eq.s32.totalorder %v9501_v18, %v9899_v44 }
  0x94   : > { %8143 = vmatpush1.msk.msra.mxu1 %vm1140_vm4, %v14525_v19  ;;  %1556 = vmatprep.mubr.f32.mxu1 %v14523_v1  ;;  %vm1174_vm4 = vcmp.eq.s32.totalorder %v9501_v18, %v9907_v45  ;;  %v10774_v53 = vrot.slane %v10592_v41, %v9582_v26 }
  0x95   : > { %8124 = vmatmul.mubr.msk.f32.vlgmr.msra.gmra.mxu0 %vm475_vm0, %v9919_v47  ;;  %8144 = vmatmul.mubr.msk.f32.vlgmr.msra.gmra.mxu1 %vm475_vm0, %v9919_v47 }
  0x96   : > { %8148 = vmatprep.subr.msk.mxu0 %vm1199_vm5, %v14525_v19  ;;  %8168 = vmatprep.subr.msk.mxu1 %vm1201_vm6, %v14525_v19  ;;  %vm1176_vm5 = vcmp.eq.s32.totalorder %v9501_v18, %v9911_v46  ;;  %vm1167_vm6 = vcmp.eq.s32.totalorder %v9528_v20, %v9887_v43 }
  0x97   : > { %8149 = vmatpush1.msk.msra.mxu0 %vm1198_vm7, %v14525_v19  ;;  %8169 = vmatpush1.msk.msra.mxu1 %vm1200_vm8, %v14525_v19  ;;  %vm1169_vm7 = vcmp.eq.s32.totalorder %v9528_v20, %v9899_v44  ;;  %vm1166_vm8 = vcmp.eq.s32.totalorder %v9528_v20, %v9907_v45 }
  0x98   : > { %8150 = vmatprep.subr.msk.mxu0 %vm1191_vm9, %v14525_v19  ;;  %8170 = vmatprep.subr.msk.mxu1 %vm1193_vm10, %v14525_v19  ;;  %vm1168_vm9 = vcmp.eq.s32.totalorder %v9528_v20, %v9911_v46  ;;  %vm1159_vm10 = vcmp.eq.s32.totalorder %v9543_v21, %v9887_v43 }
  0x99   : > { %1473 = vmatprep.mubr.f32.mxu0 %v14523_v1  ;;  %1562 = vmatprep.mubr.f32.mxu1 %v14523_v1 }
  0x9a   : > { %8151 = vmatpush1.msk.msra.mxu0 %vm1190_vm11, %v14525_v19  ;;  %8171 = vmatpush1.msk.msra.mxu1 %vm1192_vm12, %v14525_v19  ;;  %vm1161_vm11 = vcmp.eq.s32.totalorder %v9543_v21, %v9899_v44  ;;  %vm1158_vm12 = vcmp.eq.s32.totalorder %v9543_v21, %v9907_v45 }
  0x9b   : > { %8125 = vmatmul.mubr.msk.f32.gmra.mxu0 %vm475_vm0, %v9951_v48  ;;  %8145 = vmatmul.mubr.msk.f32.gmra.mxu1 %vm475_vm0, %v9951_v48 }
  0x9c   : > { %8152 = vmatprep.subr.msk.mxu0 %vm1183_vm13, %v14525_v19  ;;  %8172 = vmatprep.subr.msk.mxu1 %vm1185_vm14, %v14525_v19  ;;  %vm1160_vm13 = vcmp.eq.s32.totalorder %v9543_v21, %v9911_v46  ;;  %vm1151_vm14 = vcmp.eq.s32.totalorder %v9561_v23, %v9887_v43 }
  0x9d   : > { %8153 = vmatpush1.msk.msra.mxu0 %vm1182_vm15, %v14525_v19  ;;  %8173 = vmatpush1.msk.msra.mxu1 %vm1184_vm1, %v14525_v19  ;;  %vm1153_vm15 = vcmp.eq.s32.totalorder %v9561_v23, %v9899_v44  ;;  %vm1150_vm1 = vcmp.eq.s32.totalorder %v9561_v23, %v9907_v45 }
  0x9e   : > { %8154 = vmatprep.subr.msk.mxu0 %vm1175_vm2, %v14525_v19  ;;  %8174 = vmatprep.subr.msk.mxu1 %vm1177_vm3, %v14525_v19  ;;  %vm1152_vm2 = vcmp.eq.s32.totalorder %v9561_v23, %v9911_v46  ;;  %vm1143_vm3 = vcmp.eq.s32.totalorder %v9454_v2, %v9887_v43  ;;  %v10620_v43 = vrot.slane %v10592_v41, %v9457_v3 }
  0x9f   : > { %1479 = vmatprep.mubr.f32.mxu0 %v14523_v1  ;;  %1568 = vmatprep.mubr.f32.mxu1 %v14523_v1 }
  0xa0   : > { %8155 = vmatpush1.msk.msra.mxu0 %vm1174_vm4, %v14525_v19  ;;  %8175 = vmatpush1.msk.msra.mxu1 %vm1176_vm5, %v14525_v19  ;;  %vm1145_vm4 = vcmp.eq.s32.totalorder %v9454_v2, %v9899_v44  ;;  %vm1142_vm5 = vcmp.eq.s32.totalorder %v9454_v2, %v9907_v45  ;;  %v10624_v44 = vrot.slane %v10592_v41, %v9464_v7 }
  0xa1   : > { %8126 = vmatmul.mubr.msk.f32.gmra.mxu0 %vm475_vm0, %v9985_v51  ;;  %8146 = vmatmul.mubr.msk.f32.gmra.mxu1 %vm475_vm0, %v9985_v51  ;;  %v10632_v45 = vrot.slane %v10592_v41, %v9467_v8 }
  0xa2   : > { %8156 = vmatprep.subr.msk.mxu0 %vm1167_vm6, %v14525_v19  ;;  %8176 = vmatprep.subr.msk.mxu1 %vm1169_vm7, %v14525_v19  ;;  %vm1144_vm6 = vcmp.eq.s32.totalorder %v9454_v2, %v9911_v46  ;;  %vm2110_vm7 = vcmp.eq.s32.totalorder %v9473_v10, %v10046_v55  ;;  %v10636_v46 = vrot.slane %v10592_v41, %v9470_v9 }
  0xa3   : > { %8157 = vmatpush1.msk.msra.mxu0 %vm1166_vm8, %v14525_v19  ;;  %8177 = vmatpush1.msk.msra.mxu1 %vm1168_vm9, %v14525_v19  ;;  %vm2112_vm8 = vcmp.eq.s32.totalorder %v9473_v10, %v10050_v56  ;;  %vm2109_vm9 = vcmp.eq.s32.totalorder %v9473_v10, %v10058_v57 }
  0xa4   : > { %8158 = vmatprep.subr.msk.mxu0 %vm1159_vm10, %v14525_v19  ;;  %8178 = vmatprep.subr.msk.mxu1 %vm1161_vm11, %v14525_v19  ;;  %vm2111_vm10 = vcmp.eq.s32.totalorder %v9473_v10, %v10062_v58  ;;  %vm2102_vm11 = vcmp.eq.s32.totalorder %v9479_v12, %v10046_v55 }
  0xa5   : > { %1485 = vmatprep.mubr.f32.mxu0 %v14523_v1  ;;  %1574 = vmatprep.mubr.f32.mxu1 %v14523_v1 }
  0xa6   : > { %8159 = vmatpush1.msk.msra.mxu0 %vm1158_vm12, %v14525_v19  ;;  %8179 = vmatpush1.msk.msra.mxu1 %vm1160_vm13, %v14525_v19  ;;  %vm2104_vm12 = vcmp.eq.s32.totalorder %v9479_v12, %v10050_v56  ;;  %vm2101_vm13 = vcmp.eq.s32.totalorder %v9479_v12, %v10058_v57 }
  0xa7   : > { %8127 = vmatmul.mubr.msk.f32.gmra.mxu0 %vm475_vm0, %v10022_v54  ;;  %8147 = vmatmul.mubr.msk.f32.gmra.mxu1 %vm475_vm0, %v10022_v54 }
  0xa8   : > { %8160 = vmatprep.subr.msk.mxu0 %vm1151_vm14, %v14525_v19  ;;  %8180 = vmatprep.subr.msk.mxu1 %vm1153_vm15, %v14525_v19  ;;  %vm2103_vm14 = vcmp.eq.s32.totalorder %v9479_v12, %v10062_v58  ;;  %vm2094_vm15 = vcmp.eq.s32.totalorder %v9482_v13, %v10046_v55 }
  0xa9   : > { %8161 = vmatpush1.msk.msra.mxu0 %vm1150_vm1, %v14525_v19  ;;  %8181 = vmatpush1.msk.msra.mxu1 %vm1152_vm2, %v14525_v19  ;;  %vm2096_vm1 = vcmp.eq.s32.totalorder %v9482_v13, %v10050_v56  ;;  %vm2093_vm2 = vcmp.eq.s32.totalorder %v9482_v13, %v10058_v57 }
  0xaa   : > { %8162 = vmatprep.subr.msk.mxu0 %vm1143_vm3, %v14525_v19  ;;  %8182 = vmatprep.subr.msk.mxu1 %vm1145_vm4, %v14525_v19  ;;  %vm2095_vm3 = vcmp.eq.s32.totalorder %v9482_v13, %v10062_v58  ;;  %vm2086_vm4 = vcmp.eq.s32.totalorder %v9501_v18, %v10046_v55 }
  0xab   : > { %8163 = vmatpush1.msk.msra.mxu0 %vm1142_vm5, %v14525_v19  ;;  %1645 = vmatprep.mubr.f32.mxu0 %v14523_v1  ;;  %vm2088_vm5 = vcmp.eq.s32.totalorder %v9501_v18, %v10050_v56 }
  0xac   : > { %8183 = vmatpush1.msk.msra.mxu1 %vm1144_vm6, %v14525_v19  ;;  %1734 = vmatprep.mubr.f32.mxu1 %v14523_v1  ;;  %vm2085_vm6 = vcmp.eq.s32.totalorder %v9501_v18, %v10058_v57 }
  0xad   : > { %8164 = vmatmul.mubr.msk.f32.vlgmr.msra.gmra.mxu0 %vm475_vm0, %v9919_v47  ;;  %8184 = vmatmul.mubr.msk.f32.vlgmr.msra.gmra.mxu1 %vm475_vm0, %v9919_v47  ;;  %v10742_v47 = vrot.slane %v10592_v41, %v9552_v22 }
  0xae   : > { %8262 = vmatprep.subr.msk.mxu0 %vm2110_vm7, %v14525_v19  ;;  %8282 = vmatprep.subr.msk.mxu1 %vm2112_vm8, %v14525_v19  ;;  %vm2087_vm7 = vcmp.eq.s32.totalorder %v9501_v18, %v10062_v58  ;;  %vm2078_vm8 = vcmp.eq.s32.totalorder %v9528_v20, %v10046_v55 }
  0xaf   : > { %8263 = vmatpush1.msk.msra.mxu0 %vm2109_vm9, %v14525_v19  ;;  %8283 = vmatpush1.msk.msra.mxu1 %vm2111_vm10, %v14525_v19  ;;  %vm2080_vm9 = vcmp.eq.s32.totalorder %v9528_v20, %v10050_v56  ;;  %vm2077_vm10 = vcmp.eq.s32.totalorder %v9528_v20, %v10058_v57 }
  0xb0   : > { %8264 = vmatprep.subr.msk.mxu0 %vm2102_vm11, %v14525_v19  ;;  %8284 = vmatprep.subr.msk.mxu1 %vm2104_vm12, %v14525_v19  ;;  %vm2079_vm11 = vcmp.eq.s32.totalorder %v9528_v20, %v10062_v58  ;;  %vm2070_vm12 = vcmp.eq.s32.totalorder %v9543_v21, %v10046_v55 }
  0xb1   : > { %1651 = vmatprep.mubr.f32.mxu0 %v14523_v1  ;;  %1740 = vmatprep.mubr.f32.mxu1 %v14523_v1 }
  0xb2   : > { %8265 = vmatpush1.msk.msra.mxu0 %vm2101_vm13, %v14525_v19  ;;  %8285 = vmatpush1.msk.msra.mxu1 %vm2103_vm14, %v14525_v19  ;;  %vm2072_vm13 = vcmp.eq.s32.totalorder %v9543_v21, %v10050_v56  ;;  %vm2069_vm14 = vcmp.eq.s32.totalorder %v9543_v21, %v10058_v57 }
  0xb3   : > { %8165 = vmatmul.mubr.msk.f32.gmra.mxu0 %vm475_vm0, %v9951_v48  ;;  %8185 = vmatmul.mubr.msk.f32.gmra.mxu1 %vm475_vm0, %v9951_v48  ;;  %v10752_v48 = vrot.slane %v10592_v41, %v9564_v24 }
  0xb4   : > { %8266 = vmatprep.subr.msk.mxu0 %vm2094_vm15, %v14525_v19  ;;  %8286 = vmatprep.subr.msk.mxu1 %vm2096_vm1, %v14525_v19  ;;  %vm2071_vm15 = vcmp.eq.s32.totalorder %v9543_v21, %v10062_v58  ;;  %vm2062_vm1 = vcmp.eq.s32.totalorder %v9561_v23, %v10046_v55 }
  0xb5   : > { %8267 = vmatpush1.msk.msra.mxu0 %vm2093_vm2, %v14525_v19  ;;  %8287 = vmatpush1.msk.msra.mxu1 %vm2095_vm3, %v14525_v19  ;;  %vm2064_vm2 = vcmp.eq.s32.totalorder %v9561_v23, %v10050_v56  ;;  %vm2061_vm3 = vcmp.eq.s32.totalorder %v9561_v23, %v10058_v57 }
  0xb6   : > { %8268 = vmatprep.subr.msk.mxu0 %vm2086_vm4, %v14525_v19  ;;  %8288 = vmatprep.subr.msk.mxu1 %vm2088_vm5, %v14525_v19  ;;  %vm2063_vm4 = vcmp.eq.s32.totalorder %v9561_v23, %v10062_v58  ;;  %vm2054_vm5 = vcmp.eq.s32.totalorder %v9454_v2, %v10046_v55  ;;  %v10785_v55 = vld [vmem:[#allocation5 + $0x80] sm:$0xff] }
  0xb7   : > { %1657 = vmatprep.mubr.f32.mxu0 %v14523_v1  ;;  %1746 = vmatprep.mubr.f32.mxu1 %v14523_v1 }
  0xb8   : > { %8269 = vmatpush1.msk.msra.mxu0 %vm2085_vm6, %v14525_v19  ;;  %8289 = vmatpush1.msk.msra.mxu1 %vm2087_vm7, %v14525_v19  ;;  %vm2056_vm6 = vcmp.eq.s32.totalorder %v9454_v2, %v10050_v56  ;;  %vm2053_vm7 = vcmp.eq.s32.totalorder %v9454_v2, %v10058_v57  ;;  %v10791_v56 = vor.u32 %v8651_v50, %v8650_v49 }
  0xb9   : > { %8166 = vmatmul.mubr.msk.f32.gmra.mxu0 %vm475_vm0, %v9985_v51  ;;  %8186 = vmatmul.mubr.msk.f32.gmra.mxu1 %vm475_vm0, %v9985_v51  ;;  %v10770_v51 = vrot.slane %v10592_v41, %v9573_v25 }
  0xba   : > { %8270 = vmatprep.subr.msk.mxu0 %vm2078_vm8, %v14525_v19  ;;  %8290 = vmatprep.subr.msk.mxu1 %vm2080_vm9, %v14525_v19  ;;  %vm2055_vm8 = vcmp.eq.s32.totalorder %v9454_v2, %v10062_v58  ;;  %vm2114_vm9 = vcmp.eq.s32.totalorder %v9473_v10, %v10174_v59  ;;  %14594 = vst [vmem:[#allocation22_spill] sm:$0xff] %v10791_v56  ;;  %v10886_v5 = vand.u32 65535, %v10791_v56 }
  0xbb   : > { %8271 = vmatpush1.msk.msra.mxu0 %vm2077_vm10, %v14525_v19  ;;  %8291 = vmatpush1.msk.msra.mxu1 %vm2079_vm11, %v14525_v19  ;;  %vm2116_vm10 = vcmp.eq.s32.totalorder %v9473_v10, %v10186_v60  ;;  %vm2113_vm11 = vcmp.eq.s32.totalorder %v9473_v10, %v10194_v61 }
  0xbc   : > { %8272 = vmatprep.subr.msk.mxu0 %vm2070_vm12, %v14525_v19  ;;  %8292 = vmatprep.subr.msk.mxu1 %vm2072_vm13, %v14525_v19  ;;  %vm2115_vm12 = vcmp.eq.s32.totalorder %v9473_v10, %v10198_v62  ;;  %vm2106_vm13 = vcmp.eq.s32.totalorder %v9479_v12, %v10174_v59  ;;  %v10979_v37 = vrot.slane %v10886_v5, %v9467_v8 }
  0xbd   : > { %1663 = vmatprep.mubr.f32.mxu0 %v14523_v1  ;;  %1752 = vmatprep.mubr.f32.mxu1 %v14523_v1  ;;  %v11072_v4 = vrot.slane %v10886_v5, %v9564_v24 }
  0xbe   : > { %8273 = vmatpush1.msk.msra.mxu0 %vm2069_vm14, %v14525_v19  ;;  %8293 = vmatpush1.msk.msra.mxu1 %vm2071_vm15, %v14525_v19  ;;  %vm2108_vm14 = vcmp.eq.s32.totalorder %v9479_v12, %v10186_v60  ;;  %vm2105_vm15 = vcmp.eq.s32.totalorder %v9479_v12, %v10194_v61 }
  0xbf   : > { %8167 = vmatmul.mubr.msk.f32.gmra.mxu0 %vm475_vm0, %v10022_v54  ;;  %8187 = vmatmul.mubr.msk.f32.gmra.mxu1 %vm475_vm0, %v10022_v54  ;;  %v10781_v54 = vshra.s32 %v9461_v6, 16 }
  0xc0   : > { %8274 = vmatprep.subr.msk.mxu0 %vm2062_vm1, %v14525_v19  ;;  %8294 = vmatprep.subr.msk.mxu1 %vm2064_vm2, %v14525_v19  ;;  %vm2107_vm1 = vcmp.eq.s32.totalorder %v9479_v12, %v10198_v62  ;;  %vm2098_vm2 = vcmp.eq.s32.totalorder %v9482_v13, %v10174_v59 }
  0xc1   : > { %8275 = vmatpush1.msk.msra.mxu0 %vm2061_vm3, %v14525_v19  ;;  %8295 = vmatpush1.msk.msra.mxu1 %vm2063_vm4, %v14525_v19  ;;  %vm2100_vm3 = vcmp.eq.s32.totalorder %v9482_v13, %v10186_v60  ;;  %vm2097_vm4 = vcmp.eq.s32.totalorder %v9482_v13, %v10194_v61  ;;  %v418_v6 = vrot.slane %v10781_v54, %v9467_v8 }
  0xc2   : > { %8276 = vmatprep.subr.msk.mxu0 %vm2054_vm5, %v14525_v19  ;;  %8296 = vmatprep.subr.msk.mxu1 %vm2056_vm6, %v14525_v19  ;;  %vm2099_vm5 = vcmp.eq.s32.totalorder %v9482_v13, %v10198_v62  ;;  %vm2090_vm6 = vcmp.eq.s32.totalorder %v9501_v18, %v10174_v59  ;;  %v426_v58 = vrot.slane %v10781_v54, %v9470_v9 }
  0xc3   : > { %8277 = vmatpush1.msk.msra.mxu0 %vm2053_vm7, %v14525_v19  ;;  %2382 = vmatprep.mubr.f32.mxu0 %v14523_v1  ;;  %vm2092_vm7 = vcmp.eq.s32.totalorder %v9501_v18, %v10186_v60 }
  0xc4   : > { %8297 = vmatpush1.msk.msra.mxu1 %vm2055_vm8, %v14525_v19  ;;  %2471 = vmatprep.mubr.f32.mxu1 %v14523_v1  ;;  %vm2089_vm8 = vcmp.eq.s32.totalorder %v9501_v18, %v10194_v61 }
  0xc5   : > { %8278 = vmatmul.mubr.msk.f32.vlgmr.msra.gmra.mxu0 %vm475_vm0, %v10206_v63  ;;  %8298 = vmatmul.mubr.msk.f32.vlgmr.msra.gmra.mxu1 %vm475_vm0, %v10206_v63 }
  0xc6   : > { %8302 = vmatprep.subr.msk.mxu0 %vm2114_vm9, %v14525_v19  ;;  %8322 = vmatprep.subr.msk.mxu1 %vm2116_vm10, %v14525_v19  ;;  %vm2091_vm9 = vcmp.eq.s32.totalorder %v9501_v18, %v10198_v62  ;;  %vm2082_vm10 = vcmp.eq.s32.totalorder %v9528_v20, %v10174_v59 }
  0xc7   : > { %8303 = vmatpush1.msk.msra.mxu0 %vm2113_vm11, %v14525_v19  ;;  %8323 = vmatpush1.msk.msra.mxu1 %vm2115_vm12, %v14525_v19  ;;  %vm2084_vm11 = vcmp.eq.s32.totalorder %v9528_v20, %v10186_v60  ;;  %vm2081_vm12 = vcmp.eq.s32.totalorder %v9528_v20, %v10194_v61 }
  0xc8   : > { %8304 = vmatprep.subr.msk.mxu0 %vm2106_vm13, %v14525_v19  ;;  %8324 = vmatprep.subr.msk.mxu1 %vm2108_vm14, %v14525_v19  ;;  %vm2083_vm13 = vcmp.eq.s32.totalorder %v9528_v20, %v10198_v62  ;;  %vm2074_vm14 = vcmp.eq.s32.totalorder %v9543_v21, %v10174_v59 }
  0xc9   : > { %2388 = vmatprep.mubr.f32.mxu0 %v14523_v1  ;;  %2477 = vmatprep.mubr.f32.mxu1 %v14523_v1 }
  0xca   : > { %8305 = vmatpush1.msk.msra.mxu0 %vm2105_vm15, %v14525_v19  ;;  %8325 = vmatpush1.msk.msra.mxu1 %vm2107_vm1, %v14525_v19  ;;  %vm2076_vm15 = vcmp.eq.s32.totalorder %v9543_v21, %v10186_v60  ;;  %vm2073_vm1 = vcmp.eq.s32.totalorder %v9543_v21, %v10194_v61 }
  0xcb   : > { %8279 = vmatmul.mubr.msk.f32.gmra.mxu0 %vm475_vm0, %v10238_v0  ;;  %8299 = vmatmul.mubr.msk.f32.gmra.mxu1 %vm475_vm0, %v10238_v0 }
  0xcc   : > { %8306 = vmatprep.subr.msk.mxu0 %vm2098_vm2, %v14525_v19  ;;  %8326 = vmatprep.subr.msk.mxu1 %vm2100_vm3, %v14525_v19  ;;  %vm2075_vm2 = vcmp.eq.s32.totalorder %v9543_v21, %v10198_v62  ;;  %vm2066_vm3 = vcmp.eq.s32.totalorder %v9561_v23, %v10174_v59 }
  0xcd   : > { %8307 = vmatpush1.msk.msra.mxu0 %vm2097_vm4, %v14525_v19  ;;  %8327 = vmatpush1.msk.msra.mxu1 %vm2099_vm5, %v14525_v19  ;;  %vm2068_vm4 = vcmp.eq.s32.totalorder %v9561_v23, %v10186_v60  ;;  %vm2065_vm5 = vcmp.eq.s32.totalorder %v9561_v23, %v10194_v61 }
  0xce   : > { %8308 = vmatprep.subr.msk.mxu0 %vm2090_vm6, %v14525_v19  ;;  %8328 = vmatprep.subr.msk.mxu1 %vm2092_vm7, %v14525_v19  ;;  %vm2067_vm6 = vcmp.eq.s32.totalorder %v9561_v23, %v10198_v62  ;;  %vm2058_vm7 = vcmp.eq.s32.totalorder %v9454_v2, %v10174_v59 }
  0xcf   : > { %2394 = vmatprep.mubr.f32.mxu0 %v14523_v1  ;;  %2483 = vmatprep.mubr.f32.mxu1 %v14523_v1 }
  0xd0   : > { %8309 = vmatpush1.msk.msra.mxu0 %vm2089_vm8, %v14525_v19  ;;  %8329 = vmatpush1.msk.msra.mxu1 %vm2091_vm9, %v14525_v19  ;;  %vm2060_vm8 = vcmp.eq.s32.totalorder %v9454_v2, %v10186_v60  ;;  %vm2057_vm9 = vcmp.eq.s32.totalorder %v9454_v2, %v10194_v61  ;;  %v422_v60 = vrot.slane %v10781_v54, %v9457_v3  ;;  %v10851_v61 = vld [vmem:[#allocation5 + $0x88] sm:$0xff] }
  0xd1   : > { %8280 = vmatmul.mubr.msk.f32.gmra.mxu0 %vm475_vm0, %v10272_v11  ;;  %8300 = vmatmul.mubr.msk.f32.gmra.mxu1 %vm475_vm0, %v10272_v11 }
  0xd2   : > { %8310 = vmatprep.subr.msk.mxu0 %vm2082_vm10, %v14525_v19  ;;  %8330 = vmatprep.subr.msk.mxu1 %vm2084_vm11, %v14525_v19  ;;  %vm2059_vm10 = vcmp.eq.s32.totalorder %v9454_v2, %v10198_v62  ;;  %vm3025_vm11 = vcmp.eq.s32.totalorder %v9473_v10, %v10333_v17 }
  0xd3   : > { %8311 = vmatpush1.msk.msra.mxu0 %vm2081_vm12, %v14525_v19  ;;  %8331 = vmatpush1.msk.msra.mxu1 %vm2083_vm13, %v14525_v19  ;;  %vm3027_vm12 = vcmp.eq.s32.totalorder %v9473_v10, %v10337_v27  ;;  %vm3024_vm13 = vcmp.eq.s32.totalorder %v9473_v10, %v10345_v28 }
  0xd4   : > { %8312 = vmatprep.subr.msk.mxu0 %vm2074_vm14, %v14525_v19  ;;  %8332 = vmatprep.subr.msk.mxu1 %vm2076_vm15, %v14525_v19  ;;  %vm3026_vm14 = vcmp.eq.s32.totalorder %v9473_v10, %v10349_v29  ;;  %vm3017_vm15 = vcmp.eq.s32.totalorder %v9479_v12, %v10333_v17 }
  0xd5   : > { %2400 = vmatprep.mubr.f32.mxu0 %v14523_v1  ;;  %2489 = vmatprep.mubr.f32.mxu1 %v14523_v1 }
  0xd6   : > { %8313 = vmatpush1.msk.msra.mxu0 %vm2073_vm1, %v14525_v19  ;;  %8333 = vmatpush1.msk.msra.mxu1 %vm2075_vm2, %v14525_v19  ;;  %vm3019_vm1 = vcmp.eq.s32.totalorder %v9479_v12, %v10337_v27  ;;  %vm3016_vm2 = vcmp.eq.s32.totalorder %v9479_v12, %v10345_v28 }
  0xd7   : > { %8281 = vmatmul.mubr.msk.f32.gmra.mxu0 %vm475_vm0, %v10309_v16  ;;  %8301 = vmatmul.mubr.msk.f32.gmra.mxu1 %vm475_vm0, %v10309_v16 }
  0xd8   : > { %8314 = vmatprep.subr.msk.mxu0 %vm2066_vm3, %v14525_v19  ;;  %8334 = vmatprep.subr.msk.mxu1 %vm2068_vm4, %v14525_v19  ;;  %vm3018_vm3 = vcmp.eq.s32.totalorder %v9479_v12, %v10349_v29  ;;  %vm3009_vm4 = vcmp.eq.s32.totalorder %v9482_v13, %v10333_v17 }
  0xd9   : > { %8315 = vmatpush1.msk.msra.mxu0 %vm2065_vm5, %v14525_v19  ;;  %8335 = vmatpush1.msk.msra.mxu1 %vm2067_vm6, %v14525_v19  ;;  %vm3011_vm5 = vcmp.eq.s32.totalorder %v9482_v13, %v10337_v27  ;;  %vm3008_vm6 = vcmp.eq.s32.totalorder %v9482_v13, %v10345_v28 }
  0xda   : > { %8316 = vmatprep.subr.msk.mxu0 %vm2058_vm7, %v14525_v19  ;;  %8336 = vmatprep.subr.msk.mxu1 %vm2060_vm8, %v14525_v19  ;;  %vm3010_vm7 = vcmp.eq.s32.totalorder %v9482_v13, %v10349_v29  ;;  %vm3001_vm8 = vcmp.eq.s32.totalorder %v9501_v18, %v10333_v17 }
  0xdb   : > { %8317 = vmatpush1.msk.msra.mxu0 %vm2057_vm9, %v14525_v19  ;;  %2560 = vmatprep.mubr.f32.mxu0 %v14523_v1  ;;  %vm3003_vm9 = vcmp.eq.s32.totalorder %v9501_v18, %v10337_v27 }
  0xdc   : > { %8337 = vmatpush1.msk.msra.mxu1 %vm2059_vm10, %v14525_v19  ;;  %2649 = vmatprep.mubr.f32.mxu1 %v14523_v1  ;;  %vm3000_vm10 = vcmp.eq.s32.totalorder %v9501_v18, %v10345_v28 }
  0xdd   : > { %8318 = vmatmul.mubr.msk.f32.vlgmr.msra.gmra.mxu0 %vm475_vm0, %v10206_v63  ;;  %8338 = vmatmul.mubr.msk.f32.vlgmr.msra.gmra.mxu1 %vm475_vm0, %v10206_v63  ;;  %v430_v63 = vrot.slane %v10781_v54, %v9464_v7 }
  0xde   : > { %8416 = vmatprep.subr.msk.mxu0 %vm3025_vm11, %v14525_v19  ;;  %8436 = vmatprep.subr.msk.mxu1 %vm3027_vm12, %v14525_v19  ;;  %vm3002_vm11 = vcmp.eq.s32.totalorder %v9501_v18, %v10349_v29  ;;  %vm2993_vm12 = vcmp.eq.s32.totalorder %v9528_v20, %v10333_v17 }
  0xdf   : > { %8417 = vmatpush1.msk.msra.mxu0 %vm3024_vm13, %v14525_v19  ;;  %8437 = vmatpush1.msk.msra.mxu1 %vm3026_vm14, %v14525_v19  ;;  %vm2995_vm13 = vcmp.eq.s32.totalorder %v9528_v20, %v10337_v27  ;;  %vm2992_vm14 = vcmp.eq.s32.totalorder %v9528_v20, %v10345_v28 }
  0xe0   : > { %8418 = vmatprep.subr.msk.mxu0 %vm3017_vm15, %v14525_v19  ;;  %8438 = vmatprep.subr.msk.mxu1 %vm3019_vm1, %v14525_v19  ;;  %vm2994_vm15 = vcmp.eq.s32.totalorder %v9528_v20, %v10349_v29  ;;  %vm2985_vm1 = vcmp.eq.s32.totalorder %v9543_v21, %v10333_v17 }
  0xe1   : > { %2566 = vmatprep.mubr.f32.mxu0 %v14523_v1  ;;  %2655 = vmatprep.mubr.f32.mxu1 %v14523_v1 }
  0xe2   : > { %8419 = vmatpush1.msk.msra.mxu0 %vm3016_vm2, %v14525_v19  ;;  %8439 = vmatpush1.msk.msra.mxu1 %vm3018_vm3, %v14525_v19  ;;  %vm2987_vm2 = vcmp.eq.s32.totalorder %v9543_v21, %v10337_v27  ;;  %vm2984_vm3 = vcmp.eq.s32.totalorder %v9543_v21, %v10345_v28 }
  0xe3   : > { %8319 = vmatmul.mubr.msk.f32.gmra.mxu0 %vm475_vm0, %v10238_v0  ;;  %8339 = vmatmul.mubr.msk.f32.gmra.mxu1 %vm475_vm0, %v10238_v0 }
  0xe4   : > { %8420 = vmatprep.subr.msk.mxu0 %vm3009_vm4, %v14525_v19  ;;  %8440 = vmatprep.subr.msk.mxu1 %vm3011_vm5, %v14525_v19  ;;  %vm2986_vm4 = vcmp.eq.s32.totalorder %v9543_v21, %v10349_v29  ;;  %vm2977_vm5 = vcmp.eq.s32.totalorder %v9561_v23, %v10333_v17 }
  0xe5   : > { %8421 = vmatpush1.msk.msra.mxu0 %vm3008_vm6, %v14525_v19  ;;  %8441 = vmatpush1.msk.msra.mxu1 %vm3010_vm7, %v14525_v19  ;;  %vm2979_vm6 = vcmp.eq.s32.totalorder %v9561_v23, %v10337_v27  ;;  %vm2976_vm7 = vcmp.eq.s32.totalorder %v9561_v23, %v10345_v28 }
  0xe6   : > { %8422 = vmatprep.subr.msk.mxu0 %vm3001_vm8, %v14525_v19  ;;  %8442 = vmatprep.subr.msk.mxu1 %vm3003_vm9, %v14525_v19  ;;  %vm2978_vm8 = vcmp.eq.s32.totalorder %v9561_v23, %v10349_v29  ;;  %vm2969_vm9 = vcmp.eq.s32.totalorder %v9454_v2, %v10333_v17 }
  0xe7   : > { %2572 = vmatprep.mubr.f32.mxu0 %v14523_v1  ;;  %2661 = vmatprep.mubr.f32.mxu1 %v14523_v1 }
  0xe8   : > { %8423 = vmatpush1.msk.msra.mxu0 %vm3000_vm10, %v14525_v19  ;;  %8443 = vmatpush1.msk.msra.mxu1 %vm3002_vm11, %v14525_v19  ;;  %vm2971_vm10 = vcmp.eq.s32.totalorder %v9454_v2, %v10337_v27  ;;  %vm2968_vm11 = vcmp.eq.s32.totalorder %v9454_v2, %v10345_v28 }
  0xe9   : > { %8320 = vmatmul.mubr.msk.f32.gmra.mxu0 %vm475_vm0, %v10272_v11  ;;  %8340 = vmatmul.mubr.msk.f32.gmra.mxu1 %vm475_vm0, %v10272_v11  ;;  %v11084_v11 = vrot.slane %v10886_v5, %v9573_v25 }
  0xea   : > { %8424 = vmatprep.subr.msk.mxu0 %vm2993_vm12, %v14525_v19  ;;  %8444 = vmatprep.subr.msk.mxu1 %vm2995_vm13, %v14525_v19  ;;  %vm2970_vm12 = vcmp.eq.s32.totalorder %v9454_v2, %v10349_v29  ;;  %vm3029_vm13 = vcmp.eq.s32.totalorder %v9473_v10, %v10461_v30 }
  0xeb   : > { %8425 = vmatpush1.msk.msra.mxu0 %vm2992_vm14, %v14525_v19  ;;  %8445 = vmatpush1.msk.msra.mxu1 %vm2994_vm15, %v14525_v19  ;;  %vm3031_vm14 = vcmp.eq.s32.totalorder %v9473_v10, %v10473_v31  ;;  %vm3028_vm15 = vcmp.eq.s32.totalorder %v9473_v10, %v10481_v32 }
  0xec   : > { %8426 = vmatprep.subr.msk.mxu0 %vm2985_vm1, %v14525_v19  ;;  %8446 = vmatprep.subr.msk.mxu1 %vm2987_vm2, %v14525_v19  ;;  %vm3030_vm1 = vcmp.eq.s32.totalorder %v9473_v10, %v10485_v33  ;;  %vm3021_vm2 = vcmp.eq.s32.totalorder %v9479_v12, %v10461_v30 }
  0xed   : > { %2578 = vmatprep.mubr.f32.mxu0 %v14523_v1  ;;  %2667 = vmatprep.mubr.f32.mxu1 %v14523_v1 }
  0xee   : > { %8427 = vmatpush1.msk.msra.mxu0 %vm2984_vm3, %v14525_v19  ;;  %8447 = vmatpush1.msk.msra.mxu1 %vm2986_vm4, %v14525_v19  ;;  %vm3023_vm3 = vcmp.eq.s32.totalorder %v9479_v12, %v10473_v31  ;;  %vm3020_vm4 = vcmp.eq.s32.totalorder %v9479_v12, %v10481_v32 }
  0xef   : > { %8321 = vmatmul.mubr.msk.f32.gmra.mxu0 %vm475_vm0, %v10309_v16  ;;  %8341 = vmatmul.mubr.msk.f32.gmra.mxu1 %vm475_vm0, %v10309_v16  ;;  %v8804_v16 = vld [vmem:[%s9442_s22 + $0x6] ss:$8 sm:$0xf] }
  0xf0   : > { %8428 = vmatprep.subr.msk.mxu0 %vm2977_vm5, %v14525_v19  ;;  %8448 = vmatprep.subr.msk.mxu1 %vm2979_vm6, %v14525_v19  ;;  %vm3022_vm5 = vcmp.eq.s32.totalorder %v9479_v12, %v10485_v33  ;;  %vm3013_vm6 = vcmp.eq.s32.totalorder %v9482_v13, %v10461_v30 }
  0xf1   : > { %8429 = vmatpush1.msk.msra.mxu0 %vm2976_vm7, %v14525_v19  ;;  %8449 = vmatpush1.msk.msra.mxu1 %vm2978_vm8, %v14525_v19  ;;  %vm3015_vm7 = vcmp.eq.s32.totalorder %v9482_v13, %v10473_v31  ;;  %vm3012_vm8 = vcmp.eq.s32.totalorder %v9482_v13, %v10481_v32 }
  0xf2   : > { %8430 = vmatprep.subr.msk.mxu0 %vm2969_vm9, %v14525_v19  ;;  %8450 = vmatprep.subr.msk.mxu1 %vm2971_vm10, %v14525_v19  ;;  %vm3014_vm9 = vcmp.eq.s32.totalorder %v9482_v13, %v10485_v33  ;;  %vm3005_vm10 = vcmp.eq.s32.totalorder %v9501_v18, %v10461_v30 }
  0xf3   : > { %8431 = vmatpush1.msk.msra.mxu0 %vm2968_vm11, %v14525_v19  ;;  %3297 = vmatprep.mubr.f32.mxu0 %v14523_v1  ;;  %vm3007_vm11 = vcmp.eq.s32.totalorder %v9501_v18, %v10473_v31 }
  0xf4   : > { %8451 = vmatpush1.msk.msra.mxu1 %vm2970_vm12, %v14525_v19  ;;  %3386 = vmatprep.mubr.f32.mxu1 %v14523_v1  ;;  %vm3004_vm12 = vcmp.eq.s32.totalorder %v9501_v18, %v10481_v32 }
  0xf5   : > { %8432 = vmatmul.mubr.msk.f32.vlgmr.msra.gmra.mxu0 %vm475_vm0, %v10493_v34  ;;  %8452 = vmatmul.mubr.msk.f32.vlgmr.msra.gmra.mxu1 %vm475_vm0, %v10493_v34 }
  0xf6   : > { %8456 = vmatprep.subr.msk.mxu0 %vm3029_vm13, %v14525_v19  ;;  %8476 = vmatprep.subr.msk.mxu1 %vm3031_vm14, %v14525_v19  ;;  %vm3006_vm13 = vcmp.eq.s32.totalorder %v9501_v18, %v10485_v33  ;;  %vm2997_vm14 = vcmp.eq.s32.totalorder %v9528_v20, %v10461_v30 }
  0xf7   : > { %8457 = vmatpush1.msk.msra.mxu0 %vm3028_vm15, %v14525_v19  ;;  %8477 = vmatpush1.msk.msra.mxu1 %vm3030_vm1, %v14525_v19  ;;  %vm2999_vm15 = vcmp.eq.s32.totalorder %v9528_v20, %v10473_v31  ;;  %vm2996_vm1 = vcmp.eq.s32.totalorder %v9528_v20, %v10481_v32 }
  0xf8   : > { %8458 = vmatprep.subr.msk.mxu0 %vm3021_vm2, %v14525_v19  ;;  %8478 = vmatprep.subr.msk.mxu1 %vm3023_vm3, %v14525_v19  ;;  %vm2998_vm2 = vcmp.eq.s32.totalorder %v9528_v20, %v10485_v33  ;;  %vm2989_vm3 = vcmp.eq.s32.totalorder %v9543_v21, %v10461_v30 }
  0xf9   : > { %3303 = vmatprep.mubr.f32.mxu0 %v14523_v1  ;;  %3392 = vmatprep.mubr.f32.mxu1 %v14523_v1 }
  0xfa   : > { %8459 = vmatpush1.msk.msra.mxu0 %vm3020_vm4, %v14525_v19  ;;  %8479 = vmatpush1.msk.msra.mxu1 %vm3022_vm5, %v14525_v19  ;;  %vm2991_vm4 = vcmp.eq.s32.totalorder %v9543_v21, %v10473_v31  ;;  %vm2988_vm5 = vcmp.eq.s32.totalorder %v9543_v21, %v10481_v32 }
  0xfb   : > { %8433 = vmatmul.mubr.msk.f32.gmra.mxu0 %vm475_vm0, %v10525_v35  ;;  %8453 = vmatmul.mubr.msk.f32.gmra.mxu1 %vm475_vm0, %v10525_v35 }
  0xfc   : > { %8460 = vmatprep.subr.msk.mxu0 %vm3013_vm6, %v14525_v19  ;;  %8480 = vmatprep.subr.msk.mxu1 %vm3015_vm7, %v14525_v19  ;;  %vm2990_vm6 = vcmp.eq.s32.totalorder %v9543_v21, %v10485_v33  ;;  %vm2981_vm7 = vcmp.eq.s32.totalorder %v9561_v23, %v10461_v30 }
  0xfd   : > { %8461 = vmatpush1.msk.msra.mxu0 %vm3012_vm8, %v14525_v19  ;;  %8481 = vmatpush1.msk.msra.mxu1 %vm3014_vm9, %v14525_v19  ;;  %vm2983_vm8 = vcmp.eq.s32.totalorder %v9561_v23, %v10473_v31  ;;  %vm2980_vm9 = vcmp.eq.s32.totalorder %v9561_v23, %v10481_v32 }
  0xfe   : > { %8462 = vmatprep.subr.msk.mxu0 %vm3005_vm10, %v14525_v19  ;;  %8482 = vmatprep.subr.msk.mxu1 %vm3007_vm11, %v14525_v19  ;;  %vm2982_vm10 = vcmp.eq.s32.totalorder %v9561_v23, %v10485_v33  ;;  %vm2973_vm11 = vcmp.eq.s32.totalorder %v9454_v2, %v10461_v30  ;;  %v8805_v30 = vld [vmem:[%s9442_s22 + $0x6] ss:$8 sm:$0xf0] }
  0xff   : > { %3309 = vmatprep.mubr.f32.mxu0 %v14523_v1  ;;  %3398 = vmatprep.mubr.f32.mxu1 %v14523_v1 }
 0x100   : > { %8463 = vmatpush1.msk.msra.mxu0 %vm3004_vm12, %v14525_v19  ;;  %8483 = vmatpush1.msk.msra.mxu1 %vm3006_vm13, %v14525_v19  ;;  %vm2975_vm12 = vcmp.eq.s32.totalorder %v9454_v2, %v10473_v31  ;;  %vm2972_vm13 = vcmp.eq.s32.totalorder %v9454_v2, %v10481_v32  ;;  %v10959_v32 = vld [vmem:[#allocation5 + $0x90] sm:$0xff] }
 0x101   : > { %8434 = vmatmul.mubr.msk.f32.gmra.mxu0 %vm475_vm0, %v10559_v39  ;;  %8454 = vmatmul.mubr.msk.f32.gmra.mxu1 %vm475_vm0, %v10559_v39 }
 0x102   : > { %8464 = vmatprep.subr.msk.mxu0 %vm2997_vm14, %v14525_v19  ;;  %8484 = vmatprep.subr.msk.mxu1 %vm2999_vm15, %v14525_v19  ;;  %vm2974_vm14 = vcmp.eq.s32.totalorder %v9454_v2, %v10485_v33  ;;  %vm3940_vm15 = vcmp.eq.s32.totalorder %v9473_v10, %v10620_v43  ;;  %v10967_v33 = vrot.slane %v10886_v5, %v9457_v3 }
 0x103   : > { %8465 = vmatpush1.msk.msra.mxu0 %vm2996_vm1, %v14525_v19  ;;  %8485 = vmatpush1.msk.msra.mxu1 %vm2998_vm2, %v14525_v19  ;;  %vm3942_vm1 = vcmp.eq.s32.totalorder %v9473_v10, %v10624_v44  ;;  %vm3939_vm2 = vcmp.eq.s32.totalorder %v9473_v10, %v10632_v45 }
 0x104   : > { %8466 = vmatprep.subr.msk.mxu0 %vm2989_vm3, %v14525_v19  ;;  %8486 = vmatprep.subr.msk.mxu1 %vm2991_vm4, %v14525_v19  ;;  %vm3941_vm3 = vcmp.eq.s32.totalorder %v9473_v10, %v10636_v46  ;;  %vm3932_vm4 = vcmp.eq.s32.totalorder %v9479_v12, %v10620_v43 }
 0x105   : > { %3315 = vmatprep.mubr.f32.mxu0 %v14523_v1  ;;  %3404 = vmatprep.mubr.f32.mxu1 %v14523_v1 }
 0x106   : > { %8467 = vmatpush1.msk.msra.mxu0 %vm2988_vm5, %v14525_v19  ;;  %8487 = vmatpush1.msk.msra.mxu1 %vm2990_vm6, %v14525_v19  ;;  %vm3934_vm5 = vcmp.eq.s32.totalorder %v9479_v12, %v10624_v44  ;;  %vm3931_vm6 = vcmp.eq.s32.totalorder %v9479_v12, %v10632_v45 }
 0x107   : > { %8435 = vmatmul.mubr.msk.f32.gmra.mxu0 %vm475_vm0, %v10596_v42  ;;  %8455 = vmatmul.mubr.msk.f32.gmra.mxu1 %vm475_vm0, %v10596_v42 }
 0x108   : > { %8468 = vmatprep.subr.msk.mxu0 %vm2981_vm7, %v14525_v19  ;;  %8488 = vmatprep.subr.msk.mxu1 %vm2983_vm8, %v14525_v19  ;;  %vm3933_vm7 = vcmp.eq.s32.totalorder %v9479_v12, %v10636_v46  ;;  %vm3924_vm8 = vcmp.eq.s32.totalorder %v9482_v13, %v10620_v43 }
 0x109   : > { %8469 = vmatpush1.msk.msra.mxu0 %vm2980_vm9, %v14525_v19  ;;  %8489 = vmatpush1.msk.msra.mxu1 %vm2982_vm10, %v14525_v19  ;;  %vm3926_vm9 = vcmp.eq.s32.totalorder %v9482_v13, %v10624_v44  ;;  %vm3923_vm10 = vcmp.eq.s32.totalorder %v9482_v13, %v10632_v45 }
 0x10a   : > { %8470 = vmatprep.subr.msk.mxu0 %vm2973_vm11, %v14525_v19  ;;  %8490 = vmatprep.subr.msk.mxu1 %vm2975_vm12, %v14525_v19  ;;  %vm3925_vm11 = vcmp.eq.s32.totalorder %v9482_v13, %v10636_v46  ;;  %vm3916_vm12 = vcmp.eq.s32.totalorder %v9501_v18, %v10620_v43 }
 0x10b   : > { %8471 = vmatpush1.msk.msra.mxu0 %vm2972_vm13, %v14525_v19  ;;  %3475 = vmatprep.mubr.f32.mxu0 %v14523_v1  ;;  %vm3918_vm13 = vcmp.eq.s32.totalorder %v9501_v18, %v10624_v44 }
 0x10c   : > { %8491 = vmatpush1.msk.msra.mxu1 %vm2974_vm14, %v14525_v19  ;;  %3564 = vmatprep.mubr.f32.mxu1 %v14523_v1  ;;  %vm3915_vm14 = vcmp.eq.s32.totalorder %v9501_v18, %v10632_v45 }
 0x10d   : > { %8472 = vmatmul.mubr.msk.f32.vlgmr.msra.gmra.mxu0 %vm475_vm0, %v10493_v34  ;;  %8492 = vmatmul.mubr.msk.f32.vlgmr.msra.gmra.mxu1 %vm475_vm0, %v10493_v34  ;;  %v10971_v34 = vrot.slane %v10886_v5, %v9464_v7 }
 0x10e   : > { %8570 = vmatprep.subr.msk.mxu0 %vm3940_vm15, %v14525_v19  ;;  %8590 = vmatprep.subr.msk.mxu1 %vm3942_vm1, %v14525_v19  ;;  %vm3917_vm15 = vcmp.eq.s32.totalorder %v9501_v18, %v10636_v46  ;;  %vm3908_vm1 = vcmp.eq.s32.totalorder %v9528_v20, %v10620_v43 }
 0x10f   : > { %8571 = vmatpush1.msk.msra.mxu0 %vm3939_vm2, %v14525_v19  ;;  %8591 = vmatpush1.msk.msra.mxu1 %vm3941_vm3, %v14525_v19  ;;  %vm3910_vm2 = vcmp.eq.s32.totalorder %v9528_v20, %v10624_v44  ;;  %vm3907_vm3 = vcmp.eq.s32.totalorder %v9528_v20, %v10632_v45 }
 0x110   : > { %8572 = vmatprep.subr.msk.mxu0 %vm3932_vm4, %v14525_v19  ;;  %8592 = vmatprep.subr.msk.mxu1 %vm3934_vm5, %v14525_v19  ;;  %vm3909_vm4 = vcmp.eq.s32.totalorder %v9528_v20, %v10636_v46  ;;  %vm3900_vm5 = vcmp.eq.s32.totalorder %v9543_v21, %v10620_v43 }
 0x111   : > { %3481 = vmatprep.mubr.f32.mxu0 %v14523_v1  ;;  %3570 = vmatprep.mubr.f32.mxu1 %v14523_v1 }
 0x112   : > { %8573 = vmatpush1.msk.msra.mxu0 %vm3931_vm6, %v14525_v19  ;;  %8593 = vmatpush1.msk.msra.mxu1 %vm3933_vm7, %v14525_v19  ;;  %vm3902_vm6 = vcmp.eq.s32.totalorder %v9543_v21, %v10624_v44  ;;  %vm3899_vm7 = vcmp.eq.s32.totalorder %v9543_v21, %v10632_v45 }
 0x113   : > { %8473 = vmatmul.mubr.msk.f32.gmra.mxu0 %vm475_vm0, %v10525_v35  ;;  %8493 = vmatmul.mubr.msk.f32.gmra.mxu1 %vm475_vm0, %v10525_v35 }
 0x114   : > { %8574 = vmatprep.subr.msk.mxu0 %vm3924_vm8, %v14525_v19  ;;  %8594 = vmatprep.subr.msk.mxu1 %vm3926_vm9, %v14525_v19  ;;  %vm3901_vm8 = vcmp.eq.s32.totalorder %v9543_v21, %v10636_v46  ;;  %vm3892_vm9 = vcmp.eq.s32.totalorder %v9561_v23, %v10620_v43 }
 0x115   : > { %8575 = vmatpush1.msk.msra.mxu0 %vm3923_vm10, %v14525_v19  ;;  %8595 = vmatpush1.msk.msra.mxu1 %vm3925_vm11, %v14525_v19  ;;  %vm3894_vm10 = vcmp.eq.s32.totalorder %v9561_v23, %v10624_v44  ;;  %vm3891_vm11 = vcmp.eq.s32.totalorder %v9561_v23, %v10632_v45 }
 0x116   : > { %8576 = vmatprep.subr.msk.mxu0 %vm3916_vm12, %v14525_v19  ;;  %8596 = vmatprep.subr.msk.mxu1 %vm3918_vm13, %v14525_v19  ;;  %vm3893_vm12 = vcmp.eq.s32.totalorder %v9561_v23, %v10636_v46  ;;  %vm3884_vm13 = vcmp.eq.s32.totalorder %v9454_v2, %v10620_v43  ;;  %v11001_v43 = vor.u32 %v8805_v30, %v8804_v16 }
 0x117   : > { %3487 = vmatprep.mubr.f32.mxu0 %v14523_v1  ;;  %3576 = vmatprep.mubr.f32.mxu1 %v14523_v1 }
 0x118   : > { %8577 = vmatpush1.msk.msra.mxu0 %vm3915_vm14, %v14525_v19  ;;  %8597 = vmatpush1.msk.msra.mxu1 %vm3917_vm15, %v14525_v19  ;;  %vm3886_vm14 = vcmp.eq.s32.totalorder %v9454_v2, %v10624_v44  ;;  %vm3883_vm15 = vcmp.eq.s32.totalorder %v9454_v2, %v10632_v45  ;;  %14603 = vst [vmem:[#allocation23_spill] sm:$0xff] %v11001_v43 }
 0x119   : > { %8474 = vmatmul.mubr.msk.f32.gmra.mxu0 %vm475_vm0, %v10559_v39  ;;  %8494 = vmatmul.mubr.msk.f32.gmra.mxu1 %vm475_vm0, %v10559_v39 }
 0x11a   : > { %8578 = vmatprep.subr.msk.mxu0 %vm3908_vm1, %v14525_v19  ;;  %8598 = vmatprep.subr.msk.mxu1 %vm3910_vm2, %v14525_v19  ;;  %vm3885_vm1 = vcmp.eq.s32.totalorder %v9454_v2, %v10636_v46  ;;  %vm3944_vm2 = vcmp.eq.s32.totalorder %v9473_v10, %v10742_v47  ;;  %v11026_v46 = vrot.slane %v10886_v5, %v9552_v22 }
 0x11b   : > { %8579 = vmatpush1.msk.msra.mxu0 %vm3907_vm3, %v14525_v19  ;;  %8599 = vmatpush1.msk.msra.mxu1 %vm3909_vm4, %v14525_v19  ;;  %vm3946_vm3 = vcmp.eq.s32.totalorder %v9473_v10, %v10752_v48  ;;  %vm3936_vm4 = vcmp.eq.s32.totalorder %v9479_v12, %v10742_v47 }
 0x11c   : > { %8580 = vmatprep.subr.msk.mxu0 %vm3900_vm5, %v14525_v19  ;;  %8600 = vmatprep.subr.msk.mxu1 %vm3902_vm6, %v14525_v19  ;;  %vm3938_vm5 = vcmp.eq.s32.totalorder %v9479_v12, %v10752_v48  ;;  %vm3928_vm6 = vcmp.eq.s32.totalorder %v9482_v13, %v10742_v47 }
 0x11d   : > { %3493 = vmatprep.mubr.f32.mxu0 %v14523_v1  ;;  %3582 = vmatprep.mubr.f32.mxu1 %v14523_v1 }
 0x11e   : > { %8581 = vmatpush1.msk.msra.mxu0 %vm3899_vm7, %v14525_v19  ;;  %8601 = vmatpush1.msk.msra.mxu1 %vm3901_vm8, %v14525_v19  ;;  %vm3943_vm7 = vcmp.eq.s32.totalorder %v9473_v10, %v10770_v51  ;;  %vm3945_vm8 = vcmp.eq.s32.totalorder %v9473_v10, %v10774_v53 }
 0x11f   : > { %8475 = vmatmul.mubr.msk.f32.gmra.mxu0 %vm475_vm0, %v10596_v42  ;;  %8495 = vmatmul.mubr.msk.f32.gmra.mxu1 %vm475_vm0, %v10596_v42  ;;  %v10999_v42 = vrot.slane %v10886_v5, %v9470_v9 }
 0x120   : > { %8582 = vmatprep.subr.msk.mxu0 %vm3892_vm9, %v14525_v19  ;;  %8602 = vmatprep.subr.msk.mxu1 %vm3894_vm10, %v14525_v19  ;;  %vm3935_vm9 = vcmp.eq.s32.totalorder %v9479_v12, %v10770_v51  ;;  %vm3937_vm10 = vcmp.eq.s32.totalorder %v9479_v12, %v10774_v53 }
 0x121   : > { %8583 = vmatpush1.msk.msra.mxu0 %vm3891_vm11, %v14525_v19  ;;  %8603 = vmatpush1.msk.msra.mxu1 %vm3893_vm12, %v14525_v19  ;;  %vm3930_vm11 = vcmp.eq.s32.totalorder %v9482_v13, %v10752_v48  ;;  %vm3927_vm12 = vcmp.eq.s32.totalorder %v9482_v13, %v10770_v51 }
 0x122   : > { %8584 = vmatprep.subr.msk.mxu0 %vm3884_vm13, %v14525_v19  ;;  %8604 = vmatprep.subr.msk.mxu1 %vm3886_vm14, %v14525_v19  ;;  %vm3929_vm13 = vcmp.eq.s32.totalorder %v9482_v13, %v10774_v53  ;;  %vm3920_vm14 = vcmp.eq.s32.totalorder %v9501_v18, %v10742_v47 }
 0x123   : > { %8585 = vmatpush1.msk.msra.mxu0 %vm3883_vm15, %v14525_v19  ;;  %4212 = vmatprep.mubr.f32.mxu0 %v14523_v1  ;;  %vm3922_vm15 = vcmp.eq.s32.totalorder %v9501_v18, %v10752_v48 }
 0x124   : > { %8605 = vmatpush1.msk.msra.mxu1 %vm3885_vm1, %v14525_v19  ;;  %4301 = vmatprep.mubr.f32.mxu1 %v14523_v1  ;;  %vm3919_vm1 = vcmp.eq.s32.totalorder %v9501_v18, %v10770_v51 }
 0x125   : > { %8586 = vmatmul.mubr.msk.f32.vlgmr.msra.gmra.mxu0 %vm475_vm0, %v10785_v55  ;;  %8606 = vmatmul.mubr.msk.f32.vlgmr.msra.gmra.mxu1 %vm475_vm0, %v10785_v55  ;;  %v10817_v57 = vpop.f32.mrf.mxu0  ;;  %v643_v59 = vpop.f32.mrf.mxu1 }
 0x126   : > { %8610 = vmatprep.subr.msk.mxu0 %vm3944_vm2, %v14525_v19  ;;  %8630 = vmatprep.subr.msk.mxu1 %vm3946_vm3, %v14525_v19  ;;  %vm3921_vm2 = vcmp.eq.s32.totalorder %v9501_v18, %v10774_v53  ;;  %vm10889_vm3 = vcmp.eq.s32.totalorder %v9454_v2, %v422_v60  ;;  %v11053_v60 = vld [vmem:[#allocation5 + $0x98] sm:$0xff] }
 0x127   : > { %8611 = vmatpush1.msk.msra.mxu0 %vm3943_vm7, %v14525_v19  ;;  %8631 = vmatpush1.msk.msra.mxu1 %vm3945_vm8, %v14525_v19  ;;  %v556_v62 = vpop.f32.mrf.mxu0  ;;  %vm3914_vm7 = vcmp.eq.s32.totalorder %v9528_v20, %v10752_v48  ;;  %v645_v15 = vpop.f32.mrf.mxu1  ;;  %vm3906_vm8 = vcmp.eq.s32.totalorder %v9543_v21, %v10752_v48  ;;  %v10949_v31 = vsel %vm10889_vm3, 1.0, %v14523_v1  ;;  %vm4857_vm3 = vcmp.eq.s32.totalorder %v9473_v10, %v10971_v34 }
 0x128   : > { %8612 = vmatprep.subr.msk.mxu0 %vm3936_vm4, %v14525_v19  ;;  %8632 = vmatprep.subr.msk.mxu1 %vm3938_vm5, %v14525_v19  ;;  %vm10864_vm4 = vcmp.eq.s32.totalorder %v9454_v2, %v418_v6  ;;  %vm10869_vm5 = vcmp.eq.s32.totalorder %v9454_v2, %v426_v58  ;;  %v845_v44 = vmul.f32 %v10949_v31, %v556_v62  ;;  %v8958_v6 = vld [vmem:[%s9442_s22 + $0x7] ss:$8 sm:$0xf]  ;;  %v11060_v62 = vand.u32 65535, %v11001_v43 }
 0x129   : > { %4218 = vmatprep.mubr.f32.mxu0 %v14523_v1  ;;  %4307 = vmatprep.mubr.f32.mxu1 %v14523_v1  ;;  %v10917_v17 = vsel %vm10864_vm4, 1.0, %v14523_v1  ;;  %v10922_v27 = vsel %vm10869_vm5, 1.0, %v14523_v1  ;;  %vm3896_vm4 = vcmp.eq.s32.totalorder %v9561_v23, %v10742_v47  ;;  %vm3898_vm5 = vcmp.eq.s32.totalorder %v9561_v23, %v10752_v48 }
 0x12a   : > { %8613 = vmatpush1.msk.msra.mxu0 %vm3935_vm9, %v14525_v19  ;;  %8633 = vmatpush1.msk.msra.mxu1 %vm3937_vm10, %v14525_v19  ;;  %vm3904_vm10 = vcmp.eq.s32.totalorder %v9543_v21, %v10742_v47  ;;  %vm3903_vm9 = vcmp.eq.s32.totalorder %v9543_v21, %v10770_v51  ;;  %v844_v38 = vmul.f32 %v10917_v17, %v10817_v57 }
 0x12b   : > { %8587 = vmatmul.mubr.msk.f32.gmra.mxu0 %vm475_vm0, %v10851_v61  ;;  %8607 = vmatmul.mubr.msk.f32.gmra.mxu1 %vm475_vm0, %v10851_v61  ;;  %v10929_v29 = vpop.f32.mrf.mxu0  ;;  %v10973_v35 = vpop.f32.mrf.mxu1  ;;  %v846_v39 = vmul.f32 %v10922_v27, %v643_v59  ;;  %v8959_v59 = vld [vmem:[%s9442_s22 + $0x7] ss:$8 sm:$0xf0]  ;;  %v11173_v56 = vrot.slane %v11060_v62, %v9552_v22  ;;  %v11188_v40 = vrot.slane %v11060_v62, %v9573_v25 }
 0x12c   : > { %8614 = vmatprep.subr.msk.mxu0 %vm3928_vm6, %v14525_v19  ;;  %8634 = vmatprep.subr.msk.mxu1 %vm3930_vm11, %v14525_v19  ;;  %vm10925_vm6 = vcmp.eq.s32.totalorder %v9454_v2, %v430_v63  ;;  %vm3905_vm11 = vcmp.eq.s32.totalorder %v9543_v21, %v10774_v53  ;;  %v852_v57 = vrot.slane %v844_v38, 4  ;;  %v858_v63 = vrot.slane %v845_v44, 4 }
 0x12d   : > { %8615 = vmatpush1.msk.msra.mxu0 %vm3927_vm12, %v14525_v19  ;;  %8635 = vmatpush1.msk.msra.mxu1 %vm3929_vm13, %v14525_v19  ;;  %vm3895_vm12 = vcmp.eq.s32.totalorder %v9561_v23, %v10770_v51  ;;  %vm3897_vm13 = vcmp.eq.s32.totalorder %v9561_v23, %v10774_v53  ;;  %v10987_v41 = vsel %vm10925_vm6, 1.0, %v14523_v1  ;;  %v562_v45 = vpop.f32.mrf.mxu0  ;;  %v11029_v50 = vpop.f32.mrf.mxu1  ;;  %vm14605_vm6 = vcmp.eq.s32.totalorder %v9528_v20, %v10770_v51 }
 0x12e   : > { %8616 = vmatprep.subr.msk.mxu0 %vm3920_vm14, %v14525_v19  ;;  %8636 = vmatprep.subr.msk.mxu1 %vm3922_vm15, %v14525_v19  ;;  %vm3888_vm14 = vcmp.eq.s32.totalorder %v9454_v2, %v10742_v47  ;;  %vm3890_vm15 = vcmp.eq.s32.totalorder %v9454_v2, %v10752_v48  ;;  %v847_v49 = vmul.f32 %v10987_v41, %v645_v15  ;;  %v864_v58 = vrot.slane %v846_v39, 4 }
 0x12f   : > { %4224 = vmatprep.mubr.f32.mxu0 %v14523_v1  ;;  %4313 = vmatprep.mubr.f32.mxu1 %v14523_v1  ;;  %v908_v16 = vmul.f32 %v10917_v17, %v10929_v29  ;;  %v11090_v30 = vor.u32 %v8959_v59, %v8958_v6  ;;  %v853_v29 = vadd.f32 %v852_v57, %v844_v38  ;;  %v14608_v6 = vmov 1.0  }
 0x130   : > { %8617 = vmatpush1.msk.msra.mxu0 %vm3919_vm1, %v14525_v19  ;;  %8637 = vmatpush1.msk.msra.mxu1 %vm3921_vm2, %v14525_v19  ;;  %vm3887_vm1 = vcmp.eq.s32.totalorder %v9454_v2, %v10770_v51  ;;  %vm14604_vm2 = vcmp.eq.s32.totalorder %v9528_v20, %v10742_v47  ;;  %v870_v15 = vrot.slane %v847_v49, 4  ;;  %v11114_v59 = vrot.slane %v11060_v62, %v9457_v3 }
 0x131   : > { %8588 = vmatmul.mubr.msk.f32.gmra.mxu0 %vm475_vm0, %v10959_v32  ;;  %8608 = vmatmul.mubr.msk.f32.gmra.mxu1 %vm475_vm0, %v10959_v32  ;;  %v11062_v0 = vpop.f32.mrf.mxu0  ;;  %v11088_v28 = vpop.f32.mrf.mxu1  ;;  %14607 = vst [vmem:[#allocation24_spill] sm:$0xff] %v11090_v30  ;;  %v859_v43 = vadd.f32 %v858_v63, %v845_v44  ;;  %v909_v44 = vmul.f32 %v10949_v31, %v562_v45  ;;  %v11160_v47 = vand.u32 65535, %v11090_v30  ;;  %v14610_v48 = vmov 0.0   ;;  %14611 = vst [vmem:[#allocation26_spill] sm:$0xff] %v11173_v56 }
 0x132   : > { %8618 = vmatprep.subr.msk.mxu0 %vm14604_vm2, %v14525_v19  ;;  %8638 = vmatprep.subr.msk.mxu1 %vm3914_vm7, %v14525_v19  ;;  %vm14606_vm7 = vcmp.eq.s32.totalorder %v9528_v20, %v10774_v53  ;;  %vm4855_vm2 = vcmp.eq.s32.totalorder %v9473_v10, %v10967_v33  ;;  %v11155_v57 = vrot.slane %v11060_v62, %v9470_v9 }
 0x133   : > { %8619 = vmatpush1.msk.msra.mxu0 %vm14605_vm6, %v14525_v19  ;;  %8639 = vmatpush1.msk.msra.mxu1 %vm14606_vm7, %v14525_v19  ;;  %vm4854_vm6 = vcmp.eq.s32.totalorder %v9473_v10, %v10979_v37  ;;  %vm4856_vm7 = vcmp.eq.s32.totalorder %v9473_v10, %v10999_v42  ;;  %v11118_v38 = vpop.f32.mrf.mxu0  ;;  %v871_v45 = vadd.f32 %v870_v15, %v847_v49  ;;  %v11157_v63 = vpop.f32.mrf.mxu1  ;;  %v854_v49 = vrot.slane %v853_v29, 2 }
 0x134   : > { %8620 = vmatprep.subr.msk.mxu0 %vm3904_vm10, %v14525_v19  ;;  %8640 = vmatprep.subr.msk.mxu1 %vm3906_vm8, %v14525_v19  ;;  %vm4847_vm8 = vcmp.eq.s32.totalorder %v9479_v12, %v10967_v33  ;;  %vm4849_vm10 = vcmp.eq.s32.totalorder %v9479_v12, %v10971_v34  ;;  %14609 = vst [vmem:[#allocation25_spill] sm:$0xff] %v11160_v47  ;;  %14614 = vst [vmem:[#allocation28_spill] sm:$0xff] %v11188_v40  ;;  %v860_v14 = vrot.slane %v859_v43, 2 }
 0x135   : > { %4230 = vmatprep.mubr.f32.mxu0 %v14523_v1  ;;  %4319 = vmatprep.mubr.f32.mxu1 %v14523_v1  ;;  %v11102_v1 = vrot.slane %v10886_v5, %v9582_v26  ;;  %v910_v5 = vmul.f32 %v10922_v27, %v10973_v35  ;;  %v11134_v35 = vrot.slane %v11060_v62, %v9464_v7 }
 0x136   : > { %8621 = vmatpush1.msk.msra.mxu0 %vm3903_vm9, %v14525_v19  ;;  %8641 = vmatpush1.msk.msra.mxu1 %vm3905_vm11, %v14525_v19  ;;  %vm4846_vm9 = vcmp.eq.s32.totalorder %v9479_v12, %v10979_v37  ;;  %vm4848_vm11 = vcmp.eq.s32.totalorder %v9479_v12, %v10999_v42  ;;  %v865_v19 = vadd.f32 %v864_v58, %v846_v39  ;;  %v916_v58 = vrot.slane %v908_v16, 4 }
 0x137   : > { %8589 = vmatmul.mubr.msk.f32.gmra.mxu0 %vm475_vm0, %v11053_v60  ;;  %8609 = vmatmul.mubr.msk.f32.gmra.mxu1 %vm475_vm0, %v11053_v60  ;;  %v11138_v39 = vrot.slane %v11060_v62, %v9467_v8  ;;  %v911_v30 = vmul.f32 %v10987_v41, %v11029_v50  ;;  %v11184_v51 = vrot.slane %v11060_v62, %v9564_v24  ;;  %v928_v52 = vrot.slane %v910_v5, 4  ;;  %v11190_v56 = vpop.f32.mrf.mxu0 }
 0x138   : > { %8622 = vmatprep.subr.msk.mxu0 %vm3896_vm4, %v14608_v6  ;;  %8642 = vmatprep.subr.msk.mxu1 %vm3898_vm5, %v14608_v6  ;;  %vm4839_vm4 = vcmp.eq.s32.totalorder %v9482_v13, %v10967_v33  ;;  %vm4841_vm5 = vcmp.eq.s32.totalorder %v9482_v13, %v10971_v34  ;;  %v866_v15 = vrot.slane %v865_v19, 2  ;;  %v922_v50 = vrot.slane %v909_v44, 4 }
 0x139   : > { %8623 = vmatpush1.msk.msra.mxu0 %vm3895_vm12, %v14608_v6  ;;  %8643 = vmatpush1.msk.msra.mxu1 %vm3897_vm13, %v14608_v6  ;;  %vm4838_vm12 = vcmp.eq.s32.totalorder %v9482_v13, %v10979_v37  ;;  %vm4840_vm13 = vcmp.eq.s32.totalorder %v9482_v13, %v10999_v42  ;;  %14613 = vst [vmem:[#allocation27_spill] sm:$0xff] %v11184_v51 }
 0x13a   : > { %8624 = vmatprep.subr.msk.mxu0 %vm3888_vm14, %v14608_v6  ;;  %8644 = vmatprep.subr.msk.mxu1 %vm3890_vm15, %v14608_v6  ;;  %vm4831_vm14 = vcmp.eq.s32.totalorder %v9501_v18, %v10967_v33  ;;  %vm4832_vm15 = vcmp.eq.s32.totalorder %v9501_v18, %v10999_v42  ;;  %v434_v40 = vrot.slane %v10781_v54, %v9573_v25 }
 0x13b   : > { %8625 = vmatpush1.msk.msra.mxu0 %vm3887_vm1, %v14608_v6  ;;  %4390 = vmatprep.mubr.f32.mxu0 %v14610_v48  ;;  %vm14612_vm1 = vcmp.eq.s32.totalorder %v9454_v2, %v10774_v53  ;;  %v11202_v53 = vrot.slane %v11060_v62, %v9582_v26  ;;  %v442_v51 = vrot.slane %v10781_v54, %v9582_v26 }
 0x13c   : > { %8645 = vmatpush1.msk.msra.mxu1 %vm14612_vm1, %v14608_v6  ;;  %4479 = vmatprep.mubr.f32.mxu1 %v14610_v48  ;;  %vm4830_vm1 = vcmp.eq.s32.totalorder %v9501_v18, %v10979_v37  ;;  %v917_v62 = vadd.f32 %v916_v58, %v908_v16  ;;  %v11220_v25 = vrot.slane %v11160_v47, %v9457_v3 }
 0x13d   : > { %8626 = vmatmul.mubr.msk.f32.vlgmr.msra.gmra.mxu0 %vm475_vm0, %v10785_v55  ;;  %8646 = vmatmul.mubr.msk.f32.vlgmr.msra.gmra.mxu1 %vm475_vm0, %v10785_v55  ;;  %14615 = vst [vmem:[#allocation29_spill] sm:$0xff] %v11202_v53  ;;  %v872_v55 = vrot.slane %v871_v45, 2  ;;  %v11216_v53 = vpop.f32.mrf.mxu1  ;;  %v438_v26 = vrot.slane %v10781_v54, %v9552_v22  ;;  %v855_v16 = vadd.f32 %v854_v49, %v853_v29  ;;  %v11250_v49 = vpop.f32.mrf.mxu0 }
 0x13e   : > { %8724 = vmatprep.subr.msk.mxu0 %vm4855_vm2, %v14608_v6  ;;  %8744 = vmatprep.subr.msk.mxu1 %vm4857_vm3, %v14608_v6  ;;  %14616 = vst [vmem:[#allocation30_spill] sm:$0xff] %v11220_v25  ;;  %vm4823_vm3 = vcmp.eq.s32.totalorder %v9528_v20, %v10967_v33  ;;  %vm4825_vm2 = vcmp.eq.s32.totalorder %v9528_v20, %v10971_v34  ;;  %v934_v25 = vrot.slane %v911_v30, 4 }
 0x13f   : > { %8725 = vmatpush1.msk.msra.mxu0 %vm4854_vm6, %v14608_v6  ;;  %8745 = vmatpush1.msk.msra.mxu1 %vm4856_vm7, %v14608_v6  ;;  %v867_v58 = vadd.f32 %v866_v15, %v865_v19  ;;  %v446_v22 = vrot.slane %v10781_v54, %v9564_v24  ;;  %v861_v19 = vadd.f32 %v860_v14, %v859_v43 }
 0x140   : > { %8726 = vmatprep.subr.msk.mxu0 %vm4847_vm8, %v14608_v6  ;;  %8746 = vmatprep.subr.msk.mxu1 %vm4849_vm10, %v14608_v6  ;;  %v929_v29 = vadd.f32 %v928_v52, %v910_v5  ;;  %v11254_v54 = vrot.slane %v11160_v47, %v9464_v7  ;;  %v923_v15 = vadd.f32 %v922_v50, %v909_v44  ;;  %v918_v5 = vrot.slane %v917_v62, 2 }
 0x141   : > { %4396 = vmatprep.mubr.f32.mxu0 %v14610_v48  ;;  %4485 = vmatprep.mubr.f32.mxu1 %v14610_v48  ;;  %vm11263_vm7 = vcmp.eq.s32.totalorder %v9454_v2, %v434_v40  ;;  %v11269_v14 = vrot.slane %v11160_v47, %v9467_v8  ;;  %v873_v43 = vadd.f32 %v872_v55, %v871_v45  ;;  %v11279_v40 = vpop.f32.mrf.mxu1  ;;  %v856_v45 = vrot.slane %v855_v16, 1 }
 0x142   : > { %14617 = vst [vmem:[#allocation31_spill] sm:$0xff] %v11254_v54  ;;  %8727 = vmatpush1.msk.msra.mxu0 %vm4846_vm9, %v14608_v6  ;;  %8747 = vmatpush1.msk.msra.mxu1 %vm4848_vm11, %v14608_v6  ;;  %vm11282_vm10 = vcmp.eq.s32.totalorder %v9454_v2, %v442_v51  ;;  %vm11287_vm8 = vcmp.eq.s32.totalorder %v9454_v2, %v438_v26  ;;  %v868_v51 = vrot.slane %v867_v58, 1  ;;  %v11339_v54 = vsel %vm11263_vm7, 1.0, %v14610_v48 }
 0x143   : > { %14620 = vst [vmem:[#allocation32_spill] sm:$0xff] %v11269_v14  ;;  %8627 = vmatmul.mubr.msk.f32.gmra.mxu0 %vm475_vm0, %v10851_v61  ;;  %8647 = vmatmul.mubr.msk.f32.gmra.mxu1 %vm475_vm0, %v10851_v61  ;;  %vm4814_vm9 = vcmp.eq.s32.totalorder %v9543_v21, %v10979_v37  ;;  %vm4816_vm11 = vcmp.eq.s32.totalorder %v9543_v21, %v10999_v42  ;;  %v862_v61 = vrot.slane %v861_v19, 1  ;;  %v930_v14 = vrot.slane %v929_v29, 2  ;;  %v821_v44 = vpop.f32.mrf.mxu1 }
 0x144   : > { %v935_v55 = vadd.f32 %v934_v25, %v911_v30  ;;  %vm11300_vm6 = vcmp.eq.s32.totalorder %v9454_v2, %v446_v22  ;;  %8728 = vmatprep.subr.msk.mxu0 %vm4839_vm4, %v14608_v6  ;;  %8748 = vmatprep.subr.msk.mxu1 %vm4841_vm5, %v14608_v6  ;;  %v11314_v25 = vmul.f32 %v10917_v17, %v11062_v0  ;;  %v732_v22 = vpop.f32.mrf.mxu0  ;;  %v924_v0 = vrot.slane %v923_v15, 2 }
 0x145   : > { %v11318_v30 = vrot.slane %v11160_v47, %v9470_v9  ;;  %8729 = vmatpush1.msk.msra.mxu0 %vm4838_vm12, %v14608_v6  ;;  %8749 = vmatpush1.msk.msra.mxu1 %vm4840_vm13, %v14608_v6  ;;  %vm4807_vm4 = vcmp.eq.s32.totalorder %v9561_v23, %v10967_v33  ;;  %vm4809_vm5 = vcmp.eq.s32.totalorder %v9561_v23, %v10971_v34  ;;  %v11344_v24 = vsel %vm11282_vm10, 1.0, %v14610_v48 }
 0x146   : > { %8730 = vmatprep.subr.msk.mxu0 %vm4831_vm14, %v14608_v6  ;;  %vm14628_vm12 = vcmp.eq.s32.totalorder %v9501_v18, %v10971_v34  ;;  %vm4806_vm13 = vcmp.eq.s32.totalorder %v9561_v23, %v10979_v37  ;;  %vm4808_vm7 = vcmp.eq.s32.totalorder %v9561_v23, %v10999_v42  ;;  %v919_v52 = vadd.f32 %v918_v5, %v917_v62 }
 0x147   : > { %14627 = vst [vmem:[#allocation33_spill] sm:$0xff] %v11318_v30  ;;  %v11334_v30 = vmul.f32 %v10922_v27, %v11088_v28  ;;  %8750 = vmatprep.subr.msk.mxu1 %vm14628_vm12, %v14608_v6  ;;  %v874_v28 = vrot.slane %v873_v43, 1  ;;  %v11361_v47 = vsel %vm11287_vm8, 1.0, %v14610_v48  ;;  %v11366_v7 = vsel %vm11300_vm6, 1.0, %v14610_v48  ;;  %4402 = vmatprep.mubr.f32.mxu0 %v14610_v48 }
 0x148   : > { %4491 = vmatprep.mubr.f32.mxu1 %v14610_v48  ;;  %vm4799_vm14 = vcmp.eq.s32.totalorder %v9454_v2, %v10967_v33  ;;  %vm4801_vm10 = vcmp.eq.s32.totalorder %v9454_v2, %v10971_v34  ;;  %v11374_v62 = vadd.f32 %v856_v45, %v855_v16  ;;  %v11376_v5 = vadd.f32 %v868_v51, %v867_v58  ;;  %v734_v51 = vpop.f32.mrf.mxu0 }
 0x149   : > { %v936_v50 = vrot.slane %v935_v55, 2  ;;  %v973_v26 = vmul.f32 %v10949_v31, %v11118_v38  ;;  %8731 = vmatpush1.msk.msra.mxu0 %vm4830_vm1, %v14608_v6  ;;  %8751 = vmatpush1.msk.msra.mxu1 %vm4832_vm15, %v14608_v6  ;;  %vm4798_vm6 = vcmp.eq.s32.totalorder %v9454_v2, %v10979_v37  ;;  %v11390_v16 = vadd.f32 %v862_v61, %v861_v19 }
 0x14a   : > { %14629 = vst [vmem:[#allocation34_spill] sm:$0xff] %v11376_v5  ;;  %v931_v58 = vadd.f32 %v930_v14, %v929_v29  ;;  %v980_v45 = vrot.slane %v11314_v25, 4  ;;  %v975_v38 = vmul.f32 %v10987_v41, %v11157_v63  ;;  %8628 = vmatmul.mubr.msk.f32.gmra.mxu0 %vm475_vm0, %v10959_v32  ;;  %8648 = vmatmul.mubr.msk.f32.gmra.mxu1 %vm475_vm0, %v10959_v32  ;;  %v992_v19 = vrot.slane %v11334_v30, 4 }
 0x14b   : > { %14630 = vst [vmem:[#allocation35_spill] sm:$0xff] %v11390_v16  ;;  %vm4800_vm15 = vcmp.eq.s32.totalorder %v9454_v2, %v10999_v42  ;;  %v925_v5 = vadd.f32 %v924_v0, %v923_v15  ;;  %v1036_v29 = vmul.f32 %v10917_v17, %v11190_v56  ;;  %v1038_v14 = vmul.f32 %v10922_v27, %v11216_v53  ;;  %v823_v17 = vpop.f32.mrf.mxu1 }
 0x14c   : > { %8732 = vmatprep.subr.msk.mxu0 %vm4823_vm3, %v14608_v6  ;;  %8752 = vmatprep.subr.msk.mxu1 %vm4825_vm2, %v14608_v6  ;;  %v11414_v32 = vadd.f32 %v874_v28, %v873_v43  ;;  %v920_v63 = vrot.slane %v919_v52, 1  ;;  %v11418_v15 = vmul.f32 %v10949_v31, %v11250_v49  ;;  %v11422_v56 = vmul.f32 %v10987_v41, %v11279_v40 }
 0x14d   : > { %vm14632_vm1 = vcmp.eq.s32.totalorder %v9528_v20, %v10979_v37  ;;  %vm14633_vm3 = vcmp.eq.s32.totalorder %v9528_v20, %v10999_v42  ;;  %vm4859_vm2 = vcmp.eq.s32.totalorder %v9473_v10, %v11026_v46  ;;  %v11436_v27 = vadd.f32 %v936_v50, %v935_v55  ;;  %v738_v55 = vpop.f32.mrf.mxu0  ;;  %4408 = vmatprep.mubr.f32.mxu0 %v14610_v48 }
 0x14e   : > { %14631 = vst [vmem:[#allocation36_spill] sm:$0xff] %v11414_v32  ;;  %8733 = vmatpush1.msk.msra.mxu0 %vm14632_vm1, %v14608_v6  ;;  %8753 = vmatpush1.msk.msra.mxu1 %vm14633_vm3, %v14608_v6  ;;  %v986_v31 = vrot.slane %v973_v26, 4  ;;  %v11439_v41 = vmul.f32 %v11339_v54, %v732_v22  ;;  %v11442_v53 = vmul.f32 %v11344_v24, %v821_v44  ;;  %v932_v49 = vrot.slane %v931_v58, 1 }
 0x14f   : > { %vm14634_vm12 = vcmp.eq.s32.totalorder %v9543_v21, %v10967_v33  ;;  %vm14635_vm1 = vcmp.eq.s32.totalorder %v9543_v21, %v10971_v34  ;;  %vm4858_vm3 = vcmp.eq.s32.totalorder %v9473_v10, %v11084_v11  ;;  %vm4860_vm8 = vcmp.eq.s32.totalorder %v9473_v10, %v11102_v1  ;;  %4497 = vmatprep.mubr.f32.mxu1 %v14610_v48 }
 0x150   : > { %8734 = vmatprep.subr.msk.mxu0 %vm14634_vm12, %v14608_v6  ;;  %8754 = vmatprep.subr.msk.mxu1 %vm14635_vm1, %v14608_v6  ;;  %v981_v43 = vadd.f32 %v980_v45, %v11314_v25  ;;  %v998_v40 = vrot.slane %v975_v38, 4  ;;  %v11458_v61 = vshra.s32 %v9706_v36, 16  ;;  %vm4851_vm12 = vcmp.eq.s32.totalorder %v9479_v12, %v11026_v46  ;;  %v827_v45 = vpop.f32.mrf.mxu1 }
 0x151   : > { %vm4853_vm1 = vcmp.eq.s32.totalorder %v9479_v12, %v11072_v4  ;;  %v926_v22 = vrot.slane %v925_v5, 1  ;;  %v993_v0 = vadd.f32 %v992_v19, %v11334_v30  ;;  %v1044_v28 = vrot.slane %v1036_v29, 4  ;;  %8735 = vmatpush1.msk.msra.mxu0 %vm4814_vm9, %v14608_v6  ;;  %8755 = vmatpush1.msk.msra.mxu1 %vm4816_vm11, %v14608_v6 }
 0x152   : > { %v1056_v25 = vrot.slane %v1038_v14, 4  ;;  %v11475_v36 = vadd.f32 %v920_v63, %v919_v52  ;;  %v1050_v44 = vrot.slane %v11418_v15, 4  ;;  %v1062_v50 = vrot.slane %v11422_v56, 4  ;;  %8629 = vmatmul.mubr.msk.f32.gmra.mxu0 %vm475_vm0, %v11053_v60  ;;  %8649 = vmatmul.mubr.msk.f32.gmra.mxu1 %vm475_vm0, %v11053_v60  ;;  %v829_v34 = vpop.f32.mrf.mxu1 }
 0x153   : > { %v849_v30 = vmul.f32 %v11361_v47, %v734_v51  ;;  %vm4850_vm9 = vcmp.eq.s32.totalorder %v9479_v12, %v11084_v11  ;;  %vm4852_vm11 = vcmp.eq.s32.totalorder %v9479_v12, %v11102_v1  ;;  %v938_v52 = vrot.slane %v11436_v27, 1  ;;  %8736 = vmatprep.subr.msk.mxu0 %vm4807_vm4, %v14608_v6  ;;  %8756 = vmatprep.subr.msk.mxu1 %vm4809_vm5, %v14608_v6 }
 0x154   : > { %v987_v19 = vadd.f32 %v986_v31, %v973_v26  ;;  %v876_v63 = vrot.slane %v11439_v41, 4  ;;  %v888_v51 = vrot.slane %v11442_v53, 4  ;;  %v11499_v60 = vadd.f32 %v932_v49, %v931_v58  ;;  %v740_v31 = vpop.f32.mrf.mxu0  ;;  %8737 = vmatpush1.msk.msra.mxu0 %vm4806_vm13, %v14608_v6  ;;  %8757 = vmatpush1.msk.msra.mxu1 %vm4808_vm7, %v14608_v6 }
 0x155   : > { %v982_v32 = vrot.slane %v981_v43, 2  ;;  %v11501_v16 = vadd.f32 %v998_v40, %v975_v38  ;;  %v11504_v26 = vmul.f32 %v11366_v7, %v823_v17  ;;  %vm4843_vm4 = vcmp.eq.s32.totalorder %v9482_v13, %v11026_v46  ;;  %8738 = vmatprep.subr.msk.mxu0 %vm4799_vm14, %v14608_v6  ;;  %8758 = vmatprep.subr.msk.mxu1 %vm4801_vm10, %v14608_v6  ;;  %v11532_v40 = vld [vmem:[#allocation5 + $0xa0] sm:$0xff] }
 0x156   : > { %14636 = vst [vmem:[#allocation37_spill] sm:$0xff] %v11499_v60  ;;  %vm4845_vm5 = vcmp.eq.s32.totalorder %v9482_v13, %v11072_v4  ;;  %v11518_v58 = vadd.f32 %v926_v22, %v925_v5  ;;  %v994_v38 = vrot.slane %v993_v0, 2  ;;  %v11520_v17 = vadd.f32 %v1044_v28, %v1036_v29  ;;  %8739 = vmatpush1.msk.msra.mxu0 %vm4798_vm6, %v14608_v6 }
 0x157   : > { %v11522_v49 = vadd.f32 %v1056_v25, %v1038_v14  ;;  %vm4842_vm13 = vcmp.eq.s32.totalorder %v9482_v13, %v11084_v11  ;;  %vm4844_vm7 = vcmp.eq.s32.totalorder %v9482_v13, %v11102_v1  ;;  %v11539_v5 = vadd.f32 %v1050_v44, %v11418_v15  ;;  %5127 = vmatprep.mubr.f32.mxu0 %v14610_v48  ;;  %v11573_v44 = vpop.f32.mrf.mxu0 }
 0x158   : > { %14637 = vst [vmem:[#allocation38_spill] sm:$0xff] %v11518_v58  ;;  %v11542_v29 = vadd.f32 %v1062_v50, %v11422_v56  ;;  %v882_v33 = vrot.slane %v849_v30, 4  ;;  %v11545_v14 = vmul.f32 %v11339_v54, %v738_v55  ;;  %vm4835_vm14 = vcmp.eq.s32.totalorder %v9501_v18, %v11026_v46  ;;  %8759 = vmatpush1.msk.msra.mxu1 %vm4800_vm15, %v14608_v6 }
 0x159   : > { %vm4837_vm10 = vcmp.eq.s32.totalorder %v9501_v18, %v11072_v4  ;;  %v11557_v15 = vadd.f32 %v938_v52, %v11436_v27  ;;  %v988_v56 = vrot.slane %v987_v19, 2  ;;  %v877_v55 = vadd.f32 %v876_v63, %v11439_v41  ;;  %5216 = vmatprep.mubr.f32.mxu1 %v14610_v48  ;;  %8740 = vmatmul.mubr.msk.f32.vlgmr.msra.gmra.mxu0 %vm475_vm0, %v11532_v40  ;;  %v11603_v52 = vpop.f32.mrf.mxu1 }
 0x15a   : > { %v889_v22 = vadd.f32 %v888_v51, %v11442_v53  ;;  %v11566_v37 = vadd.f32 %v982_v32, %v981_v43  ;;  %v1000_v28 = vrot.slane %v11501_v16, 2  ;;  %v894_v25 = vrot.slane %v11504_v26, 4  ;;  %8760 = vmatmul.mubr.msk.f32.vlgmr.msra.gmra.mxu1 %vm475_vm0, %v11532_v40  ;;  %8764 = vmatprep.subr.msk.mxu0 %vm4859_vm2, %v14608_v6 }
 0x15b   : > { %14638 = vst [vmem:[#allocation39_spill] sm:$0xff] %v11557_v15  ;;  %v11571_v27 = vmul.f32 %v11344_v24, %v827_v45  ;;  %vm4836_vm15 = vcmp.eq.s32.totalorder %v9501_v18, %v11102_v1  ;;  %v11583_v42 = vadd.f32 %v994_v38, %v993_v0  ;;  %v1046_v32 = vrot.slane %v11520_v17, 2  ;;  %8765 = vmatpush1.msk.msra.mxu0 %vm4858_vm3, %v14608_v6  ;;  %v11630_v38 = vld [vmem:[#allocation5 + $0xa8] sm:$0xff]  ;;  %v11644_v15 = vpop.f32.mrf.mxu0 }
 0x15c   : > { %v1058_v41 = vrot.slane %v11522_v49, 2  ;;  %v11588_v53 = vmul.f32 %v11361_v47, %v740_v31  ;;  %vm14639_vm6 = vcmp.eq.s32.totalorder %v9473_v10, %v11072_v4  ;;  %v1052_v43 = vrot.slane %v11539_v5, 2  ;;  %8766 = vmatprep.subr.msk.mxu0 %vm4851_vm12, %v14608_v6  ;;  %5133 = vmatprep.mubr.f32.mxu0 %v14610_v48 }
 0x15d   : > { %8784 = vmatprep.subr.msk.mxu1 %vm14639_vm6, %v14608_v6  ;;  %v1064_v0 = vrot.slane %v11542_v29, 2  ;;  %v11600_v50 = vadd.f32 %v882_v33, %v849_v30  ;;  %v940_v45 = vrot.slane %v11545_v14, 4  ;;  %vm4827_vm2 = vcmp.eq.s32.totalorder %v9528_v20, %v11026_v46  ;;  %5222 = vmatprep.mubr.f32.mxu1 %v14610_v48 }
 0x15e   : > { %8785 = vmatpush1.msk.msra.mxu1 %vm4860_vm8, %v14608_v6  ;;  %vm4829_vm6 = vcmp.eq.s32.totalorder %v9528_v20, %v11072_v4  ;;  %v11617_v30 = vadd.f32 %v988_v56, %v987_v19  ;;  %v878_v63 = vrot.slane %v877_v55, 2  ;;  %v890_v51 = vrot.slane %v889_v22, 2  ;;  %8767 = vmatpush1.msk.msra.mxu0 %vm4850_vm9, %v14608_v6 }
 0x15f   : > { %v11620_v31 = vmul.f32 %v11366_v7, %v829_v34  ;;  %8786 = vmatprep.subr.msk.mxu1 %vm4853_vm1, %v14608_v6  ;;  %vm4826_vm8 = vcmp.eq.s32.totalorder %v9528_v20, %v11084_v11  ;;  %vm4828_vm3 = vcmp.eq.s32.totalorder %v9528_v20, %v11102_v1  ;;  %v984_v19 = vrot.slane %v11566_v37, 1  ;;  %8741 = vmatmul.mubr.msk.f32.gmra.mxu0 %vm475_vm0, %v11630_v38 }
 0x160   : > { %v11638_v33 = vadd.f32 %v1000_v28, %v11501_v16  ;;  %v11641_v34 = vadd.f32 %v894_v25, %v11504_v26  ;;  %v952_v56 = vrot.slane %v11571_v27, 4  ;;  %vm4819_vm12 = vcmp.eq.s32.totalorder %v9543_v21, %v11026_v46  ;;  %8787 = vmatpush1.msk.msra.mxu1 %vm4852_vm11, %v14608_v6  ;;  %8768 = vmatprep.subr.msk.mxu0 %vm4843_vm4, %v14608_v6 }
 0x161   : > { %vm4821_vm1 = vcmp.eq.s32.totalorder %v9543_v21, %v11072_v4  ;;  %v996_v16 = vrot.slane %v11583_v42, 1  ;;  %v1047_v28 = vadd.f32 %v1046_v32, %v11520_v17  ;;  %v1059_v26 = vadd.f32 %v1058_v41, %v11522_v49  ;;  %v11674_v32 = vpop.f32.mrf.mxu1  ;;  %8761 = vmatmul.mubr.msk.f32.gmra.mxu1 %vm475_vm0, %v11630_v38  ;;  %8788 = vmatprep.subr.msk.mxu1 %vm4845_vm5, %v14608_v6 }
 0x162   : > { %v946_v25 = vrot.slane %v11588_v53, 4  ;;  %v11665_v58 = vadd.f32 %v1052_v43, %v11539_v5  ;;  %v11668_v60 = vadd.f32 %v1064_v0, %v11542_v29  ;;  %v884_v17 = vrot.slane %v11600_v50, 2  ;;  %8769 = vmatpush1.msk.msra.mxu0 %vm4842_vm13, %v14608_v6  ;;  %8789 = vmatpush1.msk.msra.mxu1 %vm4844_vm7, %v14608_v6 }
 0x163   : > { %v11672_v49 = vadd.f32 %v940_v45, %v11545_v14  ;;  %vm4818_vm9 = vcmp.eq.s32.totalorder %v9543_v21, %v11084_v11  ;;  %vm4820_vm11 = vcmp.eq.s32.totalorder %v9543_v21, %v11102_v1  ;;  %v990_v5 = vrot.slane %v11617_v30, 1  ;;  %v11702_v45 = vpop.f32.mrf.mxu0  ;;  %8770 = vmatprep.subr.msk.mxu0 %vm4835_vm14, %v14608_v6  ;;  %8790 = vmatprep.subr.msk.mxu1 %vm4837_vm10, %v14608_v6 }
 0x164   : > { %v879_v29 = vadd.f32 %v878_v63, %v877_v55  ;;  %v891_v41 = vadd.f32 %v890_v51, %v889_v22  ;;  %v958_v14 = vrot.slane %v11620_v31, 4  ;;  %v11695_v43 = vadd.f32 %v984_v19, %v11566_v37  ;;  %v11730_v19 = vld [vmem:[#allocation5 + $0xb0] sm:$0xff]  ;;  %5139 = vmatprep.mubr.f32.mxu0 %v14610_v48  ;;  %5228 = vmatprep.mubr.f32.mxu1 %v14610_v48 }
 0x165   : > { %v1002_v0 = vrot.slane %v11638_v33, 1  ;;  %v896_v55 = vrot.slane %v11641_v34, 2  ;;  %v11700_v22 = vadd.f32 %v952_v56, %v11571_v27  ;;  %vm4811_vm4 = vcmp.eq.s32.totalorder %v9561_v23, %v11026_v46  ;;  %8791 = vmatpush1.msk.msra.mxu1 %vm4836_vm15, %v14608_v6  ;;  %8742 = vmatmul.mubr.msk.f32.gmra.mxu0 %vm475_vm0, %v11730_v19 }
 0x166   : > { %14640 = vst [vmem:[#allocation40_spill] sm:$0xff] %v11695_v43  ;;  %vm4813_vm5 = vcmp.eq.s32.totalorder %v9561_v23, %v11072_v4  ;;  %v11717_v37 = vadd.f32 %v996_v16, %v11583_v42  ;;  %v1048_v27 = vrot.slane %v1047_v28, 1  ;;  %v1060_v63 = vrot.slane %v1059_v26, 1  ;;  %8762 = vmatmul.mubr.msk.f32.gmra.mxu1 %vm475_vm0, %v11730_v19  ;;  %8792 = vmatprep.subr.msk.mxu1 %vm4829_vm6, %v14608_v6 }
 0x167   : > { %v11720_v51 = vadd.f32 %v946_v25, %v11588_v53  ;;  %vm4810_vm13 = vcmp.eq.s32.totalorder %v9561_v23, %v11084_v11  ;;  %v1054_v42 = vrot.slane %v11665_v58, 1  ;;  %v1066_v53 = vrot.slane %v11668_v60, 1  ;;  %v11742_v25 = vpop.f32.mrf.mxu1  ;;  %8793 = vmatpush1.msk.msra.mxu1 %vm4828_vm3, %v14608_v6  ;;  %5145 = vmatprep.mubr.f32.mxu0 %v14610_v48 }
 0x168   : > { %14641 = vst [vmem:[#allocation41_spill] sm:$0xff] %v11717_v37  ;;  %v11739_v56 = vadd.f32 %v884_v17, %v11600_v50  ;;  %v942_v16 = vrot.slane %v11672_v49, 2  ;;  %vm4803_vm14 = vcmp.eq.s32.totalorder %v9454_v2, %v11026_v46  ;;  %v11751_v37 = vadd.f32 %v990_v5, %v11617_v30  ;;  %8794 = vmatprep.subr.msk.mxu1 %vm4821_vm1, %v14608_v6 }
 0x169   : > { %v880_v43 = vrot.slane %v879_v29, 1  ;;  %v892_v50 = vrot.slane %v891_v41, 1  ;;  %v959_v17 = vadd.f32 %v958_v14, %v11620_v31  ;;  %vm14643_vm7 = vcmp.eq.s32.totalorder %v9501_v18, %v11084_v11  ;;  %5234 = vmatprep.mubr.f32.mxu1 %v14610_v48  ;;  %8795 = vmatpush1.msk.msra.mxu1 %vm4820_vm11, %v14608_v6 }
 0x16a   : > { %14642 = vst [vmem:[#allocation42_spill] sm:$0xff] %v11751_v37  ;;  %8771 = vmatpush1.msk.msra.mxu0 %vm14643_vm7, %v14608_v6  ;;  %vm4802_vm10 = vcmp.eq.s32.totalorder %v9454_v2, %v11084_v11  ;;  %v11765_v30 = vadd.f32 %v1002_v0, %v11638_v33  ;;  %v897_v5 = vadd.f32 %v896_v55, %v11641_v34  ;;  %v954_v31 = vrot.slane %v11700_v22, 2  ;;  %v11771_v37 = vpop.f32.mrf.mxu0 }
 0x16b   : > { %v976_v14 = vmul.f32 %v11339_v54, %v11573_v44  ;;  %vm4804_vm15 = vcmp.eq.s32.totalorder %v9454_v2, %v11102_v1  ;;  %v11779_v33 = vadd.f32 %v1048_v27, %v1047_v28  ;;  %v11781_v0 = vadd.f32 %v1060_v63, %v1059_v26  ;;  %8772 = vmatprep.subr.msk.mxu0 %vm4827_vm2, %v14608_v6  ;;  %v11802_v27 = vpop.f32.mrf.mxu1 }
 0x16c   : > { %v948_v34 = vrot.slane %v11720_v51, 2  ;;  %v978_v44 = vmul.f32 %v11344_v24, %v11603_v52  ;;  %v11795_v28 = vadd.f32 %v1054_v42, %v11665_v58  ;;  %v11798_v26 = vadd.f32 %v1066_v53, %v11668_v60  ;;  %8773 = vmatpush1.msk.msra.mxu0 %vm4826_vm8, %v14608_v6  ;;  %v11830_v42 = vld [vmem:[#allocation5 + $0xb8] sm:$0xff]  ;;  %v1469_v53 = vpop.f32.mrf.mxu0  ;;  %8796 = vmatprep.subr.msk.mxu1 %vm4813_vm5, %v14608_v6 }
 0x16d   : > { %v886_v55 = vrot.slane %v11739_v56, 1  ;;  %v943_v52 = vadd.f32 %v942_v16, %v11672_v49  ;;  %vm5770_vm2 = vcmp.eq.s32.totalorder %v9473_v10, %v11114_v59  ;;  %vm5772_vm6 = vcmp.eq.s32.totalorder %v9473_v10, %v11134_v35  ;;  %8774 = vmatprep.subr.msk.mxu0 %vm4819_vm12, %v14608_v6  ;;  %8743 = vmatmul.mubr.msk.f32.gmra.mxu0 %vm475_vm0, %v11830_v42 }
 0x16e   : > { %14644 = vst [vmem:[#allocation43_spill] sm:$0xff] %v11795_v28  ;;  %14645 = vst [vmem:[#allocation44_spill] sm:$0xff] %v11798_v26  ;;  %v11816_v60 = vadd.f32 %v880_v43, %v879_v29  ;;  %v11818_v58 = vadd.f32 %v892_v50, %v891_v41  ;;  %v960_v49 = vrot.slane %v959_v17, 2  ;;  %v1333_v63 = vrot.slane %v11458_v61, %v9467_v8 }
 0x16f   : > { %vm5769_vm8 = vcmp.eq.s32.totalorder %v9473_v10, %v11138_v39  ;;  %vm5771_vm3 = vcmp.eq.s32.totalorder %v9473_v10, %v11155_v57  ;;  %v898_v29 = vrot.slane %v897_v5, 1  ;;  %v11837_v41 = vadd.f32 %v954_v31, %v11700_v22  ;;  %8775 = vmatpush1.msk.msra.mxu0 %vm4818_vm9, %v14608_v6  ;;  %8763 = vmatmul.mubr.msk.f32.gmra.mxu1 %vm475_vm0, %v11830_v42 }
 0x170   : > { %v1004_v43 = vrot.slane %v976_v14, 4  ;;  %v1341_v16 = vrot.slane %v11458_v61, %v9470_v9  ;;  %vm5762_vm12 = vcmp.eq.s32.totalorder %v9479_v12, %v11114_v59  ;;  %v949_v50 = vadd.f32 %v948_v34, %v11720_v51  ;;  %8776 = vmatprep.subr.msk.mxu0 %vm4811_vm4, %v14608_v6  ;;  %5305 = vmatprep.mubr.f32.mxu0 %v14610_v48 }
 0x171   : > { %v1016_v8 = vrot.slane %v978_v44, 4  ;;  %v11850_v22 = vmul.f32 %v11361_v47, %v11644_v15  ;;  %vm1362_vm7 = vcmp.eq.s32.totalorder %v9454_v2, %v1333_v63  ;;  %v944_v31 = vrot.slane %v943_v52, 1  ;;  %v1558_v15 = vpop.f32.mrf.mxu1  ;;  %8777 = vmatpush1.msk.msra.mxu0 %vm4810_vm13, %v14608_v6  ;;  %5394 = vmatprep.mubr.f32.mxu1 %v14610_v48 }
 0x172   : > { %v979_v51 = vmul.f32 %v11366_v7, %v11674_v32  ;;  %v11864_v34 = vsel %vm1362_vm7, 1.0, %v14610_v48  ;;  %vm1364_vm1 = vcmp.eq.s32.totalorder %v9454_v2, %v1341_v16  ;;  %vm5761_vm9 = vcmp.eq.s32.totalorder %v9479_v12, %v11138_v39  ;;  %8778 = vmatprep.subr.msk.mxu0 %vm4803_vm14, %v14608_v6 }
 0x173   : > { %vm5763_vm11 = vcmp.eq.s32.totalorder %v9479_v12, %v11155_v57  ;;  %v11876_v32 = vadd.f32 %v886_v55, %v11739_v56  ;;  %v961_v63 = vadd.f32 %v960_v49, %v959_v17  ;;  %v1759_v9 = vmul.f32 %v11864_v34, %v1469_v53  ;;  %8779 = vmatpush1.msk.msra.mxu0 %vm4802_vm10, %v14608_v6 }
 0x174   : > { %v11887_v16 = vadd.f32 %v898_v29, %v897_v5  ;;  %v956_v26 = vrot.slane %v11837_v41, 1  ;;  %v1005_v28 = vadd.f32 %v1004_v43, %v976_v14  ;;  %v11891_v56 = vsel %vm1364_vm1, 1.0, %v14610_v48  ;;  %v1471_v29 = vpop.f32.mrf.mxu0  ;;  %v11925_v43 = vpop.f32.mrf.mxu1  ;;  %8780 = vmatmul.mubr.msk.f32.vlgmr.msra.gmra.mxu0 %vm475_vm0, %v11532_v40  ;;  %8878 = vmatprep.subr.msk.mxu0 %vm5770_vm2, %v14608_v6 }
 0x175   : > { %vm14647_vm4 = vcmp.eq.s32.totalorder %v9561_v23, %v11102_v1  ;;  %vm5754_vm5 = vcmp.eq.s32.totalorder %v9482_v13, %v11114_v59  ;;  %vm5756_vm7 = vcmp.eq.s32.totalorder %v9482_v13, %v11134_v35  ;;  %v950_v17 = vrot.slane %v949_v50, 1  ;;  %8879 = vmatpush1.msk.msra.mxu0 %vm5769_vm8, %v14608_v6  ;;  %5311 = vmatprep.mubr.f32.mxu0 %v14610_v48 }
 0x176   : > { %14646 = vst [vmem:[#allocation45_spill] sm:$0xff] %v11887_v16  ;;  %8797 = vmatpush1.msk.msra.mxu1 %vm14647_vm4, %v14608_v6  ;;  %v11905_v5 = vadd.f32 %v1016_v8, %v978_v44  ;;  %v1767_v14 = vrot.slane %v1759_v9, 4  ;;  %v1761_v55 = vmul.f32 %v11891_v56, %v1558_v15  ;;  %vm14648_vm13 = vcmp.eq.s32.totalorder %v9454_v2, %v11072_v4 }
 0x177   : > { %8798 = vmatprep.subr.msk.mxu1 %vm14648_vm13, %v14608_v6  ;;  %vm5753_vm1 = vcmp.eq.s32.totalorder %v9482_v13, %v11138_v39  ;;  %vm5755_vm4 = vcmp.eq.s32.totalorder %v9482_v13, %v11155_v57  ;;  %v11920_v8 = vadd.f32 %v944_v31, %v943_v52  ;;  %v1010_v44 = vrot.slane %v11850_v22, 4  ;;  %8880 = vmatprep.subr.msk.mxu0 %vm5762_vm12, %v14608_v6 }
 0x178   : > { %v1022_v49 = vrot.slane %v979_v51, 4  ;;  %v1337_v46 = vrot.slane %v11458_v61, %v9457_v3  ;;  %vm5746_vm14 = vcmp.eq.s32.totalorder %v9501_v18, %v11114_v59  ;;  %v962_v4 = vrot.slane %v961_v63, 1  ;;  %8799 = vmatpush1.msk.msra.mxu1 %vm4804_vm15, %v14608_v6  ;;  %8881 = vmatpush1.msk.msra.mxu0 %vm5761_vm9, %v14608_v6 }
 0x179   : > { %v11938_v52 = vmul.f32 %v11339_v54, %v11702_v45  ;;  %v1768_v53 = vadd.f32 %v1767_v14, %v1759_v9  ;;  %v1779_v31 = vrot.slane %v1761_v55, 4  ;;  %v1006_v11 = vrot.slane %v1005_v28, 2  ;;  %v14651_v54 = vld [vmem:[#allocation12_spill] sm:$0xff]  ;;  %8800 = vmatmul.mubr.msk.f32.vlgmr.msra.gmra.mxu1 %vm475_vm0, %v11532_v40  ;;  %8898 = vmatprep.subr.msk.mxu1 %vm5772_vm6, %v14608_v6 }
 0x17a   : > { %v1042_v15 = vmul.f32 %v11344_v24, %v11742_v25  ;;  %vm11948_vm10 = vcmp.eq.s32.totalorder %v9454_v2, %v1337_v46  ;;  %v1345_v9 = vrot.slane %v11458_v61, %v14651_v54  ;;  %vm5745_vm15 = vcmp.eq.s32.totalorder %v9501_v18, %v11138_v39  ;;  %8899 = vmatpush1.msk.msra.mxu1 %vm5771_vm3, %v14608_v6 }
 0x17b   : > { %v11963_v1 = vadd.f32 %v956_v26, %v11837_v41  ;;  %v11965_v24 = vadd.f32 %v950_v17, %v949_v50  ;;  %v1769_v45 = vrot.slane %v1768_v53, 2  ;;  %v1780_v25 = vadd.f32 %v1779_v31, %v1761_v55  ;;  %v1475_v50 = vpop.f32.mrf.mxu0  ;;  %v1564_v17 = vpop.f32.mrf.mxu1  ;;  %5400 = vmatprep.mubr.f32.mxu1 %v14610_v48  ;;  %8781 = vmatmul.mubr.msk.f32.gmra.mxu0 %vm475_vm0, %v11630_v38 }
 0x17c   : > { %v1018_v40 = vrot.slane %v11905_v5, 2  ;;  %v11977_v14 = vadd.f32 %v1010_v44, %v11850_v22  ;;  %v11979_v26 = vadd.f32 %v1022_v49, %v979_v51  ;;  %vm11982_vm13 = vcmp.eq.s32.totalorder %v9454_v2, %v1345_v9  ;;  %8882 = vmatprep.subr.msk.mxu0 %vm5754_vm5, %v14608_v6  ;;  %5317 = vmatprep.mubr.f32.mxu0 %v14610_v48 }
 0x17d   : > { %14652 = vst [vmem:[#allocation46_spill] sm:$0xff] %v11965_v24  ;;  %vm5738_vm2 = vcmp.eq.s32.totalorder %v9528_v20, %v11114_v59  ;;  %v11998_v22 = vadd.f32 %v962_v4, %v961_v63  ;;  %v1770_v51 = vadd.f32 %v1769_v45, %v1768_v53  ;;  %v1781_v55 = vrot.slane %v1780_v25, 2  ;;  %8801 = vmatmul.mubr.msk.f32.gmra.mxu1 %vm475_vm0, %v11630_v38 }
 0x17e   : > { %v12003_v44 = vsel %vm11948_vm10, 1.0, %v14610_v48  ;;  %vm14656_vm8 = vcmp.eq.s32.totalorder %v9479_v12, %v11134_v35  ;;  %vm5737_vm3 = vcmp.eq.s32.totalorder %v9528_v20, %v11138_v39  ;;  %vm5739_vm6 = vcmp.eq.s32.totalorder %v9528_v20, %v11155_v57  ;;  %8883 = vmatpush1.msk.msra.mxu0 %vm5753_vm1, %v14608_v6  ;;  %5406 = vmatprep.mubr.f32.mxu1 %v14610_v48 }
 0x17f   : > { %14655 = vst [vmem:[#allocation47_spill] sm:$0xff] %v11998_v22  ;;  %8900 = vmatprep.subr.msk.mxu1 %vm14656_vm8, %v14608_v6  ;;  %v12017_v63 = vadd.f32 %v1006_v11, %v1005_v28  ;;  %v1068_v3 = vrot.slane %v11938_v52, 4  ;;  %v1080_v49 = vrot.slane %v1042_v15, 4  ;;  %v12023_v46 = vsel %vm11982_vm13, 1.0, %v14610_v48  ;;  %8884 = vmatprep.subr.msk.mxu0 %vm5746_vm14, %v14608_v6 }
 0x180   : > { %vm5730_vm12 = vcmp.eq.s32.totalorder %v9543_v21, %v11114_v59  ;;  %vm5732_vm10 = vcmp.eq.s32.totalorder %v9543_v21, %v11134_v35  ;;  %v1771_v28 = vrot.slane %v1770_v51, 1  ;;  %v1782_v4 = vadd.f32 %v1781_v55, %v1780_v25  ;;  %8901 = vmatpush1.msk.msra.mxu1 %vm5763_vm11, %v14608_v6  ;;  %8885 = vmatpush1.msk.msra.mxu0 %vm5745_vm15, %v14608_v6 }
 0x181   : > { %v1823_v53 = vmul.f32 %v11864_v34, %v1475_v50  ;;  %v1825_v31 = vmul.f32 %v11891_v56, %v1564_v17  ;;  %v12042_v11 = vadd.f32 %v1018_v40, %v11905_v5  ;;  %v1012_v9 = vrot.slane %v11977_v14, 2  ;;  %8902 = vmatprep.subr.msk.mxu1 %vm5756_vm7, %v14608_v6  ;;  %8782 = vmatmul.mubr.msk.f32.gmra.mxu0 %vm475_vm0, %v11730_v19 }
 0x182   : > { %v1024_v45 = vrot.slane %v11979_v26, 2  ;;  %v1760_v25 = vmul.f32 %v12003_v44, %v1471_v29  ;;  %vm5729_vm9 = vcmp.eq.s32.totalorder %v9543_v21, %v11138_v39  ;;  %vm5731_vm11 = vcmp.eq.s32.totalorder %v9543_v21, %v11155_v57  ;;  %8903 = vmatpush1.msk.msra.mxu1 %vm5755_vm4, %v14608_v6  ;;  %8886 = vmatprep.subr.msk.mxu0 %vm5738_vm2, %v14608_v6 }
 0x183   : > { %v1772_v5 = vadd.f32 %v1771_v28, %v1770_v51  ;;  %v1783_v40 = vrot.slane %v1782_v4, 1  ;;  %v1831_v41 = vrot.slane %v1823_v53, 4  ;;  %v1843_v50 = vrot.slane %v1825_v31, 4  ;;  %v1477_v51 = vpop.f32.mrf.mxu0  ;;  %8802 = vmatmul.mubr.msk.f32.gmra.mxu1 %vm475_vm0, %v11730_v19  ;;  %8887 = vmatpush1.msk.msra.mxu0 %vm5737_vm3, %v14608_v6 }
 0x184   : > { %v12064_v38 = vadd.f32 %v1068_v3, %v11938_v52  ;;  %v12066_v29 = vadd.f32 %v1080_v49, %v1042_v15  ;;  %v12070_v17 = vmul.f32 %v12023_v46, %v11925_v43  ;;  %vm5722_vm5 = vcmp.eq.s32.totalorder %v9561_v23, %v11114_v59  ;;  %8888 = vmatprep.subr.msk.mxu0 %vm5730_vm12, %v14608_v6 }
 0x185   : > { %vm5724_vm7 = vcmp.eq.s32.totalorder %v9561_v23, %v11134_v35  ;;  %v1008_v43 = vrot.slane %v12017_v63, 1  ;;  %v12086_v52 = vadd.f32 %v1772_v5, %v11374_v62  ;;  %v1784_v15 = vadd.f32 %v1783_v40, %v1782_v4  ;;  %v12104_v4 = vpop.f32.mrf.mxu1  ;;  %5323 = vmatprep.mubr.f32.mxu0 %v14610_v48  ;;  %5412 = vmatprep.mubr.f32.mxu1 %v14610_v48 }
 0x186   : > { %v1832_v55 = vadd.f32 %v1831_v41, %v1823_v53  ;;  %vm14658_vm1 = vcmp.eq.s32.totalorder %v9501_v18, %v11134_v35  ;;  %vm5721_vm4 = vcmp.eq.s32.totalorder %v9561_v23, %v11138_v39  ;;  %vm5723_vm13 = vcmp.eq.s32.totalorder %v9561_v23, %v11155_v57  ;;  %8889 = vmatpush1.msk.msra.mxu0 %vm5729_vm9, %v14608_v6 }
 0x187   : > { %14657 = vst [vmem:[#allocation48_spill] sm:$0xff] %v12086_v52  ;;  %8904 = vmatprep.subr.msk.mxu1 %vm14658_vm1, %v14608_v6  ;;  %v1041_v62 = vmul.f32 %v11361_v47, %v11771_v37  ;;  %v1043_v3 = vmul.f32 %v11366_v7, %v11802_v27  ;;  %v1773_v49 = vrot.slane %v1760_v25, 4  ;;  %v1844_v28 = vadd.f32 %v1843_v50, %v1825_v31  ;;  %v14659_v7 = vld [vmem:[#allocation34_spill] sm:$0xff] }
 0x188   : > { %vm5714_vm14 = vcmp.eq.s32.totalorder %v9454_v2, %v11114_v59  ;;  %v12113_v53 = vadd.f32 %v1012_v9, %v11977_v14  ;;  %v12116_v47 = vadd.f32 %v1024_v45, %v11979_v26  ;;  %v12119_v37 = vadd.f32 %v1784_v15, %v14659_v7  ;;  %v1481_v45 = vpop.f32.mrf.mxu0  ;;  %8783 = vmatmul.mubr.msk.f32.gmra.mxu0 %vm475_vm0, %v11830_v42 }
 0x189   : > { %v1833_v27 = vrot.slane %v1832_v55, 2  ;;  %vm14661_vm1 = vcmp.eq.s32.totalorder %v9501_v18, %v11155_v57  ;;  %vm5713_vm8 = vcmp.eq.s32.totalorder %v9454_v2, %v11138_v39  ;;  %v1070_v14 = vrot.slane %v12064_v38, 2  ;;  %8803 = vmatmul.mubr.msk.f32.gmra.mxu1 %vm475_vm0, %v11830_v42  ;;  %8890 = vmatprep.subr.msk.mxu0 %vm5722_vm5, %v14608_v6  ;;  %v14673_v39 = vld [vmem:[#allocation15_spill] sm:$0xff] }
 0x18a   : > { %14660 = vst [vmem:[#allocation34_spill] sm:$0xff] %v12119_v37  ;;  %8905 = vmatpush1.msk.msra.mxu1 %vm14661_vm1, %v14608_v6  ;;  %v1082_v26 = vrot.slane %v12066_v29, 2  ;;  %v1785_v31 = vrot.slane %v12070_v17, 4  ;;  %v1845_v9 = vrot.slane %v1844_v28, 2  ;;  %vm5715_vm15 = vcmp.eq.s32.totalorder %v9454_v2, %v11155_v57  ;;  %v14666_v37 = vld [vmem:[#allocation29_spill] sm:$0xff]  ;;  %8891 = vmatpush1.msk.msra.mxu0 %vm5721_vm4, %v14608_v6 }
 0x18b   : > { %v12141_v5 = vadd.f32 %v1008_v43, %v12017_v63  ;;  %v1020_v40 = vrot.slane %v12042_v11, 1  ;;  %v1834_v41 = vadd.f32 %v1833_v27, %v1832_v55  ;;  %v1824_v50 = vmul.f32 %v12003_v44, %v1477_v51  ;;  %v1570_v43 = vpop.f32.mrf.mxu1  ;;  %v14663_v51 = vld [vmem:[#allocation26_spill] sm:$0xff]  ;;  %v14664_v55 = vld [vmem:[#allocation27_spill] sm:$0xff]  ;;  %8892 = vmatprep.subr.msk.mxu0 %vm5714_vm14, %v14608_v6  ;;  %6042 = vmatprep.mubr.f32.mxu0 %v14610_v48 }
 0x18c   : > { %vm14662_vm1 = vcmp.eq.s32.totalorder %v9528_v20, %v11134_v35  ;;  %v1074_v19 = vrot.slane %v1041_v62, 4  ;;  %v1086_v15 = vrot.slane %v1043_v3, 4  ;;  %v12153_v7 = vadd.f32 %v1773_v49, %v1760_v25  ;;  %8893 = vmatpush1.msk.msra.mxu0 %vm5713_vm8, %v14608_v6  ;;  %6131 = vmatprep.mubr.f32.mxu1 %v14610_v48 }
 0x18d   : > { %8906 = vmatprep.subr.msk.mxu1 %vm14662_vm1, %v14608_v6  ;;  %v1846_v63 = vadd.f32 %v1845_v9, %v1844_v28  ;;  %vm5774_vm2 = vcmp.eq.s32.totalorder %v9473_v10, %v14663_v51  ;;  %vm5776_vm1 = vcmp.eq.s32.totalorder %v9473_v10, %v14664_v55  ;;  %v1014_v25 = vrot.slane %v12113_v53, 1  ;;  %v14665_v9 = vld [vmem:[#allocation28_spill] sm:$0xff] }
 0x18e   : > { %8907 = vmatpush1.msk.msra.mxu1 %vm5739_vm6, %v14608_v6  ;;  %v1026_v49 = vrot.slane %v12116_v47, 1  ;;  %v1835_v28 = vrot.slane %v1834_v41, 1  ;;  %v1887_v27 = vmul.f32 %v11864_v34, %v1481_v45  ;;  %vm5773_vm6 = vcmp.eq.s32.totalorder %v9473_v10, %v14665_v9  ;;  %8918 = vmatprep.subr.msk.mxu0 %vm5774_vm2, %v14608_v6 }
 0x18f   : > { %8908 = vmatprep.subr.msk.mxu1 %vm5732_vm10, %v14608_v6  ;;  %vm5775_vm3 = vcmp.eq.s32.totalorder %v9473_v10, %v14666_v37  ;;  %v12183_v52 = vadd.f32 %v1070_v14, %v12064_v38  ;;  %v12186_v45 = vadd.f32 %v1082_v26, %v12066_v29  ;;  %v1786_v54 = vadd.f32 %v1785_v31, %v12070_v17 }
 0x190   : > { %v1847_v22 = vrot.slane %v1846_v63, 1  ;;  %vm5766_vm12 = vcmp.eq.s32.totalorder %v9479_v12, %v14663_v51  ;;  %v1836_v24 = vadd.f32 %v1835_v28, %v1834_v41  ;;  %v1837_v16 = vrot.slane %v1824_v50, 4  ;;  %8909 = vmatpush1.msk.msra.mxu1 %vm5731_vm11, %v14608_v6 }
 0x191   : > { %v1895_v38 = vrot.slane %v1887_v27, 4  ;;  %v1889_v14 = vmul.f32 %v11891_v56, %v1570_v43  ;;  %v12204_v29 = vadd.f32 %v1074_v19, %v1041_v62  ;;  %v12206_v17 = vadd.f32 %v1086_v15, %v1043_v3  ;;  %8910 = vmatprep.subr.msk.mxu1 %vm5724_vm7, %v14608_v6  ;;  %v1483_v15 = vpop.f32.mrf.mxu0  ;;  %v1572_v43 = vpop.f32.mrf.mxu1 }
 0x192   : > { %v1775_v26 = vrot.slane %v12153_v7, 2  ;;  %v1848_v31 = vadd.f32 %v1847_v22, %v1846_v63  ;;  %vm5765_vm9 = vcmp.eq.s32.totalorder %v9479_v12, %v14665_v9  ;;  %vm5767_vm10 = vcmp.eq.s32.totalorder %v9479_v12, %v14666_v37  ;;  %8911 = vmatpush1.msk.msra.mxu1 %vm5723_vm13, %v14608_v6 }
 0x193   : > { %v12218_v62 = vadd.f32 %v1836_v24, %v11475_v36  ;;  %v1826_v3 = vmul.f32 %v12023_v46, %v12104_v4  ;;  %v1896_v41 = vadd.f32 %v1895_v38, %v1887_v27  ;;  %v1907_v22 = vrot.slane %v1889_v14, 4  ;;  %v14669_v4 = vld [vmem:[#allocation37_spill] sm:$0xff] }
 0x194   : > { %v12231_v42 = vadd.f32 %v1020_v40, %v12042_v11  ;;  %v12234_v36 = vadd.f32 %v1014_v25, %v12113_v53  ;;  %v1787_v24 = vrot.slane %v1786_v54, 2  ;;  %v12237_v19 = vadd.f32 %v1848_v31, %v14669_v4  ;;  %v12262_v25 = vld [vmem:[#allocation5 + $0xc0] sm:$0xff] }
 0x195   : > { %14667 = vst [vmem:[#allocation26_spill] sm:$0xff] %v12218_v62  ;;  %vm5758_vm11 = vcmp.eq.s32.totalorder %v9482_v13, %v14663_v51  ;;  %vm5760_vm5 = vcmp.eq.s32.totalorder %v9482_v13, %v14664_v55  ;;  %v1072_v11 = vrot.slane %v12183_v52, 1  ;;  %v12252_v53 = vadd.f32 %v1837_v16, %v1824_v50  ;;  %8894 = vmatmul.mubr.msk.f32.vlgmr.msra.gmra.mxu0 %vm475_vm0, %v12262_v25 }
 0x196   : > { %14668 = vst [vmem:[#allocation27_spill] sm:$0xff] %v12234_v36  ;;  %14670 = vst [vmem:[#allocation28_spill] sm:$0xff] %v12237_v19  ;;  %v1897_v40 = vrot.slane %v1896_v41, 2  ;;  %v1908_v63 = vadd.f32 %v1907_v22, %v1889_v14  ;;  %vm14671_vm7 = vcmp.eq.s32.totalorder %v9454_v2, %v11134_v35  ;;  %vm5757_vm4 = vcmp.eq.s32.totalorder %v9482_v13, %v14665_v9  ;;  %v14674_v14 = vld [vmem:[#allocation25_spill] sm:$0xff] }
 0x197   : > { %8912 = vmatprep.subr.msk.mxu1 %vm14671_vm7, %v14608_v6  ;;  %vm5759_vm13 = vcmp.eq.s32.totalorder %v9482_v13, %v14666_v37  ;;  %v1084_v16 = vrot.slane %v12186_v45, 1  ;;  %v1076_v50 = vrot.slane %v12204_v29, 2  ;;  %v1088_v59 = vrot.slane %v12206_v17, 2  ;;  %8919 = vmatpush1.msk.msra.mxu0 %vm5773_vm6, %v14608_v6 }
 0x198   : > { %v12272_v28 = vadd.f32 %v1775_v26, %v12153_v7  ;;  %vm5750_vm14 = vcmp.eq.s32.totalorder %v9501_v18, %v14663_v51  ;;  %vm5752_vm7 = vcmp.eq.s32.totalorder %v9501_v18, %v14664_v55  ;;  %v12284_v35 = vadd.f32 %v1026_v49, %v12116_v47  ;;  %8913 = vmatpush1.msk.msra.mxu1 %vm5715_vm15, %v14608_v6  ;;  %v1487_v47 = vpop.f32.mrf.mxu0 }
 0x199   : > { %v1849_v27 = vrot.slane %v1826_v3, 4  ;;  %v1898_v38 = vadd.f32 %v1897_v40, %v1896_v41  ;;  %v1909_v7 = vrot.slane %v1908_v63, 2  ;;  %v12293_v26 = vrot.slane %v14674_v14, %v14673_v39  ;;  %8914 = vmatmul.mubr.msk.f32.vlgmr.msra.gmra.mxu1 %vm475_vm0, %v12262_v25  ;;  %8938 = vmatprep.subr.msk.mxu1 %vm5776_vm1, %v14608_v6 }
 0x19a   : > { %14672 = vst [vmem:[#allocation29_spill] sm:$0xff] %v12284_v35  ;;  %v12295_v31 = vadd.f32 %v1787_v24, %v1786_v54  ;;  %v1888_v22 = vmul.f32 %v12003_v44, %v1483_v15  ;;  %vm5749_vm8 = vcmp.eq.s32.totalorder %v9501_v18, %v14665_v9  ;;  %vm5751_vm15 = vcmp.eq.s32.totalorder %v9501_v18, %v14666_v37  ;;  %v1576_v24 = vpop.f32.mrf.mxu1  ;;  %v14682_v35 = vld [vmem:[#allocation41_spill] sm:$0xff] }
 0x19b   : > { %v12307_v57 = vadd.f32 %v1072_v11, %v12183_v52  ;;  %v1839_v54 = vrot.slane %v12252_v53, 2  ;;  %v1899_v49 = vrot.slane %v1898_v38, 1  ;;  %v1910_v41 = vadd.f32 %v1909_v7, %v1908_v63  ;;  %8939 = vmatpush1.msk.msra.mxu1 %vm5775_vm3, %v14608_v6  ;;  %8920 = vmatprep.subr.msk.mxu0 %vm5766_vm12, %v14608_v6  ;;  %v12351_v63 = vld [vmem:[#allocation5 + $0xc8] sm:$0xff] }
 0x19c   : > { %v12319_v4 = vadd.f32 %v1084_v16, %v12186_v45  ;;  %v12322_v52 = vadd.f32 %v1076_v50, %v12204_v29  ;;  %v12325_v15 = vadd.f32 %v1088_v59, %v12206_v17  ;;  %v1777_v11 = vrot.slane %v12272_v28, 1  ;;  %6048 = vmatprep.mubr.f32.mxu0 %v14610_v48  ;;  %6137 = vmatprep.mubr.f32.mxu1 %v14610_v48 }
 0x19d   : > { %14675 = vst [vmem:[#allocation37_spill] sm:$0xff] %v12307_v57  ;;  %vm5742_vm2 = vcmp.eq.s32.totalorder %v9528_v20, %v14663_v51  ;;  %v12340_v45 = vadd.f32 %v1849_v27, %v1826_v3  ;;  %v1900_v29 = vadd.f32 %v1899_v49, %v1898_v38  ;;  %v1911_v17 = vrot.slane %v1910_v41, 1  ;;  %v14678_v27 = vld [vmem:[#allocation40_spill] sm:$0xff]  ;;  %8921 = vmatpush1.msk.msra.mxu0 %vm5765_vm9, %v14608_v6  ;;  %v14681_v49 = vld [vmem:[#allocation17_spill] sm:$0xff] }
 0x19e   : > { %14676 = vst [vmem:[#allocation25_spill] sm:$0xff] %v12319_v4  ;;  %v1951_v40 = vmul.f32 %v11864_v34, %v1487_v47  ;;  %vm14677_vm6 = vcmp.eq.s32.totalorder %v9479_v12, %v14664_v55  ;;  %vm5741_vm3 = vcmp.eq.s32.totalorder %v9528_v20, %v14665_v9  ;;  %vm5743_vm1 = vcmp.eq.s32.totalorder %v9528_v20, %v14666_v37  ;;  %v1489_v47 = vpop.f32.mrf.mxu0 }
 0x19f   : > { %8940 = vmatprep.subr.msk.mxu1 %vm14677_vm6, %v14608_v6  ;;  %v1789_v34 = vrot.slane %v12295_v31, 1  ;;  %v1901_v3 = vrot.slane %v1888_v22, 4  ;;  %v12359_v16 = vmul.f32 %v12023_v46, %v1572_v43  ;;  %v1953_v50 = vmul.f32 %v11891_v56, %v1576_v24  ;;  %8895 = vmatmul.mubr.msk.f32.gmra.mxu0 %vm475_vm0, %v12351_v63 }
 0x1a0   : > { %vm5734_vm12 = vcmp.eq.s32.totalorder %v9543_v21, %v14663_v51  ;;  %vm5736_vm6 = vcmp.eq.s32.totalorder %v9543_v21, %v14664_v55  ;;  %v12369_v59 = vadd.f32 %v1839_v54, %v12252_v53  ;;  %v12372_v38 = vadd.f32 %v1900_v29, %v14678_v27  ;;  %8941 = vmatpush1.msk.msra.mxu1 %vm5767_vm10, %v14608_v6  ;;  %v14680_v53 = vld [vmem:[#allocation16_spill] sm:$0xff]  ;;  %v1578_v29 = vpop.f32.mrf.mxu1 }
 0x1a1   : > { %v1912_v43 = vadd.f32 %v1911_v17, %v1910_v41  ;;  %v1959_v7 = vrot.slane %v1951_v40, 4  ;;  %v1078_v56 = vrot.slane %v12322_v52, 1  ;;  %v12385_v54 = vrot.slane %v14674_v14, %v14680_v53  ;;  %8915 = vmatmul.mubr.msk.f32.gmra.mxu1 %vm475_vm0, %v12351_v63  ;;  %8922 = vmatprep.subr.msk.mxu0 %vm5758_vm11, %v14608_v6 }
 0x1a2   : > { %14679 = vst [vmem:[#allocation40_spill] sm:$0xff] %v12372_v38  ;;  %v12389_v41 = vrot.slane %v14674_v14, %v14681_v49  ;;  %v1971_v24 = vrot.slane %v1953_v50, 4  ;;  %vm5733_vm10 = vcmp.eq.s32.totalorder %v9543_v21, %v14665_v9  ;;  %vm5735_vm9 = vcmp.eq.s32.totalorder %v9543_v21, %v14666_v37  ;;  %8942 = vmatprep.subr.msk.mxu1 %vm5760_vm5, %v14608_v6 }
 0x1a3   : > { %v1090_v17 = vrot.slane %v12325_v15, 1  ;;  %v1851_v27 = vrot.slane %v12340_v45, 2  ;;  %v12402_v36 = vadd.f32 %v1912_v43, %v14682_v35  ;;  %v1960_v38 = vadd.f32 %v1959_v7, %v1951_v40  ;;  %8923 = vmatpush1.msk.msra.mxu0 %vm5757_vm4, %v14608_v6  ;;  %8943 = vmatpush1.msk.msra.mxu1 %vm5759_vm13, %v14608_v6  ;;  %v12433_v40 = vpop.f32.mrf.mxu0  ;;  %v12457_v7 = vpop.f32.mrf.mxu1 }
 0x1a4   : > { %v1778_v19 = vadd.f32 %v1777_v11, %v12272_v28  ;;  %v12413_v62 = vadd.f32 %v1901_v3, %v1888_v22  ;;  %v1913_v4 = vrot.slane %v12359_v16, 4  ;;  %v1972_v57 = vadd.f32 %v1971_v24, %v1953_v50  ;;  %8924 = vmatprep.subr.msk.mxu0 %vm5750_vm14, %v14608_v6  ;;  %8944 = vmatprep.subr.msk.mxu1 %vm5752_vm7, %v14608_v6  ;;  %v12443_v3 = vld [vmem:[#allocation5 + $0xd0] sm:$0xff]  ;;  %v14689_v24 = vld [vmem:[#allocation36_spill] sm:$0xff] }
 0x1a5   : > { %14683 = vst [vmem:[#allocation41_spill] sm:$0xff] %v12402_v36  ;;  %vm5726_vm11 = vcmp.eq.s32.totalorder %v9561_v23, %v14663_v51  ;;  %vm5728_vm5 = vcmp.eq.s32.totalorder %v9561_v23, %v14664_v55  ;;  %v1790_v28 = vadd.f32 %v1789_v34, %v12295_v31  ;;  %v1841_v35 = vrot.slane %v12369_v59, 1  ;;  %v14685_v31 = vld [vmem:[#allocation18_spill] sm:$0xff]  ;;  %6054 = vmatprep.mubr.f32.mxu0 %v14610_v48  ;;  %v14694_v36 = vld [vmem:[#allocation32_spill] sm:$0xff] }
 0x1a6   : > { %v1961_v22 = vrot.slane %v1960_v38, 2  ;;  %v12431_v11 = vmul.f32 %v12003_v44, %v1489_v47  ;;  %vm5725_vm4 = vcmp.eq.s32.totalorder %v9561_v23, %v14665_v9  ;;  %vm5727_vm13 = vcmp.eq.s32.totalorder %v9561_v23, %v14666_v37  ;;  %6143 = vmatprep.mubr.f32.mxu1 %v14610_v48  ;;  %8925 = vmatpush1.msk.msra.mxu0 %vm5749_vm8, %v14608_v6 }
 0x1a7   : > { %v12450_v44 = vadd.f32 %v1078_v56, %v12322_v52  ;;  %v12454_v34 = vrot.slane %v14674_v14, %v14685_v31  ;;  %v1973_v50 = vrot.slane %v1972_v57, 2  ;;  %v1954_v43 = vmul.f32 %v12023_v46, %v1578_v29  ;;  %8945 = vmatpush1.msk.msra.mxu1 %vm5751_vm15, %v14608_v6  ;;  %v14687_v46 = vld [vmem:[#allocation35_spill] sm:$0xff]  ;;  %8896 = vmatmul.mubr.msk.f32.gmra.mxu0 %vm475_vm0, %v12443_v3 }
 0x1a8   : > { %vm5718_vm14 = vcmp.eq.s32.totalorder %v9454_v2, %v14663_v51  ;;  %v12466_v52 = vadd.f32 %v1090_v17, %v12325_v15  ;;  %v12469_v14 = vadd.f32 %v1851_v27, %v12340_v45  ;;  %v1962_v47 = vadd.f32 %v1961_v22, %v1960_v38  ;;  %8916 = vmatmul.mubr.msk.f32.gmra.mxu1 %vm475_vm0, %v12443_v3  ;;  %v14692_v22 = vld [vmem:[#allocation30_spill] sm:$0xff] }
 0x1a9   : > { %14684 = vst [vmem:[#allocation49_spill] sm:$0xff] %v12450_v44  ;;  %vm5717_vm7 = vcmp.eq.s32.totalorder %v9454_v2, %v14665_v9  ;;  %v12482_v15 = vadd.f32 %v1778_v19, %v14687_v46  ;;  %v1903_v45 = vrot.slane %v12413_v62, 2  ;;  %v12486_v38 = vadd.f32 %v1913_v4, %v12359_v16  ;;  %v1649_v4 = vpop.f32.mrf.mxu0  ;;  %8926 = vmatprep.subr.msk.mxu0 %vm5742_vm2, %v14608_v6 }
 0x1aa   : > { %14686 = vst [vmem:[#allocation50_spill] sm:$0xff] %v12466_v52  ;;  %v1974_v56 = vadd.f32 %v1973_v50, %v1972_v57  ;;  %vm5719_vm8 = vcmp.eq.s32.totalorder %v9454_v2, %v14666_v37  ;;  %v12495_v29 = vadd.f32 %v1790_v28, %v14689_v24  ;;  %v1842_v19 = vadd.f32 %v1841_v35, %v12369_v59  ;;  %v1738_v35 = vpop.f32.mrf.mxu1  ;;  %v14693_v50 = vld [vmem:[#allocation31_spill] sm:$0xff] }
 0x1ab   : > { %14688 = vst [vmem:[#allocation35_spill] sm:$0xff] %v12482_v15  ;;  %v1963_v17 = vrot.slane %v1962_v47, 1  ;;  %v1965_v27 = vrot.slane %v12431_v11, 4  ;;  %vm14691_vm15 = vcmp.eq.s32.totalorder %v9528_v20, %v14664_v55  ;;  %v1977_v16 = vrot.slane %v1954_v43, 4  ;;  %8927 = vmatpush1.msk.msra.mxu0 %vm5741_vm3, %v14608_v6  ;;  %6060 = vmatprep.mubr.f32.mxu0 %v14610_v48 }
 0x1ac   : > { %14690 = vst [vmem:[#allocation36_spill] sm:$0xff] %v12495_v29  ;;  %8946 = vmatprep.subr.msk.mxu1 %vm14691_vm15, %v14608_v6  ;;  %v1975_v57 = vrot.slane %v1974_v56, 1  ;;  %v1349_v28 = vrot.slane %v11458_v61, %v14681_v49  ;;  %v1357_v59 = vrot.slane %v11458_v61, %v14685_v31  ;;  %vm6685_vm2 = vcmp.eq.s32.totalorder %v9473_v10, %v14692_v22  ;;  %v12536_v31 = vld [vmem:[#allocation5 + $0xd8] sm:$0xff] }
 0x1ad   : > { %8947 = vmatpush1.msk.msra.mxu1 %vm5743_vm1, %v14608_v6  ;;  %vm6687_vm15 = vcmp.eq.s32.totalorder %v9473_v10, %v14693_v50  ;;  %v1853_v46 = vrot.slane %v12469_v14, 1  ;;  %v1964_v24 = vadd.f32 %v1963_v17, %v1962_v47  ;;  %v1353_v52 = vrot.slane %v11458_v61, %v14673_v39  ;;  %8928 = vmatprep.subr.msk.mxu0 %vm5734_vm12, %v14608_v6  ;;  %v14695_v47 = vld [vmem:[#allocation33_spill] sm:$0xff] }
 0x1ae   : > { %v1361_v44 = vrot.slane %v11458_v61, %v14680_v53  ;;  %8948 = vmatprep.subr.msk.mxu1 %vm5736_vm6, %v14608_v6  ;;  %v12543_v61 = vadd.f32 %v1903_v45, %v12413_v62  ;;  %v1915_v17 = vrot.slane %v12486_v38, 2  ;;  %v1976_v53 = vadd.f32 %v1975_v57, %v1974_v56  ;;  %6149 = vmatprep.mubr.f32.mxu1 %v14610_v48  ;;  %v1653_v56 = vpop.f32.mrf.mxu0 }
 0x1af   : > { %vm1366_vm12 = vcmp.eq.s32.totalorder %v9454_v2, %v1349_v28  ;;  %vm6677_vm6 = vcmp.eq.s32.totalorder %v9479_v12, %v14692_v22  ;;  %vm6679_vm1 = vcmp.eq.s32.totalorder %v9479_v12, %v14693_v50  ;;  %v12554_v39 = vadd.f32 %v1964_v24, %v11779_v33  ;;  %8929 = vmatpush1.msk.msra.mxu0 %vm5733_vm10, %v14608_v6  ;;  %v1742_v28 = vpop.f32.mrf.mxu1 }
 0x1b0   : > { %v12557_v62 = vadd.f32 %v1965_v27, %v12431_v11  ;;  %v12560_v45 = vsel %vm1366_vm12, 1.0, %v14610_v48  ;;  %vm1368_vm3 = vcmp.eq.s32.totalorder %v9454_v2, %v1357_v59  ;;  %8949 = vmatpush1.msk.msra.mxu1 %vm5735_vm9, %v14608_v6  ;;  %v12572_v33 = vadd.f32 %v1976_v53, %v11781_v0  ;;  %8897 = vmatmul.mubr.msk.f32.gmra.mxu0 %vm475_vm0, %v12536_v31 }
 0x1b1   : > { %14696 = vst [vmem:[#allocation30_spill] sm:$0xff] %v12554_v39  ;;  %v12574_v11 = vadd.f32 %v1977_v16, %v1954_v43  ;;  %v1763_v27 = vmul.f32 %v12560_v45, %v12433_v40  ;;  %v12579_v57 = vsel %vm1368_vm3, 1.0, %v14610_v48  ;;  %8917 = vmatmul.mubr.msk.f32.gmra.mxu1 %vm475_vm0, %v12536_v31  ;;  %vm6676_vm10 = vcmp.eq.s32.totalorder %v9479_v12, %v14694_v36  ;;  %v1744_v24 = vpop.f32.mrf.mxu1 }
 0x1b2   : > { %14697 = vst [vmem:[#allocation31_spill] sm:$0xff] %v12572_v33  ;;  %vm6678_vm9 = vcmp.eq.s32.totalorder %v9479_v12, %v14695_v47  ;;  %v1765_v0 = vmul.f32 %v12579_v57, %v12457_v7  ;;  %vm1367_vm12 = vcmp.eq.s32.totalorder %v9454_v2, %v1353_v52  ;;  %vm1369_vm3 = vcmp.eq.s32.totalorder %v9454_v2, %v1361_v44  ;;  %v14698_v44 = vld [vmem:[#allocation38_spill] sm:$0xff] }
 0x1b3   : > { %8930 = vmatprep.subr.msk.mxu0 %vm5726_vm11, %v14608_v6  ;;  %8950 = vmatprep.subr.msk.mxu1 %vm5728_vm5, %v14608_v6  ;;  %v12602_v53 = vadd.f32 %v1853_v46, %v12469_v14  ;;  %v1791_v40 = vrot.slane %v1763_v27, 4  ;;  %v12605_v43 = vsel %vm1367_vm12, 1.0, %v14610_v48  ;;  %v12608_v7 = vsel %vm1369_vm3, 1.0, %v14610_v48  ;;  %v1655_v46 = vpop.f32.mrf.mxu0 }
 0x1b4   : > { %8931 = vmatpush1.msk.msra.mxu0 %vm5725_vm4, %v14608_v6  ;;  %8951 = vmatpush1.msk.msra.mxu1 %vm5727_vm13, %v14608_v6  ;;  %vm6669_vm11 = vcmp.eq.s32.totalorder %v9482_v13, %v14692_v22  ;;  %vm6671_vm5 = vcmp.eq.s32.totalorder %v9482_v13, %v14693_v50  ;;  %v12623_v52 = vadd.f32 %v1842_v19, %v14698_v44  ;;  %v1803_v14 = vrot.slane %v1765_v0, 4 }
 0x1b5   : > { %v1764_v16 = vmul.f32 %v12605_v43, %v1649_v4  ;;  %v1766_v59 = vmul.f32 %v12608_v7, %v1738_v35  ;;  %8932 = vmatprep.subr.msk.mxu0 %vm5718_vm14, %v14608_v6  ;;  %vm14700_vm4 = vcmp.eq.s32.totalorder %v9454_v2, %v14664_v55  ;;  %vm6668_vm13 = vcmp.eq.s32.totalorder %v9482_v13, %v14694_v36 }
 0x1b6   : > { %14699 = vst [vmem:[#allocation32_spill] sm:$0xff] %v12623_v52  ;;  %8952 = vmatprep.subr.msk.mxu1 %vm14700_vm4, %v14608_v6  ;;  %vm6670_vm12 = vcmp.eq.s32.totalorder %v9482_v13, %v14695_v47  ;;  %v12640_v19 = vadd.f32 %v1915_v17, %v12486_v38  ;;  %v1792_v4 = vadd.f32 %v1791_v40, %v1763_v27  ;;  %v1905_v51 = vrot.slane %v12543_v61, 1 }
 0x1b7   : > { %v1827_v35 = vmul.f32 %v12560_v45, %v1653_v56  ;;  %8933 = vmatpush1.msk.msra.mxu0 %vm5717_vm7, %v14608_v6  ;;  %6220 = vmatprep.mubr.f32.mxu0 %v14610_v48  ;;  %vm6661_vm14 = vcmp.eq.s32.totalorder %v9501_v18, %v14692_v22  ;;  %vm6663_vm3 = vcmp.eq.s32.totalorder %v9501_v18, %v14693_v50  ;;  %v1967_v55 = vrot.slane %v12557_v62, 2 }
 0x1b8   : > { %v1979_v38 = vrot.slane %v12574_v11, 2  ;;  %v1804_v17 = vadd.f32 %v1803_v14, %v1765_v0  ;;  %8953 = vmatpush1.msk.msra.mxu1 %vm5719_vm8, %v14608_v6  ;;  %6309 = vmatprep.mubr.f32.mxu1 %v14610_v48  ;;  %v1793_v9 = vrot.slane %v1792_v4, 2  ;;  %v1829_v27 = vmul.f32 %v12579_v57, %v1742_v28  ;;  %v12671_v28 = vpop.f32.mrf.mxu0 }
 0x1b9   : > { %v1855_v56 = vrot.slane %v1827_v35, 4  ;;  %v1828_v40 = vmul.f32 %v12605_v43, %v1655_v46  ;;  %8934 = vmatmul.mubr.msk.f32.vlgmr.msra.gmra.mxu0 %vm475_vm0, %v12262_v25  ;;  %8954 = vmatmul.mubr.msk.f32.vlgmr.msra.gmra.mxu1 %vm475_vm0, %v12262_v25  ;;  %vm6660_vm7 = vcmp.eq.s32.totalorder %v9501_v18, %v14694_v36  ;;  %v1797_v0 = vrot.slane %v1764_v16, 4 }
 0x1ba   : > { %v1805_v37 = vrot.slane %v1804_v17, 2  ;;  %v1809_v44 = vrot.slane %v1766_v59, 4  ;;  %v1830_v14 = vmul.f32 %v12608_v7, %v1744_v24  ;;  %9032 = vmatprep.subr.msk.mxu0 %vm6685_vm2, %v14608_v6  ;;  %9052 = vmatprep.subr.msk.mxu1 %vm6687_vm15, %v14608_v6  ;;  %v1794_v25 = vadd.f32 %v1793_v9, %v1792_v4 }
 0x1bb   : > { %v1856_v46 = vadd.f32 %v1855_v56, %v1827_v35  ;;  %v1867_v33 = vrot.slane %v1829_v27, 4  ;;  %v1861_v39 = vrot.slane %v1828_v40, 4  ;;  %vm14701_vm4 = vcmp.eq.s32.totalorder %v9473_v10, %v14694_v36  ;;  %6226 = vmatprep.mubr.f32.mxu0 %v14610_v48  ;;  %6315 = vmatprep.mubr.f32.mxu1 %v14610_v48 }
 0x1bc   : > { %9033 = vmatpush1.msk.msra.mxu0 %vm14701_vm4, %v14608_v6  ;;  %vm14702_vm8 = vcmp.eq.s32.totalorder %v9473_v10, %v14695_v47  ;;  %vm6653_vm2 = vcmp.eq.s32.totalorder %v9528_v20, %v14692_v22  ;;  %vm6655_vm15 = vcmp.eq.s32.totalorder %v9528_v20, %v14693_v50  ;;  %v1917_v4 = vrot.slane %v12640_v19, 1 }
 0x1bd   : > { %9053 = vmatpush1.msk.msra.mxu1 %vm14702_vm8, %v14608_v6  ;;  %v12695_v35 = vadd.f32 %v1967_v55, %v12557_v62  ;;  %v1806_v24 = vadd.f32 %v1805_v37, %v1804_v17  ;;  %v1873_v9 = vrot.slane %v1830_v14, 4  ;;  %9034 = vmatprep.subr.msk.mxu0 %vm6677_vm6, %v14608_v6  ;;  %vm6652_vm8 = vcmp.eq.s32.totalorder %v9528_v20, %v14694_v36 }
 0x1be   : > { %9054 = vmatprep.subr.msk.mxu1 %vm6679_vm1, %v14608_v6  ;;  %vm6654_vm4 = vcmp.eq.s32.totalorder %v9528_v20, %v14695_v47  ;;  %v12710_v62 = vadd.f32 %v1979_v38, %v12574_v11  ;;  %v1795_v55 = vrot.slane %v1794_v25, 1  ;;  %v1857_v17 = vrot.slane %v1856_v46, 2  ;;  %v1748_v11 = vpop.f32.mrf.mxu1  ;;  %v12719_v38 = vpop.f32.mrf.mxu0  ;;  %9035 = vmatpush1.msk.msra.mxu0 %vm6676_vm10, %v14608_v6 }
 0x1bf   : > { %v1868_v56 = vadd.f32 %v1867_v33, %v1829_v27  ;;  %vm6645_vm6 = vcmp.eq.s32.totalorder %v9543_v21, %v14692_v22  ;;  %v1906_v37 = vadd.f32 %v1905_v51, %v12543_v61  ;;  %v1807_v49 = vrot.slane %v1806_v24, 1  ;;  %9055 = vmatpush1.msk.msra.mxu1 %vm6678_vm9, %v14608_v6  ;;  %8935 = vmatmul.mubr.msk.f32.gmra.mxu0 %vm475_vm0, %v12351_v63 }
 0x1c0   : > { %v1798_v29 = vadd.f32 %v1797_v0, %v1764_v16  ;;  %v1810_v52 = vadd.f32 %v1809_v44, %v1766_v59  ;;  %v1796_v33 = vadd.f32 %v1795_v55, %v1794_v25  ;;  %v1858_v27 = vadd.f32 %v1857_v17, %v1856_v46  ;;  %8955 = vmatmul.mubr.msk.f32.gmra.mxu1 %vm475_vm0, %v12351_v63  ;;  %v1750_v25 = vpop.f32.mrf.mxu1  ;;  %v1665_v46 = vpop.f32.mrf.mxu0 }
 0x1c1   : > { %v1869_v15 = vrot.slane %v1868_v56, 2  ;;  %v1862_v61 = vadd.f32 %v1861_v39, %v1828_v40  ;;  %vm6644_vm1 = vcmp.eq.s32.totalorder %v9543_v21, %v14694_v36  ;;  %vm6646_vm10 = vcmp.eq.s32.totalorder %v9543_v21, %v14695_v47  ;;  %9036 = vmatprep.subr.msk.mxu0 %vm6669_vm11, %v14608_v6  ;;  %9056 = vmatprep.subr.msk.mxu1 %vm6671_vm5, %v14608_v6 }
 0x1c2   : > { %v1918_v16 = vadd.f32 %v1917_v4, %v12640_v19  ;;  %v1969_v59 = vrot.slane %v12695_v35, 1  ;;  %v1808_v51 = vadd.f32 %v1807_v49, %v1806_v24  ;;  %v1874_v0 = vadd.f32 %v1873_v9, %v1830_v14  ;;  %9037 = vmatpush1.msk.msra.mxu0 %vm6668_vm13, %v14608_v6  ;;  %9057 = vmatpush1.msk.msra.mxu1 %vm6670_vm12, %v14608_v6 }
 0x1c3   : > { %v1981_v39 = vrot.slane %v12710_v62, 1  ;;  %v12749_v63 = vadd.f32 %v1796_v33, %v11816_v60  ;;  %v1859_v19 = vrot.slane %v1858_v27, 1  ;;  %v1870_v40 = vadd.f32 %v1869_v15, %v1868_v56  ;;  %v14703_v60 = vld [vmem:[#allocation39_spill] sm:$0xff]  ;;  %9038 = vmatprep.subr.msk.mxu0 %vm6661_vm14, %v14608_v6  ;;  %9058 = vmatprep.subr.msk.mxu1 %vm6663_vm3, %v14608_v6 }
 0x1c4   : > { %vm6637_vm9 = vcmp.eq.s32.totalorder %v9561_v23, %v14692_v22  ;;  %vm6639_vm11 = vcmp.eq.s32.totalorder %v9561_v23, %v14693_v50  ;;  %v12765_v49 = vadd.f32 %v12602_v53, %v14703_v60  ;;  %v12768_v15 = vadd.f32 %v1808_v51, %v11818_v58  ;;  %v14705_v58 = vld [vmem:[#allocation42_spill] sm:$0xff]  ;;  %6232 = vmatprep.mubr.f32.mxu0 %v14610_v48  ;;  %v1754_v51 = vpop.f32.mrf.mxu1 }
 0x1c5   : > { %v1799_v44 = vrot.slane %v1798_v29, 2  ;;  %v1811_v14 = vrot.slane %v1810_v52, 2  ;;  %vm6636_vm5 = vcmp.eq.s32.totalorder %v9561_v23, %v14694_v36  ;;  %vm6638_vm13 = vcmp.eq.s32.totalorder %v9561_v23, %v14695_v47  ;;  %6321 = vmatprep.mubr.f32.mxu1 %v14610_v48  ;;  %9039 = vmatpush1.msk.msra.mxu0 %vm6660_vm7, %v14608_v6 }
 0x1c6   : > { %14704 = vst [vmem:[#allocation33_spill] sm:$0xff] %v12768_v15  ;;  %v12783_v53 = vadd.f32 %v1906_v37, %v14705_v58  ;;  %v1860_v4 = vadd.f32 %v1859_v19, %v1858_v27  ;;  %v1871_v24 = vrot.slane %v1870_v40, 1  ;;  %v1863_v9 = vrot.slane %v1862_v61, 2  ;;  %8936 = vmatmul.mubr.msk.f32.gmra.mxu0 %vm475_vm0, %v12443_v3  ;;  %8956 = vmatmul.mubr.msk.f32.gmra.mxu1 %vm475_vm0, %v12443_v3 }
 0x1c7   : > { %vm6629_vm12 = vcmp.eq.s32.totalorder %v9454_v2, %v14692_v22  ;;  %v12792_v55 = vadd.f32 %v1918_v16, %v11765_v30  ;;  %v1970_v17 = vadd.f32 %v1969_v59, %v12695_v35  ;;  %v1875_v56 = vrot.slane %v1874_v0, 2  ;;  %9040 = vmatprep.subr.msk.mxu0 %vm6653_vm2, %v14608_v6  ;;  %6238 = vmatprep.mubr.f32.mxu0 %v14610_v48 }
 0x1c8   : > { %v1891_v37 = vmul.f32 %v12560_v45, %v12671_v28  ;;  %vm14706_vm3 = vcmp.eq.s32.totalorder %v9501_v18, %v14695_v47  ;;  %vm6628_vm14 = vcmp.eq.s32.totalorder %v9454_v2, %v14694_v36  ;;  %v1982_v30 = vadd.f32 %v1981_v39, %v12710_v62  ;;  %v12818_v62 = vpop.f32.mrf.mxu0  ;;  %9041 = vmatpush1.msk.msra.mxu0 %vm6652_vm8, %v14608_v6 }
 0x1c9   : > { %9059 = vmatpush1.msk.msra.mxu1 %vm14706_vm3, %v14608_v6  ;;  %v12809_v35 = vadd.f32 %v1860_v4, %v11920_v8  ;;  %v1872_v33 = vadd.f32 %v1871_v24, %v1870_v40  ;;  %vm6630_vm7 = vcmp.eq.s32.totalorder %v9454_v2, %v14695_v47  ;;  %v1800_v28 = vadd.f32 %v1799_v44, %v1798_v29 }
 0x1ca   : > { %v1812_v27 = vadd.f32 %v1811_v14, %v1810_v52  ;;  %v1919_v16 = vrot.slane %v1891_v37, 4  ;;  %v1893_v59 = vmul.f32 %v12579_v57, %v1748_v11  ;;  %9060 = vmatprep.subr.msk.mxu1 %vm6655_vm15, %v14608_v6  ;;  %v1864_v3 = vadd.f32 %v1863_v9, %v1862_v61  ;;  %9042 = vmatprep.subr.msk.mxu0 %vm6645_vm6, %v14608_v6  ;;  %v14708_v61 = vld [vmem:[#allocation43_spill] sm:$0xff] }
 0x1cb   : > { %v12829_v8 = vadd.f32 %v1872_v33, %v11963_v1  ;;  %v1892_v29 = vmul.f32 %v12605_v43, %v12719_v38  ;;  %9061 = vmatpush1.msk.msra.mxu1 %vm6654_vm4, %v14608_v6  ;;  %vm6689_vm2 = vcmp.eq.s32.totalorder %v9473_v10, %v12293_v26  ;;  %vm6691_vm15 = vcmp.eq.s32.totalorder %v9473_v10, %v12385_v54 }
 0x1cc   : > { %v1876_v1 = vadd.f32 %v1875_v56, %v1874_v0  ;;  %v1920_v52 = vadd.f32 %v1919_v16, %v1891_v37  ;;  %v1931_v11 = vrot.slane %v1893_v59, 4  ;;  %v1894_v38 = vmul.f32 %v12608_v7, %v1750_v25  ;;  %6327 = vmatprep.mubr.f32.mxu1 %v14610_v48  ;;  %v12869_v25 = vpop.f32.mrf.mxu0  ;;  %9043 = vmatpush1.msk.msra.mxu0 %vm6644_vm1, %v14608_v6  ;;  %v1756_v16 = vpop.f32.mrf.mxu1 }
 0x1cd   : > { %vm14707_vm8 = vcmp.eq.s32.totalorder %v9543_v21, %v14693_v50  ;;  %vm6688_vm4 = vcmp.eq.s32.totalorder %v9473_v10, %v12389_v41  ;;  %vm6690_vm3 = vcmp.eq.s32.totalorder %v9473_v10, %v12454_v34  ;;  %v12859_v0 = vadd.f32 %v1970_v17, %v14708_v61  ;;  %8937 = vmatmul.mubr.msk.f32.gmra.mxu0 %vm475_vm0, %v12536_v31  ;;  %v12920_v61 = vld [vmem:[#allocation5 + $0xe0] sm:$0xff]  ;;  %v13001_v10 = vld [vmem:[#allocation5 + $0xe8] sm:$0xff] }
 0x1ce   : > { %9062 = vmatprep.subr.msk.mxu1 %vm14707_vm8, %v14608_v6  ;;  %v1955_v39 = vmul.f32 %v12560_v45, %v1665_v46  ;;  %v1957_v19 = vmul.f32 %v12579_v57, %v1754_v51  ;;  %vm6681_vm6 = vcmp.eq.s32.totalorder %v9479_v12, %v12293_v26  ;;  %v1801_v40 = vrot.slane %v1800_v28, 1  ;;  %8957 = vmatmul.mubr.msk.f32.gmra.mxu1 %vm475_vm0, %v12536_v31  ;;  %v14709_v31 = vld [vmem:[#allocation44_spill] sm:$0xff] }
 0x1cf   : > { %v1813_v60 = vrot.slane %v1812_v27, 1  ;;  %v1921_v44 = vrot.slane %v1920_v52, 2  ;;  %v1932_v14 = vadd.f32 %v1931_v11, %v1893_v59  ;;  %9063 = vmatpush1.msk.msra.mxu1 %vm6646_vm10, %v14608_v6  ;;  %v1865_v45 = vrot.slane %v1864_v3, 1  ;;  %9044 = vmatprep.subr.msk.mxu0 %vm6637_vm9, %v14608_v6  ;;  %v12910_v11 = vpop.f32.mrf.mxu0 }
 0x1d0   : > { %v1925_v57 = vrot.slane %v1892_v29, 4  ;;  %v1983_v46 = vrot.slane %v1955_v39, 4  ;;  %v1995_v58 = vrot.slane %v1957_v19, 4  ;;  %vm6680_vm8 = vcmp.eq.s32.totalorder %v9479_v12, %v12389_v41  ;;  %9064 = vmatprep.subr.msk.mxu1 %vm6639_vm11, %v14608_v6  ;;  %9045 = vmatpush1.msk.msra.mxu0 %vm6636_vm5, %v14608_v6 }
 0x1d1   : > { %vm6682_vm1 = vcmp.eq.s32.totalorder %v9479_v12, %v12454_v34  ;;  %v1877_v4 = vrot.slane %v1876_v1, 1  ;;  %v1922_v24 = vadd.f32 %v1921_v44, %v1920_v52  ;;  %v1933_v9 = vrot.slane %v1932_v14, 2  ;;  %9065 = vmatpush1.msk.msra.mxu1 %vm6638_vm13, %v14608_v6  ;;  %9046 = vmatprep.subr.msk.mxu0 %vm6629_vm12, %v14608_v6  ;;  %v12942_v44 = vpop.f32.mrf.mxu1 }
 0x1d2   : > { %v1937_v17 = vrot.slane %v1894_v38, 4  ;;  %v12896_v56 = vadd.f32 %v1982_v30, %v14709_v31  ;;  %v1984_v37 = vadd.f32 %v1983_v46, %v1955_v39  ;;  %v1996_v33 = vadd.f32 %v1995_v58, %v1957_v19  ;;  %9047 = vmatpush1.msk.msra.mxu0 %vm6628_vm14, %v14608_v6  ;;  %6957 = vmatprep.mubr.f32.mxu0 %v14610_v48  ;;  %v14713_v58 = vld [vmem:[#allocation46_spill] sm:$0xff] }
 0x1d3   : > { %vm6673_vm10 = vcmp.eq.s32.totalorder %v9482_v13, %v12293_v26  ;;  %vm6675_vm9 = vcmp.eq.s32.totalorder %v9482_v13, %v12385_v54  ;;  %v1802_v30 = vadd.f32 %v1801_v40, %v1800_v28  ;;  %v1814_v59 = vadd.f32 %v1813_v60, %v1812_v27  ;;  %7046 = vmatprep.mubr.f32.mxu1 %v14610_v48 }
 0x1d4   : > { %v1923_v51 = vrot.slane %v1922_v24, 1  ;;  %v1934_v52 = vadd.f32 %v1933_v9, %v1932_v14  ;;  %vm14710_vm11 = vcmp.eq.s32.totalorder %v9454_v2, %v14693_v50  ;;  %vm6672_vm5 = vcmp.eq.s32.totalorder %v9482_v13, %v12389_v41  ;;  %9048 = vmatmul.mubr.msk.f32.vlgmr.msra.gmra.mxu0 %vm475_vm0, %v12920_v61  ;;  %v12959_v14 = vpop.f32.mrf.mxu0  ;;  %9072 = vmatprep.subr.msk.mxu0 %vm6689_vm2, %v14608_v6 }
 0x1d5   : > { %9066 = vmatprep.subr.msk.mxu1 %vm14710_vm11, %v14608_v6  ;;  %vm6674_vm13 = vcmp.eq.s32.totalorder %v9482_v13, %v12454_v34  ;;  %v1866_v28 = vadd.f32 %v1865_v45, %v1864_v3  ;;  %v1926_v27 = vadd.f32 %v1925_v57, %v1892_v29  ;;  %v1985_v39 = vrot.slane %v1984_v37, 2  ;;  %9073 = vmatpush1.msk.msra.mxu0 %vm6688_vm4, %v14608_v6  ;;  %v13101_v13 = vld [vmem:[#allocation5 + $0xf0] sm:$0xff] }
 0x1d6   : > { %v1997_v19 = vrot.slane %v1996_v33, 2  ;;  %vm6665_vm12 = vcmp.eq.s32.totalorder %v9501_v18, %v12293_v26  ;;  %vm6667_vm11 = vcmp.eq.s32.totalorder %v9501_v18, %v12385_v54  ;;  %v1878_v22 = vadd.f32 %v1877_v4, %v1876_v1  ;;  %9067 = vmatpush1.msk.msra.mxu1 %vm6630_vm7, %v14608_v6  ;;  %9074 = vmatprep.subr.msk.mxu0 %vm6681_vm6, %v14608_v6 }
 0x1d7   : > { %v1924_v50 = vadd.f32 %v1923_v51, %v1922_v24  ;;  %v1935_v40 = vrot.slane %v1934_v52, 1  ;;  %v1938_v3 = vadd.f32 %v1937_v17, %v1894_v38  ;;  %v1986_v36 = vadd.f32 %v1985_v39, %v1984_v37  ;;  %9068 = vmatmul.mubr.msk.f32.vlgmr.msra.gmra.mxu1 %vm475_vm0, %v12920_v61  ;;  %9092 = vmatprep.subr.msk.mxu1 %vm6691_vm15, %v14608_v6  ;;  %v14719_v39 = vld [vmem:[#allocation11_spill] sm:$0xff] }
 0x1d8   : > { %v1998_v29 = vadd.f32 %v1997_v19, %v1996_v33  ;;  %v1956_v60 = vmul.f32 %v12605_v43, %v12818_v62  ;;  %vm6664_vm14 = vcmp.eq.s32.totalorder %v9501_v18, %v12389_v41  ;;  %vm6666_vm7 = vcmp.eq.s32.totalorder %v9501_v18, %v12454_v34  ;;  %v14711_v62 = vld [vmem:[#allocation19_spill] sm:$0xff]  ;;  %9093 = vmatpush1.msk.msra.mxu1 %vm6690_vm3, %v14608_v6 }
 0x1d9   : > { %v12953_v47 = vadd.f32 %v1924_v50, %v12141_v5  ;;  %v1936_v1 = vadd.f32 %v1935_v40, %v1934_v52  ;;  %v1958_v43 = vmul.f32 %v12608_v7, %v1756_v16  ;;  %v12957_v38 = vshra.s32 %v14711_v62, 16  ;;  %v13010_v16 = vpop.f32.mrf.mxu1  ;;  %6963 = vmatprep.mubr.f32.mxu0 %v14610_v48  ;;  %7052 = vmatprep.mubr.f32.mxu1 %v14610_v48  ;;  %v14718_v52 = vld [vmem:[#allocation14_spill] sm:$0xff]  ;;  %v14720_v40 = vld [vmem:[#allocation37_spill] sm:$0xff] }
 0x1da   : > { %v12970_v5 = vadd.f32 %v1802_v30, %v11876_v32  ;;  %v1927_v45 = vrot.slane %v1926_v27, 2  ;;  %v1987_v7 = vrot.slane %v1986_v36, 1  ;;  %v1999_v57 = vrot.slane %v1998_v29, 1  ;;  %v14712_v32 = vld [vmem:[#allocation45_spill] sm:$0xff]  ;;  %9075 = vmatpush1.msk.msra.mxu0 %vm6680_vm8, %v14608_v6 }
 0x1db   : > { %vm6657_vm2 = vcmp.eq.s32.totalorder %v9528_v20, %v12293_v26  ;;  %v12985_v46 = vadd.f32 %v1814_v59, %v14712_v32  ;;  %v12988_v4 = vadd.f32 %v1866_v28, %v14713_v58  ;;  %v12991_v24 = vadd.f32 %v1936_v1, %v12231_v42  ;;  %v14716_v42 = vld [vmem:[#allocation47_spill] sm:$0xff]  ;;  %v14717_v59 = vld [vmem:[#allocation13_spill] sm:$0xff]  ;;  %9049 = vmatmul.mubr.msk.f32.gmra.mxu0 %vm475_vm0, %v13001_v10 }
 0x1dc   : > { %v1939_v9 = vrot.slane %v1938_v3, 2  ;;  %vm14715_vm4 = vcmp.eq.s32.totalorder %v9479_v12, %v12385_v54  ;;  %vm6656_vm3 = vcmp.eq.s32.totalorder %v9528_v20, %v12389_v41  ;;  %vm6658_vm15 = vcmp.eq.s32.totalorder %v9528_v20, %v12454_v34  ;;  %9069 = vmatmul.mubr.msk.f32.gmra.mxu1 %vm475_vm0, %v13001_v10  ;;  %9076 = vmatprep.subr.msk.mxu0 %vm6673_vm10, %v14608_v6 }
 0x1dd   : > { %14714 = vst [vmem:[#allocation38_spill] sm:$0xff] %v12991_v24  ;;  %9094 = vmatprep.subr.msk.mxu1 %vm14715_vm4, %v14608_v6  ;;  %v13008_v17 = vadd.f32 %v1878_v22, %v14716_v42  ;;  %v1988_v31 = vadd.f32 %v1987_v7, %v1986_v36  ;;  %v2000_v37 = vadd.f32 %v1999_v57, %v1998_v29  ;;  %v1989_v33 = vrot.slane %v1956_v60, 4  ;;  %v2392_v22 = vpop.f32.mrf.mxu0  ;;  %v14722_v29 = vld [vmem:[#allocation25_spill] sm:$0xff]  ;;  %v2479_v57 = vpop.f32.mrf.mxu1 }
 0x1de   : > { %v2001_v30 = vrot.slane %v1958_v43, 4  ;;  %v2248_v51 = vrot.slane %v12957_v38, %v14717_v59  ;;  %v2256_v28 = vrot.slane %v12957_v38, %v14718_v52  ;;  %v2252_v19 = vrot.slane %v12957_v38, %v14719_v39  ;;  %9095 = vmatpush1.msk.msra.mxu1 %vm6682_vm1, %v14608_v6  ;;  %9077 = vmatpush1.msk.msra.mxu0 %vm6672_vm5, %v14608_v6 }
 0x1df   : > { %v13032_v50 = vadd.f32 %v1927_v45, %v1926_v27  ;;  %v13035_v36 = vadd.f32 %v1988_v31, %v14720_v40  ;;  %v13038_v1 = vadd.f32 %v2000_v37, %v14722_v29  ;;  %vm6648_vm8 = vcmp.eq.s32.totalorder %v9543_v21, %v12389_v41  ;;  %v14724_v27 = vld [vmem:[#allocation20_spill] sm:$0xff]  ;;  %9096 = vmatprep.subr.msk.mxu1 %vm6675_vm9, %v14608_v6  ;;  %v2396_v42 = vpop.f32.mrf.mxu0 }
 0x1e0   : > { %v13048_v12 = vadd.f32 %v1939_v9, %v1938_v3  ;;  %vm2277_vm4 = vcmp.eq.s32.totalorder %v9454_v2, %v2248_v51  ;;  %vm2279_vm6 = vcmp.eq.s32.totalorder %v9454_v2, %v2256_v28  ;;  %v13053_v62 = vshra.s32 %v14724_v27, 16  ;;  %9097 = vmatpush1.msk.msra.mxu1 %vm6674_vm13, %v14608_v6  ;;  %9078 = vmatprep.subr.msk.mxu0 %vm6665_vm12, %v14608_v6 }
 0x1e1   : > { %14721 = vst [vmem:[#allocation39_spill] sm:$0xff] %v13035_v36  ;;  %14723 = vst [vmem:[#allocation42_spill] sm:$0xff] %v13038_v1  ;;  %v13063_v45 = vadd.f32 %v1989_v33, %v1956_v60  ;;  %v13066_v3 = vsel %vm2277_vm4, 1.0, %v14610_v48  ;;  %v13069_v7 = vsel %vm2279_vm6, 1.0, %v14610_v48  ;;  %vm2278_vm1 = vcmp.eq.s32.totalorder %v9454_v2, %v2252_v19  ;;  %9098 = vmatprep.subr.msk.mxu1 %vm6667_vm11, %v14608_v6  ;;  %v2481_v19 = vpop.f32.mrf.mxu1  ;;  %v2398_v15 = vpop.f32.mrf.mxu0 }
 0x1e2   : > { %vm6641_vm10 = vcmp.eq.s32.totalorder %v9561_v23, %v12293_v26  ;;  %vm6643_vm9 = vcmp.eq.s32.totalorder %v9561_v23, %v12385_v54  ;;  %v13084_v60 = vadd.f32 %v2001_v30, %v1958_v43  ;;  %v2674_v32 = vmul.f32 %v13066_v3, %v12869_v25  ;;  %v14725_v43 = vld [vmem:[#allocation12_spill] sm:$0xff]  ;;  %6969 = vmatprep.mubr.f32.mxu0 %v14610_v48 }
 0x1e3   : > { %v2676_v58 = vmul.f32 %v13069_v7, %v12942_v44  ;;  %v13091_v9 = vsel %vm2278_vm1, 1.0, %v14610_v48  ;;  %vm6640_vm5 = vcmp.eq.s32.totalorder %v9561_v23, %v12389_v41  ;;  %vm6642_vm13 = vcmp.eq.s32.totalorder %v9561_v23, %v12454_v34  ;;  %7058 = vmatprep.mubr.f32.mxu1 %v14610_v48  ;;  %9079 = vmatpush1.msk.msra.mxu0 %vm6664_vm14, %v14608_v6  ;;  %v2485_v1 = vpop.f32.mrf.mxu1 }
 0x1e4   : > { %v2675_v44 = vmul.f32 %v13091_v9, %v12910_v11  ;;  %v2260_v31 = vrot.slane %v12957_v38, %v14725_v43  ;;  %v2738_v37 = vmul.f32 %v13066_v3, %v12959_v14  ;;  %vm6633_vm12 = vcmp.eq.s32.totalorder %v9454_v2, %v12293_v26  ;;  %9099 = vmatpush1.msk.msra.mxu1 %vm6666_vm7, %v14608_v6 }
 0x1e5   : > { %vm6635_vm11 = vcmp.eq.s32.totalorder %v9454_v2, %v12385_v54  ;;  %v2682_v33 = vrot.slane %v2674_v32, 4  ;;  %v2694_v30 = vrot.slane %v2676_v58, 4  ;;  %v2740_v11 = vmul.f32 %v13069_v7, %v2479_v57  ;;  %9050 = vmatmul.mubr.msk.f32.gmra.mxu0 %vm475_vm0, %v13101_v13  ;;  %9070 = vmatmul.mubr.msk.f32.gmra.mxu1 %vm475_vm0, %v13101_v13 }
 0x1e6   : > { %v2739_v51 = vmul.f32 %v13091_v9, %v2392_v22  ;;  %vm6632_vm6 = vcmp.eq.s32.totalorder %v9454_v2, %v12389_v41  ;;  %v2688_v14 = vrot.slane %v2675_v44, 4  ;;  %vm2280_vm4 = vcmp.eq.s32.totalorder %v9454_v2, %v2260_v31  ;;  %9080 = vmatprep.subr.msk.mxu0 %vm6657_vm2, %v14608_v6  ;;  %6975 = vmatprep.mubr.f32.mxu0 %v14610_v48  ;;  %v14732_v41 = vld [vmem:[#allocation35_spill] sm:$0xff] }
 0x1e7   : > { %v2746_v28 = vrot.slane %v2738_v37, 4  ;;  %v13134_v22 = vmul.f32 %v13066_v3, %v2396_v42  ;;  %vm6634_vm14 = vcmp.eq.s32.totalorder %v9454_v2, %v12454_v34  ;;  %v2683_v18 = vadd.f32 %v2682_v33, %v2674_v32  ;;  %9081 = vmatpush1.msk.msra.mxu0 %vm6656_vm3, %v14608_v6  ;;  %7064 = vmatprep.mubr.f32.mxu1 %v14610_v48 }
 0x1e8   : > { %v2695_v40 = vadd.f32 %v2694_v30, %v2676_v58  ;;  %v13143_v29 = vsel %vm2280_vm4, 1.0, %v14610_v48  ;;  %v2758_v27 = vrot.slane %v2740_v11, 4  ;;  %vm14726_vm7 = vcmp.eq.s32.totalorder %v9528_v20, %v12385_v54 }
 0x1e9   : > { %9100 = vmatprep.subr.msk.mxu1 %vm14726_vm7, %v14608_v6  ;;  %v2689_v57 = vadd.f32 %v2688_v14, %v2675_v44  ;;  %v2677_v42 = vmul.f32 %v13143_v29, %v13010_v16  ;;  %v2747_v32 = vadd.f32 %v2746_v28, %v2738_v37  ;;  %v2752_v58 = vrot.slane %v2739_v51, 4  ;;  %v13172_v16 = vld [vmem:[#allocation5 + $0xf8] sm:$0xff] }
 0x1ea   : > { %9101 = vmatpush1.msk.msra.mxu1 %vm6658_vm15, %v14608_v6  ;;  %v2684_v31 = vrot.slane %v2683_v18, 2  ;;  %v2696_v33 = vrot.slane %v2695_v40, 2  ;;  %v2759_v30 = vadd.f32 %v2758_v27, %v2740_v11  ;;  %v2741_v44 = vmul.f32 %v13143_v29, %v2481_v19  ;;  %9051 = vmatmul.mubr.msk.f32.gmra.mxu0 %vm475_vm0, %v13172_v16 }
 0x1eb   : > { %vm14727_vm2 = vcmp.eq.s32.totalorder %v9543_v21, %v12293_v26  ;;  %vm14728_vm1 = vcmp.eq.s32.totalorder %v9543_v21, %v12385_v54  ;;  %v2690_v37 = vrot.slane %v2689_v57, 2  ;;  %v2700_v20 = vrot.slane %v2677_v42, 4  ;;  %9071 = vmatmul.mubr.msk.f32.gmra.mxu1 %vm475_vm0, %v13172_v16  ;;  %7135 = vmatprep.mubr.f32.mxu0 %v14610_v48  ;;  %v14731_v26 = vld [vmem:[#allocation34_spill] sm:$0xff] }
 0x1ec   : > { %9082 = vmatprep.subr.msk.mxu0 %vm14727_vm2, %v14608_v6  ;;  %9102 = vmatprep.subr.msk.mxu1 %vm14728_vm1, %v14608_v6  ;;  %v2748_v14 = vrot.slane %v2747_v32, 2  ;;  %v2753_v28 = vadd.f32 %v2752_v58, %v2739_v51  ;;  %v2685_v11 = vadd.f32 %v2684_v31, %v2683_v18  ;;  %v2697_v19 = vadd.f32 %v2696_v33, %v2695_v40 }
 0x1ed   : > { %v2760_v27 = vrot.slane %v2759_v30, 2  ;;  %v2764_v25 = vrot.slane %v2741_v44, 4  ;;  %9083 = vmatpush1.msk.msra.mxu0 %vm6648_vm8, %v14608_v6  ;;  %vm14729_vm15 = vcmp.eq.s32.totalorder %v9543_v21, %v12454_v34  ;;  %v2691_v51 = vadd.f32 %v2690_v37, %v2689_v57  ;;  %7224 = vmatprep.mubr.f32.mxu1 %v14610_v48  ;;  %v14734_v34 = vld [vmem:[#allocation28_spill] sm:$0xff] }
 0x1ee   : > { %9103 = vmatpush1.msk.msra.mxu1 %vm14729_vm15, %v14608_v6  ;;  %v2701_v58 = vadd.f32 %v2700_v20, %v2677_v42  ;;  %v2749_v36 = vadd.f32 %v2748_v14, %v2747_v32  ;;  %v2754_v24 = vrot.slane %v2753_v28, 2  ;;  %v2686_v18 = vrot.slane %v2685_v11, 1  ;;  %9084 = vmatprep.subr.msk.mxu0 %vm6641_vm10, %v14608_v6  ;;  %v2487_v20 = vpop.f32.mrf.mxu1 }
 0x1ef   : > { %v2698_v40 = vrot.slane %v2697_v19, 1  ;;  %v2761_v31 = vadd.f32 %v2760_v27, %v2759_v30  ;;  %v2765_v33 = vadd.f32 %v2764_v25, %v2741_v44  ;;  %9104 = vmatprep.subr.msk.mxu1 %vm6643_vm9, %v14608_v6  ;;  %v2692_v21 = vrot.slane %v2691_v51, 1  ;;  %9085 = vmatpush1.msk.msra.mxu0 %vm6640_vm5, %v14608_v6 }
 0x1f0   : > { %v2702_v57 = vrot.slane %v2701_v58, 2  ;;  %v2750_v42 = vrot.slane %v2749_v36, 1  ;;  %v2755_v32 = vadd.f32 %v2754_v24, %v2753_v28  ;;  %9105 = vmatpush1.msk.msra.mxu1 %vm6642_vm13, %v14608_v6  ;;  %v2687_v25 = vadd.f32 %v2686_v18, %v2685_v11  ;;  %9086 = vmatprep.subr.msk.mxu0 %vm6633_vm12, %v14608_v6  ;;  %v14730_v11 = vld [vmem:[#allocation48_spill] sm:$0xff] }
 0x1f1   : > { %v2699_v30 = vadd.f32 %v2698_v40, %v2697_v19  ;;  %v2762_v44 = vrot.slane %v2761_v31, 1  ;;  %v2766_v37 = vrot.slane %v2765_v33, 2  ;;  %9106 = vmatprep.subr.msk.mxu1 %vm6635_vm11, %v14608_v6  ;;  %v2693_v24 = vadd.f32 %v2692_v21, %v2691_v51  ;;  %9087 = vmatpush1.msk.msra.mxu0 %vm6632_vm6, %v14608_v6  ;;  %v2402_v51 = vpop.f32.mrf.mxu0  ;;  %v14733_v40 = vld [vmem:[#allocation26_spill] sm:$0xff] }
 0x1f2   : > { %v2703_v14 = vadd.f32 %v2702_v57, %v2701_v58  ;;  %v2751_v28 = vadd.f32 %v2750_v42, %v2749_v36  ;;  %v2756_v23 = vrot.slane %v2755_v32, 1  ;;  %v13218_v19 = vadd.f32 %v2687_v25, %v14730_v11  ;;  %9107 = vmatpush1.msk.msra.mxu1 %vm6634_vm14, %v14608_v6  ;;  %9088 = vmatmul.mubr.msk.f32.vlgmr.msra.gmra.mxu0 %vm475_vm0, %v12920_v61 }
 0x1f3   : > { %v13221_v27 = vadd.f32 %v2699_v30, %v14731_v26  ;;  %v2763_v18 = vadd.f32 %v2762_v44, %v2761_v31  ;;  %v2810_v54 = vrot.slane %v13134_v22, 4  ;;  %v13230_v36 = vadd.f32 %v2693_v24, %v14732_v41  ;;  %9108 = vmatmul.mubr.msk.f32.vlgmr.msra.gmra.mxu1 %vm475_vm0, %v12920_v61  ;;  %v2491_v30 = vpop.f32.mrf.mxu1  ;;  %7141 = vmatprep.mubr.f32.mxu0 %v14610_v48  ;;  %v14736_v24 = vld [vmem:[#allocation32_spill] sm:$0xff] }
 0x1f4   : > { %v2704_v58 = vrot.slane %v2703_v14, 1  ;;  %v13233_v21 = vadd.f32 %v2751_v28, %v14733_v40  ;;  %v2757_v57 = vadd.f32 %v2756_v23, %v2755_v32  ;;  %v2767_v42 = vadd.f32 %v2766_v37, %v2765_v33  ;;  %7230 = vmatprep.mubr.f32.mxu1 %v14610_v48  ;;  %v14738_v37 = vld [vmem:[#allocation36_spill] sm:$0xff] }
 0x1f5   : > { %v13241_v6 = vadd.f32 %v2763_v18, %v14734_v34  ;;  %v2811_v25 = vadd.f32 %v2810_v54, %v13134_v22  ;;  %v2804_v61 = vmul.f32 %v13069_v7, %v2485_v1  ;;  %v2803_v26 = vmul.f32 %v13091_v9, %v2398_v15  ;;  %v2404_v22 = vpop.f32.mrf.mxu0 }
 0x1f6   : > { %v2705_v44 = vadd.f32 %v2704_v58, %v2703_v14  ;;  %v13248_v28 = vadd.f32 %v2757_v57, %v14736_v24  ;;  %v2768_v23 = vrot.slane %v2767_v42, 1  ;;  %v2805_v33 = vmul.f32 %v13143_v29, %v2487_v20  ;;  %9089 = vmatmul.mubr.msk.f32.gmra.mxu0 %vm475_vm0, %v13001_v10 }
 0x1f7   : > { %14735 = vst [vmem:[#allocation43_spill] sm:$0xff] %v13241_v6  ;;  %v2812_v11 = vrot.slane %v2811_v25, 2  ;;  %v2822_v54 = vrot.slane %v2804_v61, 4  ;;  %v2866_v41 = vmul.f32 %v13066_v3, %v2402_v51  ;;  %v2868_v14 = vmul.f32 %v13069_v7, %v2491_v30  ;;  %9109 = vmatmul.mubr.msk.f32.gmra.mxu1 %vm475_vm0, %v13001_v10  ;;  %7147 = vmatprep.mubr.f32.mxu0 %v14610_v48  ;;  %v2493_v7 = vpop.f32.mrf.mxu1 }
 0x1f8   : > { %14737 = vst [vmem:[#allocation44_spill] sm:$0xff] %v13248_v28  ;;  %v13254_v18 = vadd.f32 %v2705_v44, %v14738_v37  ;;  %v2769_v1 = vadd.f32 %v2768_v23, %v2767_v42  ;;  %v2816_v15 = vrot.slane %v2803_v26, 4  ;;  %v2828_v40 = vrot.slane %v2805_v33, 4  ;;  %7236 = vmatprep.mubr.f32.mxu1 %v14610_v48 }
 0x1f9   : > { %v2813_v58 = vadd.f32 %v2812_v11, %v2811_v25  ;;  %v2823_v20 = vadd.f32 %v2822_v54, %v2804_v61  ;;  %v2874_v57 = vrot.slane %v2866_v41, 4  ;;  %v2886_v34 = vrot.slane %v2868_v14, 4  ;;  %v2562_v11 = vpop.f32.mrf.mxu0 }
 0x1fa   : > { %v2867_v3 = vmul.f32 %v13091_v9, %v2404_v22  ;;  %v13266_v51 = vadd.f32 %v2769_v1, %v12765_v49  ;;  %v2817_v44 = vadd.f32 %v2816_v15, %v2803_v26  ;;  %v2829_v10 = vadd.f32 %v2828_v40, %v2805_v33  ;;  %9090 = vmatmul.mubr.msk.f32.gmra.mxu0 %vm475_vm0, %v13101_v13 }
 0x1fb   : > { %v2814_v30 = vrot.slane %v2813_v58, 1  ;;  %v2824_v42 = vrot.slane %v2823_v20, 2  ;;  %v2875_v25 = vadd.f32 %v2874_v57, %v2866_v41  ;;  %v2887_v24 = vadd.f32 %v2886_v34, %v2868_v14  ;;  %9110 = vmatmul.mubr.msk.f32.gmra.mxu1 %vm475_vm0, %v13101_v13  ;;  %7153 = vmatprep.mubr.f32.mxu0 %v14610_v48  ;;  %v13275_v41 = vpop.f32.mrf.mxu1  ;;  %v14740_v14 = vld [vmem:[#allocation40_spill] sm:$0xff] }
 0x1fc   : > { %14739 = vst [vmem:[#allocation19_spill] sm:$0xff] %v13266_v51  ;;  %v2880_v23 = vrot.slane %v2867_v3, 4  ;;  %v2818_v9 = vrot.slane %v2817_v44, 2  ;;  %v2830_v22 = vrot.slane %v2829_v10, 2  ;;  %v2869_v49 = vmul.f32 %v13143_v29, %v2493_v7  ;;  %7242 = vmatprep.mubr.f32.mxu1 %v14610_v48  ;;  %v2564_v7 = vpop.f32.mrf.mxu0 }
 0x1fd   : > { %v2815_v61 = vadd.f32 %v2814_v30, %v2813_v58  ;;  %v2825_v26 = vadd.f32 %v2824_v42, %v2823_v20  ;;  %v2876_v33 = vrot.slane %v2875_v25, 2  ;;  %v2888_v37 = vrot.slane %v2887_v24, 2  ;;  %v14742_v42 = vld [vmem:[#allocation17_spill] sm:$0xff] }
 0x1fe   : > { %v2881_v54 = vadd.f32 %v2880_v23, %v2867_v3  ;;  %v2819_v15 = vadd.f32 %v2818_v9, %v2817_v44  ;;  %v2831_v13 = vadd.f32 %v2830_v22, %v2829_v10  ;;  %v2892_v58 = vrot.slane %v2869_v49, 4  ;;  %9091 = vmatmul.mubr.msk.f32.gmra.mxu0 %vm475_vm0, %v13172_v16 }
 0x1ff   : > { %v13278_v1 = vadd.f32 %v2815_v61, %v14740_v14  ;;  %v2826_v40 = vrot.slane %v2825_v26, 1  ;;  %v2877_v57 = vadd.f32 %v2876_v33, %v2875_v25  ;;  %v2889_v34 = vadd.f32 %v2888_v37, %v2887_v24  ;;  %9111 = vmatmul.mubr.msk.f32.gmra.mxu1 %vm475_vm0, %v13172_v16  ;;  %v2653_v25 = vpop.f32.mrf.mxu1  ;;  %v14743_v37 = vld [vmem:[#allocation41_spill] sm:$0xff] }
 0x200   : > { %v2882_v29 = vrot.slane %v2881_v54, 2  ;;  %v2820_v20 = vrot.slane %v2819_v15, 1  ;;  %v2832_v3 = vrot.slane %v2831_v13, 1  ;;  %v2893_v30 = vadd.f32 %v2892_v58, %v2869_v49  ;;  %v2568_v49 = vpop.f32.mrf.mxu0 }
 0x201   : > { %14741 = vst [vmem:[#allocation45_spill] sm:$0xff] %v13278_v1  ;;  %v2264_v23 = vrot.slane %v12957_v38, %v14742_v42  ;;  %v2827_v44 = vadd.f32 %v2826_v40, %v2825_v26  ;;  %v2878_v10 = vrot.slane %v2877_v57, 1  ;;  %v2890_v61 = vrot.slane %v2889_v34, 1 }
 0x202   : > { %v2883_v9 = vadd.f32 %v2882_v29, %v2881_v54  ;;  %v2821_v24 = vadd.f32 %v2820_v20, %v2819_v15  ;;  %v2833_v22 = vadd.f32 %v2832_v3, %v2831_v13  ;;  %v2894_v33 = vrot.slane %v2893_v30, 2  ;;  %v14747_v13 = vld [vmem:[#allocation30_spill] sm:$0xff]  ;;  %v14749_v29 = vld [vmem:[#allocation31_spill] sm:$0xff]  ;;  %v2657_v3 = vpop.f32.mrf.mxu1 }
 0x203   : > { %vm2281_vm3 = vcmp.eq.s32.totalorder %v9454_v2, %v2264_v23  ;;  %v13288_v14 = vadd.f32 %v2827_v44, %v14743_v37  ;;  %v2879_v16 = vadd.f32 %v2878_v10, %v2877_v57  ;;  %v2891_v31 = vadd.f32 %v2890_v61, %v2889_v34  ;;  %v14753_v10 = vld [vmem:[#allocation16_spill] sm:$0xff] }
 0x204   : > { %v2884_v32 = vrot.slane %v2883_v9, 1  ;;  %v13291_v58 = vadd.f32 %v2821_v24, %v12783_v53  ;;  %v13294_v26 = vadd.f32 %v2833_v22, %v12792_v55  ;;  %v2895_v54 = vadd.f32 %v2894_v33, %v2893_v30  ;;  %v14751_v53 = vld [vmem:[#allocation18_spill] sm:$0xff]  ;;  %v14752_v55 = vld [vmem:[#allocation15_spill] sm:$0xff] }
 0x205   : > { %14744 = vst [vmem:[#allocation46_spill] sm:$0xff] %v13288_v14  ;;  %v13297_v15 = vsel %vm2281_vm3, 1.0, %v14610_v48  ;;  %v13300_v40 = vadd.f32 %v2879_v16, %v14747_v13  ;;  %v13303_v20 = vadd.f32 %v2891_v31, %v14749_v29  ;;  %v2272_v44 = vrot.slane %v12957_v38, %v14751_v53  ;;  %v2659_v16 = vpop.f32.mrf.mxu1 }
 0x206   : > { %14745 = vst [vmem:[#allocation47_spill] sm:$0xff] %v13291_v58  ;;  %14746 = vst [vmem:[#allocation37_spill] sm:$0xff] %v13294_v26  ;;  %v2885_v57 = vadd.f32 %v2884_v32, %v2883_v9  ;;  %v2678_v34 = vmul.f32 %v13297_v15, %v2562_v11  ;;  %v2896_v23 = vrot.slane %v2895_v54, 1  ;;  %v2268_v30 = vrot.slane %v12957_v38, %v14752_v55  ;;  %v2570_v11 = vpop.f32.mrf.mxu0 }
 0x207   : > { %14748 = vst [vmem:[#allocation25_spill] sm:$0xff] %v13300_v40  ;;  %14750 = vst [vmem:[#allocation20_spill] sm:$0xff] %v13303_v20  ;;  %v2276_v61 = vrot.slane %v12957_v38, %v14753_v10  ;;  %v2003_v24 = vrot.slane %v13084_v60, 2  ;;  %v2742_v32 = vmul.f32 %v13297_v15, %v2568_v49  ;;  %vm2283_vm0 = vcmp.eq.s32.totalorder %v9454_v2, %v2272_v44  ;;  %v2663_v20 = vpop.f32.mrf.mxu1 }
 0x208   : > { %v13314_v22 = vadd.f32 %v2885_v57, %v12859_v0  ;;  %v2706_v31 = vrot.slane %v2678_v34, 4  ;;  %v2897_v9 = vadd.f32 %v2896_v23, %v2895_v54  ;;  %vm2282_vm8 = vcmp.eq.s32.totalorder %v9454_v2, %v2268_v30 }
 0x209   : > { %vm2284_vm10 = vcmp.eq.s32.totalorder %v9454_v2, %v2276_v61  ;;  %v13321_v37 = vsel %vm2283_vm0, 1.0, %v14610_v48  ;;  %v13324_v38 = vsel %vm2282_vm8, 1.0, %v14610_v48  ;;  %v14755_v49 = vrot.slane %v13063_v45, 2  ;;  %v2574_v61 = vpop.f32.mrf.mxu0 }
 0x20a   : > { %14754 = vst [vmem:[#allocation48_spill] sm:$0xff] %v13314_v22  ;;  %v2707_v33 = vadd.f32 %v2706_v31, %v2678_v34  ;;  %v13327_v0 = vsel %vm2284_vm10, 1.0, %v14610_v48  ;;  %v13335_v13 = vadd.f32 %v2897_v9, %v12896_v56  ;;  %v2679_v29 = vmul.f32 %v13324_v38, %v2564_v7 }
 0x20b   : > { %v13332_v54 = vadd.f32 %v14755_v49, %v13063_v45  ;;  %v2681_v57 = vmul.f32 %v13327_v0, %v2653_v25  ;;  %v2770_v23 = vrot.slane %v2742_v32, 4  ;;  %v2744_v44 = vmul.f32 %v13321_v37, %v2657_v3  ;;  %v2576_v40 = vpop.f32.mrf.mxu0 }
 0x20c   : > { %14756 = vst [vmem:[#allocation34_spill] sm:$0xff] %v13335_v13  ;;  %v2708_v34 = vrot.slane %v2707_v33, 2  ;;  %v2743_v30 = vmul.f32 %v13324_v38, %v2570_v11  ;;  %v2680_v31 = vmul.f32 %v13321_v37, %v13275_v41  ;;  %v2712_v22 = vrot.slane %v2679_v29, 4 }
 0x20d   : > { %v2724_v45 = vrot.slane %v2681_v57, 4  ;;  %v2745_v49 = vmul.f32 %v13327_v0, %v2659_v16  ;;  %v2771_v9 = vadd.f32 %v2770_v23, %v2742_v32  ;;  %v2782_v13 = vrot.slane %v2744_v44, 4  ;;  %v2665_v23 = vpop.f32.mrf.mxu1 }
 0x20e   : > { %v2709_v56 = vadd.f32 %v2708_v34, %v2707_v33  ;;  %v2776_v7 = vrot.slane %v2743_v30, 4  ;;  %v2713_v25 = vadd.f32 %v2712_v22, %v2679_v29  ;;  %v2806_v3 = vmul.f32 %v13297_v15, %v2574_v61 }
 0x20f   : > { %v2725_v26 = vadd.f32 %v2724_v45, %v2681_v57  ;;  %v2788_v58 = vrot.slane %v2745_v49, 4  ;;  %v2772_v11 = vrot.slane %v2771_v9, 2  ;;  %v2783_v1 = vadd.f32 %v2782_v13, %v2744_v44 }
 0x210   : > { %v2710_v14 = vrot.slane %v2709_v56, 1  ;;  %v2777_v10 = vadd.f32 %v2776_v7, %v2743_v30  ;;  %v2718_v55 = vrot.slane %v2680_v31, 4  ;;  %v2714_v41 = vrot.slane %v2713_v25, 2 }
 0x211   : > { %v2726_v53 = vrot.slane %v2725_v26, 2  ;;  %v2789_v51 = vadd.f32 %v2788_v58, %v2745_v49  ;;  %v2773_v33 = vadd.f32 %v2772_v11, %v2771_v9  ;;  %v2784_v32 = vrot.slane %v2783_v1, 2 }
 0x212   : > { %v2711_v16 = vadd.f32 %v2710_v14, %v2709_v56  ;;  %v2778_v34 = vrot.slane %v2777_v10, 2  ;;  %v13346_v22 = vadd.f32 %v2003_v24, %v13084_v60  ;;  %v2715_v29 = vadd.f32 %v2714_v41, %v2713_v25  ;;  %v2580_v56 = vpop.f32.mrf.mxu0  ;;  %v2669_v60 = vpop.f32.mrf.mxu1 }
 0x213   : > { %v2727_v57 = vadd.f32 %v2726_v53, %v2725_v26  ;;  %v2790_v61 = vrot.slane %v2789_v51, 2  ;;  %v2774_v13 = vrot.slane %v2773_v33, 1  ;;  %v2785_v44 = vadd.f32 %v2784_v32, %v2783_v1 }
 0x214   : > { %v13349_v45 = vadd.f32 %v2711_v16, %v12749_v63  ;;  %v2779_v30 = vadd.f32 %v2778_v34, %v2777_v10  ;;  %v2719_v7 = vadd.f32 %v2718_v55, %v2680_v31  ;;  %v2716_v58 = vrot.slane %v2715_v29, 1 }
 0x215   : > { %v2728_v49 = vrot.slane %v2727_v57, 1  ;;  %v2791_v14 = vadd.f32 %v2790_v61, %v2789_v51  ;;  %v2775_v9 = vadd.f32 %v2774_v13, %v2773_v33  ;;  %v2786_v11 = vrot.slane %v2785_v44, 1  ;;  %v2582_v33 = vpop.f32.mrf.mxu0 }
 0x216   : > { %v2780_v28 = vrot.slane %v2779_v30, 1  ;;  %v2834_v6 = vrot.slane %v2806_v3, 4  ;;  %v1993_v24 = vrot.slane %v13332_v54, 1  ;;  %v2717_v26 = vadd.f32 %v2716_v58, %v2715_v29 }
 0x217   : > { %v2729_v53 = vadd.f32 %v2728_v49, %v2727_v57  ;;  %v2792_v25 = vrot.slane %v2791_v14, 1  ;;  %v13353_v63 = vadd.f32 %v2775_v9, %v12809_v35  ;;  %v2787_v1 = vadd.f32 %v2786_v11, %v2785_v44 }
 0x218   : > { %v2781_v10 = vadd.f32 %v2780_v28, %v2779_v30  ;;  %v2835_v55 = vadd.f32 %v2834_v6, %v2806_v3  ;;  %v2720_v31 = vrot.slane %v2719_v7, 2  ;;  %v13356_v51 = vadd.f32 %v2717_v26, %v12970_v5  ;;  %v2671_v28 = vpop.f32.mrf.mxu1 }
 0x219   : > { %v13359_v41 = vadd.f32 %v2729_v53, %v12985_v46  ;;  %v2793_v16 = vadd.f32 %v2792_v25, %v2791_v14  ;;  %v13362_v32 = vadd.f32 %v2787_v1, %v12829_v8  ;;  %v2808_v29 = vmul.f32 %v13321_v37, %v2663_v20 }
 0x21a   : > { %v13365_v34 = vadd.f32 %v2781_v10, %v12988_v4  ;;  %v2836_v35 = vrot.slane %v2835_v55, 2  ;;  %v2807_v5 = vmul.f32 %v13324_v38, %v2576_v40  ;;  %v2809_v46 = vmul.f32 %v13327_v0, %v2665_v23  ;;  %v3388_v10 = vpop.f32.mrf.mxu1 }
 0x21b   : > { %v13369_v6 = vadd.f32 %v2793_v16, %v13008_v17  ;;  %v2870_v3 = vmul.f32 %v13297_v15, %v2580_v56  ;;  %v2846_v61 = vrot.slane %v2808_v29, 4  ;;  %v2872_v8 = vmul.f32 %v13321_v37, %v2669_v60  ;;  %v3299_v60 = vpop.f32.mrf.mxu0 }
 0x21c   : > { %14757 = vst [vmem:[#allocation35_spill] sm:$0xff] %v13365_v34  ;;  %v2837_v57 = vadd.f32 %v2836_v35, %v2835_v55  ;;  %v2871_v4 = vmul.f32 %v13324_v38, %v2582_v33  ;;  %v2840_v13 = vrot.slane %v2807_v5, 4  ;;  %v2852_v44 = vrot.slane %v2809_v46, 4 }
 0x21d   : > { %14758 = vst [vmem:[#allocation26_spill] sm:$0xff] %v13369_v6  ;;  %v2898_v30 = vrot.slane %v2870_v3, 4  ;;  %v2873_v20 = vmul.f32 %v13327_v0, %v2671_v28  ;;  %v2847_v17 = vadd.f32 %v2846_v61, %v2808_v29  ;;  %v2910_v49 = vrot.slane %v2872_v8, 4  ;;  %v3301_v61 = vpop.f32.mrf.mxu0 }
 0x21e   : > { %v2838_v58 = vrot.slane %v2837_v57, 1  ;;  %v2904_v14 = vrot.slane %v2871_v4, 4  ;;  %v2005_v40 = vrot.slane %v13346_v22, 1  ;;  %v2841_v23 = vadd.f32 %v2840_v13, %v2807_v5 }
 0x21f   : > { %v2853_v9 = vadd.f32 %v2852_v44, %v2809_v46  ;;  %v2916_v15 = vrot.slane %v2873_v20, 4  ;;  %v2848_v11 = vrot.slane %v2847_v17, 2  ;;  %v2899_v26 = vadd.f32 %v2898_v30, %v2870_v3  ;;  %v3390_v44 = vpop.f32.mrf.mxu1  ;;  %v14762_v30 = vld [vmem:[#allocation27_spill] sm:$0xff] }
 0x220   : > { %v2839_v56 = vadd.f32 %v2838_v58, %v2837_v57  ;;  %v2905_v37 = vadd.f32 %v2904_v14, %v2871_v4  ;;  %v2721_v38 = vadd.f32 %v2720_v31, %v2719_v7  ;;  %v2842_v53 = vrot.slane %v2841_v23, 2  ;;  %v14764_v58 = vld [vmem:[#allocation49_spill] sm:$0xff] }
 0x221   : > { %v2911_v25 = vadd.f32 %v2910_v49, %v2872_v8  ;;  %v2917_v1 = vadd.f32 %v2916_v15, %v2873_v20  ;;  %v14759_v0 = vrot.slane %v13032_v50, 1  ;;  %v2854_v33 = vrot.slane %v2853_v9, 2  ;;  %v14765_v49 = vld [vmem:[#allocation50_spill] sm:$0xff] }
 0x222   : > { %v13382_v16 = vadd.f32 %v2839_v56, %v12953_v47  ;;  %v2906_v35 = vrot.slane %v2905_v37, 2  ;;  %v14761_v29 = vrot.slane %v13048_v12, 1  ;;  %v1994_v5 = vadd.f32 %v1993_v24, %v13332_v54  ;;  %v14763_v24 = vld [vmem:[#allocation29_spill] sm:$0xff] }
 0x223   : > { %v1930_v55 = vadd.f32 %v14759_v0, %v13032_v50  ;;  %v2006_v7 = vadd.f32 %v2005_v40, %v13346_v22  ;;  %v2918_v31 = vrot.slane %v2917_v1, 2  ;;  %v2849_v46 = vadd.f32 %v2848_v11, %v2847_v17 }
 0x224   : > { %14760 = vst [vmem:[#allocation28_spill] sm:$0xff] %v13382_v16  ;;  %v1942_v28 = vadd.f32 %v14761_v29, %v13048_v12  ;;  %v2900_v3 = vrot.slane %v2899_v26, 2  ;;  %v2907_v57 = vadd.f32 %v2906_v35, %v2905_v37  ;;  %v3163_v50 = vrot.slane %v13053_v62, %v14717_v59 }
 0x225   : > { %v2722_v47 = vrot.slane %v2721_v38, 1  ;;  %v13391_v8 = vadd.f32 %v2842_v53, %v2841_v23  ;;  %v2912_v4 = vrot.slane %v2911_v25, 2  ;;  %v2919_v13 = vadd.f32 %v2918_v31, %v2917_v1 }
 0x226   : > { %v13394_v12 = vadd.f32 %v1930_v55, %v14762_v30  ;;  %v13396_v54 = vadd.f32 %v2854_v33, %v2853_v9  ;;  %v2908_v22 = vrot.slane %v2907_v57, 1  ;;  %vm3192_vm9 = vcmp.eq.s32.totalorder %v9454_v2, %v3163_v50  ;;  %v3305_v9 = vpop.f32.mrf.mxu0  ;;  %v3394_v55 = vpop.f32.mrf.mxu1 }
 0x227   : > { %v13400_v20 = vadd.f32 %v1942_v28, %v14763_v24  ;;  %v2012_v17 = vadd.f32 %v1994_v5, %v14764_v58  ;;  %v2014_v14 = vadd.f32 %v2006_v7, %v14765_v49  ;;  %v2920_v40 = vrot.slane %v2919_v13, 1 }
 0x228   : > { %v2850_v23 = vrot.slane %v2849_v46, 1  ;;  %v13404_v15 = vadd.f32 %v2900_v3, %v2899_v26  ;;  %v2909_v56 = vadd.f32 %v2908_v22, %v2907_v57  ;;  %v13407_v11 = vsel %vm3192_vm9, 1.0, %v14610_v48 }
 0x229   : > { %v13409_v37 = vadd.f32 %v2722_v47, %v2721_v38  ;;  %v2844_v53 = vrot.slane %v13391_v8, 1  ;;  %v13412_v1 = vadd.f32 %v2912_v4, %v2911_v25  ;;  %v2921_v0 = vadd.f32 %v2920_v40, %v2919_v13  ;;  %v3396_v47 = vpop.f32.mrf.mxu1 }
 0x22a   : > { %v2856_v33 = vrot.slane %v13396_v54, 1  ;;  %v13415_v35 = vadd.f32 %v2909_v56, %v2012_v17  ;;  %v3589_v26 = vmul.f32 %v13407_v11, %v3299_v60  ;;  %v3171_v29 = vrot.slane %v13053_v62, %v14718_v52  ;;  %v3307_v60 = vpop.f32.mrf.mxu0 }
 0x22b   : > { %v13420_v28 = vadd.f32 %v2921_v0, %v2014_v14  ;;  %v3167_v38 = vrot.slane %v13053_v62, %v14719_v39  ;;  %v3175_v25 = vrot.slane %v13053_v62, %v14725_v43  ;;  %v3653_v5 = vmul.f32 %v13407_v11, %v3305_v9 }
 0x22c   : > { %14766 = vst [vmem:[#allocation32_spill] sm:$0xff] %v13415_v35  ;;  %v2851_v7 = vadd.f32 %v2850_v23, %v2849_v46  ;;  %v2902_v31 = vrot.slane %v13404_v15, 1  ;;  %v3597_v3 = vrot.slane %v3589_v26, 4  ;;  %vm3194_vm5 = vcmp.eq.s32.totalorder %v9454_v2, %v3171_v29  ;;  %v3400_v29 = vpop.f32.mrf.mxu1 }
 0x22d   : > { %14767 = vst [vmem:[#allocation36_spill] sm:$0xff] %v13420_v28  ;;  %v13430_v57 = vsel %vm3194_vm5, 1.0, %v14610_v48  ;;  %vm3193_vm13 = vcmp.eq.s32.totalorder %v9454_v2, %v3167_v38  ;;  %vm3195_vm12 = vcmp.eq.s32.totalorder %v9454_v2, %v3175_v25  ;;  %v3661_v50 = vrot.slane %v3653_v5, 4 }
 0x22e   : > { %v3598_v4 = vadd.f32 %v3597_v3, %v3589_v26  ;;  %v3591_v13 = vmul.f32 %v13430_v57, %v3388_v10  ;;  %v13436_v46 = vsel %vm3193_vm13, 1.0, %v14610_v48  ;;  %v13439_v30 = vsel %vm3195_vm12, 1.0, %v14610_v48  ;;  %v3311_v10 = vpop.f32.mrf.mxu0  ;;  %v3402_v34 = vpop.f32.mrf.mxu1 }
 0x22f   : > { %v3590_v22 = vmul.f32 %v13436_v46, %v3301_v61  ;;  %v3592_v24 = vmul.f32 %v13439_v30, %v3390_v44  ;;  %v3662_v58 = vadd.f32 %v3661_v50, %v3653_v5  ;;  %v3655_v17 = vmul.f32 %v13430_v57, %v3394_v55 }
 0x230   : > { %v3599_v49 = vrot.slane %v3598_v4, 2  ;;  %v3609_v14 = vrot.slane %v3591_v13, 4  ;;  %v3654_v40 = vmul.f32 %v13436_v46, %v3307_v60  ;;  %v3656_v23 = vmul.f32 %v13439_v30, %v3396_v47  ;;  %v3313_v47 = vpop.f32.mrf.mxu0 }
 0x231   : > { %v3603_v56 = vrot.slane %v3590_v22, 4  ;;  %v3615_v9 = vrot.slane %v3592_v24, 4  ;;  %v3663_v0 = vrot.slane %v3662_v58, 2  ;;  %v3673_v26 = vrot.slane %v3655_v17, 4 }
 0x232   : > { %v3600_v38 = vadd.f32 %v3599_v49, %v3598_v4  ;;  %v3610_v25 = vadd.f32 %v3609_v14, %v3591_v13  ;;  %v3667_v61 = vrot.slane %v3654_v40, 4  ;;  %v3679_v3 = vrot.slane %v3656_v23, 4 }
 0x233   : > { %v3604_v44 = vadd.f32 %v3603_v56, %v3590_v22  ;;  %v3616_v5 = vadd.f32 %v3615_v9, %v3592_v24  ;;  %v3664_v50 = vadd.f32 %v3663_v0, %v3662_v58  ;;  %v3674_v55 = vadd.f32 %v3673_v26, %v3655_v17  ;;  %v14768_v24 = vld [vmem:[#allocation33_spill] sm:$0xff]  ;;  %v3317_v26 = vpop.f32.mrf.mxu0 }
 0x234   : > { %v2914_v28 = vrot.slane %v13412_v1, 1  ;;  %v3601_v35 = vrot.slane %v3600_v38, 1  ;;  %v3611_v60 = vrot.slane %v3610_v25, 2  ;;  %v3668_v43 = vadd.f32 %v3667_v61, %v3654_v40  ;;  %v14769_v40 = vld [vmem:[#allocation21_spill] sm:$0xff] }
 0x235   : > { %v2845_v39 = vadd.f32 %v2844_v53, %v13391_v8  ;;  %v3605_v52 = vrot.slane %v3604_v44, 2  ;;  %v3617_v16 = vrot.slane %v3616_v5, 2  ;;  %v3680_v6 = vadd.f32 %v3679_v3, %v3656_v23  ;;  %v14770_v8 = vld [vmem:[#allocation38_spill] sm:$0xff] }
 0x236   : > { %v3612_v4 = vadd.f32 %v3611_v60, %v3610_v25  ;;  %v3665_v13 = vrot.slane %v3664_v50, 1  ;;  %v3675_v49 = vrot.slane %v3674_v55, 2  ;;  %v3717_v22 = vmul.f32 %v13407_v11, %v3311_v10 }
 0x237   : > { %v13451_v58 = vadd.f32 %v13409_v37, %v14768_v24  ;;  %v2857_v17 = vadd.f32 %v2856_v33, %v13396_v54  ;;  %v2903_v14 = vadd.f32 %v2902_v31, %v13404_v15  ;;  %v13456_v56 = vshra.s32 %v14769_v40, 16  ;;  %v3406_v54 = vpop.f32.mrf.mxu1 }
 0x238   : > { %v13459_v53 = vadd.f32 %v2851_v7, %v14770_v8  ;;  %v2915_v23 = vadd.f32 %v2914_v28, %v13412_v1  ;;  %v3602_v9 = vadd.f32 %v3601_v35, %v3600_v38  ;;  %v3669_v0 = vrot.slane %v3668_v43, 2  ;;  %v14771_v7 = vld [vmem:[#allocation39_spill] sm:$0xff] }
 0x239   : > { %v13463_v10 = vadd.f32 %v2845_v39, %v13394_v12  ;;  %v3606_v37 = vadd.f32 %v3605_v52, %v3604_v44  ;;  %v3618_v25 = vadd.f32 %v3617_v16, %v3616_v5  ;;  %v3681_v61 = vrot.slane %v3680_v6, 2  ;;  %v14772_v39 = vld [vmem:[#allocation42_spill] sm:$0xff] }
 0x23a   : > { %v3613_v33 = vrot.slane %v3612_v4, 1  ;;  %v3666_v15 = vadd.f32 %v3665_v13, %v3664_v50  ;;  %v3676_v31 = vadd.f32 %v3675_v49, %v3674_v55  ;;  %v3725_v3 = vrot.slane %v3717_v22, 4  ;;  %v3319_v50 = vpop.f32.mrf.mxu0  ;;  %v3408_v55 = vpop.f32.mrf.mxu1 }
 0x23b   : > { %v13466_v60 = vadd.f32 %v2857_v17, %v13400_v20  ;;  %v13469_v24 = vadd.f32 %v2903_v14, %v14771_v7  ;;  %v3719_v1 = vmul.f32 %v13430_v57, %v3400_v29  ;;  %v3781_v35 = vmul.f32 %v13407_v11, %v3317_v26 }
 0x23c   : > { %v13474_v12 = vadd.f32 %v2915_v23, %v14772_v39  ;;  %v13477_v52 = vadd.f32 %v3602_v9, %v13218_v19  ;;  %v3670_v16 = vadd.f32 %v3669_v0, %v3668_v43  ;;  %v3726_v28 = vadd.f32 %v3725_v3, %v3717_v22  ;;  %v3477_v7 = vpop.f32.mrf.mxu0 }
 0x23d   : > { %v3607_v38 = vrot.slane %v3606_v37, 1  ;;  %v3619_v44 = vrot.slane %v3618_v25, 1  ;;  %v3682_v5 = vadd.f32 %v3681_v61, %v3680_v6  ;;  %v3737_v20 = vrot.slane %v3719_v1, 4 }
 0x23e   : > { %14773 = vst [vmem:[#allocation40_spill] sm:$0xff] %v13474_v12  ;;  %14774 = vst [vmem:[#allocation41_spill] sm:$0xff] %v13477_v52  ;;  %v3614_v13 = vadd.f32 %v3613_v33, %v3612_v4  ;;  %v13480_v49 = vadd.f32 %v3666_v15, %v13233_v21  ;;  %v3677_v29 = vrot.slane %v3676_v31, 1  ;;  %v3718_v11 = vmul.f32 %v13436_v46, %v3313_v47 }
 0x23f   : > { %v3727_v17 = vrot.slane %v3726_v28, 2  ;;  %v3720_v14 = vmul.f32 %v13439_v30, %v3402_v34  ;;  %v3789_v19 = vrot.slane %v3781_v35, 4  ;;  %v3783_v43 = vmul.f32 %v13430_v57, %v3406_v54 }
 0x240   : > { %14775 = vst [vmem:[#allocation30_spill] sm:$0xff] %v13480_v49  ;;  %v3738_v22 = vadd.f32 %v3737_v20, %v3719_v1  ;;  %v3731_v40 = vrot.slane %v3718_v11, 4  ;;  %v3782_v6 = vmul.f32 %v13436_v46, %v3319_v50  ;;  %v3784_v8 = vmul.f32 %v13439_v30, %v3408_v55  ;;  %v3566_v46 = vpop.f32.mrf.mxu1 }
 0x241   : > { %v3671_v23 = vrot.slane %v3670_v16, 1  ;;  %v3743_v4 = vrot.slane %v3720_v14, 4  ;;  %v3790_v9 = vadd.f32 %v3789_v19, %v3781_v35  ;;  %v3801_v21 = vrot.slane %v3783_v43, 4 }
 0x242   : > { %v3683_v0 = vrot.slane %v3682_v5, 1  ;;  %v3732_v26 = vadd.f32 %v3731_v40, %v3718_v11  ;;  %v3795_v61 = vrot.slane %v3782_v6, 4  ;;  %v3807_v47 = vrot.slane %v3784_v8, 4 }
 0x243   : > { %v3608_v33 = vadd.f32 %v3607_v38, %v3606_v37  ;;  %v3744_v15 = vadd.f32 %v3743_v4, %v3720_v14  ;;  %v3791_v34 = vrot.slane %v3790_v9, 2  ;;  %v3802_v3 = vadd.f32 %v3801_v21, %v3783_v43  ;;  %v3479_v4 = vpop.f32.mrf.mxu0 }
 0x244   : > { %v3728_v57 = vadd.f32 %v3727_v17, %v3726_v28  ;;  %v3739_v54 = vrot.slane %v3738_v22, 2  ;;  %v3796_v1 = vadd.f32 %v3795_v61, %v3782_v6  ;;  %v3808_v39 = vadd.f32 %v3807_v47, %v3784_v8  ;;  %v14785_v61 = vld [vmem:[#allocation19_spill] sm:$0xff] }
 0x245   : > { %v3620_v20 = vadd.f32 %v3619_v44, %v3618_v25  ;;  %v3733_v30 = vrot.slane %v3732_v26, 2  ;;  %v3745_v50 = vrot.slane %v3744_v15, 2  ;;  %v3792_v55 = vadd.f32 %v3791_v34, %v3790_v9  ;;  %v3568_v44 = vpop.f32.mrf.mxu1  ;;  %v14783_v9 = vld [vmem:[#allocation25_spill] sm:$0xff] }
 0x246   : > { %v13488_v35 = vadd.f32 %v3614_v13, %v13221_v27  ;;  %v3678_v11 = vadd.f32 %v3677_v29, %v3676_v31  ;;  %v3803_v19 = vrot.slane %v3802_v3, 2  ;;  %v3797_v40 = vrot.slane %v3796_v1, 2  ;;  %v14779_v13 = vld [vmem:[#allocation43_spill] sm:$0xff] }
 0x247   : > { %v3672_v37 = vadd.f32 %v3671_v23, %v3670_v16  ;;  %v3684_v38 = vadd.f32 %v3683_v0, %v3682_v5  ;;  %v3793_v14 = vrot.slane %v3792_v55, 1  ;;  %v3809_v43 = vrot.slane %v3808_v39, 2 }
 0x248   : > { %14776 = vst [vmem:[#allocation31_spill] sm:$0xff] %v13488_v35  ;;  %v13491_v28 = vadd.f32 %v3608_v33, %v13230_v36  ;;  %v3729_v17 = vrot.slane %v3728_v57, 1  ;;  %v13493_v6 = vadd.f32 %v3739_v54, %v3738_v22  ;;  %v3179_v25 = vrot.slane %v13053_v62, %v14742_v42  ;;  %v14781_v22 = vld [vmem:[#allocation44_spill] sm:$0xff] }
 0x249   : > { %v13498_v27 = vadd.f32 %v3620_v20, %v13254_v18  ;;  %v13500_v31 = vadd.f32 %v3733_v30, %v3732_v26  ;;  %v13502_v16 = vadd.f32 %v3745_v50, %v3744_v15  ;;  %v3794_v5 = vadd.f32 %v3793_v14, %v3792_v55  ;;  %v3483_v26 = vpop.f32.mrf.mxu0  ;;  %v14787_v20 = vld [vmem:[#allocation18_spill] sm:$0xff]  ;;  %v14788_v30 = vld [vmem:[#allocation15_spill] sm:$0xff] }
 0x24a   : > { %14777 = vst [vmem:[#allocation27_spill] sm:$0xff] %v13491_v28  ;;  %v13505_v29 = vadd.f32 %v3678_v11, %v14779_v13  ;;  %v13507_v36 = vadd.f32 %v3803_v19, %v3802_v3  ;;  %v13509_v8 = vadd.f32 %v3797_v40, %v3796_v1  ;;  %vm3196_vm11 = vcmp.eq.s32.totalorder %v9454_v2, %v3179_v25  ;;  %v3572_v3 = vpop.f32.mrf.mxu1  ;;  %v14789_v19 = vld [vmem:[#allocation16_spill] sm:$0xff] }
 0x24b   : > { %14778 = vst [vmem:[#allocation29_spill] sm:$0xff] %v13498_v27  ;;  %v13513_v23 = vadd.f32 %v3672_v37, %v14781_v22  ;;  %v13516_v18 = vadd.f32 %v3794_v5, %v14783_v9  ;;  %v13518_v21 = vadd.f32 %v3809_v43, %v3808_v39  ;;  %v13521_v0 = vsel %vm3196_vm11, 1.0, %v14610_v48 }
 0x24c   : > { %14780 = vst [vmem:[#allocation49_spill] sm:$0xff] %v13505_v29  ;;  %v13524_v47 = vadd.f32 %v3684_v38, %v14785_v61  ;;  %v3730_v33 = vadd.f32 %v3729_v17, %v3728_v57  ;;  %v3741_v15 = vrot.slane %v13493_v6, 1  ;;  %v3593_v34 = vmul.f32 %v13521_v0, %v3477_v7  ;;  %v3485_v38 = vpop.f32.mrf.mxu0  ;;  %v3574_v25 = vpop.f32.mrf.mxu1 }
 0x24d   : > { %14782 = vst [vmem:[#allocation50_spill] sm:$0xff] %v13513_v23  ;;  %14784 = vst [vmem:[#allocation33_spill] sm:$0xff] %v13516_v18  ;;  %v3735_v54 = vrot.slane %v13500_v31, 1  ;;  %v3747_v1 = vrot.slane %v13502_v16, 1  ;;  %v3187_v39 = vrot.slane %v13053_v62, %v14787_v20  ;;  %v3183_v50 = vrot.slane %v13053_v62, %v14788_v30 }
 0x24e   : > { %14786 = vst [vmem:[#allocation21_spill] sm:$0xff] %v13524_v47  ;;  %v3805_v55 = vrot.slane %v13507_v36, 1  ;;  %v3799_v11 = vrot.slane %v13509_v8, 1  ;;  %v3621_v57 = vrot.slane %v3593_v34, 4  ;;  %v3191_v40 = vrot.slane %v13053_v62, %v14789_v19  ;;  %v3489_v18 = vpop.f32.mrf.mxu0  ;;  %v3578_v20 = vpop.f32.mrf.mxu1 }
 0x24f   : > { %v3811_v7 = vrot.slane %v13518_v21, 1  ;;  %vm3198_vm6 = vcmp.eq.s32.totalorder %v9454_v2, %v3187_v39  ;;  %vm3197_vm4 = vcmp.eq.s32.totalorder %v9454_v2, %v3183_v50  ;;  %v3657_v37 = vmul.f32 %v13521_v0, %v3483_v26 }
 0x250   : > { %v3622_v14 = vadd.f32 %v3621_v57, %v3593_v34  ;;  %v13543_v43 = vsel %vm3198_vm6, 1.0, %v14610_v48  ;;  %v13546_v17 = vsel %vm3197_vm4, 1.0, %v14610_v48  ;;  %vm3199_vm14 = vcmp.eq.s32.totalorder %v9454_v2, %v3191_v40  ;;  %v3580_v12 = vpop.f32.mrf.mxu1 }
 0x251   : > { %v3595_v62 = vmul.f32 %v13543_v43, %v3566_v46  ;;  %v3594_v5 = vmul.f32 %v13546_v17, %v3479_v4  ;;  %v13552_v13 = vsel %vm3199_vm14, 1.0, %v14610_v48  ;;  %v3685_v22 = vrot.slane %v3657_v37, 4 }
 0x252   : > { %v3623_v9 = vrot.slane %v3622_v14, 2  ;;  %v3596_v26 = vmul.f32 %v13552_v13, %v3568_v44  ;;  %v3659_v61 = vmul.f32 %v13543_v43, %v3572_v3  ;;  %v3658_v34 = vmul.f32 %v13546_v17, %v3485_v38 }
 0x253   : > { %v3633_v39 = vrot.slane %v3595_v62, 4  ;;  %v3627_v50 = vrot.slane %v3594_v5, 4  ;;  %v3686_v57 = vadd.f32 %v3685_v22, %v3657_v37  ;;  %v3660_v40 = vmul.f32 %v13552_v13, %v3574_v25  ;;  %v3491_v25 = vpop.f32.mrf.mxu0 }
 0x254   : > { %v3624_v46 = vadd.f32 %v3623_v9, %v3622_v14  ;;  %v3639_v19 = vrot.slane %v3596_v26, 4  ;;  %v3697_v4 = vrot.slane %v3659_v61, 4  ;;  %v3691_v30 = vrot.slane %v3658_v34, 4 }
 0x255   : > { %v3634_v47 = vadd.f32 %v3633_v39, %v3595_v62  ;;  %v3628_v23 = vadd.f32 %v3627_v50, %v3594_v5  ;;  %v3687_v29 = vrot.slane %v3686_v57, 2  ;;  %v3703_v27 = vrot.slane %v3660_v40, 4 }
 0x256   : > { %v3625_v44 = vrot.slane %v3624_v46, 1  ;;  %v3640_v28 = vadd.f32 %v3639_v19, %v3596_v26  ;;  %v3698_v3 = vadd.f32 %v3697_v4, %v3659_v61  ;;  %v3692_v35 = vadd.f32 %v3691_v30, %v3658_v34  ;;  %v14790_v30 = vld [vmem:[#allocation45_spill] sm:$0xff]  ;;  %v14791_v34 = vld [vmem:[#allocation46_spill] sm:$0xff] }
 0x257   : > { %v3742_v38 = vadd.f32 %v3741_v15, %v13493_v6  ;;  %v3635_v42 = vrot.slane %v3634_v47, 2  ;;  %v3629_v37 = vrot.slane %v3628_v23, 2  ;;  %v3688_v22 = vadd.f32 %v3687_v29, %v3686_v57  ;;  %v14792_v57 = vld [vmem:[#allocation47_spill] sm:$0xff] }
 0x258   : > { %v3641_v49 = vrot.slane %v3640_v28, 2  ;;  %v3699_v14 = vrot.slane %v3698_v3, 2  ;;  %v3704_v9 = vadd.f32 %v3703_v27, %v3660_v40  ;;  %v3721_v52 = vmul.f32 %v13521_v0, %v3489_v18  ;;  %v14793_v40 = vld [vmem:[#allocation37_spill] sm:$0xff] }
 0x259   : > { %v3736_v62 = vadd.f32 %v3735_v54, %v13500_v31  ;;  %v3748_v5 = vadd.f32 %v3747_v1, %v13502_v16  ;;  %v3806_v19 = vadd.f32 %v3805_v55, %v13507_v36  ;;  %v3693_v26 = vrot.slane %v3692_v35, 2  ;;  %v3495_v31 = vpop.f32.mrf.mxu0  ;;  %v3584_v55 = vpop.f32.mrf.mxu1 }
 0x25a   : > { %v13564_v61 = vadd.f32 %v3730_v33, %v14790_v30  ;;  %v3800_v6 = vadd.f32 %v3799_v11, %v13509_v8  ;;  %v3812_v29 = vadd.f32 %v3811_v7, %v13518_v21  ;;  %v3626_v15 = vadd.f32 %v3625_v44, %v3624_v46  ;;  %v14794_v21 = vld [vmem:[#allocation20_spill] sm:$0xff] }
 0x25b   : > { %v13569_v27 = vadd.f32 %v3742_v38, %v14791_v34  ;;  %v3636_v18 = vadd.f32 %v3635_v42, %v3634_v47  ;;  %v3630_v39 = vadd.f32 %v3629_v37, %v3628_v23  ;;  %v3689_v50 = vrot.slane %v3688_v22, 1  ;;  %v14795_v46 = vld [vmem:[#allocation48_spill] sm:$0xff]  ;;  %v14796_v23 = vld [vmem:[#allocation34_spill] sm:$0xff]  ;;  %v3497_v37 = vpop.f32.mrf.mxu0 }
 0x25c   : > { %v3642_v54 = vadd.f32 %v3641_v49, %v3640_v28  ;;  %v3700_v16 = vadd.f32 %v3699_v14, %v3698_v3  ;;  %v3705_v1 = vrot.slane %v3704_v9, 2  ;;  %v3749_v36 = vrot.slane %v3721_v52, 4 }
 0x25d   : > { %v13572_v33 = vadd.f32 %v3736_v62, %v14792_v57  ;;  %v13575_v8 = vadd.f32 %v3748_v5, %v14793_v40  ;;  %v13578_v11 = vadd.f32 %v3806_v19, %v14794_v21  ;;  %v3694_v7 = vadd.f32 %v3693_v26, %v3692_v35  ;;  %v3586_v19 = vpop.f32.mrf.mxu1 }
 0x25e   : > { %v13581_v42 = vadd.f32 %v3800_v6, %v14795_v46  ;;  %v13584_v47 = vadd.f32 %v3812_v29, %v14796_v23  ;;  %v13587_v49 = vadd.f32 %v3626_v15, %v13349_v45  ;;  %v3750_v28 = vadd.f32 %v3749_v36, %v3721_v52 }
 0x25f   : > { %v3637_v4 = vrot.slane %v3636_v18, 1  ;;  %v3631_v44 = vrot.slane %v3630_v39, 1  ;;  %v3690_v3 = vadd.f32 %v3689_v50, %v3688_v22  ;;  %v3723_v38 = vmul.f32 %v13543_v43, %v3578_v20 }
 0x260   : > { %14797 = vst [vmem:[#allocation38_spill] sm:$0xff] %v13587_v49  ;;  %v3643_v14 = vrot.slane %v3642_v54, 1  ;;  %v3701_v62 = vrot.slane %v3700_v16, 1  ;;  %v3706_v5 = vadd.f32 %v3705_v1, %v3704_v9  ;;  %v3751_v35 = vrot.slane %v3750_v28, 2 }
 0x261   : > { %v3695_v26 = vrot.slane %v3694_v7, 1  ;;  %v3761_v30 = vrot.slane %v3723_v38, 4  ;;  %v3722_v6 = vmul.f32 %v13546_v17, %v3491_v25  ;;  %v3724_v29 = vmul.f32 %v13552_v13, %v3580_v12 }
 0x262   : > { %v3752_v45 = vadd.f32 %v3751_v35, %v3750_v28  ;;  %v3785_v52 = vmul.f32 %v13521_v0, %v3495_v31  ;;  %v3787_v15 = vmul.f32 %v13543_v43, %v3584_v55  ;;  %v3786_v22 = vmul.f32 %v13546_v17, %v3497_v37  ;;  %v4214_v43 = vpop.f32.mrf.mxu0  ;;  %v4303_v35 = vpop.f32.mrf.mxu1 }
 0x263   : > { %v3762_v20 = vadd.f32 %v3761_v30, %v3723_v38  ;;  %v3755_v34 = vrot.slane %v3722_v6, 4  ;;  %v3767_v50 = vrot.slane %v3724_v29, 4  ;;  %v3788_v9 = vmul.f32 %v13552_v13, %v3586_v19 }
 0x264   : > { %v3638_v1 = vadd.f32 %v3637_v4, %v3636_v18  ;;  %v3813_v36 = vrot.slane %v3785_v52, 4  ;;  %v3825_v57 = vrot.slane %v3787_v15, 4  ;;  %v3819_v40 = vrot.slane %v3786_v22, 4 }
 0x265   : > { %v3763_v21 = vrot.slane %v3762_v20, 2  ;;  %v3756_v25 = vadd.f32 %v3755_v34, %v3722_v6  ;;  %v3768_v46 = vadd.f32 %v3767_v50, %v3724_v29  ;;  %v3831_v12 = vrot.slane %v3788_v9, 4 }
 0x266   : > { %v3707_v23 = vrot.slane %v3706_v5, 1  ;;  %v3814_v28 = vadd.f32 %v3813_v36, %v3785_v52  ;;  %v3826_v0 = vadd.f32 %v3825_v57, %v3787_v15  ;;  %v3820_v31 = vadd.f32 %v3819_v40, %v3786_v22  ;;  %v14803_v40 = vld [vmem:[#allocation26_spill] sm:$0xff] }
 0x267   : > { %v3753_v55 = vrot.slane %v3752_v45, 1  ;;  %v3764_v17 = vadd.f32 %v3763_v21, %v3762_v20  ;;  %v3757_v38 = vrot.slane %v3756_v25, 2  ;;  %v3769_v37 = vrot.slane %v3768_v46, 2  ;;  %v4216_v20 = vpop.f32.mrf.mxu0  ;;  %v14805_v21 = vld [vmem:[#allocation28_spill] sm:$0xff] }
 0x268   : > { %v3632_v30 = vadd.f32 %v3631_v44, %v3630_v39  ;;  %v3815_v13 = vrot.slane %v3814_v28, 2  ;;  %v3827_v18 = vrot.slane %v3826_v0, 2  ;;  %v3832_v4 = vadd.f32 %v3831_v12, %v3788_v9  ;;  %v4305_v9 = vpop.f32.mrf.mxu1 }
 0x269   : > { %v3644_v19 = vadd.f32 %v3643_v14, %v3642_v54  ;;  %v13597_v49 = vadd.f32 %v3690_v3, %v13353_v63  ;;  %v3702_v6 = vadd.f32 %v3701_v62, %v3700_v16  ;;  %v3821_v29 = vrot.slane %v3820_v31, 2  ;;  %v14801_v62 = vld [vmem:[#allocation35_spill] sm:$0xff]  ;;  %v4220_v57 = vpop.f32.mrf.mxu0 }
 0x26a   : > { %v3696_v34 = vadd.f32 %v3695_v26, %v3694_v7  ;;  %v3758_v52 = vadd.f32 %v3757_v38, %v3756_v25  ;;  %v3770_v15 = vadd.f32 %v3769_v37, %v3768_v46  ;;  %v4078_v22 = vrot.slane %v13456_v56, %v14717_v59  ;;  %v4309_v46 = vpop.f32.mrf.mxu1  ;;  %v14808_v37 = vld [vmem:[#allocation11_spill] sm:$0xff] }
 0x26b   : > { %v13602_v50 = vadd.f32 %v3638_v1, %v13451_v58  ;;  %v3708_v39 = vadd.f32 %v3707_v23, %v3706_v5  ;;  %v3754_v44 = vadd.f32 %v3753_v55, %v3752_v45  ;;  %v3765_v36 = vrot.slane %v3764_v17, 1 }
 0x26c   : > { %v13604_v54 = vadd.f32 %v3815_v13, %v3814_v28  ;;  %v13606_v63 = vadd.f32 %v3827_v18, %v3826_v0  ;;  %v3833_v16 = vrot.slane %v3832_v4, 2  ;;  %vm4107_vm7 = vcmp.eq.s32.totalorder %v9454_v2, %v4078_v22  ;;  %v14807_v0 = vld [vmem:[#allocation14_spill] sm:$0xff]  ;;  %v14809_v13 = vld [vmem:[#allocation12_spill] sm:$0xff] }
 0x26d   : > { %v13610_v7 = vadd.f32 %v3632_v30, %v13356_v51  ;;  %v13613_v3 = vadd.f32 %v3644_v19, %v13359_v41  ;;  %v13616_v58 = vadd.f32 %v3702_v6, %v13362_v32  ;;  %v13618_v14 = vadd.f32 %v3821_v29, %v3820_v31  ;;  %v4222_v6 = vpop.f32.mrf.mxu0 }
 0x26e   : > { %v13621_v5 = vadd.f32 %v3696_v34, %v14801_v62  ;;  %v3759_v26 = vrot.slane %v3758_v52, 1  ;;  %v3771_v45 = vrot.slane %v3770_v15, 1  ;;  %v13624_v1 = vsel %vm4107_vm7, 1.0, %v14610_v48  ;;  %v4311_v34 = vpop.f32.mrf.mxu1 }
 0x26f   : > { %14798 = vst [vmem:[#allocation39_spill] sm:$0xff] %v13610_v7  ;;  %14799 = vst [vmem:[#allocation42_spill] sm:$0xff] %v13613_v3  ;;  %v13627_v51 = vadd.f32 %v3708_v39, %v14803_v40  ;;  %v13630_v41 = vadd.f32 %v3754_v44, %v14805_v21  ;;  %v3766_v25 = vadd.f32 %v3765_v36, %v3764_v17  ;;  %v3817_v12 = vrot.slane %v13604_v54, 1  ;;  %v4226_v40 = vpop.f32.mrf.mxu0 }
 0x270   : > { %14800 = vst [vmem:[#allocation43_spill] sm:$0xff] %v13616_v58  ;;  %14802 = vst [vmem:[#allocation44_spill] sm:$0xff] %v13621_v5  ;;  %v4504_v32 = vmul.f32 %v13624_v1, %v4214_v43  ;;  %v3829_v23 = vrot.slane %v13606_v63, 1  ;;  %v3834_v28 = vadd.f32 %v3833_v16, %v3832_v4  ;;  %v4086_v31 = vrot.slane %v13456_v56, %v14807_v0 }
 0x271   : > { %14804 = vst [vmem:[#allocation25_spill] sm:$0xff] %v13627_v51  ;;  %14806 = vst [vmem:[#allocation19_spill] sm:$0xff] %v13630_v41  ;;  %v3823_v55 = vrot.slane %v13618_v14, 1  ;;  %v4082_v30 = vrot.slane %v13456_v56, %v14808_v37  ;;  %v4090_v17 = vrot.slane %v13456_v56, %v14809_v13  ;;  %v3760_v18 = vadd.f32 %v3759_v26, %v3758_v52  ;;  %v4228_v5 = vpop.f32.mrf.mxu0 }
 0x272   : > { %v4512_v38 = vrot.slane %v4504_v32, 4  ;;  %v3772_v43 = vadd.f32 %v3771_v45, %v3770_v15  ;;  %vm4109_vm2 = vcmp.eq.s32.totalorder %v9454_v2, %v4086_v31  ;;  %v4568_v19 = vmul.f32 %v13624_v1, %v4220_v57 }
 0x273   : > { %v13645_v29 = vsel %vm4109_vm2, 1.0, %v14610_v48  ;;  %vm4108_vm1 = vcmp.eq.s32.totalorder %v9454_v2, %v4082_v30  ;;  %vm4110_vm15 = vcmp.eq.s32.totalorder %v9454_v2, %v4090_v17  ;;  %v4315_v30 = vpop.f32.mrf.mxu1  ;;  %v3835_v0 = vrot.slane %v3834_v28, 1 }
 0x274   : > { %v4513_v4 = vadd.f32 %v4512_v38, %v4504_v32  ;;  %v4506_v22 = vmul.f32 %v13645_v29, %v4303_v35  ;;  %v13651_v39 = vsel %vm4108_vm1, 1.0, %v14610_v48  ;;  %v13654_v52 = vsel %vm4110_vm15, 1.0, %v14610_v48 }
 0x275   : > { %v4576_v15 = vrot.slane %v4568_v19, 4  ;;  %v4505_v36 = vmul.f32 %v13651_v39, %v4216_v20  ;;  %v4507_v16 = vmul.f32 %v13654_v52, %v4305_v9  ;;  %v4570_v62 = vmul.f32 %v13645_v29, %v4309_v46  ;;  %v4317_v3 = vpop.f32.mrf.mxu1 }
 0x276   : > { %v4514_v44 = vrot.slane %v4513_v4, 2  ;;  %v4524_v26 = vrot.slane %v4506_v22, 4  ;;  %v4569_v57 = vmul.f32 %v13651_v39, %v4222_v6  ;;  %v4571_v35 = vmul.f32 %v13654_v52, %v4311_v34 }
 0x277   : > { %v4577_v45 = vadd.f32 %v4576_v15, %v4568_v19  ;;  %v4518_v32 = vrot.slane %v4505_v36, 4  ;;  %v4530_v31 = vrot.slane %v4507_v16, 4  ;;  %v4588_v38 = vrot.slane %v4570_v62, 4 }
 0x278   : > { %v4515_v21 = vadd.f32 %v4514_v44, %v4513_v4  ;;  %v4525_v17 = vadd.f32 %v4524_v26, %v4506_v22  ;;  %v4582_v37 = vrot.slane %v4569_v57, 4  ;;  %v4594_v20 = vrot.slane %v4571_v35, 4 }
 0x279   : > { %v4578_v13 = vrot.slane %v4577_v45, 2  ;;  %v4519_v9 = vadd.f32 %v4518_v32, %v4505_v36  ;;  %v4531_v41 = vadd.f32 %v4530_v31, %v4507_v16  ;;  %v4589_v46 = vadd.f32 %v4588_v38, %v4570_v62  ;;  %v4321_v32 = vpop.f32.mrf.mxu1 }
 0x27a   : > { %v4516_v51 = vrot.slane %v4515_v21, 1  ;;  %v4526_v19 = vrot.slane %v4525_v17, 2  ;;  %v4583_v6 = vadd.f32 %v4582_v37, %v4569_v57  ;;  %v4595_v4 = vadd.f32 %v4594_v20, %v4571_v35 }
 0x27b   : > { %v4579_v15 = vadd.f32 %v4578_v13, %v4577_v45  ;;  %v4520_v34 = vrot.slane %v4519_v9, 2  ;;  %v4532_v58 = vrot.slane %v4531_v41, 2  ;;  %v4632_v44 = vmul.f32 %v13624_v1, %v4226_v40 }
 0x27c   : > { %v3818_v22 = vadd.f32 %v3817_v12, %v13604_v54  ;;  %v3830_v26 = vadd.f32 %v3829_v23, %v13606_v63  ;;  %v4527_v7 = vadd.f32 %v4526_v19, %v4525_v17  ;;  %v4590_v59 = vrot.slane %v4589_v46, 2  ;;  %v4232_v54 = vpop.f32.mrf.mxu0 }
 0x27d   : > { %v13665_v36 = vadd.f32 %v3766_v25, %v13459_v53  ;;  %v13668_v16 = vadd.f32 %v3760_v18, %v13463_v10  ;;  %v3824_v37 = vadd.f32 %v3823_v55, %v13618_v14  ;;  %v3836_v13 = vadd.f32 %v3835_v0, %v3834_v28  ;;  %v14810_v10 = vld [vmem:[#allocation40_spill] sm:$0xff] }
 0x27e   : > { %v13672_v62 = vadd.f32 %v3772_v43, %v13466_v60  ;;  %v4517_v45 = vadd.f32 %v4516_v51, %v4515_v21  ;;  %v4580_v57 = vrot.slane %v4579_v15, 1  ;;  %v4584_v35 = vrot.slane %v4583_v6, 2  ;;  %v14812_v0 = vld [vmem:[#allocation32_spill] sm:$0xff] }
 0x27f   : > { %v4521_v12 = vadd.f32 %v4520_v34, %v4519_v9  ;;  %v4533_v63 = vadd.f32 %v4532_v58, %v4531_v41  ;;  %v4596_v23 = vrot.slane %v4595_v4, 2  ;;  %v4640_v40 = vrot.slane %v4632_v44, 4  ;;  %v14814_v51 = vld [vmem:[#allocation36_spill] sm:$0xff]  ;;  %v14816_v41 = vld [vmem:[#allocation41_spill] sm:$0xff]  ;;  %v4234_v9 = vpop.f32.mrf.mxu0 }
 0x280   : > { %v13675_v53 = vadd.f32 %v3818_v22, %v13469_v24  ;;  %v13678_v25 = vadd.f32 %v3830_v26, %v14810_v10  ;;  %v4528_v14 = vrot.slane %v4527_v7, 1  ;;  %v4591_v28 = vadd.f32 %v4590_v59, %v4589_v46  ;;  %v4323_v46 = vpop.f32.mrf.mxu1 }
 0x281   : > { %v13681_v60 = vadd.f32 %v3824_v37, %v14812_v0  ;;  %v13684_v55 = vadd.f32 %v3836_v13, %v14814_v51  ;;  %v4641_v18 = vadd.f32 %v4640_v40, %v4632_v44  ;;  %v4696_v58 = vmul.f32 %v13624_v1, %v4232_v54  ;;  %v4392_v51 = vpop.f32.mrf.mxu0 }
 0x282   : > { %14811 = vst [vmem:[#allocation45_spill] sm:$0xff] %v13678_v25  ;;  %v13688_v43 = vadd.f32 %v4517_v45, %v14816_v41  ;;  %v4581_v21 = vadd.f32 %v4580_v57, %v4579_v15  ;;  %v4585_v24 = vadd.f32 %v4584_v35, %v4583_v6  ;;  %v4634_v31 = vmul.f32 %v13645_v29, %v4315_v30 }
 0x283   : > { %14813 = vst [vmem:[#allocation46_spill] sm:$0xff] %v13681_v60  ;;  %14815 = vst [vmem:[#allocation47_spill] sm:$0xff] %v13684_v55  ;;  %v4522_v38 = vrot.slane %v4521_v12, 1  ;;  %v4534_v17 = vrot.slane %v4533_v63, 1  ;;  %v4597_v20 = vadd.f32 %v4596_v23, %v4595_v4  ;;  %v4642_v59 = vrot.slane %v4641_v18, 2 }
 0x284   : > { %14817 = vst [vmem:[#allocation37_spill] sm:$0xff] %v13688_v43  ;;  %v4529_v19 = vadd.f32 %v4528_v14, %v4527_v7  ;;  %v4592_v34 = vrot.slane %v4591_v28, 1  ;;  %v4652_v22 = vrot.slane %v4634_v31, 4  ;;  %v4633_v44 = vmul.f32 %v13651_v39, %v4228_v5 }
 0x285   : > { %v4643_v26 = vadd.f32 %v4642_v59, %v4641_v18  ;;  %v4635_v1 = vmul.f32 %v13654_v52, %v4317_v3  ;;  %v4704_v37 = vrot.slane %v4696_v58, 4  ;;  %v4698_v15 = vmul.f32 %v13645_v29, %v4321_v32 }
 0x286   : > { %v4653_v6 = vadd.f32 %v4652_v22, %v4634_v31  ;;  %v4646_v13 = vrot.slane %v4633_v44, 4  ;;  %v4697_v30 = vmul.f32 %v13651_v39, %v4234_v9  ;;  %v4699_v4 = vmul.f32 %v13654_v52, %v4323_v46  ;;  %v4481_v39 = vpop.f32.mrf.mxu1  ;;  %v14818_v52 = vld [vmem:[#allocation30_spill] sm:$0xff] }
 0x287   : > { %v4586_v45 = vrot.slane %v4585_v24, 1  ;;  %v4658_v57 = vrot.slane %v4635_v1, 4  ;;  %v4705_v35 = vadd.f32 %v4704_v37, %v4696_v58  ;;  %v4716_v7 = vrot.slane %v4698_v15, 4 }
 0x288   : > { %v4654_v54 = vrot.slane %v4653_v6, 2  ;;  %v4647_v23 = vadd.f32 %v4646_v13, %v4633_v44  ;;  %v4710_v40 = vrot.slane %v4697_v30, 4  ;;  %v4722_v5 = vrot.slane %v4699_v4, 4 }
 0x289   : > { %v4598_v10 = vrot.slane %v4597_v20, 1  ;;  %v4644_v14 = vrot.slane %v4643_v26, 1  ;;  %v4659_v3 = vadd.f32 %v4658_v57, %v4635_v1  ;;  %v4717_v0 = vadd.f32 %v4716_v7, %v4698_v15  ;;  %v14820_v15 = vld [vmem:[#allocation17_spill] sm:$0xff]  ;;  %v4394_v57 = vpop.f32.mrf.mxu0  ;;  %v4483_v7 = vpop.f32.mrf.mxu1 }
 0x28a   : > { %v4655_v29 = vadd.f32 %v4654_v54, %v4653_v6  ;;  %v4706_v32 = vrot.slane %v4705_v35, 2  ;;  %v4711_v18 = vadd.f32 %v4710_v40, %v4697_v30  ;;  %v4723_v41 = vadd.f32 %v4722_v5, %v4699_v4  ;;  %v14821_v30 = vld [vmem:[#allocation31_spill] sm:$0xff]  ;;  %v14831_v5 = vld [vmem:[#allocation21_spill] sm:$0xff] }
 0x28b   : > { %v4523_v31 = vadd.f32 %v4522_v38, %v4521_v12  ;;  %v13697_v59 = vadd.f32 %v4581_v21, %v14818_v52  ;;  %v4648_v58 = vrot.slane %v4647_v23, 2  ;;  %v4660_v9 = vrot.slane %v4659_v3, 2  ;;  %v14823_v54 = vld [vmem:[#allocation27_spill] sm:$0xff]  ;;  %v4487_v52 = vpop.f32.mrf.mxu1 }
 0x28c   : > { %v4535_v46 = vadd.f32 %v4534_v17, %v4533_v63  ;;  %v4593_v22 = vadd.f32 %v4592_v34, %v4591_v28  ;;  %v4718_v44 = vrot.slane %v4717_v0, 2  ;;  %v4712_v37 = vrot.slane %v4711_v18, 2  ;;  %v14825_v17 = vld [vmem:[#allocation29_spill] sm:$0xff] }
 0x28d   : > { %14819 = vst [vmem:[#allocation20_spill] sm:$0xff] %v13697_v59  ;;  %v4587_v13 = vadd.f32 %v4586_v45, %v4585_v24  ;;  %v4599_v43 = vadd.f32 %v4598_v10, %v4597_v20  ;;  %v4724_v1 = vrot.slane %v4723_v41, 2  ;;  %v4094_v6 = vrot.slane %v13456_v56, %v14820_v15  ;;  %v14827_v34 = vld [vmem:[#allocation49_spill] sm:$0xff] }
 0x28e   : > { %v13702_v4 = vadd.f32 %v4529_v19, %v14821_v30  ;;  %v4645_v12 = vadd.f32 %v4644_v14, %v4643_v26  ;;  %v4656_v38 = vrot.slane %v4655_v29, 1  ;;  %v13704_v21 = vadd.f32 %v4706_v32, %v4705_v35  ;;  %v14829_v35 = vld [vmem:[#allocation50_spill] sm:$0xff] }
 0x28f   : > { %v13707_v63 = vadd.f32 %v4523_v31, %v14823_v54  ;;  %v13709_v28 = vadd.f32 %v4648_v58, %v4647_v23  ;;  %v13711_v24 = vadd.f32 %v4660_v9, %v4659_v3  ;;  %vm4111_vm3 = vcmp.eq.s32.totalorder %v9454_v2, %v4094_v6  ;;  %v4398_v3 = vpop.f32.mrf.mxu0  ;;  %v14834_v9 = vld [vmem:[#allocation18_spill] sm:$0xff]  ;;  %v4489_v54 = vpop.f32.mrf.mxu1 }
 0x290   : > { %14822 = vst [vmem:[#allocation48_spill] sm:$0xff] %v13702_v4  ;;  %v13715_v20 = vadd.f32 %v4535_v46, %v14825_v17  ;;  %v13718_v19 = vadd.f32 %v4593_v22, %v14827_v34  ;;  %v13720_v26 = vadd.f32 %v4718_v44, %v4717_v0  ;;  %v13722_v45 = vadd.f32 %v4712_v37, %v4711_v18  ;;  %v14835_v46 = vld [vmem:[#allocation15_spill] sm:$0xff]  ;;  %v14836_v37 = vld [vmem:[#allocation16_spill] sm:$0xff] }
 0x291   : > { %14824 = vst [vmem:[#allocation34_spill] sm:$0xff] %v13707_v63  ;;  %v13725_v40 = vadd.f32 %v4587_v13, %v14829_v35  ;;  %v13728_v23 = vadd.f32 %v4599_v43, %v14831_v5  ;;  %v13730_v10 = vadd.f32 %v4724_v1, %v4723_v41  ;;  %v13733_v14 = vsel %vm4111_vm3, 1.0, %v14610_v48  ;;  %v4400_v6 = vpop.f32.mrf.mxu0 }
 0x292   : > { %14826 = vst [vmem:[#allocation35_spill] sm:$0xff] %v13715_v20  ;;  %14828 = vst [vmem:[#allocation26_spill] sm:$0xff] %v13718_v19  ;;  %v13736_v32 = vadd.f32 %v4645_v12, %v13564_v61  ;;  %v4657_v31 = vadd.f32 %v4656_v38, %v4655_v29  ;;  %v4708_v0 = vrot.slane %v13704_v21, 1  ;;  %v4508_v18 = vmul.f32 %v13733_v14, %v4392_v51 }
 0x293   : > { %14830 = vst [vmem:[#allocation28_spill] sm:$0xff] %v13725_v40  ;;  %14832 = vst [vmem:[#allocation40_spill] sm:$0xff] %v13728_v23  ;;  %v4650_v58 = vrot.slane %v13709_v28, 1  ;;  %v4662_v43 = vrot.slane %v13711_v24, 1  ;;  %v4102_v41 = vrot.slane %v13456_v56, %v14834_v9  ;;  %v4098_v22 = vrot.slane %v13456_v56, %v14835_v46  ;;  %v4404_v46 = vpop.f32.mrf.mxu0  ;;  %v4493_v23 = vpop.f32.mrf.mxu1 }
 0x294   : > { %14833 = vst [vmem:[#allocation32_spill] sm:$0xff] %v13736_v32  ;;  %v4720_v44 = vrot.slane %v13720_v26, 1  ;;  %v4714_v61 = vrot.slane %v13722_v45, 1  ;;  %v4536_v29 = vrot.slane %v4508_v18, 4  ;;  %v4106_v13 = vrot.slane %v13456_v56, %v14836_v37 }
 0x295   : > { %v4726_v51 = vrot.slane %v13730_v10, 1  ;;  %vm4113_vm0 = vcmp.eq.s32.totalorder %v9454_v2, %v4102_v41  ;;  %vm4112_vm8 = vcmp.eq.s32.totalorder %v9454_v2, %v4098_v22  ;;  %v4572_v1 = vmul.f32 %v13733_v14, %v4398_v3  ;;  %v4495_v25 = vpop.f32.mrf.mxu1 }
 0x296   : > { %v4537_v30 = vadd.f32 %v4536_v29, %v4508_v18  ;;  %v13755_v12 = vsel %vm4113_vm0, 1.0, %v14610_v48  ;;  %v13758_v38 = vsel %vm4112_vm8, 1.0, %v14610_v48  ;;  %vm4114_vm10 = vcmp.eq.s32.totalorder %v9454_v2, %v4106_v13 }
 0x297   : > { %v4510_v56 = vmul.f32 %v13755_v12, %v4481_v39  ;;  %v4509_v17 = vmul.f32 %v13758_v38, %v4394_v57  ;;  %v13764_v34 = vsel %vm4114_vm10, 1.0, %v14610_v48  ;;  %v4600_v35 = vrot.slane %v4572_v1, 4 }
 0x298   : > { %v4538_v5 = vrot.slane %v4537_v30, 2  ;;  %v4511_v3 = vmul.f32 %v13764_v34, %v4483_v7  ;;  %v4574_v18 = vmul.f32 %v13755_v12, %v4487_v52  ;;  %v4573_v41 = vmul.f32 %v13758_v38, %v4400_v6 }
 0x299   : > { %v4548_v22 = vrot.slane %v4510_v56, 4  ;;  %v4542_v29 = vrot.slane %v4509_v17, 4  ;;  %v4601_v37 = vadd.f32 %v4600_v35, %v4572_v1  ;;  %v4575_v13 = vmul.f32 %v13764_v34, %v4489_v54  ;;  %v4406_v54 = vpop.f32.mrf.mxu0 }
 0x29a   : > { %v4539_v39 = vadd.f32 %v4538_v5, %v4537_v30  ;;  %v4554_v9 = vrot.slane %v4511_v3, 4  ;;  %v4612_v57 = vrot.slane %v4574_v18, 4  ;;  %v4606_v32 = vrot.slane %v4573_v41, 4 }
 0x29b   : > { %v4549_v40 = vadd.f32 %v4548_v22, %v4510_v56  ;;  %v4543_v19 = vadd.f32 %v4542_v29, %v4509_v17  ;;  %v4602_v20 = vrot.slane %v4601_v37, 2  ;;  %v4618_v63 = vrot.slane %v4575_v13, 4 }
 0x29c   : > { %v4540_v7 = vrot.slane %v4539_v39, 1  ;;  %v4555_v4 = vadd.f32 %v4554_v9, %v4511_v3  ;;  %v4613_v52 = vadd.f32 %v4612_v57, %v4574_v18  ;;  %v4607_v59 = vadd.f32 %v4606_v32, %v4573_v41 }
 0x29d   : > { %v4709_v6 = vadd.f32 %v4708_v0, %v13704_v21  ;;  %v4550_v15 = vrot.slane %v4549_v40, 2  ;;  %v4544_v1 = vrot.slane %v4543_v19, 2  ;;  %v4603_v35 = vadd.f32 %v4602_v20, %v4601_v37  ;;  %v14837_v37 = vld [vmem:[#allocation33_spill] sm:$0xff] }
 0x29e   : > { %v4556_v55 = vrot.slane %v4555_v4, 2  ;;  %v4614_v30 = vrot.slane %v4613_v52, 2  ;;  %v4619_v5 = vadd.f32 %v4618_v63, %v4575_v13  ;;  %v4636_v60 = vmul.f32 %v13733_v14, %v4404_v46 }
 0x29f   : > { %v4651_v56 = vadd.f32 %v4650_v58, %v13709_v28  ;;  %v4663_v17 = vadd.f32 %v4662_v43, %v13711_v24  ;;  %v4721_v9 = vadd.f32 %v4720_v44, %v13720_v26  ;;  %v4608_v3 = vrot.slane %v4607_v59, 2  ;;  %v4410_v28 = vpop.f32.mrf.mxu0  ;;  %v4499_v44 = vpop.f32.mrf.mxu1 }
 0x2a0   : > { %v13776_v32 = vadd.f32 %v4657_v31, %v13569_v27  ;;  %v4715_v21 = vadd.f32 %v4714_v61, %v13722_v45  ;;  %v4727_v20 = vadd.f32 %v4726_v51, %v13730_v10  ;;  %v4541_v0 = vadd.f32 %v4540_v7, %v4539_v39 }
 0x2a1   : > { %v13781_v63 = vadd.f32 %v4709_v6, %v14837_v37  ;;  %v4551_v46 = vadd.f32 %v4550_v15, %v4549_v40  ;;  %v4545_v18 = vadd.f32 %v4544_v1, %v4543_v19  ;;  %v4604_v41 = vrot.slane %v4603_v35, 1  ;;  %v4412_v22 = vpop.f32.mrf.mxu0  ;;  %v4501_v39 = vpop.f32.mrf.mxu1 }
 0x2a2   : > { %v4557_v58 = vadd.f32 %v4556_v55, %v4555_v4  ;;  %v4615_v24 = vadd.f32 %v4614_v30, %v4613_v52  ;;  %v4620_v43 = vrot.slane %v4619_v5, 2  ;;  %v4664_v26 = vrot.slane %v4636_v60, 4  ;;  %v14839_v55 = vld [vmem:[#allocation38_spill] sm:$0xff] }
 0x2a3   : > { %v13784_v27 = vadd.f32 %v4651_v56, %v13572_v33  ;;  %v13787_v45 = vadd.f32 %v4663_v17, %v13575_v8  ;;  %v13790_v10 = vadd.f32 %v4721_v9, %v13578_v11  ;;  %v4609_v31 = vadd.f32 %v4608_v3, %v4607_v59 }
 0x2a4   : > { %v13793_v15 = vadd.f32 %v4715_v21, %v13581_v42  ;;  %v13796_v19 = vadd.f32 %v4727_v20, %v13584_v47  ;;  %v13799_v4 = vadd.f32 %v4541_v0, %v14839_v55  ;;  %v4665_v40 = vadd.f32 %v4664_v26, %v4636_v60 }
 0x2a5   : > { %v4552_v61 = vrot.slane %v4551_v46, 1  ;;  %v4546_v33 = vrot.slane %v4545_v18, 1  ;;  %v4605_v51 = vadd.f32 %v4604_v41, %v4603_v35  ;;  %v4638_v8 = vmul.f32 %v13755_v12, %v4493_v23 }
 0x2a6   : > { %14838 = vst [vmem:[#allocation36_spill] sm:$0xff] %v13796_v19  ;;  %14840 = vst [vmem:[#allocation41_spill] sm:$0xff] %v13799_v4  ;;  %v4558_v29 = vrot.slane %v4557_v58, 1  ;;  %v4616_v11 = vrot.slane %v4615_v24, 1  ;;  %v4621_v13 = vadd.f32 %v4620_v43, %v4619_v5  ;;  %v4666_v59 = vrot.slane %v4665_v40, 2 }
 0x2a7   : > { %v4610_v42 = vrot.slane %v4609_v31, 1  ;;  %v4676_v57 = vrot.slane %v4638_v8, 4  ;;  %v4637_v47 = vmul.f32 %v13758_v38, %v4406_v54  ;;  %v4639_v7 = vmul.f32 %v13764_v34, %v4495_v25 }
 0x2a8   : > { %v4667_v52 = vadd.f32 %v4666_v59, %v4665_v40  ;;  %v4700_v60 = vmul.f32 %v13733_v14, %v4410_v28  ;;  %v4702_v6 = vmul.f32 %v13755_v12, %v4499_v44  ;;  %v4701_v1 = vmul.f32 %v13758_v38, %v4412_v22  ;;  %v5129_v12 = vpop.f32.mrf.mxu0  ;;  %v5218_v44 = vpop.f32.mrf.mxu1 }
 0x2a9   : > { %v4677_v23 = vadd.f32 %v4676_v57, %v4638_v8  ;;  %v4670_v35 = vrot.slane %v4637_v47, 4  ;;  %v4682_v30 = vrot.slane %v4639_v7, 4  ;;  %v4703_v5 = vmul.f32 %v13764_v34, %v4501_v39 }
 0x2aa   : > { %v4553_v56 = vadd.f32 %v4552_v61, %v4551_v46  ;;  %v4728_v17 = vrot.slane %v4700_v60, 4  ;;  %v4740_v9 = vrot.slane %v4702_v6, 4  ;;  %v4734_v3 = vrot.slane %v4701_v1, 4 }
 0x2ab   : > { %v4678_v21 = vrot.slane %v4677_v23, 2  ;;  %v4671_v54 = vadd.f32 %v4670_v35, %v4637_v47  ;;  %v4683_v20 = vadd.f32 %v4682_v30, %v4639_v7  ;;  %v4746_v25 = vrot.slane %v4703_v5, 4  ;;  %v14842_v7 = vld [vmem:[#allocation22_spill] sm:$0xff]  ;;  %v5220_v35 = vpop.f32.mrf.mxu1 }
 0x2ac   : > { %v4622_v0 = vrot.slane %v4621_v13, 1  ;;  %v4729_v37 = vadd.f32 %v4728_v17, %v4700_v60  ;;  %v4741_v14 = vadd.f32 %v4740_v9, %v4702_v6  ;;  %v4735_v41 = vadd.f32 %v4734_v3, %v4701_v1  ;;  %v5131_v6 = vpop.f32.mrf.mxu0 }
 0x2ad   : > { %v4668_v28 = vrot.slane %v4667_v52, 1  ;;  %v4672_v38 = vrot.slane %v4671_v54, 2  ;;  %v4684_v43 = vrot.slane %v4683_v20, 2  ;;  %v4747_v26 = vadd.f32 %v4746_v25, %v4703_v5 }
 0x2ae   : > { %v4547_v55 = vadd.f32 %v4546_v33, %v4545_v18  ;;  %v4679_v34 = vadd.f32 %v4678_v21, %v4677_v23  ;;  %v4730_v46 = vrot.slane %v4729_v37, 2  ;;  %v4742_v40 = vrot.slane %v4741_v14, 2  ;;  %v5135_v3 = vpop.f32.mrf.mxu0  ;;  %v14852_v21 = vld [vmem:[#allocation25_spill] sm:$0xff] }
 0x2af   : > { %v4559_v61 = vadd.f32 %v4558_v29, %v4557_v58  ;;  %v13809_v8 = vadd.f32 %v4605_v51, %v13597_v49  ;;  %v4617_v22 = vadd.f32 %v4616_v11, %v4615_v24  ;;  %v4736_v59 = vrot.slane %v4735_v41, 2  ;;  %v14844_v24 = vld [vmem:[#allocation13_spill] sm:$0xff]  ;;  %v14845_v51 = vld [vmem:[#allocation39_spill] sm:$0xff] }
 0x2b0   : > { %v4611_v39 = vadd.f32 %v4610_v42, %v4609_v31  ;;  %v4673_v57 = vadd.f32 %v4672_v38, %v4671_v54  ;;  %v4685_v47 = vadd.f32 %v4684_v43, %v4683_v20  ;;  %v13812_v60 = vshra.s32 %v14842_v7, 16  ;;  %v14847_v42 = vld [vmem:[#allocation42_spill] sm:$0xff]  ;;  %v14853_v20 = vld [vmem:[#allocation19_spill] sm:$0xff] }
 0x2b1   : > { %14841 = vst [vmem:[#allocation30_spill] sm:$0xff] %v13809_v8  ;;  %v13815_v1 = vadd.f32 %v4553_v56, %v13602_v50  ;;  %v4623_v18 = vadd.f32 %v4622_v0, %v4621_v13  ;;  %v4669_v33 = vadd.f32 %v4668_v28, %v4667_v52  ;;  %v4748_v23 = vrot.slane %v4747_v26, 2  ;;  %v14849_v50 = vld [vmem:[#allocation43_spill] sm:$0xff]  ;;  %v14851_v52 = vld [vmem:[#allocation44_spill] sm:$0xff] }
 0x2b2   : > { %v4680_v58 = vrot.slane %v4679_v34, 1  ;;  %v13817_v29 = vadd.f32 %v4730_v46, %v4729_v37  ;;  %v13819_v49 = vadd.f32 %v4742_v40, %v4741_v14  ;;  %v4993_v31 = vrot.slane %v13812_v60, %v14844_v24  ;;  %v5224_v14 = vpop.f32.mrf.mxu1  ;;  %v14855_v46 = vld [vmem:[#allocation14_spill] sm:$0xff] }
 0x2b3   : > { %14843 = vst [vmem:[#allocation31_spill] sm:$0xff] %v13815_v1  ;;  %v13824_v11 = vadd.f32 %v4547_v55, %v14845_v51  ;;  %v13827_v30 = vadd.f32 %v4559_v61, %v14847_v42  ;;  %v13830_v5 = vadd.f32 %v4617_v22, %v14849_v50  ;;  %v13832_v13 = vadd.f32 %v4736_v59, %v4735_v41  ;;  %v14856_v61 = vld [vmem:[#allocation11_spill] sm:$0xff]  ;;  %v14857_v22 = vld [vmem:[#allocation12_spill] sm:$0xff] }
 0x2b4   : > { %v13835_v56 = vadd.f32 %v4611_v39, %v14851_v52  ;;  %v4674_v17 = vrot.slane %v4673_v57, 1  ;;  %v4686_v9 = vrot.slane %v4685_v47, 1  ;;  %vm5022_vm9 = vcmp.eq.s32.totalorder %v9454_v2, %v4993_v31 }
 0x2b5   : > { %14846 = vst [vmem:[#allocation27_spill] sm:$0xff] %v13824_v11  ;;  %14848 = vst [vmem:[#allocation29_spill] sm:$0xff] %v13827_v30  ;;  %v13839_v54 = vadd.f32 %v4623_v18, %v14852_v21  ;;  %v13842_v25 = vadd.f32 %v4669_v33, %v14853_v20  ;;  %v13844_v0 = vadd.f32 %v4748_v23, %v4747_v26  ;;  %v13847_v37 = vsel %vm5022_vm9, 1.0, %v14610_v48  ;;  %v5137_v33 = vpop.f32.mrf.mxu0 }
 0x2b6   : > { %14850 = vst [vmem:[#allocation49_spill] sm:$0xff] %v13830_v5  ;;  %v4681_v41 = vadd.f32 %v4680_v58, %v4679_v34  ;;  %v4732_v28 = vrot.slane %v13817_v29, 1  ;;  %v4744_v38 = vrot.slane %v13819_v49, 1  ;;  %v5419_v43 = vmul.f32 %v13847_v37, %v5129_v12  ;;  %v5226_v12 = vpop.f32.mrf.mxu1 }
 0x2b7   : > { %14854 = vst [vmem:[#allocation50_spill] sm:$0xff] %v13842_v25  ;;  %v4738_v55 = vrot.slane %v13832_v13, 1  ;;  %v5001_v40 = vrot.slane %v13812_v60, %v14855_v46  ;;  %v4997_v26 = vrot.slane %v13812_v60, %v14856_v61  ;;  %v5005_v59 = vrot.slane %v13812_v60, %v14857_v22  ;;  %v5141_v20 = vpop.f32.mrf.mxu0 }
 0x2b8   : > { %v4675_v39 = vadd.f32 %v4674_v17, %v4673_v57  ;;  %v4687_v7 = vadd.f32 %v4686_v9, %v4685_v47  ;;  %v5427_v34 = vrot.slane %v5419_v43, 4  ;;  %v5483_v18 = vmul.f32 %v13847_v37, %v5135_v3 }
 0x2b9   : > { %v4750_v23 = vrot.slane %v13844_v0, 1  ;;  %vm5024_vm5 = vcmp.eq.s32.totalorder %v9454_v2, %v5001_v40  ;;  %vm5023_vm13 = vcmp.eq.s32.totalorder %v9454_v2, %v4997_v26  ;;  %vm5025_vm12 = vcmp.eq.s32.totalorder %v9454_v2, %v5005_v59  ;;  %v5143_v11 = vpop.f32.mrf.mxu0 }
 0x2ba   : > { %v5428_v58 = vadd.f32 %v5427_v34, %v5419_v43  ;;  %v13865_v31 = vsel %vm5024_vm5, 1.0, %v14610_v48  ;;  %v13868_v57 = vsel %vm5023_vm13, 1.0, %v14610_v48  ;;  %v13871_v47 = vsel %vm5025_vm12, 1.0, %v14610_v48  ;;  %v5230_v34 = vpop.f32.mrf.mxu1 }
 0x2bb   : > { %v5421_v51 = vmul.f32 %v13865_v31, %v5218_v44  ;;  %v5420_v42 = vmul.f32 %v13868_v57, %v5131_v6  ;;  %v5422_v50 = vmul.f32 %v13871_v47, %v5220_v35  ;;  %v5491_v52 = vrot.slane %v5483_v18, 4 }
 0x2bc   : > { %v5429_v17 = vrot.slane %v5428_v58, 2  ;;  %v5485_v9 = vmul.f32 %v13865_v31, %v5224_v14  ;;  %v5484_v3 = vmul.f32 %v13868_v57, %v5137_v33  ;;  %v5486_v21 = vmul.f32 %v13871_v47, %v5226_v12 }
 0x2bd   : > { %v5439_v43 = vrot.slane %v5421_v51, 4  ;;  %v5433_v40 = vrot.slane %v5420_v42, 4  ;;  %v5445_v26 = vrot.slane %v5422_v50, 4  ;;  %v5492_v59 = vadd.f32 %v5491_v52, %v5483_v18  ;;  %v5232_v18 = vpop.f32.mrf.mxu1 }
 0x2be   : > { %v5430_v22 = vadd.f32 %v5429_v17, %v5428_v58  ;;  %v5503_v44 = vrot.slane %v5485_v9, 4  ;;  %v5497_v61 = vrot.slane %v5484_v3, 4  ;;  %v5509_v6 = vrot.slane %v5486_v21, 4 }
 0x2bf   : > { %v5440_v46 = vadd.f32 %v5439_v43, %v5421_v51  ;;  %v5434_v35 = vadd.f32 %v5433_v40, %v5420_v42  ;;  %v5446_v25 = vadd.f32 %v5445_v26, %v5422_v50  ;;  %v5493_v30 = vrot.slane %v5492_v59, 2 }
 0x2c0   : > { %v5431_v5 = vrot.slane %v5430_v22, 1  ;;  %v5504_v14 = vadd.f32 %v5503_v44, %v5485_v9  ;;  %v5498_v8 = vadd.f32 %v5497_v61, %v5484_v3  ;;  %v5510_v33 = vadd.f32 %v5509_v6, %v5486_v21  ;;  %v5147_v3 = vpop.f32.mrf.mxu0 }
 0x2c1   : > { %v4733_v12 = vadd.f32 %v4732_v28, %v13817_v29  ;;  %v5441_v1 = vrot.slane %v5440_v46, 2  ;;  %v5435_v24 = vrot.slane %v5434_v35, 2  ;;  %v5447_v4 = vrot.slane %v5446_v25, 2 }
 0x2c2   : > { %v5494_v52 = vadd.f32 %v5493_v30, %v5492_v59  ;;  %v5505_v58 = vrot.slane %v5504_v14, 2  ;;  %v5499_v17 = vrot.slane %v5498_v8, 2  ;;  %v5547_v19 = vmul.f32 %v13847_v37, %v5141_v20  ;;  %v5149_v59 = vpop.f32.mrf.mxu0 }
 0x2c3   : > { %v13882_v51 = vadd.f32 %v4681_v41, %v13665_v36  ;;  %v4745_v42 = vadd.f32 %v4744_v38, %v13819_v49  ;;  %v4739_v61 = vadd.f32 %v4738_v55, %v13832_v13  ;;  %v4751_v50 = vadd.f32 %v4750_v23, %v13844_v0  ;;  %v5236_v49 = vpop.f32.mrf.mxu1  ;;  %v14858_v23 = vld [vmem:[#allocation45_spill] sm:$0xff] }
 0x2c4   : > { %v13888_v29 = vadd.f32 %v4675_v39, %v13668_v16  ;;  %v13891_v28 = vadd.f32 %v4687_v7, %v13672_v62  ;;  %v5432_v30 = vadd.f32 %v5431_v5, %v5430_v22  ;;  %v5511_v9 = vrot.slane %v5510_v33, 2  ;;  %v14859_v39 = vld [vmem:[#allocation46_spill] sm:$0xff]  ;;  %v14861_v5 = vld [vmem:[#allocation47_spill] sm:$0xff]  ;;  %v14863_v7 = vld [vmem:[#allocation37_spill] sm:$0xff] }
 0x2c5   : > { %v13894_v21 = vadd.f32 %v4733_v12, %v13675_v53  ;;  %v5442_v36 = vadd.f32 %v5441_v1, %v5440_v46  ;;  %v5436_v41 = vadd.f32 %v5435_v24, %v5434_v35  ;;  %v5448_v20 = vadd.f32 %v5447_v4, %v5446_v25  ;;  %v14865_v25 = vld [vmem:[#allocation17_spill] sm:$0xff]  ;;  %v5238_v44 = vpop.f32.mrf.mxu1 }
 0x2c6   : > { %v5495_v38 = vrot.slane %v5494_v52, 1  ;;  %v5506_v13 = vadd.f32 %v5505_v58, %v5504_v14  ;;  %v5500_v55 = vadd.f32 %v5499_v17, %v5498_v8  ;;  %v5555_v0 = vrot.slane %v5547_v19, 4 }
 0x2c7   : > { %v13897_v16 = vadd.f32 %v4745_v42, %v14858_v23  ;;  %v13900_v62 = vadd.f32 %v4739_v61, %v14859_v39  ;;  %v13903_v22 = vadd.f32 %v4751_v50, %v14861_v5  ;;  %v5611_v53 = vmul.f32 %v13847_v37, %v5147_v3 }
 0x2c8   : > { %v13907_v1 = vadd.f32 %v5432_v30, %v14863_v7  ;;  %v5512_v4 = vadd.f32 %v5511_v9, %v5510_v33  ;;  %v5556_v24 = vadd.f32 %v5555_v0, %v5547_v19  ;;  %v5009_v8 = vrot.slane %v13812_v60, %v14865_v25  ;;  %v5307_v7 = vpop.f32.mrf.mxu0 }
 0x2c9   : > { %14860 = vst [vmem:[#allocation21_spill] sm:$0xff] %v13900_v62  ;;  %14862 = vst [vmem:[#allocation33_spill] sm:$0xff] %v13903_v22  ;;  %v5443_v46 = vrot.slane %v5442_v36, 1  ;;  %v5437_v43 = vrot.slane %v5436_v41, 1  ;;  %v5449_v40 = vrot.slane %v5448_v20, 1  ;;  %v5549_v26 = vmul.f32 %v13865_v31, %v5230_v34  ;;  %v14866_v62 = vld [vmem:[#allocation20_spill] sm:$0xff] }
 0x2ca   : > { %14864 = vst [vmem:[#allocation38_spill] sm:$0xff] %v13907_v1  ;;  %v5496_v6 = vadd.f32 %v5495_v38, %v5494_v52  ;;  %v5507_v35 = vrot.slane %v5506_v13, 1  ;;  %v5501_v14 = vrot.slane %v5500_v55, 1  ;;  %v5557_v12 = vrot.slane %v5556_v24, 2 }
 0x2cb   : > { %v5567_v37 = vrot.slane %v5549_v26, 4  ;;  %v5548_v58 = vmul.f32 %v13868_v57, %v5143_v11  ;;  %v5550_v33 = vmul.f32 %v13871_v47, %v5232_v18  ;;  %v5619_v19 = vrot.slane %v5611_v53, 4 }
 0x2cc   : > { %v5558_v17 = vadd.f32 %v5557_v12, %v5556_v24  ;;  %v5613_v42 = vmul.f32 %v13865_v31, %v5236_v49  ;;  %v5612_v61 = vmul.f32 %v13868_v57, %v5149_v59  ;;  %v5614_v50 = vmul.f32 %v13871_v47, %v5238_v44  ;;  %v5396_v44 = vpop.f32.mrf.mxu1 }
 0x2cd   : > { %v5568_v34 = vadd.f32 %v5567_v37, %v5549_v26  ;;  %v5561_v30 = vrot.slane %v5548_v58, 4  ;;  %v5573_v9 = vrot.slane %v5550_v33, 4  ;;  %v5620_v52 = vadd.f32 %v5619_v19, %v5611_v53 }
 0x2ce   : > { %v5513_v3 = vrot.slane %v5512_v4, 1  ;;  %v5631_v38 = vrot.slane %v5613_v42, 4  ;;  %v5625_v0 = vrot.slane %v5612_v61, 4  ;;  %v5637_v23 = vrot.slane %v5614_v50, 4 }
 0x2cf   : > { %v5569_v39 = vrot.slane %v5568_v34, 2  ;;  %v5562_v11 = vadd.f32 %v5561_v30, %v5548_v58  ;;  %v5574_v5 = vadd.f32 %v5573_v9, %v5550_v33  ;;  %v5621_v18 = vrot.slane %v5620_v52, 2  ;;  %v5309_v9 = vpop.f32.mrf.mxu0 }
 0x2d0   : > { %v5559_v24 = vrot.slane %v5558_v17, 1  ;;  %v5632_v12 = vadd.f32 %v5631_v38, %v5613_v42  ;;  %v5626_v31 = vadd.f32 %v5625_v0, %v5612_v61  ;;  %v5638_v49 = vadd.f32 %v5637_v23, %v5614_v50  ;;  %v5398_v50 = vpop.f32.mrf.mxu1  ;;  %v14879_v0 = vld [vmem:[#allocation32_spill] sm:$0xff] }
 0x2d1   : > { %v5444_v57 = vadd.f32 %v5443_v46, %v5442_v36  ;;  %v5438_v59 = vadd.f32 %v5437_v43, %v5436_v41  ;;  %v5570_v47 = vadd.f32 %v5569_v39, %v5568_v34  ;;  %v5563_v26 = vrot.slane %v5562_v11, 2  ;;  %v14867_v36 = vld [vmem:[#allocation48_spill] sm:$0xff]  ;;  %v14869_v46 = vld [vmem:[#allocation34_spill] sm:$0xff]  ;;  %v5313_v38 = vpop.f32.mrf.mxu0 }
 0x2d2   : > { %v5450_v37 = vadd.f32 %v5449_v40, %v5448_v20  ;;  %v5575_v53 = vrot.slane %v5574_v5, 2  ;;  %v5622_v19 = vadd.f32 %v5621_v18, %v5620_v52  ;;  %v5633_v22 = vrot.slane %v5632_v12, 2  ;;  %v14877_v52 = vld [vmem:[#allocation40_spill] sm:$0xff] }
 0x2d3   : > { %v13918_v25 = vadd.f32 %v5496_v6, %v14866_v62  ;;  %v5508_v58 = vadd.f32 %v5507_v35, %v5506_v13  ;;  %v5502_v33 = vadd.f32 %v5501_v14, %v5500_v55  ;;  %v5514_v30 = vadd.f32 %v5513_v3, %v5512_v4  ;;  %v14871_v4 = vld [vmem:[#allocation35_spill] sm:$0xff] }
 0x2d4   : > { %v5560_v1 = vadd.f32 %v5559_v24, %v5558_v17  ;;  %v5627_v42 = vrot.slane %v5626_v31, 2  ;;  %v5639_v61 = vrot.slane %v5638_v49, 2  ;;  %vm5026_vm11 = vcmp.eq.s32.totalorder %v9454_v2, %v5009_v8  ;;  %v14873_v8 = vld [vmem:[#allocation26_spill] sm:$0xff]  ;;  %v14875_v17 = vld [vmem:[#allocation28_spill] sm:$0xff] }
 0x2d5   : > { %v13922_v41 = vadd.f32 %v5444_v57, %v14867_v36  ;;  %v13925_v20 = vadd.f32 %v5438_v59, %v14869_v46  ;;  %v5571_v43 = vrot.slane %v5570_v47, 1  ;;  %v5564_v40 = vadd.f32 %v5563_v26, %v5562_v11  ;;  %v14881_v24 = vld [vmem:[#allocation18_spill] sm:$0xff]  ;;  %v14882_v57 = vld [vmem:[#allocation15_spill] sm:$0xff]  ;;  %v5402_v26 = vpop.f32.mrf.mxu1 }
 0x2d6   : > { %v5576_v62 = vadd.f32 %v5575_v53, %v5574_v5  ;;  %v5623_v6 = vrot.slane %v5622_v19, 1  ;;  %v13927_v13 = vadd.f32 %v5633_v22, %v5632_v12  ;;  %v13930_v55 = vsel %vm5026_vm11, 1.0, %v14610_v48 }
 0x2d7   : > { %14868 = vst [vmem:[#allocation22_spill] sm:$0xff] %v13922_v41  ;;  %14870 = vst [vmem:[#allocation39_spill] sm:$0xff] %v13925_v20  ;;  %v13933_v35 = vadd.f32 %v5450_v37, %v14871_v4  ;;  %v13936_v14 = vadd.f32 %v5508_v58, %v14873_v8  ;;  %v13939_v34 = vadd.f32 %v5502_v33, %v14875_v17  ;;  %v5565_v18 = vrot.slane %v5564_v40, 1 }
 0x2d8   : > { %v13942_v3 = vadd.f32 %v5514_v30, %v14877_v52  ;;  %v13945_v23 = vadd.f32 %v5560_v1, %v14879_v0  ;;  %v5628_v22 = vadd.f32 %v5627_v42, %v5626_v31  ;;  %v5640_v39 = vadd.f32 %v5639_v61, %v5638_v49  ;;  %v14883_v1 = vld [vmem:[#allocation16_spill] sm:$0xff]  ;;  %v5315_v49 = vpop.f32.mrf.mxu0 }
 0x2d9   : > { %14872 = vst [vmem:[#allocation42_spill] sm:$0xff] %v13933_v35  ;;  %14874 = vst [vmem:[#allocation43_spill] sm:$0xff] %v13936_v14  ;;  %v5423_v11 = vmul.f32 %v13930_v55, %v5307_v7  ;;  %v5572_v5 = vadd.f32 %v5571_v43, %v5570_v47  ;;  %v5017_v12 = vrot.slane %v13812_v60, %v14881_v24  ;;  %v5577_v37 = vrot.slane %v5576_v62, 1  ;;  %v5404_v43 = vpop.f32.mrf.mxu1 }
 0x2da   : > { %14876 = vst [vmem:[#allocation44_spill] sm:$0xff] %v13939_v34  ;;  %14878 = vst [vmem:[#allocation25_spill] sm:$0xff] %v13942_v3  ;;  %v5013_v59 = vrot.slane %v13812_v60, %v14882_v57  ;;  %v5624_v53 = vadd.f32 %v5623_v6, %v5622_v19  ;;  %v5635_v58 = vrot.slane %v13927_v13, 1  ;;  %v5021_v7 = vrot.slane %v13812_v60, %v14883_v1 }
 0x2db   : > { %14880 = vst [vmem:[#allocation19_spill] sm:$0xff] %v13945_v23  ;;  %v5451_v33 = vrot.slane %v5423_v11, 4  ;;  %vm5028_vm6 = vcmp.eq.s32.totalorder %v9454_v2, %v5017_v12  ;;  %v5487_v31 = vmul.f32 %v13930_v55, %v5313_v38  ;;  %v5629_v47 = vrot.slane %v5628_v22, 1 }
 0x2dc   : > { %vm5027_vm4 = vcmp.eq.s32.totalorder %v9454_v2, %v5013_v59  ;;  %v13959_v42 = vsel %vm5028_vm6, 1.0, %v14610_v48  ;;  %vm5029_vm14 = vcmp.eq.s32.totalorder %v9454_v2, %v5021_v7  ;;  %v5319_v59 = vpop.f32.mrf.mxu0  ;;  %v5566_v1 = vadd.f32 %v5565_v18, %v5564_v40 }
 0x2dd   : > { %v5452_v30 = vadd.f32 %v5451_v33, %v5423_v11  ;;  %v13962_v19 = vsel %vm5027_vm4, 1.0, %v14610_v48  ;;  %v5425_v61 = vmul.f32 %v13959_v42, %v5396_v44  ;;  %v5515_v46 = vrot.slane %v5487_v31, 4 }
 0x2de   : > { %v5424_v36 = vmul.f32 %v13962_v19, %v5309_v9  ;;  %v13968_v6 = vsel %vm5029_vm14, 1.0, %v14610_v48  ;;  %v5489_v4 = vmul.f32 %v13959_v42, %v5402_v26  ;;  %v5488_v8 = vmul.f32 %v13962_v19, %v5315_v49  ;;  %v5408_v26 = vpop.f32.mrf.mxu1  ;;  %v5321_v41 = vpop.f32.mrf.mxu0 }
 0x2df   : > { %v5453_v60 = vrot.slane %v5452_v30, 2  ;;  %v5463_v17 = vrot.slane %v5425_v61, 4  ;;  %v5426_v38 = vmul.f32 %v13968_v6, %v5398_v50  ;;  %v5516_v0 = vadd.f32 %v5515_v46, %v5487_v31 }
 0x2e0   : > { %v5457_v52 = vrot.slane %v5424_v36, 4  ;;  %v5641_v44 = vrot.slane %v5640_v39, 1  ;;  %v5527_v11 = vrot.slane %v5489_v4, 4  ;;  %v5521_v9 = vrot.slane %v5488_v8, 4  ;;  %v5410_v18 = vpop.f32.mrf.mxu1 }
 0x2e1   : > { %v5490_v12 = vmul.f32 %v13968_v6, %v5404_v43  ;;  %v13975_v33 = vadd.f32 %v5572_v5, %v13776_v32  ;;  %v5464_v7 = vadd.f32 %v5463_v17, %v5425_v61  ;;  %v5469_v3 = vrot.slane %v5426_v38, 4 }
 0x2e2   : > { %v5458_v23 = vadd.f32 %v5457_v52, %v5424_v36  ;;  %v5454_v49 = vadd.f32 %v5453_v60, %v5452_v30  ;;  %v5522_v57 = vadd.f32 %v5521_v9, %v5488_v8  ;;  %v5578_v34 = vadd.f32 %v5577_v37, %v5576_v62 }
 0x2e3   : > { %v5533_v24 = vrot.slane %v5490_v12, 4  ;;  %v5465_v50 = vrot.slane %v5464_v7, 2  ;;  %v5517_v31 = vrot.slane %v5516_v0, 2  ;;  %v5528_v46 = vadd.f32 %v5527_v11, %v5489_v4 }
 0x2e4   : > { %v5459_v14 = vrot.slane %v5458_v23, 2  ;;  %v5523_v35 = vrot.slane %v5522_v57, 2  ;;  %v5551_v43 = vmul.f32 %v13930_v55, %v5319_v59  ;;  %v13979_v32 = vadd.f32 %v5624_v53, %v13781_v63  ;;  %v5325_v53 = vpop.f32.mrf.mxu0 }
 0x2e5   : > { %v5534_v20 = vadd.f32 %v5533_v24, %v5490_v12  ;;  %v5636_v5 = vadd.f32 %v5635_v58, %v13927_v13  ;;  %v5630_v61 = vadd.f32 %v5629_v47, %v5628_v22  ;;  %v5470_v40 = vadd.f32 %v5469_v3, %v5426_v38 }
 0x2e6   : > { %v5642_v30 = vadd.f32 %v5641_v44, %v5640_v39  ;;  %v5455_v36 = vrot.slane %v5454_v49, 1  ;;  %v5524_v62 = vadd.f32 %v5523_v35, %v5522_v57  ;;  %v13983_v60 = vadd.f32 %v5566_v1, %v13784_v27  ;;  %v5414_v27 = vpop.f32.mrf.mxu1 }
 0x2e7   : > { %v5535_v37 = vrot.slane %v5534_v20, 2  ;;  %v5466_v4 = vadd.f32 %v5465_v50, %v5464_v7  ;;  %v5518_v24 = vadd.f32 %v5517_v31, %v5516_v0  ;;  %v5529_v8 = vrot.slane %v5528_v46, 2  ;;  %v5327_v0 = vpop.f32.mrf.mxu0 }
 0x2e8   : > { %v5460_v17 = vadd.f32 %v5459_v14, %v5458_v23  ;;  %v5525_v52 = vrot.slane %v5524_v62, 1  ;;  %v5579_v63 = vrot.slane %v5551_v43, 4  ;;  %v13986_v13 = vadd.f32 %v5578_v34, %v13787_v45  ;;  %v5416_v59 = vpop.f32.mrf.mxu1 }
 0x2e9   : > { %v5536_v11 = vadd.f32 %v5535_v37, %v5534_v20  ;;  %v13989_v3 = vadd.f32 %v5636_v5, %v13790_v10  ;;  %v13992_v35 = vadd.f32 %v5630_v61, %v13793_v15  ;;  %v5471_v22 = vrot.slane %v5470_v40, 2 }
 0x2ea   : > { %v5456_v39 = vadd.f32 %v5455_v36, %v5454_v49  ;;  %v5526_v57 = vadd.f32 %v5525_v52, %v5524_v62  ;;  %v5580_v1 = vadd.f32 %v5579_v63, %v5551_v43  ;;  %v5467_v14 = vrot.slane %v5466_v4, 1 }
 0x2eb   : > { %v5537_v58 = vrot.slane %v5536_v11, 1  ;;  %v5519_v23 = vrot.slane %v5518_v24, 1  ;;  %v5530_v20 = vadd.f32 %v5529_v8, %v5528_v46  ;;  %v5553_v47 = vmul.f32 %v13959_v42, %v5408_v26 }
 0x2ec   : > { %v5461_v38 = vrot.slane %v5460_v17, 1  ;;  %v13996_v45 = vadd.f32 %v5526_v57, %v13835_v56  ;;  %v5581_v34 = vrot.slane %v5580_v1, 2  ;;  %v5472_v15 = vadd.f32 %v5471_v22, %v5470_v40 }
 0x2ed   : > { %v5538_v10 = vadd.f32 %v5537_v58, %v5536_v11  ;;  %v5591_v44 = vrot.slane %v5553_v47, 4  ;;  %v5552_v9 = vmul.f32 %v13962_v19, %v5321_v41  ;;  %v5554_v12 = vmul.f32 %v13968_v6, %v5410_v18  ;;  %v6044_v11 = vpop.f32.mrf.mxu0 }
 0x2ee   : > { %14884 = vst [vmem:[#allocation45_spill] sm:$0xff] %v13996_v45  ;;  %v5582_v49 = vadd.f32 %v5581_v34, %v5580_v1  ;;  %v5615_v26 = vmul.f32 %v13930_v55, %v5325_v53  ;;  %v5617_v50 = vmul.f32 %v13959_v42, %v5414_v27  ;;  %v5616_v43 = vmul.f32 %v13962_v19, %v5327_v0  ;;  %v6133_v27 = vpop.f32.mrf.mxu1  ;;  %v14886_v19 = vld [vmem:[#allocation36_spill] sm:$0xff] }
 0x2ef   : > { %v14001_v7 = vadd.f32 %v5538_v10, %v13839_v54  ;;  %v5592_v56 = vadd.f32 %v5591_v44, %v5553_v47  ;;  %v5585_v31 = vrot.slane %v5552_v9, 4  ;;  %v5597_v46 = vrot.slane %v5554_v12, 4 }
 0x2f0   : > { %v5531_v5 = vrot.slane %v5530_v20, 1  ;;  %v5643_v61 = vrot.slane %v5615_v26, 4  ;;  %v5655_v40 = vrot.slane %v5617_v50, 4  ;;  %v5618_v41 = vmul.f32 %v13968_v6, %v5416_v59  ;;  %v14887_v59 = vld [vmem:[#allocation23_spill] sm:$0xff] }
 0x2f1   : > { %14885 = vst [vmem:[#allocation46_spill] sm:$0xff] %v14001_v7  ;;  %v5593_v18 = vrot.slane %v5592_v56, 2  ;;  %v5586_v36 = vadd.f32 %v5585_v31, %v5552_v9  ;;  %v5598_v62 = vadd.f32 %v5597_v46, %v5554_v12  ;;  %v5649_v54 = vrot.slane %v5616_v43, 4 }
 0x2f2   : > { %v5473_v37 = vrot.slane %v5472_v15, 1  ;;  %v5644_v8 = vadd.f32 %v5643_v61, %v5615_v26  ;;  %v5656_v52 = vadd.f32 %v5655_v40, %v5617_v50  ;;  %v5661_v55 = vrot.slane %v5618_v41, 4  ;;  %v6046_v50 = vpop.f32.mrf.mxu0  ;;  %v6135_v40 = vpop.f32.mrf.mxu1 }
 0x2f3   : > { %v5583_v42 = vrot.slane %v5582_v49, 1  ;;  %v5594_v63 = vadd.f32 %v5593_v18, %v5592_v56  ;;  %v5587_v53 = vrot.slane %v5586_v36, 2  ;;  %v5599_v22 = vrot.slane %v5598_v62, 2  ;;  %v14888_v56 = vld [vmem:[#allocation41_spill] sm:$0xff] }
 0x2f4   : > { %v14008_v57 = vadd.f32 %v5642_v30, %v14886_v19  ;;  %v5645_v58 = vrot.slane %v5644_v8, 2  ;;  %v5657_v1 = vrot.slane %v5656_v52, 2  ;;  %v5650_v6 = vadd.f32 %v5649_v54, %v5616_v43  ;;  %v6050_v54 = vpop.f32.mrf.mxu0 }
 0x2f5   : > { %v5468_v47 = vadd.f32 %v5467_v14, %v5466_v4  ;;  %v5462_v10 = vadd.f32 %v5461_v38, %v5460_v17  ;;  %v5520_v34 = vadd.f32 %v5519_v23, %v5518_v24  ;;  %v5662_v0 = vadd.f32 %v5661_v55, %v5618_v41  ;;  %v14889_v17 = vld [vmem:[#allocation13_spill] sm:$0xff]  ;;  %v14890_v23 = vld [vmem:[#allocation31_spill] sm:$0xff] }
 0x2f6   : > { %v5532_v44 = vadd.f32 %v5531_v5, %v5530_v20  ;;  %v5595_v9 = vrot.slane %v5594_v63, 1  ;;  %v5588_v12 = vadd.f32 %v5587_v53, %v5586_v36  ;;  %v14011_v26 = vshra.s32 %v14887_v59, 16  ;;  %v14892_v38 = vld [vmem:[#allocation27_spill] sm:$0xff]  ;;  %v14903_v59 = vld [vmem:[#allocation12_spill] sm:$0xff] }
 0x2f7   : > { %v14014_v31 = vadd.f32 %v5456_v39, %v14888_v56  ;;  %v5474_v46 = vadd.f32 %v5473_v37, %v5472_v15  ;;  %v5584_v30 = vadd.f32 %v5583_v42, %v5582_v49  ;;  %v5600_v61 = vadd.f32 %v5599_v22, %v5598_v62  ;;  %v14894_v39 = vld [vmem:[#allocation30_spill] sm:$0xff]  ;;  %v14895_v49 = vld [vmem:[#allocation49_spill] sm:$0xff]  ;;  %v6139_v22 = vpop.f32.mrf.mxu1 }
 0x2f8   : > { %v14016_v18 = vadd.f32 %v5645_v58, %v5644_v8  ;;  %v14018_v4 = vadd.f32 %v5657_v1, %v5656_v52  ;;  %v5651_v24 = vrot.slane %v5650_v6, 2  ;;  %v5908_v14 = vrot.slane %v14011_v26, %v14889_v17  ;;  %v14897_v37 = vld [vmem:[#allocation29_spill] sm:$0xff]  ;;  %v14899_v52 = vld [vmem:[#allocation50_spill] sm:$0xff] }
 0x2f9   : > { %v14023_v20 = vadd.f32 %v5468_v47, %v14890_v23  ;;  %v14026_v43 = vadd.f32 %v5462_v10, %v14892_v38  ;;  %v14029_v5 = vadd.f32 %v5520_v34, %v14894_v39  ;;  %v5663_v15 = vrot.slane %v5662_v0, 2  ;;  %v14901_v10 = vld [vmem:[#allocation14_spill] sm:$0xff] }
 0x2fa   : > { %v14032_v41 = vadd.f32 %v5532_v44, %v14895_v49  ;;  %v5596_v36 = vadd.f32 %v5595_v9, %v5594_v63  ;;  %v5589_v62 = vrot.slane %v5588_v12, 1  ;;  %vm5937_vm7 = vcmp.eq.s32.totalorder %v9454_v2, %v5908_v14  ;;  %v14902_v44 = vld [vmem:[#allocation11_spill] sm:$0xff] }
 0x2fb   : > { %14891 = vst [vmem:[#allocation47_spill] sm:$0xff] %v14023_v20  ;;  %14893 = vst [vmem:[#allocation37_spill] sm:$0xff] %v14026_v43  ;;  %v14036_v8 = vadd.f32 %v5474_v46, %v14897_v37  ;;  %v14039_v55 = vadd.f32 %v5584_v30, %v14899_v52  ;;  %v5601_v42 = vrot.slane %v5600_v61, 1  ;;  %v14042_v53 = vsel %vm5937_vm7, 1.0, %v14610_v48 }
 0x2fc   : > { %14896 = vst [vmem:[#allocation20_spill] sm:$0xff] %v14032_v41  ;;  %v5647_v19 = vrot.slane %v14016_v18, 1  ;;  %v5659_v58 = vrot.slane %v14018_v4, 1  ;;  %v14046_v63 = vadd.f32 %v5651_v24, %v5650_v6  ;;  %v6334_v1 = vmul.f32 %v14042_v53, %v6044_v11  ;;  %v6052_v24 = vpop.f32.mrf.mxu0 }
 0x2fd   : > { %14898 = vst [vmem:[#allocation48_spill] sm:$0xff] %v14036_v8  ;;  %14900 = vst [vmem:[#allocation34_spill] sm:$0xff] %v14039_v55  ;;  %v14049_v47 = vadd.f32 %v5663_v15, %v5662_v0  ;;  %v5916_v34 = vrot.slane %v14011_v26, %v14901_v10  ;;  %v5912_v9 = vrot.slane %v14011_v26, %v14902_v44  ;;  %v6141_v0 = vpop.f32.mrf.mxu1 }
 0x2fe   : > { %v5920_v56 = vrot.slane %v14011_v26, %v14903_v59  ;;  %v14058_v46 = vadd.f32 %v5596_v36, %v13882_v51  ;;  %v5590_v30 = vadd.f32 %v5589_v62, %v5588_v12  ;;  %v6342_v14 = vrot.slane %v6334_v1, 4  ;;  %v6056_v52 = vpop.f32.mrf.mxu0 }
 0x2ff   : > { %v6398_v6 = vmul.f32 %v14042_v53, %v6050_v54  ;;  %v14061_v11 = vadd.f32 %v5601_v42, %v5600_v61  ;;  %vm5939_vm2 = vcmp.eq.s32.totalorder %v9454_v2, %v5916_v34  ;;  %vm5938_vm1 = vcmp.eq.s32.totalorder %v9454_v2, %v5912_v9 }
 0x300   : > { %14904 = vst [vmem:[#allocation35_spill] sm:$0xff] %v14058_v46  ;;  %vm5940_vm15 = vcmp.eq.s32.totalorder %v9454_v2, %v5920_v56  ;;  %v6343_v23 = vadd.f32 %v6342_v14, %v6334_v1  ;;  %v14067_v38 = vsel %vm5939_vm2, 1.0, %v14610_v48  ;;  %v14070_v51 = vsel %vm5938_vm1, 1.0, %v14610_v48  ;;  %v6145_v56 = vpop.f32.mrf.mxu1  ;;  %v6058_v45 = vpop.f32.mrf.mxu0 }
 0x301   : > { %v14073_v12 = vsel %vm5940_vm15, 1.0, %v14610_v48  ;;  %v6336_v61 = vmul.f32 %v14067_v38, %v6133_v27  ;;  %v6335_v39 = vmul.f32 %v14070_v51, %v6046_v50  ;;  %v6406_v49 = vrot.slane %v6398_v6, 4 }
 0x302   : > { %v6337_v15 = vmul.f32 %v14073_v12, %v6135_v40  ;;  %v6344_v36 = vrot.slane %v6343_v23, 2  ;;  %v6400_v62 = vmul.f32 %v14067_v38, %v6139_v22  ;;  %v6399_v54 = vmul.f32 %v14070_v51, %v6052_v24  ;;  %v6147_v43 = vpop.f32.mrf.mxu1 }
 0x303   : > { %v6401_v37 = vmul.f32 %v14073_v12, %v6141_v0  ;;  %v6354_v42 = vrot.slane %v6336_v61, 4  ;;  %v6348_v1 = vrot.slane %v6335_v39, 4  ;;  %v6407_v9 = vadd.f32 %v6406_v49, %v6398_v6 }
 0x304   : > { %v6360_v34 = vrot.slane %v6337_v15, 4  ;;  %v6345_v14 = vadd.f32 %v6344_v36, %v6343_v23  ;;  %v6418_v27 = vrot.slane %v6400_v62, 4  ;;  %v6412_v46 = vrot.slane %v6399_v54, 4 }
 0x305   : > { %v6424_v50 = vrot.slane %v6401_v37, 4  ;;  %v6355_v59 = vadd.f32 %v6354_v42, %v6336_v61  ;;  %v6349_v40 = vadd.f32 %v6348_v1, %v6335_v39  ;;  %v6408_v10 = vrot.slane %v6407_v9, 2 }
 0x306   : > { %v6361_v44 = vadd.f32 %v6360_v34, %v6337_v15  ;;  %v6346_v55 = vrot.slane %v6345_v14, 1  ;;  %v6419_v22 = vadd.f32 %v6418_v27, %v6400_v62  ;;  %v6413_v7 = vadd.f32 %v6412_v46, %v6399_v54 }
 0x307   : > { %v6425_v24 = vadd.f32 %v6424_v50, %v6401_v37  ;;  %v6356_v0 = vrot.slane %v6355_v59, 2  ;;  %v6350_v8 = vrot.slane %v6349_v40, 2  ;;  %v6409_v41 = vadd.f32 %v6408_v10, %v6407_v9  ;;  %v6062_v37 = vpop.f32.mrf.mxu0 }
 0x308   : > { %v6362_v17 = vrot.slane %v6361_v44, 2  ;;  %v6420_v6 = vrot.slane %v6419_v22, 2  ;;  %v6414_v49 = vrot.slane %v6413_v7, 2  ;;  %v6462_v36 = vmul.f32 %v14042_v53, %v6056_v52  ;;  %v6151_v52 = vpop.f32.mrf.mxu1 }
 0x309   : > { %v6426_v23 = vrot.slane %v6425_v24, 2  ;;  %v5648_v61 = vadd.f32 %v5647_v19, %v14016_v18  ;;  %v5653_v39 = vrot.slane %v14046_v63, 1  ;;  %v6357_v15 = vadd.f32 %v6356_v0, %v6355_v59 }
 0x30a   : > { %v6351_v42 = vadd.f32 %v6350_v8, %v6349_v40  ;;  %v14085_v46 = vadd.f32 %v5590_v30, %v13888_v29  ;;  %v5660_v62 = vadd.f32 %v5659_v58, %v14018_v4  ;;  %v5665_v54 = vrot.slane %v14049_v47, 1  ;;  %v14911_v58 = vld [vmem:[#allocation38_spill] sm:$0xff] }
 0x30b   : > { %v6347_v10 = vadd.f32 %v6346_v55, %v6345_v14  ;;  %v6363_v1 = vadd.f32 %v6362_v17, %v6361_v44  ;;  %v6410_v34 = vrot.slane %v6409_v41, 1  ;;  %v6421_v9 = vadd.f32 %v6420_v6, %v6419_v22  ;;  %v6064_v14 = vpop.f32.mrf.mxu0 }
 0x30c   : > { %14905 = vst [vmem:[#allocation26_spill] sm:$0xff] %v14085_v46  ;;  %v6415_v27 = vadd.f32 %v6414_v49, %v6413_v7  ;;  %v6358_v50 = vrot.slane %v6357_v15, 1  ;;  %v6352_v18 = vrot.slane %v6351_v42, 1  ;;  %v6427_v19 = vadd.f32 %v6426_v23, %v6425_v24 }
 0x30d   : > { %v6470_v20 = vrot.slane %v6462_v36, 4  ;;  %v14091_v8 = vadd.f32 %v14061_v11, %v13891_v28  ;;  %v14094_v29 = vadd.f32 %v5648_v61, %v13894_v21  ;;  %v14097_v4 = vadd.f32 %v5653_v39, %v14046_v63  ;;  %v6153_v63 = vpop.f32.mrf.mxu1 }
 0x30e   : > { %v6526_v17 = vmul.f32 %v14042_v53, %v6062_v37  ;;  %v14101_v55 = vadd.f32 %v5660_v62, %v13897_v16  ;;  %v14104_v7 = vadd.f32 %v5665_v54, %v14049_v47  ;;  %v14107_v44 = vadd.f32 %v6347_v10, %v14911_v58 }
 0x30f   : > { %14906 = vst [vmem:[#allocation28_spill] sm:$0xff] %v14091_v8  ;;  %14907 = vst [vmem:[#allocation40_spill] sm:$0xff] %v14094_v29  ;;  %v6471_v59 = vadd.f32 %v6470_v20, %v6462_v36  ;;  %v6364_v28 = vrot.slane %v6363_v1, 1  ;;  %v6411_v30 = vadd.f32 %v6410_v34, %v6409_v41  ;;  %v6422_v11 = vrot.slane %v6421_v9, 1  ;;  %v6222_v34 = vpop.f32.mrf.mxu0 }
 0x310   : > { %14908 = vst [vmem:[#allocation32_spill] sm:$0xff] %v14097_v4  ;;  %14909 = vst [vmem:[#allocation36_spill] sm:$0xff] %v14101_v55  ;;  %v6464_v21 = vmul.f32 %v14067_v38, %v6145_v56  ;;  %v6359_v40 = vadd.f32 %v6358_v50, %v6357_v15  ;;  %v6353_v22 = vadd.f32 %v6352_v18, %v6351_v42  ;;  %v6416_v53 = vrot.slane %v6415_v27, 1 }
 0x311   : > { %14910 = vst [vmem:[#allocation23_spill] sm:$0xff] %v14104_v7  ;;  %v6428_v24 = vrot.slane %v6427_v19, 1  ;;  %v6463_v0 = vmul.f32 %v14070_v51, %v6058_v45  ;;  %v6465_v47 = vmul.f32 %v14073_v12, %v6147_v43  ;;  %v6534_v6 = vrot.slane %v6526_v17, 4 }
 0x312   : > { %v6482_v16 = vrot.slane %v6464_v21, 4  ;;  %v6472_v49 = vrot.slane %v6471_v59, 2  ;;  %v6528_v20 = vmul.f32 %v14067_v38, %v6151_v52  ;;  %v6527_v41 = vmul.f32 %v14070_v51, %v6064_v14 }
 0x313   : > { %v6529_v23 = vmul.f32 %v14073_v12, %v6153_v63  ;;  %v6476_v36 = vrot.slane %v6463_v0, 4  ;;  %v6488_v61 = vrot.slane %v6465_v47, 4  ;;  %v6535_v39 = vadd.f32 %v6534_v6, %v6526_v17  ;;  %v6311_v17 = vpop.f32.mrf.mxu1 }
 0x314   : > { %v6483_v56 = vadd.f32 %v6482_v16, %v6464_v21  ;;  %v6365_v15 = vadd.f32 %v6364_v28, %v6363_v1  ;;  %v6546_v42 = vrot.slane %v6528_v20, 4  ;;  %v6540_v62 = vrot.slane %v6527_v41, 4  ;;  %v14912_v16 = vld [vmem:[#allocation22_spill] sm:$0xff] }
 0x315   : > { %v6552_v54 = vrot.slane %v6529_v23, 4  ;;  %v6477_v45 = vadd.f32 %v6476_v36, %v6463_v0  ;;  %v6489_v37 = vadd.f32 %v6488_v61, %v6465_v47  ;;  %v6536_v43 = vrot.slane %v6535_v39, 2 }
 0x316   : > { %v6484_v10 = vrot.slane %v6483_v56, 2  ;;  %v14116_v50 = vadd.f32 %v6411_v30, %v13918_v25  ;;  %v6547_v38 = vadd.f32 %v6546_v42, %v6528_v20  ;;  %v6541_v51 = vadd.f32 %v6540_v62, %v6527_v41  ;;  %v6224_v30 = vpop.f32.mrf.mxu0  ;;  %v14916_v42 = vld [vmem:[#allocation43_spill] sm:$0xff] }
 0x317   : > { %v6553_v52 = vadd.f32 %v6552_v54, %v6529_v23  ;;  %v6473_v12 = vadd.f32 %v6472_v49, %v6471_v59  ;;  %v6478_v58 = vrot.slane %v6477_v45, 2  ;;  %v6537_v21 = vadd.f32 %v6536_v43, %v6535_v39  ;;  %v14913_v59 = vld [vmem:[#allocation17_spill] sm:$0xff]  ;;  %v6313_v39 = vpop.f32.mrf.mxu1  ;;  %v14917_v54 = vld [vmem:[#allocation44_spill] sm:$0xff] }
 0x318   : > { %v6485_v18 = vadd.f32 %v6484_v10, %v6483_v56  ;;  %v6423_v1 = vadd.f32 %v6422_v11, %v6421_v9  ;;  %v6490_v28 = vrot.slane %v6489_v37, 2  ;;  %v6548_v14 = vrot.slane %v6547_v38, 2  ;;  %v14914_v56 = vld [vmem:[#allocation39_spill] sm:$0xff] }
 0x319   : > { %v6542_v63 = vrot.slane %v6541_v51, 2  ;;  %v14119_v0 = vadd.f32 %v6359_v40, %v14912_v16  ;;  %v6417_v47 = vadd.f32 %v6416_v53, %v6415_v27  ;;  %v14121_v6 = vadd.f32 %v6428_v24, %v6427_v19  ;;  %v14915_v53 = vld [vmem:[#allocation42_spill] sm:$0xff]  ;;  %v14921_v16 = vld [vmem:[#allocation15_spill] sm:$0xff] }
 0x31a   : > { %v6538_v25 = vrot.slane %v6537_v21, 1  ;;  %v6479_v20 = vadd.f32 %v6478_v58, %v6477_v45  ;;  %v6549_v41 = vadd.f32 %v6548_v14, %v6547_v38  ;;  %v6554_v23 = vrot.slane %v6553_v52, 2  ;;  %v6228_v45 = vpop.f32.mrf.mxu0  ;;  %v6317_v14 = vpop.f32.mrf.mxu1 }
 0x31b   : > { %v5924_v49 = vrot.slane %v14011_v26, %v14913_v59  ;;  %v14126_v36 = vadd.f32 %v6353_v22, %v14914_v56  ;;  %v6474_v9 = vrot.slane %v6473_v12, 1  ;;  %v6486_v11 = vrot.slane %v6485_v18, 1 }
 0x31c   : > { %v6539_v61 = vadd.f32 %v6538_v25, %v6537_v21  ;;  %v14128_v40 = vadd.f32 %v6490_v28, %v6489_v37  ;;  %v6550_v27 = vrot.slane %v6549_v41, 1  ;;  %v14130_v19 = vadd.f32 %v6542_v63, %v6541_v51 }
 0x31d   : > { %vm5941_vm3 = vcmp.eq.s32.totalorder %v9454_v2, %v5924_v49  ;;  %v14134_v24 = vadd.f32 %v6365_v15, %v14915_v53  ;;  %v14137_v62 = vadd.f32 %v6423_v1, %v14916_v42  ;;  %v14140_v22 = vadd.f32 %v6417_v47, %v14917_v54  ;;  %v14919_v1 = vld [vmem:[#allocation18_spill] sm:$0xff] }
 0x31e   : > { %v14143_v10 = vadd.f32 %v6539_v61, %v13979_v32  ;;  %v6480_v37 = vrot.slane %v6479_v20, 1  ;;  %v6551_v43 = vadd.f32 %v6550_v27, %v6549_v41  ;;  %v14145_v38 = vadd.f32 %v6554_v23, %v6553_v52  ;;  %v6230_v41 = vpop.f32.mrf.mxu0 }
 0x31f   : > { %v14148_v51 = vsel %vm5941_vm3, 1.0, %v14610_v48  ;;  %v14150_v58 = vadd.f32 %v6474_v9, %v6473_v12  ;;  %v14152_v15 = vadd.f32 %v6486_v11, %v6485_v18  ;;  %v5932_v28 = vrot.slane %v14011_v26, %v14919_v1  ;;  %v14922_v18 = vld [vmem:[#allocation16_spill] sm:$0xff] }
 0x320   : > { %14918 = vst [vmem:[#allocation41_spill] sm:$0xff] %v14143_v10  ;;  %v6338_v21 = vmul.f32 %v14148_v51, %v6222_v34  ;;  %v6492_v32 = vrot.slane %v14128_v40, 1  ;;  %v14159_v63 = vadd.f32 %v6551_v43, %v13989_v3  ;;  %v6544_v52 = vrot.slane %v14130_v19, 1 }
 0x321   : > { %v5928_v47 = vrot.slane %v14011_v26, %v14921_v16  ;;  %vm5943_vm0 = vcmp.eq.s32.totalorder %v9454_v2, %v5932_v28  ;;  %v5936_v34 = vrot.slane %v14011_v26, %v14922_v18  ;;  %v6402_v25 = vmul.f32 %v14148_v51, %v6228_v45  ;;  %v6319_v26 = vpop.f32.mrf.mxu1 }
 0x322   : > { %14920 = vst [vmem:[#allocation31_spill] sm:$0xff] %v14159_v63  ;;  %v6366_v12 = vrot.slane %v6338_v21, 4  ;;  %v6481_v23 = vadd.f32 %v6480_v37, %v6479_v20  ;;  %v6556_v49 = vrot.slane %v14145_v38, 1  ;;  %v14170_v3 = vsel %vm5943_vm0, 1.0, %v14610_v48  ;;  %v6234_v37 = vpop.f32.mrf.mxu0 }
 0x323   : > { %vm5942_vm8 = vcmp.eq.s32.totalorder %v9454_v2, %v5928_v47  ;;  %v6340_v9 = vmul.f32 %v14170_v3, %v6311_v17  ;;  %vm5944_vm10 = vcmp.eq.s32.totalorder %v9454_v2, %v5936_v34  ;;  %v6430_v27 = vrot.slane %v6402_v25, 4  ;;  %v6323_v29 = vpop.f32.mrf.mxu1 }
 0x324   : > { %v6367_v56 = vadd.f32 %v6366_v12, %v6338_v21  ;;  %v14175_v11 = vsel %vm5942_vm8, 1.0, %v14610_v48  ;;  %v14180_v20 = vsel %vm5944_vm10, 1.0, %v14610_v48  ;;  %v6404_v53 = vmul.f32 %v14170_v3, %v6317_v14 }
 0x325   : > { %v6339_v61 = vmul.f32 %v14175_v11, %v6224_v30  ;;  %v6378_v54 = vrot.slane %v6340_v9, 4  ;;  %v6341_v45 = vmul.f32 %v14180_v20, %v6313_v39  ;;  %v6403_v17 = vmul.f32 %v14175_v11, %v6230_v41  ;;  %v6236_v41 = vpop.f32.mrf.mxu0 }
 0x326   : > { %v6368_v42 = vrot.slane %v6367_v56, 2  ;;  %v6431_v21 = vadd.f32 %v6430_v27, %v6402_v25  ;;  %v6442_v28 = vrot.slane %v6404_v53, 4  ;;  %v6405_v47 = vmul.f32 %v14180_v20, %v6319_v26 }
 0x327   : > { %v6372_v43 = vrot.slane %v6339_v61, 4  ;;  %v6379_v30 = vadd.f32 %v6378_v54, %v6340_v9  ;;  %v6384_v34 = vrot.slane %v6341_v45, 4  ;;  %v6436_v55 = vrot.slane %v6403_v17, 4  ;;  %v14923_v54 = vld [vmem:[#allocation25_spill] sm:$0xff] }
 0x328   : > { %v6369_v12 = vadd.f32 %v6368_v42, %v6367_v56  ;;  %v6432_v4 = vrot.slane %v6431_v21, 2  ;;  %v6443_v14 = vadd.f32 %v6442_v28, %v6404_v53  ;;  %v6448_v8 = vrot.slane %v6405_v47, 4  ;;  %v6325_v42 = vpop.f32.mrf.mxu1 }
 0x329   : > { %v6373_v7 = vadd.f32 %v6372_v43, %v6339_v61  ;;  %v6380_v18 = vrot.slane %v6379_v30, 2  ;;  %v6385_v39 = vadd.f32 %v6384_v34, %v6341_v45  ;;  %v6437_v16 = vadd.f32 %v6436_v55, %v6403_v17  ;;  %v14924_v17 = vld [vmem:[#allocation19_spill] sm:$0xff] }
 0x32a   : > { %v6370_v46 = vrot.slane %v6369_v12, 1  ;;  %v6433_v1 = vadd.f32 %v6432_v4, %v6431_v21  ;;  %v6444_v25 = vrot.slane %v6443_v14, 2  ;;  %v6449_v27 = vadd.f32 %v6448_v8, %v6405_v47  ;;  %v6240_v21 = vpop.f32.mrf.mxu0 }
 0x32b   : > { %v6374_v63 = vrot.slane %v6373_v7, 2  ;;  %v6381_v10 = vadd.f32 %v6380_v18, %v6379_v30  ;;  %v6386_v26 = vrot.slane %v6385_v39, 2  ;;  %v6438_v56 = vrot.slane %v6437_v16, 2 }
 0x32c   : > { %v6466_v9 = vmul.f32 %v14148_v51, %v6234_v37  ;;  %v14189_v61 = vadd.f32 %v14121_v6, %v14923_v54  ;;  %v6493_v53 = vadd.f32 %v6492_v32, %v14128_v40  ;;  %v6545_v45 = vadd.f32 %v6544_v52, %v14130_v19  ;;  %v6242_v30 = vpop.f32.mrf.mxu0 }
 0x32d   : > { %v6375_v55 = vadd.f32 %v6374_v63, %v6373_v7  ;;  %v14195_v4 = vadd.f32 %v14150_v58, %v14924_v17  ;;  %v6557_v8 = vadd.f32 %v6556_v49, %v14145_v38  ;;  %v6371_v18 = vadd.f32 %v6370_v46, %v6369_v12  ;;  %v6329_v58 = vpop.f32.mrf.mxu1 }
 0x32e   : > { %v6434_v43 = vrot.slane %v6433_v1, 1  ;;  %v14200_v37 = vadd.f32 %v14152_v15, %v13975_v33  ;;  %v6382_v6 = vrot.slane %v6381_v10, 1  ;;  %v6445_v28 = vadd.f32 %v6444_v25, %v6443_v14 }
 0x32f   : > { %v6450_v47 = vrot.slane %v6449_v27, 2  ;;  %v14203_v40 = vadd.f32 %v6481_v23, %v13983_v60  ;;  %v6387_v7 = vadd.f32 %v6386_v26, %v6385_v39  ;;  %v6439_v19 = vadd.f32 %v6438_v56, %v6437_v16 }
 0x330   : > { %v6494_v32 = vrot.slane %v6466_v9, 4  ;;  %v14206_v63 = vadd.f32 %v6493_v53, %v13986_v13  ;;  %v14209_v46 = vadd.f32 %v6545_v45, %v13992_v35  ;;  %v6376_v38 = vrot.slane %v6375_v55, 1 }
 0x331   : > { %v6530_v33 = vmul.f32 %v14148_v51, %v6240_v21  ;;  %v14213_v15 = vadd.f32 %v6557_v8, %v14008_v57  ;;  %v14216_v52 = vadd.f32 %v6371_v18, %v14014_v31  ;;  %v6435_v60 = vadd.f32 %v6434_v43, %v6433_v1  ;;  %v6331_v51 = vpop.f32.mrf.mxu1 }
 0x332   : > { %v6495_v23 = vadd.f32 %v6494_v32, %v6466_v9  ;;  %v6383_v16 = vadd.f32 %v6382_v6, %v6381_v10  ;;  %v6446_v49 = vrot.slane %v6445_v28, 1  ;;  %v6451_v12 = vadd.f32 %v6450_v47, %v6449_v27 }
 0x333   : > { %v6468_v13 = vmul.f32 %v14170_v3, %v6323_v29  ;;  %v6388_v34 = vrot.slane %v6387_v7, 1  ;;  %v6440_v35 = vrot.slane %v6439_v19, 1  ;;  %v6467_v39 = vmul.f32 %v14175_v11, %v6236_v41 }
 0x334   : > { %v6496_v14 = vrot.slane %v6495_v23, 2  ;;  %v6377_v25 = vadd.f32 %v6376_v38, %v6375_v55  ;;  %v6469_v26 = vmul.f32 %v14180_v20, %v6325_v42  ;;  %v6558_v31 = vrot.slane %v6530_v33, 4 }
 0x335   : > { %v6506_v57 = vrot.slane %v6468_v13, 4  ;;  %v6500_v1 = vrot.slane %v6467_v39, 4  ;;  %v6532_v10 = vmul.f32 %v14170_v3, %v6329_v58  ;;  %v6531_v27 = vmul.f32 %v14175_v11, %v6242_v30 }
 0x336   : > { %v6497_v56 = vadd.f32 %v6496_v14, %v6495_v23  ;;  %v6512_v29 = vrot.slane %v6469_v26, 4  ;;  %v6559_v54 = vadd.f32 %v6558_v31, %v6530_v33  ;;  %v6533_v53 = vmul.f32 %v14180_v20, %v6331_v51  ;;  %v6959_v23 = vpop.f32.mrf.mxu0 }
 0x337   : > { %v6507_v9 = vadd.f32 %v6506_v57, %v6468_v13  ;;  %v6452_v45 = vrot.slane %v6451_v12, 1  ;;  %v6501_v17 = vadd.f32 %v6500_v1, %v6467_v39  ;;  %v6570_v41 = vrot.slane %v6532_v10, 4 }
 0x338   : > { %v6564_v8 = vrot.slane %v6531_v27, 4  ;;  %v6513_v18 = vadd.f32 %v6512_v29, %v6469_v26  ;;  %v6560_v43 = vrot.slane %v6559_v54, 2  ;;  %v6576_v42 = vrot.slane %v6533_v53, 4  ;;  %v7048_v26 = vpop.f32.mrf.mxu1  ;;  %v14926_v29 = vld [vmem:[#allocation47_spill] sm:$0xff] }
 0x339   : > { %v6508_v55 = vrot.slane %v6507_v9, 2  ;;  %v6498_v21 = vrot.slane %v6497_v56, 1  ;;  %v6502_v6 = vrot.slane %v6501_v17, 2  ;;  %v6571_v47 = vadd.f32 %v6570_v41, %v6532_v10 }
 0x33a   : > { %v6565_v32 = vadd.f32 %v6564_v8, %v6531_v27  ;;  %v6514_v58 = vrot.slane %v6513_v18, 2  ;;  %v6561_v11 = vadd.f32 %v6560_v43, %v6559_v54  ;;  %v6577_v38 = vadd.f32 %v6576_v42, %v6533_v53  ;;  %v14925_v27 = vld [vmem:[#allocation24_spill] sm:$0xff]  ;;  %v14938_v43 = vld [vmem:[#allocation34_spill] sm:$0xff] }
 0x33b   : > { %v6509_v3 = vadd.f32 %v6508_v55, %v6507_v9  ;;  %v14225_v33 = vadd.f32 %v6435_v60, %v14029_v5  ;;  %v6447_v20 = vadd.f32 %v6446_v49, %v6445_v28  ;;  %v6503_v13 = vadd.f32 %v6502_v6, %v6501_v17  ;;  %v14927_v5 = vld [vmem:[#allocation37_spill] sm:$0xff] }
 0x33c   : > { %v6572_v30 = vrot.slane %v6571_v47, 2  ;;  %v6389_v14 = vadd.f32 %v6388_v34, %v6387_v7  ;;  %v6441_v39 = vadd.f32 %v6440_v35, %v6439_v19  ;;  %v6453_v51 = vadd.f32 %v6452_v45, %v6451_v12  ;;  %v6961_v7 = vpop.f32.mrf.mxu0  ;;  %v14928_v19 = vld [vmem:[#allocation20_spill] sm:$0xff] }
 0x33d   : > { %v6566_v57 = vrot.slane %v6565_v32, 2  ;;  %v6499_v31 = vadd.f32 %v6498_v21, %v6497_v56  ;;  %v6510_v1 = vrot.slane %v6509_v3, 1  ;;  %v14227_v10 = vadd.f32 %v6514_v58, %v6513_v18  ;;  %v14931_v56 = vld [vmem:[#allocation13_spill] sm:$0xff]  ;;  %v14932_v45 = vld [vmem:[#allocation48_spill] sm:$0xff]  ;;  %v7050_v18 = vpop.f32.mrf.mxu1 }
 0x33e   : > { %v14230_v9 = vshra.s32 %v14925_v27, 16  ;;  %v14233_v54 = vadd.f32 %v6383_v16, %v14926_v29  ;;  %v14236_v60 = vadd.f32 %v6377_v25, %v14927_v5  ;;  %v6562_v28 = vrot.slane %v6561_v11, 1  ;;  %v14933_v16 = vld [vmem:[#allocation45_spill] sm:$0xff]  ;;  %v14935_v25 = vld [vmem:[#allocation46_spill] sm:$0xff] }
 0x33f   : > { %v6578_v49 = vrot.slane %v6577_v38, 2  ;;  %v14239_v12 = vadd.f32 %v6447_v20, %v14928_v19  ;;  %v6504_v34 = vrot.slane %v6503_v13, 1  ;;  %v14241_v35 = vadd.f32 %v6572_v30, %v6571_v47  ;;  %v14941_v30 = vld [vmem:[#allocation14_spill] sm:$0xff]  ;;  %v7054_v27 = vpop.f32.mrf.mxu1 }
 0x340   : > { %v6823_v53 = vrot.slane %v14230_v9, %v14931_v56  ;;  %v14246_v17 = vadd.f32 %v6389_v14, %v14932_v45  ;;  %v14249_v41 = vadd.f32 %v6441_v39, %v14933_v16  ;;  %v14252_v8 = vadd.f32 %v6453_v51, %v14935_v25  ;;  %v6965_v14 = vpop.f32.mrf.mxu0 }
 0x341   : > { %14929 = vst [vmem:[#allocation27_spill] sm:$0xff] %v14239_v12  ;;  %14930 = vst [vmem:[#allocation30_spill] sm:$0xff] %v14241_v35  ;;  %v14254_v55 = vadd.f32 %v6566_v57, %v6565_v32  ;;  %v14257_v42 = vadd.f32 %v6499_v31, %v14938_v43  ;;  %v14259_v21 = vadd.f32 %v6510_v1, %v6509_v3  ;;  %v14942_v57 = vld [vmem:[#allocation11_spill] sm:$0xff] }
 0x342   : > { %14934 = vst [vmem:[#allocation49_spill] sm:$0xff] %v14249_v41  ;;  %14936 = vst [vmem:[#allocation29_spill] sm:$0xff] %v14252_v8  ;;  %vm6852_vm9 = vcmp.eq.s32.totalorder %v9454_v2, %v6823_v53  ;;  %v14263_v47 = vadd.f32 %v6562_v28, %v6561_v11  ;;  %v14265_v58 = vadd.f32 %v6578_v49, %v6577_v38  ;;  %v14943_v38 = vld [vmem:[#allocation12_spill] sm:$0xff] }
 0x343   : > { %14937 = vst [vmem:[#allocation50_spill] sm:$0xff] %v14254_v55  ;;  %14939 = vst [vmem:[#allocation38_spill] sm:$0xff] %v14257_v42  ;;  %v14268_v20 = vsel %vm6852_vm9, 1.0, %v14610_v48  ;;  %v6831_v32 = vrot.slane %v14230_v9, %v14941_v30  ;;  %v14272_v39 = vadd.f32 %v6504_v34, %v6503_v13  ;;  %v6827_v31 = vrot.slane %v14230_v9, %v14942_v57  ;;  %v6967_v34 = vpop.f32.mrf.mxu0 }
 0x344   : > { %14940 = vst [vmem:[#allocation22_spill] sm:$0xff] %v14263_v47  ;;  %v7249_v51 = vmul.f32 %v14268_v20, %v6959_v23  ;;  %v6835_v1 = vrot.slane %v14230_v9, %v14943_v38  ;;  %v9314_v13 = vmov 1966171168   ;;  %v7313_v19 = vmul.f32 %v14268_v20, %v6965_v14 }
 0x345   : > { %vm6854_vm5 = vcmp.eq.s32.totalorder %v9454_v2, %v6831_v32  ;;  %vm6853_vm13 = vcmp.eq.s32.totalorder %v9454_v2, %v6827_v31  ;;  %v7526_v28 = vunpack.c.l.s4 %v9314_v13  ;;  %v7056_v32 = vpop.f32.mrf.mxu1  ;;  %v6971_v12 = vpop.f32.mrf.mxu0 }
 0x346   : > { %v7257_v29 = vrot.slane %v7249_v51, 4  ;;  %v14283_v5 = vsel %vm6854_vm5, 1.0, %v14610_v48  ;;  %v14288_v49 = vsel %vm6853_vm13, 1.0, %v14610_v48  ;;  %vm6855_vm12 = vcmp.eq.s32.totalorder %v9454_v2, %v6835_v1 }
 0x347   : > { %v7251_v23 = vmul.f32 %v14283_v5, %v7048_v26  ;;  %v7250_v53 = vmul.f32 %v14288_v49, %v6961_v7  ;;  %v7527_v45 = vunpack.c.0.s8 %v7526_v28  ;;  %v14294_v16 = vsel %vm6855_vm12, 1.0, %v14610_v48 }
 0x348   : > { %v7258_v56 = vadd.f32 %v7257_v29, %v7249_v51  ;;  %v7252_v43 = vmul.f32 %v14294_v16, %v7050_v18  ;;  %v7321_v30 = vrot.slane %v7313_v19, 4  ;;  %v7315_v26 = vmul.f32 %v14283_v5, %v7054_v27 }
 0x349   : > { %v7269_v25 = vrot.slane %v7251_v23, 4  ;;  %v7263_v31 = vrot.slane %v7250_v53, 4  ;;  %v14299_v38 = vsub.s32 %v7527_v45, %v9454_v2  ;;  %v7314_v14 = vmul.f32 %v14288_v49, %v6967_v34 }
 0x34a   : > { %v7259_v57 = vrot.slane %v7258_v56, 2  ;;  %v7275_v7 = vrot.slane %v7252_v43, 4  ;;  %v7322_v1 = vadd.f32 %v7321_v30, %v7313_v19  ;;  %v7333_v29 = vrot.slane %v7315_v26, 4 }
 0x34b   : > { %v7270_v51 = vadd.f32 %v7269_v25, %v7251_v23  ;;  %v7264_v28 = vadd.f32 %v7263_v31, %v7250_v53  ;;  %v7327_v11 = vrot.slane %v7314_v14, 4  ;;  %v7316_v18 = vmul.f32 %v14294_v16, %v7056_v32 }
 0x34c   : > { %v7260_v13 = vadd.f32 %v7259_v57, %v7258_v56  ;;  %v7276_v6 = vadd.f32 %v7275_v7, %v7252_v43  ;;  %v7323_v27 = vrot.slane %v7322_v1, 2  ;;  %v7334_v47 = vadd.f32 %v7333_v29, %v7315_v26 }
 0x34d   : > { %v7271_v3 = vrot.slane %v7270_v51, 2  ;;  %v7265_v35 = vrot.slane %v7264_v28, 2  ;;  %v7328_v42 = vadd.f32 %v7327_v11, %v7314_v14  ;;  %v7339_v45 = vrot.slane %v7316_v18, 4 }
 0x34e   : > { %v7261_v55 = vrot.slane %v7260_v13, 1  ;;  %v7277_v41 = vrot.slane %v7276_v6, 2  ;;  %v7324_v34 = vadd.f32 %v7323_v27, %v7322_v1  ;;  %v7335_v23 = vrot.slane %v7334_v47, 2 }
 0x34f   : > { %v7272_v8 = vadd.f32 %v7271_v3, %v7270_v51  ;;  %v7266_v19 = vadd.f32 %v7265_v35, %v7264_v28  ;;  %v7329_v30 = vrot.slane %v7328_v42, 2  ;;  %v7340_v56 = vadd.f32 %v7339_v45, %v7316_v18  ;;  %v6973_v45 = vpop.f32.mrf.mxu0 }
 0x350   : > { %v7262_v25 = vadd.f32 %v7261_v55, %v7260_v13  ;;  %v7278_v57 = vadd.f32 %v7277_v41, %v7276_v6  ;;  %v7325_v31 = vrot.slane %v7324_v34, 1  ;;  %v7336_v32 = vadd.f32 %v7335_v23, %v7334_v47  ;;  %v7060_v13 = vpop.f32.mrf.mxu1 }
 0x351   : > { %v7273_v53 = vrot.slane %v7272_v8, 1  ;;  %v7267_v7 = vrot.slane %v7266_v19, 1  ;;  %v7330_v26 = vadd.f32 %v7329_v30, %v7328_v42  ;;  %v7341_v29 = vrot.slane %v7340_v56, 2 }
 0x352   : > { %v7305_v43 = vadd.f32 %v7262_v25, %v14107_v44  ;;  %v7279_v14 = vrot.slane %v7278_v57, 1  ;;  %v7326_v3 = vadd.f32 %v7325_v31, %v7324_v34  ;;  %v7337_v51 = vrot.slane %v7336_v32, 1 }
 0x353   : > { %v7274_v11 = vadd.f32 %v7273_v53, %v7272_v8  ;;  %v7268_v27 = vadd.f32 %v7267_v7, %v7266_v19  ;;  %v7331_v55 = vrot.slane %v7330_v26, 1  ;;  %v7342_v35 = vadd.f32 %v7341_v29, %v7340_v56 }
 0x354   : > { %v7505_v1 = vmul.f32 0.5, %v7305_v43  ;;  %v7280_v41 = vadd.f32 %v7279_v14, %v7278_v57  ;;  %v7369_v6 = vadd.f32 %v7326_v3, %v14116_v50  ;;  %v7338_v47 = vadd.f32 %v7337_v51, %v7336_v32  ;;  %v7062_v50 = vpop.f32.mrf.mxu1 }
 0x355   : > { %v7307_v28 = vadd.f32 %v7274_v11, %v14119_v0  ;;  %v7306_v44 = vadd.f32 %v7268_v27, %v14126_v36  ;;  %v7332_v42 = vadd.f32 %v7331_v55, %v7330_v26  ;;  %v7343_v18 = vrot.slane %v7342_v35, 1 }
 0x356   : > { %v7377_v8 = vmul.f32 %v14268_v20, %v6971_v12  ;;  %v7308_v23 = vadd.f32 %v7280_v41, %v14134_v24  ;;  %v7572_v25 = vmul.f32 0.5, %v7369_v6  ;;  %v7371_v19 = vadd.f32 %v7338_v47, %v14137_v62 }
 0x357   : > { %v7507_v34 = vmul.f32 0.5, %v7307_v28  ;;  %v7506_v30 = vmul.f32 0.5, %v7306_v44  ;;  %v7370_v0 = vadd.f32 %v7332_v42, %v14140_v22  ;;  %v7344_v56 = vadd.f32 %v7343_v18, %v7342_v35  ;;  %v6977_v22 = vpop.f32.mrf.mxu0 }
 0x358   : > { %v7385_v53 = vrot.slane %v7377_v8, 4  ;;  %v7508_v57 = vmul.f32 0.5, %v7308_v23  ;;  %v7574_v31 = vmul.f32 0.5, %v7371_v19  ;;  %v7379_v36 = vmul.f32 %v14283_v5, %v7060_v13 }
 0x359   : > { %v7378_v32 = vmul.f32 %v14288_v49, %v6973_v45  ;;  %v7521_v12 = vcombine.low %v7505_v1, %v7506_v30  ;;  %v7573_v43 = vmul.f32 0.5, %v7370_v0  ;;  %v7372_v7 = vadd.f32 %v7344_v56, %v14189_v61  ;;  %v7066_v61 = vpop.f32.mrf.mxu1  ;;  %v6979_v19 = vpop.f32.mrf.mxu0  ;;  %v14944_v30 = vld [vmem:[#allocation35_spill] sm:$0xff] }
 0x35a   : > { %v7386_v24 = vadd.f32 %v7385_v53, %v7377_v8  ;;  %v7522_v26 = vcombine.low %v7507_v34, %v7508_v57  ;;  %v7397_v29 = vrot.slane %v7379_v36, 4  ;;  %v7380_v11 = vmul.f32 %v14294_v16, %v7062_v50 }
 0x35b   : > { %v7391_v62 = vrot.slane %v7378_v32, 4  ;;  %v14316_v14 = vrot.slane %v7521_v12, %v14299_v38  ;;  %v7588_v3 = vcombine.low %v7572_v25, %v7573_v43  ;;  %v7575_v51 = vmul.f32 0.5, %v7372_v7 }
 0x35c   : > { %v7387_v27 = vrot.slane %v7386_v24, 2  ;;  %v14319_v55 = vrot.slane %v7522_v26, %v14299_v38  ;;  %v7398_v1 = vadd.f32 %v7397_v29, %v7379_v36  ;;  %v7403_v13 = vrot.slane %v7380_v11, 4 }
 0x35d   : > { %v7392_v35 = vadd.f32 %v7391_v62, %v7378_v32  ;;  %v14322_v28 = vrot.slane %v7588_v3, %v14299_v38  ;;  %v7589_v41 = vcombine.low %v7574_v31, %v7575_v51  ;;  %v7441_v47 = vmul.f32 %v14268_v20, %v6977_v22 }
 0x35e   : > { %v7388_v6 = vadd.f32 %v7387_v27, %v7386_v24  ;;  %v7553_v44 = vcombine.low %v14316_v14, %v14319_v55  ;;  %v7399_v42 = vrot.slane %v7398_v1, 2  ;;  %v7404_v8 = vadd.f32 %v7403_v13, %v7380_v11 }
 0x35f   : > { %v7393_v18 = vrot.slane %v7392_v35, 2  ;;  %v14328_v45 = vrot.slane %v7589_v41, %v14299_v38  ;;  %v7449_v23 = vrot.slane %v7441_v47, 4  ;;  %v7443_v25 = vmul.f32 %v14283_v5, %v7066_v61  ;;  %v7068_v5 = vpop.f32.mrf.mxu1 }
 0x360   : > { %v7389_v34 = vrot.slane %v7388_v6, 1  ;;  %v14333_v0 = vadd.f32 %v14259_v21, %v14944_v30  ;;  %v7400_v56 = vadd.f32 %v7399_v42, %v7398_v1  ;;  %v7405_v53 = vrot.slane %v7404_v8, 2 }
 0x361   : > { %v7394_v20 = vadd.f32 %v7393_v18, %v7392_v35  ;;  %v7620_v50 = vcombine.low %v14322_v28, %v14328_v45  ;;  %v7450_v31 = vadd.f32 %v7449_v23, %v7441_v47  ;;  %v7461_v36 = vrot.slane %v7443_v25, 4  ;;  %v14957_v28 = vld [vmem:[#allocation30_spill] sm:$0xff] }
 0x362   : > { %v7390_v57 = vadd.f32 %v7389_v34, %v7388_v6  ;;  %v7401_v32 = vrot.slane %v7400_v56, 1  ;;  %v7406_v43 = vadd.f32 %v7405_v53, %v7404_v8  ;;  %v7442_v7 = vmul.f32 %v14288_v49, %v6979_v19  ;;  %v14946_v53 = vld [vmem:[#allocation41_spill] sm:$0xff] }
 0x363   : > { %v7395_v12 = vrot.slane %v7394_v20, 1  ;;  %v14945_v24 = vrot.slane %v14227_v10, 1  ;;  %v7451_v29 = vrot.slane %v7450_v31, 2  ;;  %v7462_v62 = vadd.f32 %v7461_v36, %v7443_v25  ;;  %v7137_v25 = vpop.f32.mrf.mxu0 }
 0x364   : > { %v7433_v26 = vadd.f32 %v7390_v57, %v14195_v4  ;;  %v7402_v11 = vadd.f32 %v7401_v32, %v7400_v56  ;;  %v7407_v3 = vrot.slane %v7406_v43, 1  ;;  %v7455_v51 = vrot.slane %v7442_v7, 4 }
 0x365   : > { %v14341_v21 = vadd.f32 %v14945_v24, %v14227_v10  ;;  %v7396_v22 = vadd.f32 %v7395_v12, %v7394_v20  ;;  %v7452_v1 = vadd.f32 %v7451_v29, %v7450_v31  ;;  %v7463_v35 = vrot.slane %v7462_v62, 2  ;;  %v7139_v24 = vpop.f32.mrf.mxu0  ;;  %v14948_v29 = vld [vmem:[#allocation31_spill] sm:$0xff] }
 0x366   : > { %v7640_v27 = vmul.f32 0.5, %v7433_v26  ;;  %v7444_v13 = vmul.f32 %v14294_v16, %v7068_v5  ;;  %v7435_v49 = vadd.f32 %v7402_v11, %v14200_v37  ;;  %v7408_v41 = vadd.f32 %v7407_v3, %v7406_v43 }
 0x367   : > { %v7434_v61 = vadd.f32 %v7396_v22, %v14203_v40  ;;  %v7456_v10 = vadd.f32 %v7455_v51, %v7442_v7  ;;  %v7453_v6 = vrot.slane %v7452_v1, 1  ;;  %v7464_v47 = vadd.f32 %v7463_v35, %v7462_v62  ;;  %v14947_v7 = vld [vmem:[#allocation18_spill] sm:$0xff] }
 0x368   : > { %v7467_v4 = vrot.slane %v7444_v13, 4  ;;  %v6839_v42 = vrot.slane %v14230_v9, %v14913_v59  ;;  %v7642_v18 = vmul.f32 0.5, %v7435_v49  ;;  %v7436_v34 = vadd.f32 %v7408_v41, %v14206_v63  ;;  %v7226_v63 = vpop.f32.mrf.mxu1 }
 0x369   : > { %v7641_v8 = vmul.f32 0.5, %v7434_v61  ;;  %v7457_v23 = vrot.slane %v7456_v10, 2  ;;  %v7454_v19 = vadd.f32 %v7453_v6, %v7452_v1  ;;  %v7465_v16 = vrot.slane %v7464_v47, 1 }
 0x36a   : > { %v7468_v30 = vadd.f32 %v7467_v4, %v7444_v13  ;;  %vm6856_vm11 = vcmp.eq.s32.totalorder %v9454_v2, %v6839_v42  ;;  %v7643_v40 = vmul.f32 0.5, %v7436_v34  ;;  %v6847_v5 = vrot.slane %v14230_v9, %v14947_v7  ;;  %v7228_v41 = vpop.f32.mrf.mxu1  ;;  %v7143_v4 = vpop.f32.mrf.mxu0  ;;  %v14950_v34 = vld [vmem:[#allocation16_spill] sm:$0xff] }
 0x36b   : > { %v7656_v37 = vcombine.low %v7640_v27, %v7641_v8  ;;  %v7458_v56 = vadd.f32 %v7457_v23, %v7456_v10  ;;  %v14352_v20 = vsel %vm6856_vm11, 1.0, %v14610_v48  ;;  %v7497_v57 = vadd.f32 %v7454_v19, %v14946_v53  ;;  %v14949_v27 = vld [vmem:[#allocation15_spill] sm:$0xff] }
 0x36c   : > { %v7466_v59 = vadd.f32 %v7465_v16, %v7464_v47  ;;  %v7469_v31 = vrot.slane %v7468_v30, 2  ;;  %v7253_v36 = vmul.f32 %v14352_v20, %v7137_v25  ;;  %v7657_v12 = vcombine.low %v7642_v18, %v7643_v40 }
 0x36d   : > { %v14357_v32 = vrot.slane %v7656_v37, %v14299_v38  ;;  %v7459_v43 = vrot.slane %v7458_v56, 1  ;;  %v6580_v26 = vrot.slane %v14265_v58, 1  ;;  %vm6858_vm6 = vcmp.eq.s32.totalorder %v9454_v2, %v6847_v5 }
 0x36e   : > { %v7499_v62 = vadd.f32 %v7466_v59, %v14948_v29  ;;  %v7470_v11 = vadd.f32 %v7469_v31, %v7468_v30  ;;  %v7281_v22 = vrot.slane %v7253_v36, 4  ;;  %v14364_v3 = vrot.slane %v7657_v12, %v14299_v38 }
 0x36f   : > { %v7460_v51 = vadd.f32 %v7459_v43, %v7458_v56  ;;  %v6843_v1 = vrot.slane %v14230_v9, %v14949_v27  ;;  %v7708_v35 = vmul.f32 0.5, %v7497_v57  ;;  %v14370_v61 = vsel %vm6858_vm6, 1.0, %v14610_v48  ;;  %v7232_v56 = vpop.f32.mrf.mxu1  ;;  %v7145_v43 = vpop.f32.mrf.mxu0 }
 0x370   : > { %v7471_v13 = vrot.slane %v7470_v11, 1  ;;  %v7282_v49 = vadd.f32 %v7281_v22, %v7253_v36  ;;  %v7688_v10 = vcombine.low %v14357_v32, %v14364_v3  ;;  %v7255_v47 = vmul.f32 %v14370_v61, %v7226_v63 }
 0x371   : > { %v7498_v6 = vadd.f32 %v7460_v51, %v14209_v46  ;;  %vm6857_vm4 = vcmp.eq.s32.totalorder %v9454_v2, %v6843_v1  ;;  %v6851_v23 = vrot.slane %v14230_v9, %v14950_v34  ;;  %v7710_v25 = vmul.f32 0.5, %v7499_v62  ;;  %v14951_v1 = vld [vmem:[#allocation26_spill] sm:$0xff] }
 0x372   : > { %v7472_v42 = vadd.f32 %v7471_v13, %v7470_v11  ;;  %v7283_v18 = vrot.slane %v7282_v49, 2  ;;  %v14378_v8 = vsel %vm6857_vm4, 1.0, %v14610_v48  ;;  %v7293_v16 = vrot.slane %v7255_v47, 4 }
 0x373   : > { %v7709_v19 = vmul.f32 0.5, %v7498_v6  ;;  %v7254_v30 = vmul.f32 %v14378_v8, %v7139_v24  ;;  %vm6859_vm14 = vcmp.eq.s32.totalorder %v9454_v2, %v6851_v23  ;;  %v7317_v40 = vmul.f32 %v14352_v20, %v7143_v4 }
 0x374   : > { %v7500_v46 = vadd.f32 %v7472_v42, %v14213_v15  ;;  %v7284_v37 = vadd.f32 %v7283_v18, %v7282_v49  ;;  %v7294_v57 = vadd.f32 %v7293_v16, %v7255_v47  ;;  %v14387_v31 = vsel %vm6859_vm14, 1.0, %v14610_v48  ;;  %v7234_v18 = vpop.f32.mrf.mxu1 }
 0x375   : > { %v7724_v53 = vcombine.low %v7708_v35, %v7709_v19  ;;  %v7287_v59 = vrot.slane %v7254_v30, 4  ;;  %v7256_v63 = vmul.f32 %v14387_v31, %v7228_v41  ;;  %v7345_v12 = vrot.slane %v7317_v40, 4 }
 0x376   : > { %v7711_v9 = vmul.f32 0.5, %v7500_v46  ;;  %v7285_v36 = vrot.slane %v7284_v37, 1  ;;  %v7295_v7 = vrot.slane %v7294_v57, 2  ;;  %v7319_v5 = vmul.f32 %v14370_v61, %v7232_v56 }
 0x377   : > { %v14391_v15 = vrot.slane %v7724_v53, %v14299_v38  ;;  %v7288_v2 = vadd.f32 %v7287_v59, %v7254_v30  ;;  %v7299_v62 = vrot.slane %v7256_v63, 4  ;;  %v7346_v11 = vadd.f32 %v7345_v12, %v7317_v40  ;;  %v14952_v40 = vld [vmem:[#allocation28_spill] sm:$0xff] }
 0x378   : > { %v7725_v24 = vcombine.low %v7710_v25, %v7711_v9  ;;  %v7286_v29 = vadd.f32 %v7285_v36, %v7284_v37  ;;  %v7296_v22 = vadd.f32 %v7295_v7, %v7294_v57  ;;  %v7357_v51 = vrot.slane %v7319_v5, 4  ;;  %v7149_v37 = vpop.f32.mrf.mxu0 }
 0x379   : > { %v7289_v48 = vrot.slane %v7288_v2, 2  ;;  %v7318_v27 = vmul.f32 %v14378_v8, %v7145_v43  ;;  %v14397_v35 = vadd.f32 %v14272_v39, %v14951_v1  ;;  %v7300_v49 = vadd.f32 %v7299_v62, %v7256_v63 }
 0x37a   : > { %v14400_v13 = vrot.slane %v7725_v24, %v14299_v38  ;;  %v7347_v41 = vrot.slane %v7346_v11, 2  ;;  %v7297_v6 = vrot.slane %v7296_v22, 1  ;;  %v7358_v4 = vadd.f32 %v7357_v51, %v7319_v5  ;;  %v7238_v5 = vpop.f32.mrf.mxu1 }
 0x37b   : > { %v7290_v47 = vadd.f32 %v7289_v48, %v7288_v2  ;;  %v7351_v42 = vrot.slane %v7318_v27, 4  ;;  %v7309_v23 = vadd.f32 %v7286_v29, %v14216_v52  ;;  %v7301_v25 = vrot.slane %v7300_v49, 2 }
 0x37c   : > { %v7756_v34 = vcombine.low %v14391_v15, %v14400_v13  ;;  %v7348_v19 = vadd.f32 %v7347_v41, %v7346_v11  ;;  %v7298_v16 = vadd.f32 %v7297_v6, %v7296_v22  ;;  %v7359_v30 = vrot.slane %v7358_v4, 2 }
 0x37d   : > { %v7291_v39 = vrot.slane %v7290_v47, 1  ;;  %v7352_v46 = vadd.f32 %v7351_v42, %v7318_v27  ;;  %v14407_v56 = vadd.f32 %v14341_v21, %v14952_v40  ;;  %v7302_v53 = vadd.f32 %v7301_v25, %v7300_v49  ;;  %v14953_v40 = vld [vmem:[#allocation27_spill] sm:$0xff] }
 0x37e   : > { %v7349_v57 = vrot.slane %v7348_v19, 1  ;;  %v7320_v59 = vmul.f32 %v14387_v31, %v7234_v18  ;;  %v7311_v9 = vadd.f32 %v7298_v16, %v14233_v54  ;;  %v7360_v63 = vadd.f32 %v7359_v30, %v7358_v4  ;;  %v7151_v54 = vpop.f32.mrf.mxu0  ;;  %v7240_v30 = vpop.f32.mrf.mxu1 }
 0x37f   : > { %v7292_v36 = vadd.f32 %v7291_v39, %v7290_v47  ;;  %v7353_v52 = vrot.slane %v7352_v46, 2  ;;  %v7303_v12 = vrot.slane %v7302_v53, 1  ;;  %v7381_v2 = vmul.f32 %v14352_v20, %v7149_v37 }
 0x380   : > { %v7350_v43 = vadd.f32 %v7349_v57, %v7348_v19  ;;  %v7363_v7 = vrot.slane %v7320_v59, 4  ;;  %v7509_v24 = vmul.f32 0.5, %v7309_v23  ;;  %v7361_v21 = vrot.slane %v7360_v63, 1  ;;  %v14954_v57 = vld [vmem:[#allocation49_spill] sm:$0xff] }
 0x381   : > { %v7310_v29 = vadd.f32 %v7292_v36, %v14236_v60  ;;  %v7354_v62 = vadd.f32 %v7353_v52, %v7352_v46  ;;  %v7304_v11 = vadd.f32 %v7303_v12, %v7302_v53  ;;  %v7409_v51 = vrot.slane %v7381_v2, 4  ;;  %v7155_v46 = vpop.f32.mrf.mxu0 }
 0x382   : > { %v7373_v22 = vadd.f32 %v7350_v43, %v14225_v33  ;;  %v7364_v48 = vadd.f32 %v7363_v7, %v7320_v59  ;;  %v7362_v1 = vadd.f32 %v7361_v21, %v7360_v63  ;;  %v7383_v41 = vmul.f32 %v14370_v61, %v7238_v5 }
 0x383   : > { %v7510_v27 = vmul.f32 0.5, %v7310_v29  ;;  %v7355_v49 = vrot.slane %v7354_v62, 1  ;;  %v7511_v6 = vmul.f32 0.5, %v7311_v9  ;;  %v7312_v47 = vadd.f32 %v7304_v11, %v14246_v17 }
 0x384   : > { %v7365_v4 = vrot.slane %v7364_v48, 2  ;;  %v7410_v42 = vadd.f32 %v7409_v51, %v7381_v2  ;;  %v7576_v60 = vmul.f32 0.5, %v7373_v22  ;;  %v7421_v25 = vrot.slane %v7383_v41, 4  ;;  %v7244_v51 = vpop.f32.mrf.mxu1 }
 0x385   : > { %v7523_v18 = vcombine.low %v7509_v24, %v7510_v27  ;;  %v7356_v23 = vadd.f32 %v7355_v49, %v7354_v62  ;;  %v7512_v19 = vmul.f32 0.5, %v7312_v47  ;;  %v7382_v39 = vmul.f32 %v14378_v8, %v7151_v54  ;;  %v14955_v27 = vld [vmem:[#allocation29_spill] sm:$0xff] }
 0x386   : > { %v7366_v16 = vadd.f32 %v7365_v4, %v7364_v48  ;;  %v7411_v33 = vrot.slane %v7410_v42, 2  ;;  %v7375_v53 = vadd.f32 %v7362_v1, %v14953_v40  ;;  %v7422_v17 = vadd.f32 %v7421_v25, %v7383_v41  ;;  %v14956_v25 = vld [vmem:[#allocation38_spill] sm:$0xff] }
 0x387   : > { %v7545_v37 = vrot.slane %v7523_v18, %v14299_v38  ;;  %v7374_v59 = vadd.f32 %v7356_v23, %v14954_v57  ;;  %v7524_v9 = vcombine.low %v7511_v6, %v7512_v19  ;;  %v7415_v52 = vrot.slane %v7382_v39, 4 }
 0x388   : > { %v7367_v36 = vrot.slane %v7366_v16, 1  ;;  %v7412_v63 = vadd.f32 %v7411_v33, %v7410_v42  ;;  %v7423_v43 = vrot.slane %v7422_v17, 2  ;;  %v7384_v7 = vmul.f32 %v14387_v31, %v7240_v30  ;;  %v7157_v30 = vpop.f32.mrf.mxu0 }
 0x389   : > { %v7577_v12 = vmul.f32 0.5, %v7374_v59  ;;  %v7445_v2 = vmul.f32 %v14352_v20, %v7155_v46  ;;  %v7552_v5 = vrot.slane %v7524_v9, %v14299_v38  ;;  %v7416_v21 = vadd.f32 %v7415_v52, %v7382_v39  ;;  %v7246_v46 = vpop.f32.mrf.mxu1 }
 0x38a   : > { %v7368_v24 = vadd.f32 %v7367_v36, %v7366_v16  ;;  %v7413_v29 = vrot.slane %v7412_v63, 1  ;;  %v7424_v11 = vadd.f32 %v7423_v43, %v7422_v17  ;;  %v7427_v22 = vrot.slane %v7384_v7, 4 }
 0x38b   : > { %v7590_v62 = vcombine.low %v7576_v60, %v7577_v12  ;;  %v7473_v48 = vrot.slane %v7445_v2, 4  ;;  %v7554_v54 = vcombine.low %v7545_v37, %v7552_v5  ;;  %v7417_v41 = vrot.slane %v7416_v21, 2 }
 0x38c   : > { %v7376_v1 = vadd.f32 %v7368_v24, %v14955_v27  ;;  %v7414_v49 = vadd.f32 %v7413_v29, %v7412_v63  ;;  %v7561_v20 = vrot.slane %v7553_v44, %v14299_v38  ;;  %v7425_v6 = vrot.slane %v7424_v11, 1 }
 0x38d   : > { %v7428_v47 = vadd.f32 %v7427_v22, %v7384_v7  ;;  %v7474_v4 = vadd.f32 %v7473_v48, %v7445_v2  ;;  %v7568_v42 = vrot.slane %v7554_v54, %v14299_v38  ;;  %v7578_v18 = vmul.f32 0.5, %v7375_v53 }
 0x38e   : > { %v7579_v60 = vmul.f32 0.5, %v7376_v1  ;;  %v7418_v23 = vadd.f32 %v7417_v41, %v7416_v21  ;;  %v7437_v19 = vadd.f32 %v7414_v49, %v14956_v25  ;;  %v7447_v39 = vmul.f32 %v14370_v61, %v7244_v51  ;;  %v14959_v51 = vld [vmem:[#allocation50_spill] sm:$0xff] }
 0x38f   : > { %v7429_v16 = vrot.slane %v7428_v47, 2  ;;  %v7475_v33 = vrot.slane %v7474_v4, 2  ;;  %v7569_v37 = vcombine.low %v7561_v20, %v7568_v42  ;;  %v7612_v14 = vrot.slane %v7590_v62, %v14299_v38 }
 0x390   : > { %v7591_v55 = vcombine.low %v7578_v18, %v7579_v60  ;;  %v7419_v44 = vrot.slane %v7418_v23, 1  ;;  %v7426_v40 = vadd.f32 %v7425_v6, %v7424_v11  ;;  %v7485_v17 = vrot.slane %v7447_v39, 4  ;;  %v14961_v18 = vld [vmem:[#allocation21_spill] sm:$0xff]  ;;  %v14962_v60 = vld [vmem:[#allocation32_spill] sm:$0xff] }
 0x391   : > { %v7430_v57 = vadd.f32 %v7429_v16, %v7428_v47  ;;  %v7476_v59 = vadd.f32 %v7475_v33, %v7474_v4  ;;  %v7446_v36 = vmul.f32 %v14378_v8, %v7157_v30  ;;  %v7448_v63 = vmul.f32 %v14387_v31, %v7246_v46  ;;  %7571 = vst [vmem:[%s14436_s17] ss:$4 sm:$0xff] %v7569_v37  ;;  %v14964_v33 = vld [vmem:[#allocation23_spill] sm:$0xff] }
 0x392   : > { %v7619_v53 = vrot.slane %v7591_v55, %v14299_v38  ;;  %v7420_v9 = vadd.f32 %v7419_v44, %v7418_v23  ;;  %v7628_v61 = vrot.slane %v7620_v50, %v14299_v38  ;;  %v7644_v52 = vmul.f32 0.5, %v7437_v19  ;;  %v14966_v55 = vld [vmem:[#allocation22_spill] sm:$0xff] }
 0x393   : > { %v7431_v12 = vrot.slane %v7430_v57, 1  ;;  %v7486_v43 = vadd.f32 %v7485_v17, %v7447_v39  ;;  %v7479_v5 = vrot.slane %v7446_v36, 4  ;;  %v7491_v24 = vrot.slane %v7448_v63, 4 }
 0x394   : > { %v7621_v7 = vcombine.low %v7612_v14, %v7619_v53  ;;  %v7438_v2 = vadd.f32 %v7420_v9, %v14397_v35  ;;  %v7439_v8 = vadd.f32 %v7426_v40, %v14333_v0  ;;  %v7477_v29 = vrot.slane %v7476_v59, 1  ;;  %v14965_v14 = vld [vmem:[#allocation40_spill] sm:$0xff] }
 0x395   : > { %v7432_v31 = vadd.f32 %v7431_v12, %v7430_v57  ;;  %v7487_v21 = vrot.slane %v7486_v43, 2  ;;  %v7480_v22 = vadd.f32 %v7479_v5, %v7446_v36  ;;  %v7492_v48 = vadd.f32 %v7491_v24, %v7448_v63 }
 0x396   : > { %v7635_v62 = vrot.slane %v7621_v7, %v14299_v38  ;;  %v7645_v11 = vmul.f32 0.5, %v7438_v2  ;;  %v14958_v45 = vrot.slane %v14957_v28, 1  ;;  %v14960_v54 = vrot.slane %v14959_v51, 1 }
 0x397   : > { %v7440_v27 = vadd.f32 %v7432_v31, %v14407_v56  ;;  %v7488_v0 = vadd.f32 %v7487_v21, %v7486_v43  ;;  %v7481_v41 = vrot.slane %v7480_v22, 2  ;;  %v7493_v20 = vrot.slane %v7492_v48, 2  ;;  %v14963_v56 = vld [vmem:[#allocation33_spill] sm:$0xff] }
 0x398   : > { %v6575_v50 = vadd.f32 %v14958_v45, %v14957_v28  ;;  %v6569_v35 = vadd.f32 %v14960_v54, %v14959_v51  ;;  %v7636_v1 = vcombine.low %v7628_v61, %v7635_v62  ;;  %v7658_v49 = vcombine.low %v7644_v52, %v7645_v11 }
 0x399   : > { %v6581_v6 = vadd.f32 %v6580_v26, %v14265_v58  ;;  %v7646_v47 = vmul.f32 0.5, %v7439_v8  ;;  %v7647_v4 = vmul.f32 0.5, %v7440_v27  ;;  %v7489_v42 = vrot.slane %v7488_v0, 1  ;;  %v14967_v26 = vld [vmem:[#allocation36_spill] sm:$0xff] }
 0x39a   : > { %v5672_v23 = vadd.f32 %v14962_v60, %v14961_v18  ;;  %v7478_v25 = vadd.f32 %v7477_v29, %v7476_v59  ;;  %v7482_v19 = vadd.f32 %v7481_v41, %v7480_v22  ;;  %v7494_v16 = vadd.f32 %v7493_v20, %v7492_v48  ;;  %9112 = vst [vmem:[%s14436_s17 + $0x1] ss:$4 sm:$0xff] %v7636_v1 }
 0x39b   : > { %v5674_v39 = vadd.f32 %v14964_v33, %v14963_v56  ;;  %v7680_v30 = vrot.slane %v7658_v49, %v14299_v38  ;;  %v7659_v46 = vcombine.low %v7646_v47, %v7647_v4  ;;  %v7490_v37 = vadd.f32 %v7489_v42, %v7488_v0 }
 0x39c   : > { %v6586_v58 = vadd.f32 %v14966_v55, %v14965_v14  ;;  %v6588_v44 = vadd.f32 %v6575_v50, %v14967_v26  ;;  %v7483_v40 = vrot.slane %v7482_v19, 1  ;;  %v7495_v57 = vrot.slane %v7494_v16, 1 }
 0x39d   : > { %v6587_v17 = vadd.f32 %v6569_v35, %v5672_v23  ;;  %v6589_v53 = vadd.f32 %v6581_v6, %v5674_v39  ;;  %v7687_v59 = vrot.slane %v7659_v46, %v14299_v38  ;;  %v7696_v7 = vrot.slane %v7688_v10, %v14299_v38 }
 0x39e   : > { %v7501_v9 = vadd.f32 %v7478_v25, %v6586_v58  ;;  %v7503_v36 = vadd.f32 %v7490_v37, %v6588_v44  ;;  %v7484_v63 = vadd.f32 %v7483_v40, %v7482_v19  ;;  %v7496_v61 = vadd.f32 %v7495_v57, %v7494_v16 }
 0x39f   : > { %v7689_v52 = vcombine.low %v7680_v30, %v7687_v59  ;;  %v7764_v32 = vrot.slane %v7756_v34, %v14299_v38 }
 0x3a0   : > { %v7502_v12 = vadd.f32 %v7484_v63, %v6587_v17  ;;  %v7504_v43 = vadd.f32 %v7496_v61, %v6589_v53  ;;  %v7712_v5 = vmul.f32 0.5, %v7501_v9  ;;  %v7714_v24 = vmul.f32 0.5, %v7503_v36 }
 0x3a1   : > { %v7703_v2 = vrot.slane %v7689_v52, %v14299_v38 }
 0x3a2   : > { %v7713_v8 = vmul.f32 0.5, %v7502_v12  ;;  %v7715_v31 = vmul.f32 0.5, %v7504_v43 }
 0x3a3   : > { %v7704_v29 = vcombine.low %v7696_v7, %v7703_v2 }
 0x3a4   : > { %v7726_v21 = vcombine.low %v7712_v5, %v7713_v8  ;;  %v7727_v62 = vcombine.low %v7714_v24, %v7715_v31 }
 0x3a5   : > { %9113 = vst [vmem:[%s14436_s17 + $0x2] ss:$4 sm:$0xff] %v7704_v29 }
 0x3a6   : > { %v7748_v11 = vrot.slane %v7726_v21, %v14299_v38  ;;  %v7755_v22 = vrot.slane %v7727_v62, %v14299_v38 }
 0x3a8   : > { %v7757_v48 = vcombine.low %v7748_v11, %v7755_v22 }
 0x3aa   : > { %v7771_v3 = vrot.slane %v7757_v48, %v14299_v38 }
 0x3ac   : > { %v7772_v10 = vcombine.low %v7764_v32, %v7771_v3 }
 0x3ae   : > { %9114 = vst [vmem:[%s14436_s17 + $0x3] ss:$4 sm:$0xff] %v7772_v10 }
 0x3af   : > { %9251 = shalt.err (!%p9248_p0)
}
 0x3b0   : > { %s9252_s28 = scalar_lea.hbm %s7789_s23, 512  ;;  %s9256_s5 = scalar_lea.hbm %s14518_s2, 1024 }
 0x3b1   : > { %p9253_p5 = scmp.ne.s32.totalorder %s7789_s23, %s9252_s28  ;;  %p9257_p1 = scmp.lt.s32.totalorder %s7789_s23, %s14518_s2 }
 0x3b2   : > { %p9258_p4 = scmp.lt.s32.totalorder %s9256_s5, %s9252_s28 }
 0x3b3   : > { %p9254_p9 = pnand %p9253_p5, %p14968_p3 }
 0x3b4   : > { %p9259_p6 = por %p9258_p4, %p9257_p1 }
 0x3b5   : > { %p9255_p12 = pneg %p9254_p9 }
 0x3b7   : > { %p9260_p8 = pnand %p9259_p6, %p9255_p12 }
 0x3b9   : > { %9263 = shalt.err (!%p9260_p8)
}
 0x3ba   : > { %9128 = dma.vmem_to_hbm [thread:$0]  (%p14968_p3), %s7792_s18, 512, %s7789_s23, %s7777_s24  }
 0x3bb PF: > { %s7803_s14 = sand.u32 1, %s9294_s9   ;;  %p14969_p11 = scmp.ne.s32.totalorder %s14573_s16, 0 }
 0x3bc   : > { %p14970_p7 = scmp.ge.s32.totalorder %s9306_s12, 2  ;;  %s7804_s22 = scalar_lea.sflag [#allocation4], %s7803_s14 }
 0x3be   : > { %p9139_p10 = pnand %p14970_p7, %p14969_p11 }
 0x3c0   : > { %p9140_p2 = pneg %p9139_p10 }
 0x3c2   : > { %9289 = dma.done.wait (%p9140_p2), %s7804_s22, 512  }
 0x3c3   : > { %9291 = vsyncadd (%p9140_p2), %s7804_s22, 4294966784  ;;  %p16_p13 = scmp.ge.s32.totalorder %s9385_s21, 4   ;;  %s14971_s9 = smov %s9298_s10 }
 0x3c4   : > { %s14972_s10 = smov %s9302_s11  ;;  %s14973_s11 = smov %s9402_s29 }
 0x3c5   : > { %s14974_s12 = smov %s9385_s21  ;;  %18 = sbr.rel (!%p16_p13) target bundleno = 6 (0x6), region = 94 }
 0x3ca   :  { %7809 = vsyncpa [#allocation3], 1 }
 0x3cb   :  { %7811 = vsyncpa [#allocation3 + $0x1], 1 }
 0x3cc   :  { %7812 = vsyncpa [#allocation6], 1 }
 0x3cd   :  { %7813 = vsyncpa [#allocation4], 1 }
 0x3ce   :  { %7815 = vsyncpa [#allocation4 + $0x1], 1 }

</bundles_post_ra>
